<compile_context>
chip_gen: v7x
topology: tpu7x:2x2x1
jax: 0.10.0
libtpu: 0.0.40
codegen_flags: <defaults>
</compile_context>

<pallas_src>
import functools

import numpy as np
import jax
import jax.numpy as jnp
from jax.experimental import pallas as pl
from jax.experimental.pallas import tpu as pltpu

LN_EPS = 1e-5
MASK_VALUE = -1e30          # finite: avoids exp(-inf - -inf) = NaN on fully masked rows

_SINGLE_BUFFER_WEIGHTS = None   # lazily decided: is pl.Buffered(1) supported?


# ----------------------------------------------------------------------------
# Shared helpers (pure jnp: usable both inside the kernel and in the reference)
# ----------------------------------------------------------------------------
def _layer_norm(x, gamma, beta):
    # one-pass variance: E[x^2] - mu^2 (one cross-lane reduction less than 2-pass)
    mu = jnp.mean(x, axis=-1, keepdims=True)
    ms = jnp.mean(x * x, axis=-1, keepdims=True)
    var = ms - mu * mu
    return (x - mu) * jax.lax.rsqrt(var + LN_EPS) * gamma + beta


# ----------------------------------------------------------------------------
# Fused decoder-layer Pallas kernel
# ----------------------------------------------------------------------------
def _attention_block(x_q, kv_b, masked, wqkv_ref, bqkv_ref, wo_ref, bo_ref,
                     gamma_ref, beta_ref, npm, *, n_head, d_head):
    """Post-LN multi-head attention sub-block, fully in VMEM / vregs.

      x_q   : (TQ, D) f32       kv_b : (Lk, D) bf16
      masked: (TQ, Lk) bool     npm  : (TQ, 1) f32
      wqkv_ref: (3, D, Dp) bf16 (1/sqrt(d_head) pre-folded into wq)
      bqkv_ref: (3, 1, Dp) f32  wo_ref: (Dp, D) bf16
    Returns LayerNorm(x_q + attention_output) * npm   (f32, shape (TQ, D)).
    """
    xq_b = x_q.astype(jnp.bfloat16)

    # Full-width projections: MXU N-dim = Dp (lane-dense), not d_head.
    q = (jnp.dot(xq_b, wqkv_ref[0], preferred_element_type=jnp.float32)
         + bqkv_ref[0]).astype(jnp.bfloat16)
    k = (jnp.dot(kv_b, wqkv_ref[1], preferred_element_type=jnp.float32)
         + bqkv_ref[1]).astype(jnp.bfloat16)
    v = (jnp.dot(kv_b, wqkv_ref[2], preferred_element_type=jnp.float32)
         + bqkv_ref[2]).astype(jnp.bfloat16)

    # Per-head scores / softmax / PV.  n_head is small + static -> unrolled loop.
    # TODO(synk): flash-style KV tiling here for long Lk.
    outs = []
    for h in range(n_head):
        sl = slice(h * d_head, (h + 1) * d_head)
        s = jax.lax.dot_general(                      # (TQ, Lk) "nt" matmul, no .T copy
            q[:, sl], k[:, sl],
            dimension_numbers=(((1,), (1,)), ((), ())),
            preferred_element_type=jnp.float32)
        s = jnp.where(masked, MASK_VALUE, s)
        m = jnp.max(s, axis=-1, keepdims=True)
        e = jnp.exp(s - m)
        p = e * pl.reciprocal(jnp.sum(e, axis=-1, keepdims=True), approx=True)
        outs.append(jnp.dot(p.astype(jnp.bfloat16), v[:, sl],
                            preferred_element_type=jnp.float32))
    av = jnp.concatenate(outs, axis=-1).astype(jnp.bfloat16)     # (TQ, Dp), in-register

    # Single full-K output projection (K = Dp).
    attn = jnp.dot(av, wo_ref[...], preferred_element_type=jnp.float32) + bo_ref[...]
    y = _layer_norm(x_q + attn, gamma_ref[...], beta_ref[...])
    return y * npm


def _ffn_block(x, w1_ref, b1_ref, w2_ref, b2_ref, gamma_ref, beta_ref, npm):
    # TODO(synk): K-tile over d_inner (stream w1/w2) for very large d_inner on v7x.
    h = jnp.dot(x.astype(jnp.bfloat16), w1_ref[...],
                preferred_element_type=jnp.float32) + b1_ref[...]
    h = jnp.maximum(h, 0.0)
    y = jnp.dot(h.astype(jnp.bfloat16), w2_ref[...],
                preferred_element_type=jnp.float32) + b2_ref[...]
    z = _layer_norm(x + y, gamma_ref[...], beta_ref[...])
    return z * npm


def _decoder_layer_kernel(
        decq_ref, deckv_ref, enc_ref, tpad_ref, epad_ref, npm_ref,
        # self-attention params
        s_wqkv, s_bqkv, s_wo, s_bo, s_g, s_b,
        # encoder-decoder attention params
        c_wqkv, c_bqkv, c_wo, c_bo, c_g, c_b,
        # position-wise FFN params
        f_w1, f_b1, f_w2, f_b2, f_g, f_b,
        o_ref,
        *, n_head, d_head):
    """One whole decoder layer for one (batch, q-tile) block; activations stay in VMEM."""
    tq = decq_ref.shape[1]
    Lt = deckv_ref.shape[1]
    Le = enc_ref.shape[1]

    q0 = pl.program_id(1) * tq                       # row offset of this q-tile

    x = decq_ref[0].astype(jnp.float32)              # (tq, D) residual stream, f32
    dec_kv = deckv_ref[0]                            # (Lt, D) bf16
    enc_kv = enc_ref[0]                              # (Le, D) bf16
    npm = npm_ref[0]                                 # (tq, 1) f32

    # ---- self-attention: key-pad OR causal mask rebuilt in-kernel ----
    rows = q0 + jax.lax.broadcasted_iota(jnp.int32, (tq, Lt), 0)
    cols = jax.lax.broadcasted_iota(jnp.int32, (tq, Lt), 1)
    slf_masked = jnp.logical_or(jnp.broadcast_to(tpad_ref[0], (tq, Lt)) == 0,
                                cols > rows)
    x = _attention_block(x, dec_kv, slf_masked, s_wqkv, s_bqkv, s_wo, s_bo,
                         s_g, s_b, npm, n_head=n_head, d_head=d_head)

    # ---- encoder-decoder attention: encoder key-pad only ----
    enc_masked = jnp.broadcast_to(epad_ref[0], (tq, Le)) == 0
    x = _attention_block(x, enc_kv, enc_masked, c_wqkv, c_bqkv, c_wo, c_bo,
                         c_g, c_b, npm, n_head=n_head, d_head=d_head)

    # ---- position-wise FFN ----
    o_ref[0] = _ffn_block(x, f_w1, f_b1, f_w2, f_b2, f_g, f_b, npm).astype(o_ref.dtype)


def decoder_layer_pallas(dec, enc_out, tpad, epad, npm, lp, n_head):
    global _SINGLE_BUFFER_WEIGHTS
    B, Lt, D = dec.shape
    Le = enc_out.shape[1]
    d_head = D // n_head
    Dp = n_head * d_head
    Di = lp["ffn"]["w1"].shape[1]

    # query-tile size: prefer MXU-aligned 256 (v6e/v7x), else 128, else full seq
    if Lt % 256 == 0:
        tq = 256
    elif Lt % 128 == 0:
        tq = 128
    else:
        tq = Lt
    nq = Lt // tq

    kernel = functools.partial(_decoder_layer_kernel, n_head=n_head, d_head=d_head)

    s, c, f = lp["slf"], lp["enc"], lp["ffn"]
    args = (dec, dec, enc_out, tpad, epad, npm,
            s["wqkv"], s["bqkv"], s["wo"], s["bo"], s["gamma"], s["beta"],
            c["wqkv"], c["bqkv"], c["wo"], c["bo"], c["gamma"], c["beta"],
            f["w1"], f["b1"], f["w2"], f["b2"], f["gamma"], f["beta"])

    # Advisory cost estimate (approximate; helps XLA schedule surrounding HLO).
    flops_self = 3 * 2 * Lt * D * Dp + 2 * 2 * Lt * Lt * Dp + 2 * Lt * Dp * D
    flops_cross = (2 * Lt * D * Dp + 2 * 2 * Le * D * Dp
                   + 2 * 2 * Lt * Le * Dp + 2 * Lt * Dp * D)
    flops_ffn = 4 * Lt * D * Di
    weight_bytes = 2 * (2 * (3 * D * Dp + Dp * D) + D * Di + Di * D)        # bf16 matmul weights
    weight_bytes += 4 * (2 * (3 * Dp + 4 * D) + Di + 3 * D)                 # f32 biases / LN params
    act_bytes = 2 * B * (2 * Lt * D + Le * D) + 4 * B * (Lt + Lt + Le)      # bf16 act I/O + masks/npm
    cost = pl.CostEstimate(
        flops=int(B * (flops_self + flops_cross + flops_ffn)),
        transcendentals=int(B * n_head * (Lt * Lt + Lt * Le)),
        bytes_accessed=int(weight_bytes + act_bytes))

    def build(single_buffer_weights):
        def fixed(shape):
            nd = len(shape)
            idx = lambda b, q, _nd=nd: (0,) * _nd
            if single_buffer_weights:
                # grid-invariant constants: single buffer (halves weight VMEM)
                return pl.BlockSpec(shape, idx, pipeline_mode=pl.Buffered(1))
            return pl.BlockSpec(shape, idx)

        return pl.pallas_call(
            kernel,
            out_shape=jax.ShapeDtypeStruct((B, Lt, D), jnp.bfloat16),
            grid=(B, nq),
            in_specs=[
                pl.BlockSpec((1, tq, D), lambda b, q: (b, q, 0)),   # dec q-tile
                pl.BlockSpec((1, Lt, D), lambda b, q: (b, 0, 0)),   # dec (self-attn K/V source)
                pl.BlockSpec((1, Le, D), lambda b, q: (b, 0, 0)),   # encoder output (K/V source)
                pl.BlockSpec((1, 1, Lt), lambda b, q: (b, 0, 0)),   # target key-pad vector
                pl.BlockSpec((1, 1, Le), lambda b, q: (b, 0, 0)),   # encoder key-pad vector
                pl.BlockSpec((1, tq, 1), lambda b, q: (b, q, 0)),   # non-pad multiplier
                # self-attention params
                fixed((3, D, Dp)), fixed((3, 1, Dp)), fixed((Dp, D)),
                fixed((1, D)), fixed((1, D)), fixed((1, D)),
                # encoder-decoder attention params
                fixed((3, D, Dp)), fixed((3, 1, Dp)), fixed((Dp, D)),
                fixed((1, D)), fixed((1, D)), fixed((1, D)),
                # FFN params
                fixed((D, Di)), fixed((1, Di)), fixed((Di, D)),
                fixed((1, D)), fixed((1, D)), fixed((1, D)),
            ],
            out_specs=pl.BlockSpec((1, tq, D), lambda b, q: (b, q, 0)),
            compiler_params=pltpu.CompilerParams(
                dimension_semantics=("parallel", "parallel"),
                vmem_limit_bytes=64 * 1024 * 1024),
            cost_estimate=cost,
        )

    if _SINGLE_BUFFER_WEIGHTS is None:
        try:
            out = build(True)(*args)
            _SINGLE_BUFFER_WEIGHTS = True
            return out
        except Exception:
            # pl.Buffered(1) not supported by this Pallas build -> default buffering
            _SINGLE_BUFFER_WEIGHTS = False
    return build(_SINGLE_BUFFER_WEIGHTS)(*args)


# ----------------------------------------------------------------------------
# Pure-JAX reference (mirrors the PyTorch forward; same bf16 matmul operands)
# ----------------------------------------------------------------------------
def ref_mha(q, kv, mask_bool, npm, p, n_head):
    B, Lq, D = q.shape
    Lk = kv.shape[1]
    d_head = D // n_head
    scale = float(d_head) ** -0.5
    residual = q
    qb, kvb = q.astype(jnp.bfloat16), kv.astype(jnp.bfloat16)
    qp = (jnp.dot(qb, p["wq"], preferred_element_type=jnp.float32) + p["bq"]
          ).reshape(B, Lq, n_head, d_head) * scale
    kp = (jnp.dot(kvb, p["wk"], preferred_element_type=jnp.float32) + p["bk"]
          ).reshape(B, Lk, n_head, d_head)
    vp = (jnp.dot(kvb, p["wv"], preferred_element_type=jnp.float32) + p["bv"]
          ).reshape(B, Lk, n_head, d_head)
    s = jnp.einsum("bqnd,bknd->bqkn", qp.astype(jnp.bfloat16), kp.astype(jnp.bfloat16),
                   preferred_element_type=jnp.float32)
    s = jnp.where(mask_bool[:, :, :, None], MASK_VALUE, s)
    prob = jax.nn.softmax(s, axis=2)
    av = jnp.einsum("bqkn,bknd->bqnd", prob.astype(jnp.bfloat16), vp.astype(jnp.bfloat16),
                    preferred_element_type=jnp.float32).reshape(B, Lq, n_head * d_head)
    out = jnp.dot(av.astype(jnp.bfloat16), p["wfc"], preferred_element_type=jnp.float32) + p["bfc"]
    return _layer_norm(residual + out, p["gamma"], p["beta"]) * npm


def ref_ffn(x, npm, p):
    h = jnp.dot(x.astype(jnp.bfloat16), p["w1"], preferred_element_type=jnp.float32) + p["b1"]
    h = jnp.maximum(h, 0.0)
    y = jnp.dot(h.astype(jnp.bfloat16), p["w2"], preferred_element_type=jnp.float32) + p["b2"]
    return _layer_norm(x + y, p["gamma"], p["beta"]) * npm


# ----------------------------------------------------------------------------
# Parameter init (shapes follow the PyTorch module; matmul weights stored bf16)
# ----------------------------------------------------------------------------
def init_params(key, n_layer, n_head, d_model, d_inner, vocab):
    d_head = d_model // n_head
    Dp = n_head * d_head
    keys = jax.random.split(key, 1 + n_layer)
    emb = jax.random.normal(keys[0], (vocab, d_model), jnp.float32)

    qkv_std = float(np.sqrt(2.0 / (d_model + d_head)))
    fc_std = float(np.sqrt(2.0 / Dp))
    w1_std = float(np.sqrt(2.0 / d_model))
    w2_std = float(np.sqrt(2.0 / d_inner))

    layers = []
    for li in range(n_layer):
        ks = jax.random.split(keys[1 + li], 10)

        def attn_params(k4):
            return dict(
                wq=(qkv_std * jax.random.normal(k4[0], (d_model, Dp), jnp.float32)).astype(jnp.bfloat16),
                bq=jnp.zeros((1, Dp), jnp.float32),
                wk=(qkv_std * jax.random.normal(k4[1], (d_model, Dp), jnp.float32)).astype(jnp.bfloat16),
                bk=jnp.zeros((1, Dp), jnp.float32),
                wv=(qkv_std * jax.random.normal(k4[2], (d_model, Dp), jnp.float32)).astype(jnp.bfloat16),
                bv=jnp.zeros((1, Dp), jnp.float32),
                wfc=(fc_std * jax.random.normal(k4[3], (Dp, d_model), jnp.float32)).astype(jnp.bfloat16),
                bfc=jnp.zeros((1, d_model), jnp.float32),
                gamma=jnp.ones((1, d_model), jnp.float32),
                beta=jnp.zeros((1, d_model), jnp.float32),
            )

        slf = attn_params(ks[0:4])
        enc = attn_params(ks[4:8])
        ffn = dict(
            w1=(w1_std * jax.random.normal(ks[8], (d_model, d_inner), jnp.float32)).astype(jnp.bfloat16),
            b1=jnp.zeros((1, d_inner), jnp.float32),
            w2=(w2_std * jax.random.normal(ks[9], (d_inner, d_model), jnp.float32)).astype(jnp.bfloat16),
            b2=jnp.zeros((1, d_model), jnp.float32),
            gamma=jnp.ones((1, d_model), jnp.float32),
            beta=jnp.zeros((1, d_model), jnp.float32),
        )
        layers.append(dict(slf=slf, enc=enc, ffn=ffn))
    return emb, layers


def prepare_kernel_params(layers, n_head):
    """Stack Q/K/V to full-width (3, D, Dp) slabs; fold 1/sqrt(d_head) into wq/bq."""
    def attn(p):
        D, Dp = p["wq"].shape
        d_head = Dp // n_head
        scale = float(d_head) ** -0.5
        wq = (p["wq"].astype(jnp.float32) * scale).astype(jnp.bfloat16)
        bq = p["bq"] * scale
        wqkv = jnp.stack([wq, p["wk"], p["wv"]])          # (3, D, Dp) bf16
        bqkv = jnp.stack([bq, p["bk"], p["bv"]])          # (3, 1, Dp) f32
        return dict(wqkv=wqkv, bqkv=bqkv, wo=p["wfc"], bo=p["bfc"],
                    gamma=p["gamma"], beta=p["beta"])

    return [dict(slf=attn(lp["slf"]), enc=attn(lp["enc"]), ffn=lp["ffn"]) for lp in layers]


# ----------------------------------------------------------------------------
# Full decoder forward
# ----------------------------------------------------------------------------
def positional_embedding(L, D, B):
    inv_freq = 1.0 / (10000.0 ** (jnp.arange(0.0, D, 2.0) / D))
    sinusoid = jnp.outer(jnp.arange(0.0, L, 1.0), inv_freq)
    pe = jnp.concatenate([jnp.sin(sinusoid), jnp.cos(sinusoid)], axis=-1)
    return jnp.broadcast_to(pe[None], (B, L, D))


def transformer_decoder(target, target_mask, enc_out, enc_mask,
                        emb, layers, kernel_layers, n_head, use_pallas=True):
    B, Lt = target.shape
    Le = enc_mask.shape[1]
    D = emb.shape[1]

    npm = target_mask.astype(jnp.float32)[:, :, None]            # (B, Lt, 1)
    dec = emb[target] + positional_embedding(Lt, D, B)

    if use_pallas:
        dec = dec.astype(jnp.bfloat16)                           # bf16 layer-boundary I/O
        enc_b = enc_out.astype(jnp.bfloat16)
        tpad = target_mask.astype(jnp.int32)[:, None, :]         # (B, 1, Lt)
        epad = enc_mask.astype(jnp.int32)[:, None, :]            # (B, 1, Le)
        for lp in kernel_layers:
            dec = decoder_layer_pallas(dec, enc_b, tpad, epad, npm, lp, n_head)
        return dec.astype(jnp.float32)

    # pure-JAX reference; rounds activations to bf16 at the same layer boundaries
    dec = dec.astype(jnp.bfloat16).astype(jnp.float32)
    enc_b = enc_out.astype(jnp.bfloat16).astype(jnp.float32)
    subseq = jnp.broadcast_to(jnp.triu(jnp.ones((Lt, Lt), jnp.bool_), k=1), (B, Lt, Lt))
    keypad = jnp.broadcast_to((target_mask == 0)[:, None, :], (B, Lt, Lt))
    slf_mask = jnp.logical_or(keypad, subseq)
    de_mask = jnp.broadcast_to((enc_mask == 0)[:, None, :], (B, Lt, Le))
    for lp in layers:
        dec = ref_mha(dec, dec, slf_mask, npm, lp["slf"], n_head)
        dec = ref_mha(dec, enc_b, de_mask, npm, lp["enc"], n_head)
        dec = ref_ffn(dec, npm, lp["ffn"])
        dec = dec.astype(jnp.bfloat16).astype(jnp.float32)
    return dec


# ----------------------------------------------------------------------------
if __name__ == "__main__":
    B, Lt, Le = 2, 8, 8
    vocab, n_layer, n_head, d_model, d_inner = 50, 2, 4, 32, 64

    key = jax.random.PRNGKey(0)
    kparam, ktgt, kenc = jax.random.split(key, 3)
    emb, layers = init_params(kparam, n_layer, n_head, d_model, d_inner, vocab)
    kernel_layers = prepare_kernel_params(layers, n_head)

    target = jax.random.randint(ktgt, (B, Lt), 0, vocab, dtype=jnp.int32)
    enc_out = jax.random.normal(kenc, (B, Le, d_model), jnp.float32)
    target_mask = jnp.array([[1] * Lt, [1] * (Lt - 2) + [0, 0]], dtype=jnp.int32)
    enc_mask = jnp.array([[1] * Le, [1] * (Le - 3) + [0, 0, 0]], dtype=jnp.int32)

    out = transformer_decoder(target, target_mask, enc_out, enc_mask,
                              emb, layers, kernel_layers, n_head, use_pallas=True)
    out = jax.block_until_ready(out)

    ref = transformer_decoder(target, target_mask, enc_out, enc_mask,
                              emb, layers, kernel_layers, n_head, use_pallas=False)
    ref = jax.block_until_ready(ref)

    assert out.shape == (B, Lt, d_model)
    assert bool(jnp.all(jnp.isfinite(out)))
    np.testing.assert_allclose(np.asarray(out), np.asarray(ref), rtol=2e-2, atol=2e-2)
    print("KERNEL_OK")
</pallas_src>

<mosaic_0001>
module attributes {stable_mosaic.version = 11 : i64} {
  func.func @_decoder_layer_kernel(%arg0: i32, %arg1: i32, %arg2: memref<1x8x32xbf16, #tpu.memory_space<vmem>>, %arg3: memref<1x8x32xbf16, #tpu.memory_space<vmem>>, %arg4: memref<1x8x32xbf16, #tpu.memory_space<vmem>>, %arg5: memref<1x1x8xi32, #tpu.memory_space<vmem>>, %arg6: memref<1x1x8xi32, #tpu.memory_space<vmem>>, %arg7: memref<1x8x1xf32, #tpu.memory_space<vmem>>, %arg8: memref<3x32x32xbf16, #tpu.memory_space<vmem>>, %arg9: memref<3x1x32xf32, #tpu.memory_space<vmem>>, %arg10: memref<32x32xbf16, #tpu.memory_space<vmem>>, %arg11: memref<1x32xf32, #tpu.memory_space<vmem>>, %arg12: memref<1x32xf32, #tpu.memory_space<vmem>>, %arg13: memref<1x32xf32, #tpu.memory_space<vmem>>, %arg14: memref<3x32x32xbf16, #tpu.memory_space<vmem>>, %arg15: memref<3x1x32xf32, #tpu.memory_space<vmem>>, %arg16: memref<32x32xbf16, #tpu.memory_space<vmem>>, %arg17: memref<1x32xf32, #tpu.memory_space<vmem>>, %arg18: memref<1x32xf32, #tpu.memory_space<vmem>>, %arg19: memref<1x32xf32, #tpu.memory_space<vmem>>, %arg20: memref<32x64xbf16, #tpu.memory_space<vmem>>, %arg21: memref<1x64xf32, #tpu.memory_space<vmem>>, %arg22: memref<64x32xbf16, #tpu.memory_space<vmem>>, %arg23: memref<1x32xf32, #tpu.memory_space<vmem>>, %arg24: memref<1x32xf32, #tpu.memory_space<vmem>>, %arg25: memref<1x32xf32, #tpu.memory_space<vmem>>, %arg26: memref<1x8x32xbf16, #tpu.memory_space<vmem>>) attributes {dimension_semantics = [#tpu.dimension_semantics<parallel>, #tpu.dimension_semantics<parallel>], iteration_bounds = array<i64: 2, 1>, scalar_prefetch = 0 : i64, scratch_operands = 0 : i64, tpu.core_type = #tpu.core_type<tc>, window_params = [{transform_indices = @transform_0, window_bounds = array<i64: 1, 8, 32>}, {transform_indices = @transform_1, window_bounds = array<i64: 1, 8, 32>}, {transform_indices = @transform_2, window_bounds = array<i64: 1, 8, 32>}, {transform_indices = @transform_3, window_bounds = array<i64: 1, 1, 8>}, {transform_indices = @transform_4, window_bounds = array<i64: 1, 1, 8>}, {transform_indices = @transform_5, window_bounds = array<i64: 1, 8, 1>}, {pipeline_mode = #tpu.pipeline_mode<synchronous>, transform_indices = @transform_6, window_bounds = array<i64: 3, 32, 32>}, {pipeline_mode = #tpu.pipeline_mode<synchronous>, transform_indices = @transform_7, window_bounds = array<i64: 3, 1, 32>}, {pipeline_mode = #tpu.pipeline_mode<synchronous>, transform_indices = @transform_8, window_bounds = array<i64: 32, 32>}, {pipeline_mode = #tpu.pipeline_mode<synchronous>, transform_indices = @transform_9, window_bounds = array<i64: 1, 32>}, {pipeline_mode = #tpu.pipeline_mode<synchronous>, transform_indices = @transform_10, window_bounds = array<i64: 1, 32>}, {pipeline_mode = #tpu.pipeline_mode<synchronous>, transform_indices = @transform_11, window_bounds = array<i64: 1, 32>}, {pipeline_mode = #tpu.pipeline_mode<synchronous>, transform_indices = @transform_12, window_bounds = array<i64: 3, 32, 32>}, {pipeline_mode = #tpu.pipeline_mode<synchronous>, transform_indices = @transform_13, window_bounds = array<i64: 3, 1, 32>}, {pipeline_mode = #tpu.pipeline_mode<synchronous>, transform_indices = @transform_14, window_bounds = array<i64: 32, 32>}, {pipeline_mode = #tpu.pipeline_mode<synchronous>, transform_indices = @transform_15, window_bounds = array<i64: 1, 32>}, {pipeline_mode = #tpu.pipeline_mode<synchronous>, transform_indices = @transform_16, window_bounds = array<i64: 1, 32>}, {pipeline_mode = #tpu.pipeline_mode<synchronous>, transform_indices = @transform_17, window_bounds = array<i64: 1, 32>}, {pipeline_mode = #tpu.pipeline_mode<synchronous>, transform_indices = @transform_18, window_bounds = array<i64: 32, 64>}, {pipeline_mode = #tpu.pipeline_mode<synchronous>, transform_indices = @transform_19, window_bounds = array<i64: 1, 64>}, {pipeline_mode = #tpu.pipeline_mode<synchronous>, transform_indices = @transform_20, window_bounds = array<i64: 64, 32>}, {pipeline_mode = #tpu.pipeline_mode<synchronous>, transform_indices = @transform_21, window_bounds = array<i64: 1, 32>}, {pipeline_mode = #tpu.pipeline_mode<synchronous>, transform_indices = @transform_22, window_bounds = array<i64: 1, 32>}, {pipeline_mode = #tpu.pipeline_mode<synchronous>, transform_indices = @transform_23, window_bounds = array<i64: 1, 32>}, {transform_indices = @transform_24, window_bounds = array<i64: 1, 8, 32>}]} {
    %c8_i32 = arith.constant 8 : i32
    %0 = arith.muli %arg1, %c8_i32 : i32
    %c0 = arith.constant 0 : index
    %c0_0 = arith.constant 0 : index
    %c0_1 = arith.constant 0 : index
    %1 = vector.load %arg2[%c0, %c0_0, %c0_1] : memref<1x8x32xbf16, #tpu.memory_space<vmem>>, vector<1x8x32xbf16>
    %2 = vector.shape_cast %1 : vector<1x8x32xbf16> to vector<8x32xbf16>
    %3 = arith.extf %2 : vector<8x32xbf16> to vector<8x32xf32>
    %c0_2 = arith.constant 0 : index
    %c0_3 = arith.constant 0 : index
    %c0_4 = arith.constant 0 : index
    %4 = vector.load %arg3[%c0_2, %c0_3, %c0_4] : memref<1x8x32xbf16, #tpu.memory_space<vmem>>, vector<1x8x32xbf16>
    %5 = vector.shape_cast %4 : vector<1x8x32xbf16> to vector<8x32xbf16>
    %c0_5 = arith.constant 0 : index
    %c0_6 = arith.constant 0 : index
    %c0_7 = arith.constant 0 : index
    %6 = vector.load %arg4[%c0_5, %c0_6, %c0_7] : memref<1x8x32xbf16, #tpu.memory_space<vmem>>, vector<1x8x32xbf16>
    %7 = vector.shape_cast %6 : vector<1x8x32xbf16> to vector<8x32xbf16>
    %c0_8 = arith.constant 0 : index
    %c0_9 = arith.constant 0 : index
    %c0_10 = arith.constant 0 : index
    %8 = vector.load %arg7[%c0_8, %c0_9, %c0_10] : memref<1x8x1xf32, #tpu.memory_space<vmem>>, vector<1x8x1xf32>
    %9 = vector.shape_cast %8 : vector<1x8x1xf32> to vector<8x1xf32>
    %10 = tpu.iota {dimensions = array<i32: 0>} : vector<8x8xi32>
    %11 = vector.broadcast %0 : i32 to vector<8x8xi32>
    %12 = arith.addi %11, %10 : vector<8x8xi32>
    %13 = tpu.iota {dimensions = array<i32: 1>} : vector<8x8xi32>
    %c0_11 = arith.constant 0 : index
    %c0_12 = arith.constant 0 : index
    %c0_13 = arith.constant 0 : index
    %14 = vector.load %arg5[%c0_11, %c0_12, %c0_13] : memref<1x1x8xi32, #tpu.memory_space<vmem>>, vector<1x1x8xi32>
    %15 = vector.shape_cast %14 : vector<1x1x8xi32> to vector<1x8xi32>
    %16 = vector.shape_cast %15 : vector<1x8xi32> to vector<1x8xi32>
    %17 = vector.broadcast %16 : vector<1x8xi32> to vector<8x8xi32>
    %c0_i32 = arith.constant 0 : i32
    %18 = vector.broadcast %c0_i32 : i32 to vector<8x8xi32>
    %19 = arith.cmpi eq, %17, %18 : vector<8x8xi32>
    %20 = arith.cmpi sgt, %13, %12 : vector<8x8xi32>
    %21 = arith.ori %19, %20 : vector<8x8xi1>
    %22 = arith.truncf %3 : vector<8x32xf32> to vector<8x32xbf16>
    %c0_14 = arith.constant 0 : index
    %c0_15 = arith.constant 0 : index
    %c0_16 = arith.constant 0 : index
    %23 = vector.load %arg8[%c0_14, %c0_15, %c0_16] : memref<3x32x32xbf16, #tpu.memory_space<vmem>>, vector<1x32x32xbf16>
    %24 = vector.shape_cast %23 : vector<1x32x32xbf16> to vector<32x32xbf16>
    %cst = arith.constant dense<0.000000e+00> : vector<8x32xf32>
    %25 = tpu.matmul %22, %24, %cst {dimension_numbers = #tpu.dot_dimension_numbers<[1], [0], [0], [1], [0, 0, 1, 1], [], []>} : vector<8x32xbf16>, vector<32x32xbf16>, vector<8x32xf32> -> vector<8x32xf32>
    %c0_17 = arith.constant 0 : index
    %c0_18 = arith.constant 0 : index
    %c0_19 = arith.constant 0 : index
    %26 = vector.load %arg9[%c0_17, %c0_18, %c0_19] : memref<3x1x32xf32, #tpu.memory_space<vmem>>, vector<1x1x32xf32>
    %27 = vector.shape_cast %26 : vector<1x1x32xf32> to vector<1x32xf32>
    %28 = vector.broadcast %27 : vector<1x32xf32> to vector<8x32xf32>
    %29 = arith.addf %25, %28 : vector<8x32xf32>
    %30 = arith.truncf %29 : vector<8x32xf32> to vector<8x32xbf16>
    %c1 = arith.constant 1 : index
    %c0_20 = arith.constant 0 : index
    %c0_21 = arith.constant 0 : index
    %31 = vector.load %arg8[%c1, %c0_20, %c0_21] : memref<3x32x32xbf16, #tpu.memory_space<vmem>>, vector<1x32x32xbf16>
    %32 = vector.shape_cast %31 : vector<1x32x32xbf16> to vector<32x32xbf16>
    %cst_22 = arith.constant dense<0.000000e+00> : vector<8x32xf32>
    %33 = tpu.matmul %5, %32, %cst_22 {dimension_numbers = #tpu.dot_dimension_numbers<[1], [0], [0], [1], [0, 0, 1, 1], [], []>} : vector<8x32xbf16>, vector<32x32xbf16>, vector<8x32xf32> -> vector<8x32xf32>
    %c1_23 = arith.constant 1 : index
    %c0_24 = arith.constant 0 : index
    %c0_25 = arith.constant 0 : index
    %34 = vector.load %arg9[%c1_23, %c0_24, %c0_25] : memref<3x1x32xf32, #tpu.memory_space<vmem>>, vector<1x1x32xf32>
    %35 = vector.shape_cast %34 : vector<1x1x32xf32> to vector<1x32xf32>
    %36 = vector.broadcast %35 : vector<1x32xf32> to vector<8x32xf32>
    %37 = arith.addf %33, %36 : vector<8x32xf32>
    %38 = arith.truncf %37 : vector<8x32xf32> to vector<8x32xbf16>
    %c2 = arith.constant 2 : index
    %c0_26 = arith.constant 0 : index
    %c0_27 = arith.constant 0 : index
    %39 = vector.load %arg8[%c2, %c0_26, %c0_27] : memref<3x32x32xbf16, #tpu.memory_space<vmem>>, vector<1x32x32xbf16>
    %40 = vector.shape_cast %39 : vector<1x32x32xbf16> to vector<32x32xbf16>
    %cst_28 = arith.constant dense<0.000000e+00> : vector<8x32xf32>
    %41 = tpu.matmul %5, %40, %cst_28 {dimension_numbers = #tpu.dot_dimension_numbers<[1], [0], [0], [1], [0, 0, 1, 1], [], []>} : vector<8x32xbf16>, vector<32x32xbf16>, vector<8x32xf32> -> vector<8x32xf32>
    %c2_29 = arith.constant 2 : index
    %c0_30 = arith.constant 0 : index
    %c0_31 = arith.constant 0 : index
    %42 = vector.load %arg9[%c2_29, %c0_30, %c0_31] : memref<3x1x32xf32, #tpu.memory_space<vmem>>, vector<1x1x32xf32>
    %43 = vector.shape_cast %42 : vector<1x1x32xf32> to vector<1x32xf32>
    %44 = vector.broadcast %43 : vector<1x32xf32> to vector<8x32xf32>
    %45 = arith.addf %41, %44 : vector<8x32xf32>
    %46 = arith.truncf %45 : vector<8x32xf32> to vector<8x32xbf16>
    %47 = vector.extract_strided_slice %30 {offsets = [0, 0], sizes = [8, 8], strides = [1, 1]} : vector<8x32xbf16> to vector<8x8xbf16>
    %48 = vector.extract_strided_slice %38 {offsets = [0, 0], sizes = [8, 8], strides = [1, 1]} : vector<8x32xbf16> to vector<8x8xbf16>
    %cst_32 = arith.constant dense<0.000000e+00> : vector<8x8xf32>
    %49 = tpu.matmul %47, %48, %cst_32 {dimension_numbers = #tpu.dot_dimension_numbers<[1], [1], [0], [0], [0, 0, 1, 0], [], []>} : vector<8x8xbf16>, vector<8x8xbf16>, vector<8x8xf32> -> vector<8x8xf32>
    %cst_33 = arith.constant -1.000000e+30 : f32
    %50 = vector.broadcast %cst_33 : f32 to vector<8x8xf32>
    %51 = arith.select %21, %50, %49 : vector<8x8xi1>, vector<8x8xf32>
    %cst_34 = arith.constant dense<0xFF800000> : vector<8xf32>
    %52 = vector.multi_reduction <maximumf>, %51, %cst_34 [1] : vector<8x8xf32> to vector<8xf32>
    %53 = vector.shape_cast %52 : vector<8xf32> to vector<8x1xf32>
    %54 = vector.broadcast %53 : vector<8x1xf32> to vector<8x8xf32>
    %55 = arith.subf %51, %54 : vector<8x8xf32>
    %56 = math.exp %55 : vector<8x8xf32>
    %cst_35 = arith.constant dense<0.000000e+00> : vector<8xf32>
    %57 = vector.multi_reduction <add>, %56, %cst_35 [1] : vector<8x8xf32> to vector<8xf32>
    %58 = vector.shape_cast %57 : vector<8xf32> to vector<8x1xf32>
    %59 = tpu.reciprocal %58 {approx = true} : vector<8x1xf32> -> vector<8x1xf32>
    %60 = vector.broadcast %59 : vector<8x1xf32> to vector<8x8xf32>
    %61 = arith.mulf %56, %60 : vector<8x8xf32>
    %62 = arith.truncf %61 : vector<8x8xf32> to vector<8x8xbf16>
    %63 = vector.extract_strided_slice %46 {offsets = [0, 0], sizes = [8, 8], strides = [1, 1]} : vector<8x32xbf16> to vector<8x8xbf16>
    %cst_36 = arith.constant dense<0.000000e+00> : vector<8x8xf32>
    %64 = tpu.matmul %62, %63, %cst_36 {dimension_numbers = #tpu.dot_dimension_numbers<[1], [0], [0], [1], [0, 0, 1, 1], [], []>} : vector<8x8xbf16>, vector<8x8xbf16>, vector<8x8xf32> -> vector<8x8xf32>
    %65 = vector.extract_strided_slice %30 {offsets = [0, 8], sizes = [8, 8], strides = [1, 1]} : vector<8x32xbf16> to vector<8x8xbf16>
    %66 = vector.extract_strided_slice %38 {offsets = [0, 8], sizes = [8, 8], strides = [1, 1]} : vector<8x32xbf16> to vector<8x8xbf16>
    %cst_37 = arith.constant dense<0.000000e+00> : vector<8x8xf32>
    %67 = tpu.matmul %65, %66, %cst_37 {dimension_numbers = #tpu.dot_dimension_numbers<[1], [1], [0], [0], [0, 0, 1, 0], [], []>} : vector<8x8xbf16>, vector<8x8xbf16>, vector<8x8xf32> -> vector<8x8xf32>
    %cst_38 = arith.constant -1.000000e+30 : f32
    %68 = vector.broadcast %cst_38 : f32 to vector<8x8xf32>
    %69 = arith.select %21, %68, %67 : vector<8x8xi1>, vector<8x8xf32>
    %cst_39 = arith.constant dense<0xFF800000> : vector<8xf32>
    %70 = vector.multi_reduction <maximumf>, %69, %cst_39 [1] : vector<8x8xf32> to vector<8xf32>
    %71 = vector.shape_cast %70 : vector<8xf32> to vector<8x1xf32>
    %72 = vector.broadcast %71 : vector<8x1xf32> to vector<8x8xf32>
    %73 = arith.subf %69, %72 : vector<8x8xf32>
    %74 = math.exp %73 : vector<8x8xf32>
    %cst_40 = arith.constant dense<0.000000e+00> : vector<8xf32>
    %75 = vector.multi_reduction <add>, %74, %cst_40 [1] : vector<8x8xf32> to vector<8xf32>
    %76 = vector.shape_cast %75 : vector<8xf32> to vector<8x1xf32>
    %77 = tpu.reciprocal %76 {approx = true} : vector<8x1xf32> -> vector<8x1xf32>
    %78 = vector.broadcast %77 : vector<8x1xf32> to vector<8x8xf32>
    %79 = arith.mulf %74, %78 : vector<8x8xf32>
    %80 = arith.truncf %79 : vector<8x8xf32> to vector<8x8xbf16>
    %81 = vector.extract_strided_slice %46 {offsets = [0, 8], sizes = [8, 8], strides = [1, 1]} : vector<8x32xbf16> to vector<8x8xbf16>
    %cst_41 = arith.constant dense<0.000000e+00> : vector<8x8xf32>
    %82 = tpu.matmul %80, %81, %cst_41 {dimension_numbers = #tpu.dot_dimension_numbers<[1], [0], [0], [1], [0, 0, 1, 1], [], []>} : vector<8x8xbf16>, vector<8x8xbf16>, vector<8x8xf32> -> vector<8x8xf32>
    %83 = vector.extract_strided_slice %30 {offsets = [0, 16], sizes = [8, 8], strides = [1, 1]} : vector<8x32xbf16> to vector<8x8xbf16>
    %84 = vector.extract_strided_slice %38 {offsets = [0, 16], sizes = [8, 8], strides = [1, 1]} : vector<8x32xbf16> to vector<8x8xbf16>
    %cst_42 = arith.constant dense<0.000000e+00> : vector<8x8xf32>
    %85 = tpu.matmul %83, %84, %cst_42 {dimension_numbers = #tpu.dot_dimension_numbers<[1], [1], [0], [0], [0, 0, 1, 0], [], []>} : vector<8x8xbf16>, vector<8x8xbf16>, vector<8x8xf32> -> vector<8x8xf32>
    %cst_43 = arith.constant -1.000000e+30 : f32
    %86 = vector.broadcast %cst_43 : f32 to vector<8x8xf32>
    %87 = arith.select %21, %86, %85 : vector<8x8xi1>, vector<8x8xf32>
    %cst_44 = arith.constant dense<0xFF800000> : vector<8xf32>
    %88 = vector.multi_reduction <maximumf>, %87, %cst_44 [1] : vector<8x8xf32> to vector<8xf32>
    %89 = vector.shape_cast %88 : vector<8xf32> to vector<8x1xf32>
    %90 = vector.broadcast %89 : vector<8x1xf32> to vector<8x8xf32>
    %91 = arith.subf %87, %90 : vector<8x8xf32>
    %92 = math.exp %91 : vector<8x8xf32>
    %cst_45 = arith.constant dense<0.000000e+00> : vector<8xf32>
    %93 = vector.multi_reduction <add>, %92, %cst_45 [1] : vector<8x8xf32> to vector<8xf32>
    %94 = vector.shape_cast %93 : vector<8xf32> to vector<8x1xf32>
    %95 = tpu.reciprocal %94 {approx = true} : vector<8x1xf32> -> vector<8x1xf32>
    %96 = vector.broadcast %95 : vector<8x1xf32> to vector<8x8xf32>
    %97 = arith.mulf %92, %96 : vector<8x8xf32>
    %98 = arith.truncf %97 : vector<8x8xf32> to vector<8x8xbf16>
    %99 = vector.extract_strided_slice %46 {offsets = [0, 16], sizes = [8, 8], strides = [1, 1]} : vector<8x32xbf16> to vector<8x8xbf16>
    %cst_46 = arith.constant dense<0.000000e+00> : vector<8x8xf32>
    %100 = tpu.matmul %98, %99, %cst_46 {dimension_numbers = #tpu.dot_dimension_numbers<[1], [0], [0], [1], [0, 0, 1, 1], [], []>} : vector<8x8xbf16>, vector<8x8xbf16>, vector<8x8xf32> -> vector<8x8xf32>
    %101 = vector.extract_strided_slice %30 {offsets = [0, 24], sizes = [8, 8], strides = [1, 1]} : vector<8x32xbf16> to vector<8x8xbf16>
    %102 = vector.extract_strided_slice %38 {offsets = [0, 24], sizes = [8, 8], strides = [1, 1]} : vector<8x32xbf16> to vector<8x8xbf16>
    %cst_47 = arith.constant dense<0.000000e+00> : vector<8x8xf32>
    %103 = tpu.matmul %101, %102, %cst_47 {dimension_numbers = #tpu.dot_dimension_numbers<[1], [1], [0], [0], [0, 0, 1, 0], [], []>} : vector<8x8xbf16>, vector<8x8xbf16>, vector<8x8xf32> -> vector<8x8xf32>
    %cst_48 = arith.constant -1.000000e+30 : f32
    %104 = vector.broadcast %cst_48 : f32 to vector<8x8xf32>
    %105 = arith.select %21, %104, %103 : vector<8x8xi1>, vector<8x8xf32>
    %cst_49 = arith.constant dense<0xFF800000> : vector<8xf32>
    %106 = vector.multi_reduction <maximumf>, %105, %cst_49 [1] : vector<8x8xf32> to vector<8xf32>
    %107 = vector.shape_cast %106 : vector<8xf32> to vector<8x1xf32>
    %108 = vector.broadcast %107 : vector<8x1xf32> to vector<8x8xf32>
    %109 = arith.subf %105, %108 : vector<8x8xf32>
    %110 = math.exp %109 : vector<8x8xf32>
    %cst_50 = arith.constant dense<0.000000e+00> : vector<8xf32>
    %111 = vector.multi_reduction <add>, %110, %cst_50 [1] : vector<8x8xf32> to vector<8xf32>
    %112 = vector.shape_cast %111 : vector<8xf32> to vector<8x1xf32>
    %113 = tpu.reciprocal %112 {approx = true} : vector<8x1xf32> -> vector<8x1xf32>
    %114 = vector.broadcast %113 : vector<8x1xf32> to vector<8x8xf32>
    %115 = arith.mulf %110, %114 : vector<8x8xf32>
    %116 = arith.truncf %115 : vector<8x8xf32> to vector<8x8xbf16>
    %117 = vector.extract_strided_slice %46 {offsets = [0, 24], sizes = [8, 8], strides = [1, 1]} : vector<8x32xbf16> to vector<8x8xbf16>
    %cst_51 = arith.constant dense<0.000000e+00> : vector<8x8xf32>
    %118 = tpu.matmul %116, %117, %cst_51 {dimension_numbers = #tpu.dot_dimension_numbers<[1], [0], [0], [1], [0, 0, 1, 1], [], []>} : vector<8x8xbf16>, vector<8x8xbf16>, vector<8x8xf32> -> vector<8x8xf32>
    %119 = tpu.concatenate %64, %82, %100, %118 in 1 : vector<8x8xf32>, vector<8x8xf32>, vector<8x8xf32>, vector<8x8xf32> -> vector<8x32xf32>
    %120 = arith.truncf %119 : vector<8x32xf32> to vector<8x32xbf16>
    %c0_52 = arith.constant 0 : index
    %c0_53 = arith.constant 0 : index
    %121 = vector.load %arg10[%c0_52, %c0_53] : memref<32x32xbf16, #tpu.memory_space<vmem>>, vector<32x32xbf16>
    %cst_54 = arith.constant dense<0.000000e+00> : vector<8x32xf32>
    %122 = tpu.matmul %120, %121, %cst_54 {dimension_numbers = #tpu.dot_dimension_numbers<[1], [0], [0], [1], [0, 0, 1, 1], [], []>} : vector<8x32xbf16>, vector<32x32xbf16>, vector<8x32xf32> -> vector<8x32xf32>
    %c0_55 = arith.constant 0 : index
    %c0_56 = arith.constant 0 : index
    %123 = vector.load %arg11[%c0_55, %c0_56] : memref<1x32xf32, #tpu.memory_space<vmem>>, vector<1x32xf32>
    %124 = vector.broadcast %123 : vector<1x32xf32> to vector<8x32xf32>
    %125 = arith.addf %122, %124 : vector<8x32xf32>
    %126 = arith.addf %3, %125 : vector<8x32xf32>
    %c0_57 = arith.constant 0 : index
    %c0_58 = arith.constant 0 : index
    %127 = vector.load %arg12[%c0_57, %c0_58] : memref<1x32xf32, #tpu.memory_space<vmem>>, vector<1x32xf32>
    %c0_59 = arith.constant 0 : index
    %c0_60 = arith.constant 0 : index
    %128 = vector.load %arg13[%c0_59, %c0_60] : memref<1x32xf32, #tpu.memory_space<vmem>>, vector<1x32xf32>
    %cst_61 = arith.constant dense<0.000000e+00> : vector<8xf32>
    %129 = vector.multi_reduction <add>, %126, %cst_61 [1] : vector<8x32xf32> to vector<8xf32>
    %130 = vector.shape_cast %129 : vector<8xf32> to vector<8x1xf32>
    %cst_62 = arith.constant 3.200000e+01 : f32
    %131 = vector.broadcast %cst_62 : f32 to vector<8x1xf32>
    %132 = arith.divf %130, %131 : vector<8x1xf32>
    %133 = arith.mulf %126, %126 : vector<8x32xf32>
    %cst_63 = arith.constant dense<0.000000e+00> : vector<8xf32>
    %134 = vector.multi_reduction <add>, %133, %cst_63 [1] : vector<8x32xf32> to vector<8xf32>
    %135 = vector.shape_cast %134 : vector<8xf32> to vector<8x1xf32>
    %cst_64 = arith.constant 3.200000e+01 : f32
    %136 = vector.broadcast %cst_64 : f32 to vector<8x1xf32>
    %137 = arith.divf %135, %136 : vector<8x1xf32>
    %138 = arith.mulf %132, %132 : vector<8x1xf32>
    %139 = arith.subf %137, %138 : vector<8x1xf32>
    %140 = vector.broadcast %132 : vector<8x1xf32> to vector<8x32xf32>
    %141 = arith.subf %126, %140 : vector<8x32xf32>
    %cst_65 = arith.constant 9.99999974E-6 : f32
    %142 = vector.broadcast %cst_65 : f32 to vector<8x1xf32>
    %143 = arith.addf %139, %142 : vector<8x1xf32>
    %144 = math.rsqrt %143 : vector<8x1xf32>
    %145 = vector.broadcast %144 : vector<8x1xf32> to vector<8x32xf32>
    %146 = arith.mulf %141, %145 : vector<8x32xf32>
    %147 = vector.broadcast %127 : vector<1x32xf32> to vector<8x32xf32>
    %148 = arith.mulf %146, %147 : vector<8x32xf32>
    %149 = vector.broadcast %128 : vector<1x32xf32> to vector<8x32xf32>
    %150 = arith.addf %148, %149 : vector<8x32xf32>
    %151 = vector.broadcast %9 : vector<8x1xf32> to vector<8x32xf32>
    %152 = arith.mulf %150, %151 : vector<8x32xf32>
    %c0_66 = arith.constant 0 : index
    %c0_67 = arith.constant 0 : index
    %c0_68 = arith.constant 0 : index
    %153 = vector.load %arg6[%c0_66, %c0_67, %c0_68] : memref<1x1x8xi32, #tpu.memory_space<vmem>>, vector<1x1x8xi32>
    %154 = vector.shape_cast %153 : vector<1x1x8xi32> to vector<1x8xi32>
    %155 = vector.shape_cast %154 : vector<1x8xi32> to vector<1x8xi32>
    %156 = vector.broadcast %155 : vector<1x8xi32> to vector<8x8xi32>
    %c0_i32_69 = arith.constant 0 : i32
    %157 = vector.broadcast %c0_i32_69 : i32 to vector<8x8xi32>
    %158 = arith.cmpi eq, %156, %157 : vector<8x8xi32>
    %159 = arith.truncf %152 : vector<8x32xf32> to vector<8x32xbf16>
    %c0_70 = arith.constant 0 : index
    %c0_71 = arith.constant 0 : index
    %c0_72 = arith.constant 0 : index
    %160 = vector.load %arg14[%c0_70, %c0_71, %c0_72] : memref<3x32x32xbf16, #tpu.memory_space<vmem>>, vector<1x32x32xbf16>
    %161 = vector.shape_cast %160 : vector<1x32x32xbf16> to vector<32x32xbf16>
    %cst_73 = arith.constant dense<0.000000e+00> : vector<8x32xf32>
    %162 = tpu.matmul %159, %161, %cst_73 {dimension_numbers = #tpu.dot_dimension_numbers<[1], [0], [0], [1], [0, 0, 1, 1], [], []>} : vector<8x32xbf16>, vector<32x32xbf16>, vector<8x32xf32> -> vector<8x32xf32>
    %c0_74 = arith.constant 0 : index
    %c0_75 = arith.constant 0 : index
    %c0_76 = arith.constant 0 : index
    %163 = vector.load %arg15[%c0_74, %c0_75, %c0_76] : memref<3x1x32xf32, #tpu.memory_space<vmem>>, vector<1x1x32xf32>
    %164 = vector.shape_cast %163 : vector<1x1x32xf32> to vector<1x32xf32>
    %165 = vector.broadcast %164 : vector<1x32xf32> to vector<8x32xf32>
    %166 = arith.addf %162, %165 : vector<8x32xf32>
    %167 = arith.truncf %166 : vector<8x32xf32> to vector<8x32xbf16>
    %c1_77 = arith.constant 1 : index
    %c0_78 = arith.constant 0 : index
    %c0_79 = arith.constant 0 : index
    %168 = vector.load %arg14[%c1_77, %c0_78, %c0_79] : memref<3x32x32xbf16, #tpu.memory_space<vmem>>, vector<1x32x32xbf16>
    %169 = vector.shape_cast %168 : vector<1x32x32xbf16> to vector<32x32xbf16>
    %cst_80 = arith.constant dense<0.000000e+00> : vector<8x32xf32>
    %170 = tpu.matmul %7, %169, %cst_80 {dimension_numbers = #tpu.dot_dimension_numbers<[1], [0], [0], [1], [0, 0, 1, 1], [], []>} : vector<8x32xbf16>, vector<32x32xbf16>, vector<8x32xf32> -> vector<8x32xf32>
    %c1_81 = arith.constant 1 : index
    %c0_82 = arith.constant 0 : index
    %c0_83 = arith.constant 0 : index
    %171 = vector.load %arg15[%c1_81, %c0_82, %c0_83] : memref<3x1x32xf32, #tpu.memory_space<vmem>>, vector<1x1x32xf32>
    %172 = vector.shape_cast %171 : vector<1x1x32xf32> to vector<1x32xf32>
    %173 = vector.broadcast %172 : vector<1x32xf32> to vector<8x32xf32>
    %174 = arith.addf %170, %173 : vector<8x32xf32>
    %175 = arith.truncf %174 : vector<8x32xf32> to vector<8x32xbf16>
    %c2_84 = arith.constant 2 : index
    %c0_85 = arith.constant 0 : index
    %c0_86 = arith.constant 0 : index
    %176 = vector.load %arg14[%c2_84, %c0_85, %c0_86] : memref<3x32x32xbf16, #tpu.memory_space<vmem>>, vector<1x32x32xbf16>
    %177 = vector.shape_cast %176 : vector<1x32x32xbf16> to vector<32x32xbf16>
    %cst_87 = arith.constant dense<0.000000e+00> : vector<8x32xf32>
    %178 = tpu.matmul %7, %177, %cst_87 {dimension_numbers = #tpu.dot_dimension_numbers<[1], [0], [0], [1], [0, 0, 1, 1], [], []>} : vector<8x32xbf16>, vector<32x32xbf16>, vector<8x32xf32> -> vector<8x32xf32>
    %c2_88 = arith.constant 2 : index
    %c0_89 = arith.constant 0 : index
    %c0_90 = arith.constant 0 : index
    %179 = vector.load %arg15[%c2_88, %c0_89, %c0_90] : memref<3x1x32xf32, #tpu.memory_space<vmem>>, vector<1x1x32xf32>
    %180 = vector.shape_cast %179 : vector<1x1x32xf32> to vector<1x32xf32>
    %181 = vector.broadcast %180 : vector<1x32xf32> to vector<8x32xf32>
    %182 = arith.addf %178, %181 : vector<8x32xf32>
    %183 = arith.truncf %182 : vector<8x32xf32> to vector<8x32xbf16>
    %184 = vector.extract_strided_slice %167 {offsets = [0, 0], sizes = [8, 8], strides = [1, 1]} : vector<8x32xbf16> to vector<8x8xbf16>
    %185 = vector.extract_strided_slice %175 {offsets = [0, 0], sizes = [8, 8], strides = [1, 1]} : vector<8x32xbf16> to vector<8x8xbf16>
    %cst_91 = arith.constant dense<0.000000e+00> : vector<8x8xf32>
    %186 = tpu.matmul %184, %185, %cst_91 {dimension_numbers = #tpu.dot_dimension_numbers<[1], [1], [0], [0], [0, 0, 1, 0], [], []>} : vector<8x8xbf16>, vector<8x8xbf16>, vector<8x8xf32> -> vector<8x8xf32>
    %cst_92 = arith.constant -1.000000e+30 : f32
    %187 = vector.broadcast %cst_92 : f32 to vector<8x8xf32>
    %188 = arith.select %158, %187, %186 : vector<8x8xi1>, vector<8x8xf32>
    %cst_93 = arith.constant dense<0xFF800000> : vector<8xf32>
    %189 = vector.multi_reduction <maximumf>, %188, %cst_93 [1] : vector<8x8xf32> to vector<8xf32>
    %190 = vector.shape_cast %189 : vector<8xf32> to vector<8x1xf32>
    %191 = vector.broadcast %190 : vector<8x1xf32> to vector<8x8xf32>
    %192 = arith.subf %188, %191 : vector<8x8xf32>
    %193 = math.exp %192 : vector<8x8xf32>
    %cst_94 = arith.constant dense<0.000000e+00> : vector<8xf32>
    %194 = vector.multi_reduction <add>, %193, %cst_94 [1] : vector<8x8xf32> to vector<8xf32>
    %195 = vector.shape_cast %194 : vector<8xf32> to vector<8x1xf32>
    %196 = tpu.reciprocal %195 {approx = true} : vector<8x1xf32> -> vector<8x1xf32>
    %197 = vector.broadcast %196 : vector<8x1xf32> to vector<8x8xf32>
    %198 = arith.mulf %193, %197 : vector<8x8xf32>
    %199 = arith.truncf %198 : vector<8x8xf32> to vector<8x8xbf16>
    %200 = vector.extract_strided_slice %183 {offsets = [0, 0], sizes = [8, 8], strides = [1, 1]} : vector<8x32xbf16> to vector<8x8xbf16>
    %cst_95 = arith.constant dense<0.000000e+00> : vector<8x8xf32>
    %201 = tpu.matmul %199, %200, %cst_95 {dimension_numbers = #tpu.dot_dimension_numbers<[1], [0], [0], [1], [0, 0, 1, 1], [], []>} : vector<8x8xbf16>, vector<8x8xbf16>, vector<8x8xf32> -> vector<8x8xf32>
    %202 = vector.extract_strided_slice %167 {offsets = [0, 8], sizes = [8, 8], strides = [1, 1]} : vector<8x32xbf16> to vector<8x8xbf16>
    %203 = vector.extract_strided_slice %175 {offsets = [0, 8], sizes = [8, 8], strides = [1, 1]} : vector<8x32xbf16> to vector<8x8xbf16>
    %cst_96 = arith.constant dense<0.000000e+00> : vector<8x8xf32>
    %204 = tpu.matmul %202, %203, %cst_96 {dimension_numbers = #tpu.dot_dimension_numbers<[1], [1], [0], [0], [0, 0, 1, 0], [], []>} : vector<8x8xbf16>, vector<8x8xbf16>, vector<8x8xf32> -> vector<8x8xf32>
    %cst_97 = arith.constant -1.000000e+30 : f32
    %205 = vector.broadcast %cst_97 : f32 to vector<8x8xf32>
    %206 = arith.select %158, %205, %204 : vector<8x8xi1>, vector<8x8xf32>
    %cst_98 = arith.constant dense<0xFF800000> : vector<8xf32>
    %207 = vector.multi_reduction <maximumf>, %206, %cst_98 [1] : vector<8x8xf32> to vector<8xf32>
    %208 = vector.shape_cast %207 : vector<8xf32> to vector<8x1xf32>
    %209 = vector.broadcast %208 : vector<8x1xf32> to vector<8x8xf32>
    %210 = arith.subf %206, %209 : vector<8x8xf32>
    %211 = math.exp %210 : vector<8x8xf32>
    %cst_99 = arith.constant dense<0.000000e+00> : vector<8xf32>
    %212 = vector.multi_reduction <add>, %211, %cst_99 [1] : vector<8x8xf32> to vector<8xf32>
    %213 = vector.shape_cast %212 : vector<8xf32> to vector<8x1xf32>
    %214 = tpu.reciprocal %213 {approx = true} : vector<8x1xf32> -> vector<8x1xf32>
    %215 = vector.broadcast %214 : vector<8x1xf32> to vector<8x8xf32>
    %216 = arith.mulf %211, %215 : vector<8x8xf32>
    %217 = arith.truncf %216 : vector<8x8xf32> to vector<8x8xbf16>
    %218 = vector.extract_strided_slice %183 {offsets = [0, 8], sizes = [8, 8], strides = [1, 1]} : vector<8x32xbf16> to vector<8x8xbf16>
    %cst_100 = arith.constant dense<0.000000e+00> : vector<8x8xf32>
    %219 = tpu.matmul %217, %218, %cst_100 {dimension_numbers = #tpu.dot_dimension_numbers<[1], [0], [0], [1], [0, 0, 1, 1], [], []>} : vector<8x8xbf16>, vector<8x8xbf16>, vector<8x8xf32> -> vector<8x8xf32>
    %220 = vector.extract_strided_slice %167 {offsets = [0, 16], sizes = [8, 8], strides = [1, 1]} : vector<8x32xbf16> to vector<8x8xbf16>
    %221 = vector.extract_strided_slice %175 {offsets = [0, 16], sizes = [8, 8], strides = [1, 1]} : vector<8x32xbf16> to vector<8x8xbf16>
    %cst_101 = arith.constant dense<0.000000e+00> : vector<8x8xf32>
    %222 = tpu.matmul %220, %221, %cst_101 {dimension_numbers = #tpu.dot_dimension_numbers<[1], [1], [0], [0], [0, 0, 1, 0], [], []>} : vector<8x8xbf16>, vector<8x8xbf16>, vector<8x8xf32> -> vector<8x8xf32>
    %cst_102 = arith.constant -1.000000e+30 : f32
    %223 = vector.broadcast %cst_102 : f32 to vector<8x8xf32>
    %224 = arith.select %158, %223, %222 : vector<8x8xi1>, vector<8x8xf32>
    %cst_103 = arith.constant dense<0xFF800000> : vector<8xf32>
    %225 = vector.multi_reduction <maximumf>, %224, %cst_103 [1] : vector<8x8xf32> to vector<8xf32>
    %226 = vector.shape_cast %225 : vector<8xf32> to vector<8x1xf32>
    %227 = vector.broadcast %226 : vector<8x1xf32> to vector<8x8xf32>
    %228 = arith.subf %224, %227 : vector<8x8xf32>
    %229 = math.exp %228 : vector<8x8xf32>
    %cst_104 = arith.constant dense<0.000000e+00> : vector<8xf32>
    %230 = vector.multi_reduction <add>, %229, %cst_104 [1] : vector<8x8xf32> to vector<8xf32>
    %231 = vector.shape_cast %230 : vector<8xf32> to vector<8x1xf32>
    %232 = tpu.reciprocal %231 {approx = true} : vector<8x1xf32> -> vector<8x1xf32>
    %233 = vector.broadcast %232 : vector<8x1xf32> to vector<8x8xf32>
    %234 = arith.mulf %229, %233 : vector<8x8xf32>
    %235 = arith.truncf %234 : vector<8x8xf32> to vector<8x8xbf16>
    %236 = vector.extract_strided_slice %183 {offsets = [0, 16], sizes = [8, 8], strides = [1, 1]} : vector<8x32xbf16> to vector<8x8xbf16>
    %cst_105 = arith.constant dense<0.000000e+00> : vector<8x8xf32>
    %237 = tpu.matmul %235, %236, %cst_105 {dimension_numbers = #tpu.dot_dimension_numbers<[1], [0], [0], [1], [0, 0, 1, 1], [], []>} : vector<8x8xbf16>, vector<8x8xbf16>, vector<8x8xf32> -> vector<8x8xf32>
    %238 = vector.extract_strided_slice %167 {offsets = [0, 24], sizes = [8, 8], strides = [1, 1]} : vector<8x32xbf16> to vector<8x8xbf16>
    %239 = vector.extract_strided_slice %175 {offsets = [0, 24], sizes = [8, 8], strides = [1, 1]} : vector<8x32xbf16> to vector<8x8xbf16>
    %cst_106 = arith.constant dense<0.000000e+00> : vector<8x8xf32>
    %240 = tpu.matmul %238, %239, %cst_106 {dimension_numbers = #tpu.dot_dimension_numbers<[1], [1], [0], [0], [0, 0, 1, 0], [], []>} : vector<8x8xbf16>, vector<8x8xbf16>, vector<8x8xf32> -> vector<8x8xf32>
    %cst_107 = arith.constant -1.000000e+30 : f32
    %241 = vector.broadcast %cst_107 : f32 to vector<8x8xf32>
    %242 = arith.select %158, %241, %240 : vector<8x8xi1>, vector<8x8xf32>
    %cst_108 = arith.constant dense<0xFF800000> : vector<8xf32>
    %243 = vector.multi_reduction <maximumf>, %242, %cst_108 [1] : vector<8x8xf32> to vector<8xf32>
    %244 = vector.shape_cast %243 : vector<8xf32> to vector<8x1xf32>
    %245 = vector.broadcast %244 : vector<8x1xf32> to vector<8x8xf32>
    %246 = arith.subf %242, %245 : vector<8x8xf32>
    %247 = math.exp %246 : vector<8x8xf32>
    %cst_109 = arith.constant dense<0.000000e+00> : vector<8xf32>
    %248 = vector.multi_reduction <add>, %247, %cst_109 [1] : vector<8x8xf32> to vector<8xf32>
    %249 = vector.shape_cast %248 : vector<8xf32> to vector<8x1xf32>
    %250 = tpu.reciprocal %249 {approx = true} : vector<8x1xf32> -> vector<8x1xf32>
    %251 = vector.broadcast %250 : vector<8x1xf32> to vector<8x8xf32>
    %252 = arith.mulf %247, %251 : vector<8x8xf32>
    %253 = arith.truncf %252 : vector<8x8xf32> to vector<8x8xbf16>
    %254 = vector.extract_strided_slice %183 {offsets = [0, 24], sizes = [8, 8], strides = [1, 1]} : vector<8x32xbf16> to vector<8x8xbf16>
    %cst_110 = arith.constant dense<0.000000e+00> : vector<8x8xf32>
    %255 = tpu.matmul %253, %254, %cst_110 {dimension_numbers = #tpu.dot_dimension_numbers<[1], [0], [0], [1], [0, 0, 1, 1], [], []>} : vector<8x8xbf16>, vector<8x8xbf16>, vector<8x8xf32> -> vector<8x8xf32>
    %256 = tpu.concatenate %201, %219, %237, %255 in 1 : vector<8x8xf32>, vector<8x8xf32>, vector<8x8xf32>, vector<8x8xf32> -> vector<8x32xf32>
    %257 = arith.truncf %256 : vector<8x32xf32> to vector<8x32xbf16>
    %c0_111 = arith.constant 0 : index
    %c0_112 = arith.constant 0 : index
    %258 = vector.load %arg16[%c0_111, %c0_112] : memref<32x32xbf16, #tpu.memory_space<vmem>>, vector<32x32xbf16>
    %cst_113 = arith.constant dense<0.000000e+00> : vector<8x32xf32>
    %259 = tpu.matmul %257, %258, %cst_113 {dimension_numbers = #tpu.dot_dimension_numbers<[1], [0], [0], [1], [0, 0, 1, 1], [], []>} : vector<8x32xbf16>, vector<32x32xbf16>, vector<8x32xf32> -> vector<8x32xf32>
    %c0_114 = arith.constant 0 : index
    %c0_115 = arith.constant 0 : index
    %260 = vector.load %arg17[%c0_114, %c0_115] : memref<1x32xf32, #tpu.memory_space<vmem>>, vector<1x32xf32>
    %261 = vector.broadcast %260 : vector<1x32xf32> to vector<8x32xf32>
    %262 = arith.addf %259, %261 : vector<8x32xf32>
    %263 = arith.addf %152, %262 : vector<8x32xf32>
    %c0_116 = arith.constant 0 : index
    %c0_117 = arith.constant 0 : index
    %264 = vector.load %arg18[%c0_116, %c0_117] : memref<1x32xf32, #tpu.memory_space<vmem>>, vector<1x32xf32>
    %c0_118 = arith.constant 0 : index
    %c0_119 = arith.constant 0 : index
    %265 = vector.load %arg19[%c0_118, %c0_119] : memref<1x32xf32, #tpu.memory_space<vmem>>, vector<1x32xf32>
    %cst_120 = arith.constant dense<0.000000e+00> : vector<8xf32>
    %266 = vector.multi_reduction <add>, %263, %cst_120 [1] : vector<8x32xf32> to vector<8xf32>
    %267 = vector.shape_cast %266 : vector<8xf32> to vector<8x1xf32>
    %cst_121 = arith.constant 3.200000e+01 : f32
    %268 = vector.broadcast %cst_121 : f32 to vector<8x1xf32>
    %269 = arith.divf %267, %268 : vector<8x1xf32>
    %270 = arith.mulf %263, %263 : vector<8x32xf32>
    %cst_122 = arith.constant dense<0.000000e+00> : vector<8xf32>
    %271 = vector.multi_reduction <add>, %270, %cst_122 [1] : vector<8x32xf32> to vector<8xf32>
    %272 = vector.shape_cast %271 : vector<8xf32> to vector<8x1xf32>
    %cst_123 = arith.constant 3.200000e+01 : f32
    %273 = vector.broadcast %cst_123 : f32 to vector<8x1xf32>
    %274 = arith.divf %272, %273 : vector<8x1xf32>
    %275 = arith.mulf %269, %269 : vector<8x1xf32>
    %276 = arith.subf %274, %275 : vector<8x1xf32>
    %277 = vector.broadcast %269 : vector<8x1xf32> to vector<8x32xf32>
    %278 = arith.subf %263, %277 : vector<8x32xf32>
    %cst_124 = arith.constant 9.99999974E-6 : f32
    %279 = vector.broadcast %cst_124 : f32 to vector<8x1xf32>
    %280 = arith.addf %276, %279 : vector<8x1xf32>
    %281 = math.rsqrt %280 : vector<8x1xf32>
    %282 = vector.broadcast %281 : vector<8x1xf32> to vector<8x32xf32>
    %283 = arith.mulf %278, %282 : vector<8x32xf32>
    %284 = vector.broadcast %264 : vector<1x32xf32> to vector<8x32xf32>
    %285 = arith.mulf %283, %284 : vector<8x32xf32>
    %286 = vector.broadcast %265 : vector<1x32xf32> to vector<8x32xf32>
    %287 = arith.addf %285, %286 : vector<8x32xf32>
    %288 = vector.broadcast %9 : vector<8x1xf32> to vector<8x32xf32>
    %289 = arith.mulf %287, %288 : vector<8x32xf32>
    %290 = arith.truncf %289 : vector<8x32xf32> to vector<8x32xbf16>
    %c0_125 = arith.constant 0 : index
    %c0_126 = arith.constant 0 : index
    %291 = vector.load %arg20[%c0_125, %c0_126] : memref<32x64xbf16, #tpu.memory_space<vmem>>, vector<32x64xbf16>
    %cst_127 = arith.constant dense<0.000000e+00> : vector<8x64xf32>
    %292 = tpu.matmul %290, %291, %cst_127 {dimension_numbers = #tpu.dot_dimension_numbers<[1], [0], [0], [1], [0, 0, 1, 1], [], []>} : vector<8x32xbf16>, vector<32x64xbf16>, vector<8x64xf32> -> vector<8x64xf32>
    %c0_128 = arith.constant 0 : index
    %c0_129 = arith.constant 0 : index
    %293 = vector.load %arg21[%c0_128, %c0_129] : memref<1x64xf32, #tpu.memory_space<vmem>>, vector<1x64xf32>
    %294 = vector.broadcast %293 : vector<1x64xf32> to vector<8x64xf32>
    %295 = arith.addf %292, %294 : vector<8x64xf32>
    %cst_130 = arith.constant 0.000000e+00 : f32
    %296 = vector.broadcast %cst_130 : f32 to vector<8x64xf32>
    %297 = arith.maximumf %295, %296 : vector<8x64xf32>
    %298 = arith.truncf %297 : vector<8x64xf32> to vector<8x64xbf16>
    %c0_131 = arith.constant 0 : index
    %c0_132 = arith.constant 0 : index
    %299 = vector.load %arg22[%c0_131, %c0_132] : memref<64x32xbf16, #tpu.memory_space<vmem>>, vector<64x32xbf16>
    %cst_133 = arith.constant dense<0.000000e+00> : vector<8x32xf32>
    %300 = tpu.matmul %298, %299, %cst_133 {dimension_numbers = #tpu.dot_dimension_numbers<[1], [0], [0], [1], [0, 0, 1, 1], [], []>} : vector<8x64xbf16>, vector<64x32xbf16>, vector<8x32xf32> -> vector<8x32xf32>
    %c0_134 = arith.constant 0 : index
    %c0_135 = arith.constant 0 : index
    %301 = vector.load %arg23[%c0_134, %c0_135] : memref<1x32xf32, #tpu.memory_space<vmem>>, vector<1x32xf32>
    %302 = vector.broadcast %301 : vector<1x32xf32> to vector<8x32xf32>
    %303 = arith.addf %300, %302 : vector<8x32xf32>
    %304 = arith.addf %289, %303 : vector<8x32xf32>
    %c0_136 = arith.constant 0 : index
    %c0_137 = arith.constant 0 : index
    %305 = vector.load %arg24[%c0_136, %c0_137] : memref<1x32xf32, #tpu.memory_space<vmem>>, vector<1x32xf32>
    %c0_138 = arith.constant 0 : index
    %c0_139 = arith.constant 0 : index
    %306 = vector.load %arg25[%c0_138, %c0_139] : memref<1x32xf32, #tpu.memory_space<vmem>>, vector<1x32xf32>
    %cst_140 = arith.constant dense<0.000000e+00> : vector<8xf32>
    %307 = vector.multi_reduction <add>, %304, %cst_140 [1] : vector<8x32xf32> to vector<8xf32>
    %308 = vector.shape_cast %307 : vector<8xf32> to vector<8x1xf32>
    %cst_141 = arith.constant 3.200000e+01 : f32
    %309 = vector.broadcast %cst_141 : f32 to vector<8x1xf32>
    %310 = arith.divf %308, %309 : vector<8x1xf32>
    %311 = arith.mulf %304, %304 : vector<8x32xf32>
    %cst_142 = arith.constant dense<0.000000e+00> : vector<8xf32>
    %312 = vector.multi_reduction <add>, %311, %cst_142 [1] : vector<8x32xf32> to vector<8xf32>
    %313 = vector.shape_cast %312 : vector<8xf32> to vector<8x1xf32>
    %cst_143 = arith.constant 3.200000e+01 : f32
    %314 = vector.broadcast %cst_143 : f32 to vector<8x1xf32>
    %315 = arith.divf %313, %314 : vector<8x1xf32>
    %316 = arith.mulf %310, %310 : vector<8x1xf32>
    %317 = arith.subf %315, %316 : vector<8x1xf32>
    %318 = vector.broadcast %310 : vector<8x1xf32> to vector<8x32xf32>
    %319 = arith.subf %304, %318 : vector<8x32xf32>
    %cst_144 = arith.constant 9.99999974E-6 : f32
    %320 = vector.broadcast %cst_144 : f32 to vector<8x1xf32>
    %321 = arith.addf %317, %320 : vector<8x1xf32>
    %322 = math.rsqrt %321 : vector<8x1xf32>
    %323 = vector.broadcast %322 : vector<8x1xf32> to vector<8x32xf32>
    %324 = arith.mulf %319, %323 : vector<8x32xf32>
    %325 = vector.broadcast %305 : vector<1x32xf32> to vector<8x32xf32>
    %326 = arith.mulf %324, %325 : vector<8x32xf32>
    %327 = vector.broadcast %306 : vector<1x32xf32> to vector<8x32xf32>
    %328 = arith.addf %326, %327 : vector<8x32xf32>
    %329 = vector.broadcast %9 : vector<8x1xf32> to vector<8x32xf32>
    %330 = arith.mulf %328, %329 : vector<8x32xf32>
    %331 = arith.truncf %330 : vector<8x32xf32> to vector<8x32xbf16>
    %c0_145 = arith.constant 0 : index
    %c0_146 = arith.constant 0 : index
    %c0_147 = arith.constant 0 : index
    %332 = vector.load %arg26[%c0_145, %c0_146, %c0_147] : memref<1x8x32xbf16, #tpu.memory_space<vmem>>, vector<1x8x32xbf16>
    %333 = vector.shape_cast %332 : vector<1x8x32xbf16> to vector<8x32xbf16>
    %334 = vector.shape_cast %331 : vector<8x32xbf16> to vector<1x8x32xbf16>
    tpu.vector_store %arg26[%c0_145, %c0_146, %c0_147], %334 {strides = array<i32>} : memref<1x8x32xbf16, #tpu.memory_space<vmem>>, vector<1x8x32xbf16>,
    return
  }
  func.func @transform_0(%arg0: i32, %arg1: i32) -> (i32, i32, i32) {
    %c0_i32 = arith.constant 0 : i32
    %c0_i32_0 = arith.constant 0 : i32
    return %arg0, %arg1, %c0_i32 : i32, i32, i32
  }
  func.func @transform_1(%arg0: i32, %arg1: i32) -> (i32, i32, i32) {
    %c0_i32 = arith.constant 0 : i32
    %c0_i32_0 = arith.constant 0 : i32
    %c0_i32_1 = arith.constant 0 : i32
    return %arg0, %c0_i32, %c0_i32_0 : i32, i32, i32
  }
  func.func @transform_2(%arg0: i32, %arg1: i32) -> (i32, i32, i32) {
    %c0_i32 = arith.constant 0 : i32
    %c0_i32_0 = arith.constant 0 : i32
    %c0_i32_1 = arith.constant 0 : i32
    return %arg0, %c0_i32, %c0_i32_0 : i32, i32, i32
  }
  func.func @transform_3(%arg0: i32, %arg1: i32) -> (i32, i32, i32) {
    %c0_i32 = arith.constant 0 : i32
    %c0_i32_0 = arith.constant 0 : i32
    %c0_i32_1 = arith.constant 0 : i32
    return %arg0, %c0_i32, %c0_i32_0 : i32, i32, i32
  }
  func.func @transform_4(%arg0: i32, %arg1: i32) -> (i32, i32, i32) {
    %c0_i32 = arith.constant 0 : i32
    %c0_i32_0 = arith.constant 0 : i32
    %c0_i32_1 = arith.constant 0 : i32
    return %arg0, %c0_i32, %c0_i32_0 : i32, i32, i32
  }
  func.func @transform_5(%arg0: i32, %arg1: i32) -> (i32, i32, i32) {
    %c0_i32 = arith.constant 0 : i32
    %c0_i32_0 = arith.constant 0 : i32
    return %arg0, %arg1, %c0_i32 : i32, i32, i32
  }
  func.func @transform_6(%arg0: i32, %arg1: i32) -> (i32, i32, i32) {
    %c0_i32 = arith.constant 0 : i32
    %c0_i32_0 = arith.constant 0 : i32
    %c0_i32_1 = arith.constant 0 : i32
    %c0_i32_2 = arith.constant 0 : i32
    return %c0_i32, %c0_i32_0, %c0_i32_1 : i32, i32, i32
  }
  func.func @transform_7(%arg0: i32, %arg1: i32) -> (i32, i32, i32) {
    %c0_i32 = arith.constant 0 : i32
    %c0_i32_0 = arith.constant 0 : i32
    %c0_i32_1 = arith.constant 0 : i32
    %c0_i32_2 = arith.constant 0 : i32
    return %c0_i32, %c0_i32_0, %c0_i32_1 : i32, i32, i32
  }
  func.func @transform_8(%arg0: i32, %arg1: i32) -> (i32, i32) {
    %c0_i32 = arith.constant 0 : i32
    %c0_i32_0 = arith.constant 0 : i32
    %c0_i32_1 = arith.constant 0 : i32
    return %c0_i32, %c0_i32_0 : i32, i32
  }
  func.func @transform_9(%arg0: i32, %arg1: i32) -> (i32, i32) {
    %c0_i32 = arith.constant 0 : i32
    %c0_i32_0 = arith.constant 0 : i32
    %c0_i32_1 = arith.constant 0 : i32
    return %c0_i32, %c0_i32_0 : i32, i32
  }
  func.func @transform_10(%arg0: i32, %arg1: i32) -> (i32, i32) {
    %c0_i32 = arith.constant 0 : i32
    %c0_i32_0 = arith.constant 0 : i32
    %c0_i32_1 = arith.constant 0 : i32
    return %c0_i32, %c0_i32_0 : i32, i32
  }
  func.func @transform_11(%arg0: i32, %arg1: i32) -> (i32, i32) {
    %c0_i32 = arith.constant 0 : i32
    %c0_i32_0 = arith.constant 0 : i32
    %c0_i32_1 = arith.constant 0 : i32
    return %c0_i32, %c0_i32_0 : i32, i32
  }
  func.func @transform_12(%arg0: i32, %arg1: i32) -> (i32, i32, i32) {
    %c0_i32 = arith.constant 0 : i32
    %c0_i32_0 = arith.constant 0 : i32
    %c0_i32_1 = arith.constant 0 : i32
    %c0_i32_2 = arith.constant 0 : i32
    return %c0_i32, %c0_i32_0, %c0_i32_1 : i32, i32, i32
  }
  func.func @transform_13(%arg0: i32, %arg1: i32) -> (i32, i32, i32) {
    %c0_i32 = arith.constant 0 : i32
    %c0_i32_0 = arith.constant 0 : i32
    %c0_i32_1 = arith.constant 0 : i32
    %c0_i32_2 = arith.constant 0 : i32
    return %c0_i32, %c0_i32_0, %c0_i32_1 : i32, i32, i32
  }
  func.func @transform_14(%arg0: i32, %arg1: i32) -> (i32, i32) {
    %c0_i32 = arith.constant 0 : i32
    %c0_i32_0 = arith.constant 0 : i32
    %c0_i32_1 = arith.constant 0 : i32
    return %c0_i32, %c0_i32_0 : i32, i32
  }
  func.func @transform_15(%arg0: i32, %arg1: i32) -> (i32, i32) {
    %c0_i32 = arith.constant 0 : i32
    %c0_i32_0 = arith.constant 0 : i32
    %c0_i32_1 = arith.constant 0 : i32
    return %c0_i32, %c0_i32_0 : i32, i32
  }
  func.func @transform_16(%arg0: i32, %arg1: i32) -> (i32, i32) {
    %c0_i32 = arith.constant 0 : i32
    %c0_i32_0 = arith.constant 0 : i32
    %c0_i32_1 = arith.constant 0 : i32
    return %c0_i32, %c0_i32_0 : i32, i32
  }
  func.func @transform_17(%arg0: i32, %arg1: i32) -> (i32, i32) {
    %c0_i32 = arith.constant 0 : i32
    %c0_i32_0 = arith.constant 0 : i32
    %c0_i32_1 = arith.constant 0 : i32
    return %c0_i32, %c0_i32_0 : i32, i32
  }
  func.func @transform_18(%arg0: i32, %arg1: i32) -> (i32, i32) {
    %c0_i32 = arith.constant 0 : i32
    %c0_i32_0 = arith.constant 0 : i32
    %c0_i32_1 = arith.constant 0 : i32
    return %c0_i32, %c0_i32_0 : i32, i32
  }
  func.func @transform_19(%arg0: i32, %arg1: i32) -> (i32, i32) {
    %c0_i32 = arith.constant 0 : i32
    %c0_i32_0 = arith.constant 0 : i32
    %c0_i32_1 = arith.constant 0 : i32
    return %c0_i32, %c0_i32_0 : i32, i32
  }
  func.func @transform_20(%arg0: i32, %arg1: i32) -> (i32, i32) {
    %c0_i32 = arith.constant 0 : i32
    %c0_i32_0 = arith.constant 0 : i32
    %c0_i32_1 = arith.constant 0 : i32
    return %c0_i32, %c0_i32_0 : i32, i32
  }
  func.func @transform_21(%arg0: i32, %arg1: i32) -> (i32, i32) {
    %c0_i32 = arith.constant 0 : i32
    %c0_i32_0 = arith.constant 0 : i32
    %c0_i32_1 = arith.constant 0 : i32
    return %c0_i32, %c0_i32_0 : i32, i32
  }
  func.func @transform_22(%arg0: i32, %arg1: i32) -> (i32, i32) {
    %c0_i32 = arith.constant 0 : i32
    %c0_i32_0 = arith.constant 0 : i32
    %c0_i32_1 = arith.constant 0 : i32
    return %c0_i32, %c0_i32_0 : i32, i32
  }
  func.func @transform_23(%arg0: i32, %arg1: i32) -> (i32, i32) {
    %c0_i32 = arith.constant 0 : i32
    %c0_i32_0 = arith.constant 0 : i32
    %c0_i32_1 = arith.constant 0 : i32
    return %c0_i32, %c0_i32_0 : i32, i32
  }
  func.func @transform_24(%arg0: i32, %arg1: i32) -> (i32, i32, i32) {
    %c0_i32 = arith.constant 0 : i32
    %c0_i32_0 = arith.constant 0 : i32
    return %arg0, %arg1, %c0_i32 : i32, i32, i32
  }
}

module attributes {stable_mosaic.version = 11 : i64} {
  func.func @_decoder_layer_kernel(%arg0: i32, %arg1: i32, %arg2: memref<1x8x32xbf16, #tpu.memory_space<vmem>>, %arg3: memref<1x8x32xbf16, #tpu.memory_space<vmem>>, %arg4: memref<1x8x32xbf16, #tpu.memory_space<vmem>>, %arg5: memref<1x1x8xi32, #tpu.memory_space<vmem>>, %arg6: memref<1x1x8xi32, #tpu.memory_space<vmem>>, %arg7: memref<1x8x1xf32, #tpu.memory_space<vmem>>, %arg8: memref<3x32x32xbf16, #tpu.memory_space<vmem>>, %arg9: memref<3x1x32xf32, #tpu.memory_space<vmem>>, %arg10: memref<32x32xbf16, #tpu.memory_space<vmem>>, %arg11: memref<1x32xf32, #tpu.memory_space<vmem>>, %arg12: memref<1x32xf32, #tpu.memory_space<vmem>>, %arg13: memref<1x32xf32, #tpu.memory_space<vmem>>, %arg14: memref<3x32x32xbf16, #tpu.memory_space<vmem>>, %arg15: memref<3x1x32xf32, #tpu.memory_space<vmem>>, %arg16: memref<32x32xbf16, #tpu.memory_space<vmem>>, %arg17: memref<1x32xf32, #tpu.memory_space<vmem>>, %arg18: memref<1x32xf32, #tpu.memory_space<vmem>>, %arg19: memref<1x32xf32, #tpu.memory_space<vmem>>, %arg20: memref<32x64xbf16, #tpu.memory_space<vmem>>, %arg21: memref<1x64xf32, #tpu.memory_space<vmem>>, %arg22: memref<64x32xbf16, #tpu.memory_space<vmem>>, %arg23: memref<1x32xf32, #tpu.memory_space<vmem>>, %arg24: memref<1x32xf32, #tpu.memory_space<vmem>>, %arg25: memref<1x32xf32, #tpu.memory_space<vmem>>, %arg26: memref<1x8x32xbf16, #tpu.memory_space<vmem>>) attributes {dimension_semantics = [#tpu.dimension_semantics<parallel>, #tpu.dimension_semantics<parallel>], iteration_bounds = array<i64: 2, 1>, scalar_prefetch = 0 : i64, scratch_operands = 0 : i64, tpu.core_type = #tpu.core_type<tc>, window_params = [{transform_indices = @transform_0, window_bounds = array<i64: 1, 8, 32>}, {transform_indices = @transform_1, window_bounds = array<i64: 1, 8, 32>}, {transform_indices = @transform_2, window_bounds = array<i64: 1, 8, 32>}, {transform_indices = @transform_3, window_bounds = array<i64: 1, 1, 8>}, {transform_indices = @transform_4, window_bounds = array<i64: 1, 1, 8>}, {transform_indices = @transform_5, window_bounds = array<i64: 1, 8, 1>}, {pipeline_mode = #tpu.pipeline_mode<synchronous>, transform_indices = @transform_6, window_bounds = array<i64: 3, 32, 32>}, {pipeline_mode = #tpu.pipeline_mode<synchronous>, transform_indices = @transform_7, window_bounds = array<i64: 3, 1, 32>}, {pipeline_mode = #tpu.pipeline_mode<synchronous>, transform_indices = @transform_8, window_bounds = array<i64: 32, 32>}, {pipeline_mode = #tpu.pipeline_mode<synchronous>, transform_indices = @transform_9, window_bounds = array<i64: 1, 32>}, {pipeline_mode = #tpu.pipeline_mode<synchronous>, transform_indices = @transform_10, window_bounds = array<i64: 1, 32>}, {pipeline_mode = #tpu.pipeline_mode<synchronous>, transform_indices = @transform_11, window_bounds = array<i64: 1, 32>}, {pipeline_mode = #tpu.pipeline_mode<synchronous>, transform_indices = @transform_12, window_bounds = array<i64: 3, 32, 32>}, {pipeline_mode = #tpu.pipeline_mode<synchronous>, transform_indices = @transform_13, window_bounds = array<i64: 3, 1, 32>}, {pipeline_mode = #tpu.pipeline_mode<synchronous>, transform_indices = @transform_14, window_bounds = array<i64: 32, 32>}, {pipeline_mode = #tpu.pipeline_mode<synchronous>, transform_indices = @transform_15, window_bounds = array<i64: 1, 32>}, {pipeline_mode = #tpu.pipeline_mode<synchronous>, transform_indices = @transform_16, window_bounds = array<i64: 1, 32>}, {pipeline_mode = #tpu.pipeline_mode<synchronous>, transform_indices = @transform_17, window_bounds = array<i64: 1, 32>}, {pipeline_mode = #tpu.pipeline_mode<synchronous>, transform_indices = @transform_18, window_bounds = array<i64: 32, 64>}, {pipeline_mode = #tpu.pipeline_mode<synchronous>, transform_indices = @transform_19, window_bounds = array<i64: 1, 64>}, {pipeline_mode = #tpu.pipeline_mode<synchronous>, transform_indices = @transform_20, window_bounds = array<i64: 64, 32>}, {pipeline_mode = #tpu.pipeline_mode<synchronous>, transform_indices = @transform_21, window_bounds = array<i64: 1, 32>}, {pipeline_mode = #tpu.pipeline_mode<synchronous>, transform_indices = @transform_22, window_bounds = array<i64: 1, 32>}, {pipeline_mode = #tpu.pipeline_mode<synchronous>, transform_indices = @transform_23, window_bounds = array<i64: 1, 32>}, {transform_indices = @transform_24, window_bounds = array<i64: 1, 8, 32>}]} {
    %c8_i32 = arith.constant 8 : i32
    %0 = arith.muli %arg1, %c8_i32 : i32
    %c0 = arith.constant 0 : index
    %c0_0 = arith.constant 0 : index
    %c0_1 = arith.constant 0 : index
    %1 = vector.load %arg2[%c0, %c0_0, %c0_1] : memref<1x8x32xbf16, #tpu.memory_space<vmem>>, vector<1x8x32xbf16>
    %2 = vector.shape_cast %1 : vector<1x8x32xbf16> to vector<8x32xbf16>
    %3 = arith.extf %2 : vector<8x32xbf16> to vector<8x32xf32>
    %c0_2 = arith.constant 0 : index
    %c0_3 = arith.constant 0 : index
    %c0_4 = arith.constant 0 : index
    %4 = vector.load %arg3[%c0_2, %c0_3, %c0_4] : memref<1x8x32xbf16, #tpu.memory_space<vmem>>, vector<1x8x32xbf16>
    %5 = vector.shape_cast %4 : vector<1x8x32xbf16> to vector<8x32xbf16>
    %c0_5 = arith.constant 0 : index
    %c0_6 = arith.constant 0 : index
    %c0_7 = arith.constant 0 : index
    %6 = vector.load %arg4[%c0_5, %c0_6, %c0_7] : memref<1x8x32xbf16, #tpu.memory_space<vmem>>, vector<1x8x32xbf16>
    %7 = vector.shape_cast %6 : vector<1x8x32xbf16> to vector<8x32xbf16>
    %c0_8 = arith.constant 0 : index
    %c0_9 = arith.constant 0 : index
    %c0_10 = arith.constant 0 : index
    %8 = vector.load %arg7[%c0_8, %c0_9, %c0_10] : memref<1x8x1xf32, #tpu.memory_space<vmem>>, vector<1x8x1xf32>
    %9 = vector.shape_cast %8 : vector<1x8x1xf32> to vector<8x1xf32>
    %10 = tpu.iota {dimensions = array<i32: 0>} : vector<8x8xi32>
    %11 = vector.broadcast %0 : i32 to vector<8x8xi32>
    %12 = arith.addi %11, %10 : vector<8x8xi32>
    %13 = tpu.iota {dimensions = array<i32: 1>} : vector<8x8xi32>
    %c0_11 = arith.constant 0 : index
    %c0_12 = arith.constant 0 : index
    %c0_13 = arith.constant 0 : index
    %14 = vector.load %arg5[%c0_11, %c0_12, %c0_13] : memref<1x1x8xi32, #tpu.memory_space<vmem>>, vector<1x1x8xi32>
    %15 = vector.shape_cast %14 : vector<1x1x8xi32> to vector<1x8xi32>
    %16 = vector.shape_cast %15 : vector<1x8xi32> to vector<1x8xi32>
    %17 = vector.broadcast %16 : vector<1x8xi32> to vector<8x8xi32>
    %c0_i32 = arith.constant 0 : i32
    %18 = vector.broadcast %c0_i32 : i32 to vector<8x8xi32>
    %19 = arith.cmpi eq, %17, %18 : vector<8x8xi32>
    %20 = arith.cmpi sgt, %13, %12 : vector<8x8xi32>
    %21 = arith.ori %19, %20 : vector<8x8xi1>
    %22 = arith.truncf %3 : vector<8x32xf32> to vector<8x32xbf16>
    %c0_14 = arith.constant 0 : index
    %c0_15 = arith.constant 0 : index
    %c0_16 = arith.constant 0 : index
    %23 = vector.load %arg8[%c0_14, %c0_15, %c0_16] : memref<3x32x32xbf16, #tpu.memory_space<vmem>>, vector<1x32x32xbf16>
    %24 = vector.shape_cast %23 : vector<1x32x32xbf16> to vector<32x32xbf16>
    %cst = arith.constant dense<0.000000e+00> : vector<8x32xf32>
    %25 = tpu.matmul %22, %24, %cst {dimension_numbers = #tpu.dot_dimension_numbers<[1], [0], [0], [1], [0, 0, 1, 1], [], []>} : vector<8x32xbf16>, vector<32x32xbf16>, vector<8x32xf32> -> vector<8x32xf32>
    %c0_17 = arith.constant 0 : index
    %c0_18 = arith.constant 0 : index
    %c0_19 = arith.constant 0 : index
    %26 = vector.load %arg9[%c0_17, %c0_18, %c0_19] : memref<3x1x32xf32, #tpu.memory_space<vmem>>, vector<1x1x32xf32>
    %27 = vector.shape_cast %26 : vector<1x1x32xf32> to vector<1x32xf32>
    %28 = vector.broadcast %27 : vector<1x32xf32> to vector<8x32xf32>
    %29 = arith.addf %25, %28 : vector<8x32xf32>
    %30 = arith.truncf %29 : vector<8x32xf32> to vector<8x32xbf16>
    %c1 = arith.constant 1 : index
    %c0_20 = arith.constant 0 : index
    %c0_21 = arith.constant 0 : index
    %31 = vector.load %arg8[%c1, %c0_20, %c0_21] : memref<3x32x32xbf16, #tpu.memory_space<vmem>>, vector<1x32x32xbf16>
    %32 = vector.shape_cast %31 : vector<1x32x32xbf16> to vector<32x32xbf16>
    %cst_22 = arith.constant dense<0.000000e+00> : vector<8x32xf32>
    %33 = tpu.matmul %5, %32, %cst_22 {dimension_numbers = #tpu.dot_dimension_numbers<[1], [0], [0], [1], [0, 0, 1, 1], [], []>} : vector<8x32xbf16>, vector<32x32xbf16>, vector<8x32xf32> -> vector<8x32xf32>
    %c1_23 = arith.constant 1 : index
    %c0_24 = arith.constant 0 : index
    %c0_25 = arith.constant 0 : index
    %34 = vector.load %arg9[%c1_23, %c0_24, %c0_25] : memref<3x1x32xf32, #tpu.memory_space<vmem>>, vector<1x1x32xf32>
    %35 = vector.shape_cast %34 : vector<1x1x32xf32> to vector<1x32xf32>
    %36 = vector.broadcast %35 : vector<1x32xf32> to vector<8x32xf32>
    %37 = arith.addf %33, %36 : vector<8x32xf32>
    %38 = arith.truncf %37 : vector<8x32xf32> to vector<8x32xbf16>
    %c2 = arith.constant 2 : index
    %c0_26 = arith.constant 0 : index
    %c0_27 = arith.constant 0 : index
    %39 = vector.load %arg8[%c2, %c0_26, %c0_27] : memref<3x32x32xbf16, #tpu.memory_space<vmem>>, vector<1x32x32xbf16>
    %40 = vector.shape_cast %39 : vector<1x32x32xbf16> to vector<32x32xbf16>
    %cst_28 = arith.constant dense<0.000000e+00> : vector<8x32xf32>
    %41 = tpu.matmul %5, %40, %cst_28 {dimension_numbers = #tpu.dot_dimension_numbers<[1], [0], [0], [1], [0, 0, 1, 1], [], []>} : vector<8x32xbf16>, vector<32x32xbf16>, vector<8x32xf32> -> vector<8x32xf32>
    %c2_29 = arith.constant 2 : index
    %c0_30 = arith.constant 0 : index
    %c0_31 = arith.constant 0 : index
    %42 = vector.load %arg9[%c2_29, %c0_30, %c0_31] : memref<3x1x32xf32, #tpu.memory_space<vmem>>, vector<1x1x32xf32>
    %43 = vector.shape_cast %42 : vector<1x1x32xf32> to vector<1x32xf32>
    %44 = vector.broadcast %43 : vector<1x32xf32> to vector<8x32xf32>
    %45 = arith.addf %41, %44 : vector<8x32xf32>
    %46 = arith.truncf %45 : vector<8x32xf32> to vector<8x32xbf16>
    %47 = vector.extract_strided_slice %30 {offsets = [0, 0], sizes = [8, 8], strides = [1, 1]} : vector<8x32xbf16> to vector<8x8xbf16>
    %48 = vector.extract_strided_slice %38 {offsets = [0, 0], sizes = [8, 8], strides = [1, 1]} : vector<8x32xbf16> to vector<8x8xbf16>
    %cst_32 = arith.constant dense<0.000000e+00> : vector<8x8xf32>
    %49 = tpu.matmul %47, %48, %cst_32 {dimension_numbers = #tpu.dot_dimension_numbers<[1], [1], [0], [0], [0, 0, 1, 0], [], []>} : vector<8x8xbf16>, vector<8x8xbf16>, vector<8x8xf32> -> vector<8x8xf32>
    %cst_33 = arith.constant -1.000000e+30 : f32
    %50 = vector.broadcast %cst_33 : f32 to vector<8x8xf32>
    %51 = arith.select %21, %50, %49 : vector<8x8xi1>, vector<8x8xf32>
    %cst_34 = arith.constant dense<0xFF800000> : vector<8xf32>
    %52 = vector.multi_reduction <maximumf>, %51, %cst_34 [1] : vector<8x8xf32> to vector<8xf32>
    %53 = vector.shape_cast %52 : vector<8xf32> to vector<8x1xf32>
    %54 = vector.broadcast %53 : vector<8x1xf32> to vector<8x8xf32>
    %55 = arith.subf %51, %54 : vector<8x8xf32>
    %56 = math.exp %55 : vector<8x8xf32>
    %cst_35 = arith.constant dense<0.000000e+00> : vector<8xf32>
    %57 = vector.multi_reduction <add>, %56, %cst_35 [1] : vector<8x8xf32> to vector<8xf32>
    %58 = vector.shape_cast %57 : vector<8xf32> to vector<8x1xf32>
    %59 = tpu.reciprocal %58 {approx = true} : vector<8x1xf32> -> vector<8x1xf32>
    %60 = vector.broadcast %59 : vector<8x1xf32> to vector<8x8xf32>
    %61 = arith.mulf %56, %60 : vector<8x8xf32>
    %62 = arith.truncf %61 : vector<8x8xf32> to vector<8x8xbf16>
    %63 = vector.extract_strided_slice %46 {offsets = [0, 0], sizes = [8, 8], strides = [1, 1]} : vector<8x32xbf16> to vector<8x8xbf16>
    %cst_36 = arith.constant dense<0.000000e+00> : vector<8x8xf32>
    %64 = tpu.matmul %62, %63, %cst_36 {dimension_numbers = #tpu.dot_dimension_numbers<[1], [0], [0], [1], [0, 0, 1, 1], [], []>} : vector<8x8xbf16>, vector<8x8xbf16>, vector<8x8xf32> -> vector<8x8xf32>
    %65 = vector.extract_strided_slice %30 {offsets = [0, 8], sizes = [8, 8], strides = [1, 1]} : vector<8x32xbf16> to vector<8x8xbf16>
    %66 = vector.extract_strided_slice %38 {offsets = [0, 8], sizes = [8, 8], strides = [1, 1]} : vector<8x32xbf16> to vector<8x8xbf16>
    %cst_37 = arith.constant dense<0.000000e+00> : vector<8x8xf32>
    %67 = tpu.matmul %65, %66, %cst_37 {dimension_numbers = #tpu.dot_dimension_numbers<[1], [1], [0], [0], [0, 0, 1, 0], [], []>} : vector<8x8xbf16>, vector<8x8xbf16>, vector<8x8xf32> -> vector<8x8xf32>
    %cst_38 = arith.constant -1.000000e+30 : f32
    %68 = vector.broadcast %cst_38 : f32 to vector<8x8xf32>
    %69 = arith.select %21, %68, %67 : vector<8x8xi1>, vector<8x8xf32>
    %cst_39 = arith.constant dense<0xFF800000> : vector<8xf32>
    %70 = vector.multi_reduction <maximumf>, %69, %cst_39 [1] : vector<8x8xf32> to vector<8xf32>
    %71 = vector.shape_cast %70 : vector<8xf32> to vector<8x1xf32>
    %72 = vector.broadcast %71 : vector<8x1xf32> to vector<8x8xf32>
    %73 = arith.subf %69, %72 : vector<8x8xf32>
    %74 = math.exp %73 : vector<8x8xf32>
    %cst_40 = arith.constant dense<0.000000e+00> : vector<8xf32>
    %75 = vector.multi_reduction <add>, %74, %cst_40 [1] : vector<8x8xf32> to vector<8xf32>
    %76 = vector.shape_cast %75 : vector<8xf32> to vector<8x1xf32>
    %77 = tpu.reciprocal %76 {approx = true} : vector<8x1xf32> -> vector<8x1xf32>
    %78 = vector.broadcast %77 : vector<8x1xf32> to vector<8x8xf32>
    %79 = arith.mulf %74, %78 : vector<8x8xf32>
    %80 = arith.truncf %79 : vector<8x8xf32> to vector<8x8xbf16>
    %81 = vector.extract_strided_slice %46 {offsets = [0, 8], sizes = [8, 8], strides = [1, 1]} : vector<8x32xbf16> to vector<8x8xbf16>
    %cst_41 = arith.constant dense<0.000000e+00> : vector<8x8xf32>
    %82 = tpu.matmul %80, %81, %cst_41 {dimension_numbers = #tpu.dot_dimension_numbers<[1], [0], [0], [1], [0, 0, 1, 1], [], []>} : vector<8x8xbf16>, vector<8x8xbf16>, vector<8x8xf32> -> vector<8x8xf32>
    %83 = vector.extract_strided_slice %30 {offsets = [0, 16], sizes = [8, 8], strides = [1, 1]} : vector<8x32xbf16> to vector<8x8xbf16>
    %84 = vector.extract_strided_slice %38 {offsets = [0, 16], sizes = [8, 8], strides = [1, 1]} : vector<8x32xbf16> to vector<8x8xbf16>
    %cst_42 = arith.constant dense<0.000000e+00> : vector<8x8xf32>
    %85 = tpu.matmul %83, %84, %cst_42 {dimension_numbers = #tpu.dot_dimension_numbers<[1], [1], [0], [0], [0, 0, 1, 0], [], []>} : vector<8x8xbf16>, vector<8x8xbf16>, vector<8x8xf32> -> vector<8x8xf32>
    %cst_43 = arith.constant -1.000000e+30 : f32
    %86 = vector.broadcast %cst_43 : f32 to vector<8x8xf32>
    %87 = arith.select %21, %86, %85 : vector<8x8xi1>, vector<8x8xf32>
    %cst_44 = arith.constant dense<0xFF800000> : vector<8xf32>
    %88 = vector.multi_reduction <maximumf>, %87, %cst_44 [1] : vector<8x8xf32> to vector<8xf32>
    %89 = vector.shape_cast %88 : vector<8xf32> to vector<8x1xf32>
    %90 = vector.broadcast %89 : vector<8x1xf32> to vector<8x8xf32>
    %91 = arith.subf %87, %90 : vector<8x8xf32>
    %92 = math.exp %91 : vector<8x8xf32>
    %cst_45 = arith.constant dense<0.000000e+00> : vector<8xf32>
    %93 = vector.multi_reduction <add>, %92, %cst_45 [1] : vector<8x8xf32> to vector<8xf32>
    %94 = vector.shape_cast %93 : vector<8xf32> to vector<8x1xf32>
    %95 = tpu.reciprocal %94 {approx = true} : vector<8x1xf32> -> vector<8x1xf32>
    %96 = vector.broadcast %95 : vector<8x1xf32> to vector<8x8xf32>
    %97 = arith.mulf %92, %96 : vector<8x8xf32>
    %98 = arith.truncf %97 : vector<8x8xf32> to vector<8x8xbf16>
    %99 = vector.extract_strided_slice %46 {offsets = [0, 16], sizes = [8, 8], strides = [1, 1]} : vector<8x32xbf16> to vector<8x8xbf16>
    %cst_46 = arith.constant dense<0.000000e+00> : vector<8x8xf32>
    %100 = tpu.matmul %98, %99, %cst_46 {dimension_numbers = #tpu.dot_dimension_numbers<[1], [0], [0], [1], [0, 0, 1, 1], [], []>} : vector<8x8xbf16>, vector<8x8xbf16>, vector<8x8xf32> -> vector<8x8xf32>
    %101 = vector.extract_strided_slice %30 {offsets = [0, 24], sizes = [8, 8], strides = [1, 1]} : vector<8x32xbf16> to vector<8x8xbf16>
    %102 = vector.extract_strided_slice %38 {offsets = [0, 24], sizes = [8, 8], strides = [1, 1]} : vector<8x32xbf16> to vector<8x8xbf16>
    %cst_47 = arith.constant dense<0.000000e+00> : vector<8x8xf32>
    %103 = tpu.matmul %101, %102, %cst_47 {dimension_numbers = #tpu.dot_dimension_numbers<[1], [1], [0], [0], [0, 0, 1, 0], [], []>} : vector<8x8xbf16>, vector<8x8xbf16>, vector<8x8xf32> -> vector<8x8xf32>
    %cst_48 = arith.constant -1.000000e+30 : f32
    %104 = vector.broadcast %cst_48 : f32 to vector<8x8xf32>
    %105 = arith.select %21, %104, %103 : vector<8x8xi1>, vector<8x8xf32>
    %cst_49 = arith.constant dense<0xFF800000> : vector<8xf32>
    %106 = vector.multi_reduction <maximumf>, %105, %cst_49 [1] : vector<8x8xf32> to vector<8xf32>
    %107 = vector.shape_cast %106 : vector<8xf32> to vector<8x1xf32>
    %108 = vector.broadcast %107 : vector<8x1xf32> to vector<8x8xf32>
    %109 = arith.subf %105, %108 : vector<8x8xf32>
    %110 = math.exp %109 : vector<8x8xf32>
    %cst_50 = arith.constant dense<0.000000e+00> : vector<8xf32>
    %111 = vector.multi_reduction <add>, %110, %cst_50 [1] : vector<8x8xf32> to vector<8xf32>
    %112 = vector.shape_cast %111 : vector<8xf32> to vector<8x1xf32>
    %113 = tpu.reciprocal %112 {approx = true} : vector<8x1xf32> -> vector<8x1xf32>
    %114 = vector.broadcast %113 : vector<8x1xf32> to vector<8x8xf32>
    %115 = arith.mulf %110, %114 : vector<8x8xf32>
    %116 = arith.truncf %115 : vector<8x8xf32> to vector<8x8xbf16>
    %117 = vector.extract_strided_slice %46 {offsets = [0, 24], sizes = [8, 8], strides = [1, 1]} : vector<8x32xbf16> to vector<8x8xbf16>
    %cst_51 = arith.constant dense<0.000000e+00> : vector<8x8xf32>
    %118 = tpu.matmul %116, %117, %cst_51 {dimension_numbers = #tpu.dot_dimension_numbers<[1], [0], [0], [1], [0, 0, 1, 1], [], []>} : vector<8x8xbf16>, vector<8x8xbf16>, vector<8x8xf32> -> vector<8x8xf32>
    %119 = tpu.concatenate %64, %82, %100, %118 in 1 : vector<8x8xf32>, vector<8x8xf32>, vector<8x8xf32>, vector<8x8xf32> -> vector<8x32xf32>
    %120 = arith.truncf %119 : vector<8x32xf32> to vector<8x32xbf16>
    %c0_52 = arith.constant 0 : index
    %c0_53 = arith.constant 0 : index
    %121 = vector.load %arg10[%c0_52, %c0_53] : memref<32x32xbf16, #tpu.memory_space<vmem>>, vector<32x32xbf16>
    %cst_54 = arith.constant dense<0.000000e+00> : vector<8x32xf32>
    %122 = tpu.matmul %120, %121, %cst_54 {dimension_numbers = #tpu.dot_dimension_numbers<[1], [0], [0], [1], [0, 0, 1, 1], [], []>} : vector<8x32xbf16>, vector<32x32xbf16>, vector<8x32xf32> -> vector<8x32xf32>
    %c0_55 = arith.constant 0 : index
    %c0_56 = arith.constant 0 : index
    %123 = vector.load %arg11[%c0_55, %c0_56] : memref<1x32xf32, #tpu.memory_space<vmem>>, vector<1x32xf32>
    %124 = vector.broadcast %123 : vector<1x32xf32> to vector<8x32xf32>
    %125 = arith.addf %122, %124 : vector<8x32xf32>
    %126 = arith.addf %3, %125 : vector<8x32xf32>
    %c0_57 = arith.constant 0 : index
    %c0_58 = arith.constant 0 : index
    %127 = vector.load %arg12[%c0_57, %c0_58] : memref<1x32xf32, #tpu.memory_space<vmem>>, vector<1x32xf32>
    %c0_59 = arith.constant 0 : index
    %c0_60 = arith.constant 0 : index
    %128 = vector.load %arg13[%c0_59, %c0_60] : memref<1x32xf32, #tpu.memory_space<vmem>>, vector<1x32xf32>
    %cst_61 = arith.constant dense<0.000000e+00> : vector<8xf32>
    %129 = vector.multi_reduction <add>, %126, %cst_61 [1] : vector<8x32xf32> to vector<8xf32>
    %130 = vector.shape_cast %129 : vector<8xf32> to vector<8x1xf32>
    %cst_62 = arith.constant 3.200000e+01 : f32
    %131 = vector.broadcast %cst_62 : f32 to vector<8x1xf32>
    %132 = arith.divf %130, %131 : vector<8x1xf32>
    %133 = arith.mulf %126, %126 : vector<8x32xf32>
    %cst_63 = arith.constant dense<0.000000e+00> : vector<8xf32>
    %134 = vector.multi_reduction <add>, %133, %cst_63 [1] : vector<8x32xf32> to vector<8xf32>
    %135 = vector.shape_cast %134 : vector<8xf32> to vector<8x1xf32>
    %cst_64 = arith.constant 3.200000e+01 : f32
    %136 = vector.broadcast %cst_64 : f32 to vector<8x1xf32>
    %137 = arith.divf %135, %136 : vector<8x1xf32>
    %138 = arith.mulf %132, %132 : vector<8x1xf32>
    %139 = arith.subf %137, %138 : vector<8x1xf32>
    %140 = vector.broadcast %132 : vector<8x1xf32> to vector<8x32xf32>
    %141 = arith.subf %126, %140 : vector<8x32xf32>
    %cst_65 = arith.constant 9.99999974E-6 : f32
    %142 = vector.broadcast %cst_65 : f32 to vector<8x1xf32>
    %143 = arith.addf %139, %142 : vector<8x1xf32>
    %144 = math.rsqrt %143 : vector<8x1xf32>
    %145 = vector.broadcast %144 : vector<8x1xf32> to vector<8x32xf32>
    %146 = arith.mulf %141, %145 : vector<8x32xf32>
    %147 = vector.broadcast %127 : vector<1x32xf32> to vector<8x32xf32>
    %148 = arith.mulf %146, %147 : vector<8x32xf32>
    %149 = vector.broadcast %128 : vector<1x32xf32> to vector<8x32xf32>
    %150 = arith.addf %148, %149 : vector<8x32xf32>
    %151 = vector.broadcast %9 : vector<8x1xf32> to vector<8x32xf32>
    %152 = arith.mulf %150, %151 : vector<8x32xf32>
    %c0_66 = arith.constant 0 : index
    %c0_67 = arith.constant 0 : index
    %c0_68 = arith.constant 0 : index
    %153 = vector.load %arg6[%c0_66, %c0_67, %c0_68] : memref<1x1x8xi32, #tpu.memory_space<vmem>>, vector<1x1x8xi32>
    %154 = vector.shape_cast %153 : vector<1x1x8xi32> to vector<1x8xi32>
    %155 = vector.shape_cast %154 : vector<1x8xi32> to vector<1x8xi32>
    %156 = vector.broadcast %155 : vector<1x8xi32> to vector<8x8xi32>
    %c0_i32_69 = arith.constant 0 : i32
    %157 = vector.broadcast %c0_i32_69 : i32 to vector<8x8xi32>
    %158 = arith.cmpi eq, %156, %157 : vector<8x8xi32>
    %159 = arith.truncf %152 : vector<8x32xf32> to vector<8x32xbf16>
    %c0_70 = arith.constant 0 : index
    %c0_71 = arith.constant 0 : index
    %c0_72 = arith.constant 0 : index
    %160 = vector.load %arg14[%c0_70, %c0_71, %c0_72] : memref<3x32x32xbf16, #tpu.memory_space<vmem>>, vector<1x32x32xbf16>
    %161 = vector.shape_cast %160 : vector<1x32x32xbf16> to vector<32x32xbf16>
    %cst_73 = arith.constant dense<0.000000e+00> : vector<8x32xf32>
    %162 = tpu.matmul %159, %161, %cst_73 {dimension_numbers = #tpu.dot_dimension_numbers<[1], [0], [0], [1], [0, 0, 1, 1], [], []>} : vector<8x32xbf16>, vector<32x32xbf16>, vector<8x32xf32> -> vector<8x32xf32>
    %c0_74 = arith.constant 0 : index
    %c0_75 = arith.constant 0 : index
    %c0_76 = arith.constant 0 : index
    %163 = vector.load %arg15[%c0_74, %c0_75, %c0_76] : memref<3x1x32xf32, #tpu.memory_space<vmem>>, vector<1x1x32xf32>
    %164 = vector.shape_cast %163 : vector<1x1x32xf32> to vector<1x32xf32>
    %165 = vector.broadcast %164 : vector<1x32xf32> to vector<8x32xf32>
    %166 = arith.addf %162, %165 : vector<8x32xf32>
    %167 = arith.truncf %166 : vector<8x32xf32> to vector<8x32xbf16>
    %c1_77 = arith.constant 1 : index
    %c0_78 = arith.constant 0 : index
    %c0_79 = arith.constant 0 : index
    %168 = vector.load %arg14[%c1_77, %c0_78, %c0_79] : memref<3x32x32xbf16, #tpu.memory_space<vmem>>, vector<1x32x32xbf16>
    %169 = vector.shape_cast %168 : vector<1x32x32xbf16> to vector<32x32xbf16>
    %cst_80 = arith.constant dense<0.000000e+00> : vector<8x32xf32>
    %170 = tpu.matmul %7, %169, %cst_80 {dimension_numbers = #tpu.dot_dimension_numbers<[1], [0], [0], [1], [0, 0, 1, 1], [], []>} : vector<8x32xbf16>, vector<32x32xbf16>, vector<8x32xf32> -> vector<8x32xf32>
    %c1_81 = arith.constant 1 : index
    %c0_82 = arith.constant 0 : index
    %c0_83 = arith.constant 0 : index
    %171 = vector.load %arg15[%c1_81, %c0_82, %c0_83] : memref<3x1x32xf32, #tpu.memory_space<vmem>>, vector<1x1x32xf32>
    %172 = vector.shape_cast %171 : vector<1x1x32xf32> to vector<1x32xf32>
    %173 = vector.broadcast %172 : vector<1x32xf32> to vector<8x32xf32>
    %174 = arith.addf %170, %173 : vector<8x32xf32>
    %175 = arith.truncf %174 : vector<8x32xf32> to vector<8x32xbf16>
    %c2_84 = arith.constant 2 : index
    %c0_85 = arith.constant 0 : index
    %c0_86 = arith.constant 0 : index
    %176 = vector.load %arg14[%c2_84, %c0_85, %c0_86] : memref<3x32x32xbf16, #tpu.memory_space<vmem>>, vector<1x32x32xbf16>
    %177 = vector.shape_cast %176 : vector<1x32x32xbf16> to vector<32x32xbf16>
    %cst_87 = arith.constant dense<0.000000e+00> : vector<8x32xf32>
    %178 = tpu.matmul %7, %177, %cst_87 {dimension_numbers = #tpu.dot_dimension_numbers<[1], [0], [0], [1], [0, 0, 1, 1], [], []>} : vector<8x32xbf16>, vector<32x32xbf16>, vector<8x32xf32> -> vector<8x32xf32>
    %c2_88 = arith.constant 2 : index
    %c0_89 = arith.constant 0 : index
    %c0_90 = arith.constant 0 : index
    %179 = vector.load %arg15[%c2_88, %c0_89, %c0_90] : memref<3x1x32xf32, #tpu.memory_space<vmem>>, vector<1x1x32xf32>
    %180 = vector.shape_cast %179 : vector<1x1x32xf32> to vector<1x32xf32>
    %181 = vector.broadcast %180 : vector<1x32xf32> to vector<8x32xf32>
    %182 = arith.addf %178, %181 : vector<8x32xf32>
    %183 = arith.truncf %182 : vector<8x32xf32> to vector<8x32xbf16>
    %184 = vector.extract_strided_slice %167 {offsets = [0, 0], sizes = [8, 8], strides = [1, 1]} : vector<8x32xbf16> to vector<8x8xbf16>
    %185 = vector.extract_strided_slice %175 {offsets = [0, 0], sizes = [8, 8], strides = [1, 1]} : vector<8x32xbf16> to vector<8x8xbf16>
    %cst_91 = arith.constant dense<0.000000e+00> : vector<8x8xf32>
    %186 = tpu.matmul %184, %185, %cst_91 {dimension_numbers = #tpu.dot_dimension_numbers<[1], [1], [0], [0], [0, 0, 1, 0], [], []>} : vector<8x8xbf16>, vector<8x8xbf16>, vector<8x8xf32> -> vector<8x8xf32>
    %cst_92 = arith.constant -1.000000e+30 : f32
    %187 = vector.broadcast %cst_92 : f32 to vector<8x8xf32>
    %188 = arith.select %158, %187, %186 : vector<8x8xi1>, vector<8x8xf32>
    %cst_93 = arith.constant dense<0xFF800000> : vector<8xf32>
    %189 = vector.multi_reduction <maximumf>, %188, %cst_93 [1] : vector<8x8xf32> to vector<8xf32>
    %190 = vector.shape_cast %189 : vector<8xf32> to vector<8x1xf32>
    %191 = vector.broadcast %190 : vector<8x1xf32> to vector<8x8xf32>
    %192 = arith.subf %188, %191 : vector<8x8xf32>
    %193 = math.exp %192 : vector<8x8xf32>
    %cst_94 = arith.constant dense<0.000000e+00> : vector<8xf32>
    %194 = vector.multi_reduction <add>, %193, %cst_94 [1] : vector<8x8xf32> to vector<8xf32>
    %195 = vector.shape_cast %194 : vector<8xf32> to vector<8x1xf32>
    %196 = tpu.reciprocal %195 {approx = true} : vector<8x1xf32> -> vector<8x1xf32>
    %197 = vector.broadcast %196 : vector<8x1xf32> to vector<8x8xf32>
    %198 = arith.mulf %193, %197 : vector<8x8xf32>
    %199 = arith.truncf %198 : vector<8x8xf32> to vector<8x8xbf16>
    %200 = vector.extract_strided_slice %183 {offsets = [0, 0], sizes = [8, 8], strides = [1, 1]} : vector<8x32xbf16> to vector<8x8xbf16>
    %cst_95 = arith.constant dense<0.000000e+00> : vector<8x8xf32>
    %201 = tpu.matmul %199, %200, %cst_95 {dimension_numbers = #tpu.dot_dimension_numbers<[1], [0], [0], [1], [0, 0, 1, 1], [], []>} : vector<8x8xbf16>, vector<8x8xbf16>, vector<8x8xf32> -> vector<8x8xf32>
    %202 = vector.extract_strided_slice %167 {offsets = [0, 8], sizes = [8, 8], strides = [1, 1]} : vector<8x32xbf16> to vector<8x8xbf16>
    %203 = vector.extract_strided_slice %175 {offsets = [0, 8], sizes = [8, 8], strides = [1, 1]} : vector<8x32xbf16> to vector<8x8xbf16>
    %cst_96 = arith.constant dense<0.000000e+00> : vector<8x8xf32>
    %204 = tpu.matmul %202, %203, %cst_96 {dimension_numbers = #tpu.dot_dimension_numbers<[1], [1], [0], [0], [0, 0, 1, 0], [], []>} : vector<8x8xbf16>, vector<8x8xbf16>, vector<8x8xf32> -> vector<8x8xf32>
    %cst_97 = arith.constant -1.000000e+30 : f32
    %205 = vector.broadcast %cst_97 : f32 to vector<8x8xf32>
    %206 = arith.select %158, %205, %204 : vector<8x8xi1>, vector<8x8xf32>
    %cst_98 = arith.constant dense<0xFF800000> : vector<8xf32>
    %207 = vector.multi_reduction <maximumf>, %206, %cst_98 [1] : vector<8x8xf32> to vector<8xf32>
    %208 = vector.shape_cast %207 : vector<8xf32> to vector<8x1xf32>
    %209 = vector.broadcast %208 : vector<8x1xf32> to vector<8x8xf32>
    %210 = arith.subf %206, %209 : vector<8x8xf32>
    %211 = math.exp %210 : vector<8x8xf32>
    %cst_99 = arith.constant dense<0.000000e+00> : vector<8xf32>
    %212 = vector.multi_reduction <add>, %211, %cst_99 [1] : vector<8x8xf32> to vector<8xf32>
    %213 = vector.shape_cast %212 : vector<8xf32> to vector<8x1xf32>
    %214 = tpu.reciprocal %213 {approx = true} : vector<8x1xf32> -> vector<8x1xf32>
    %215 = vector.broadcast %214 : vector<8x1xf32> to vector<8x8xf32>
    %216 = arith.mulf %211, %215 : vector<8x8xf32>
    %217 = arith.truncf %216 : vector<8x8xf32> to vector<8x8xbf16>
    %218 = vector.extract_strided_slice %183 {offsets = [0, 8], sizes = [8, 8], strides = [1, 1]} : vector<8x32xbf16> to vector<8x8xbf16>
    %cst_100 = arith.constant dense<0.000000e+00> : vector<8x8xf32>
    %219 = tpu.matmul %217, %218, %cst_100 {dimension_numbers = #tpu.dot_dimension_numbers<[1], [0], [0], [1], [0, 0, 1, 1], [], []>} : vector<8x8xbf16>, vector<8x8xbf16>, vector<8x8xf32> -> vector<8x8xf32>
    %220 = vector.extract_strided_slice %167 {offsets = [0, 16], sizes = [8, 8], strides = [1, 1]} : vector<8x32xbf16> to vector<8x8xbf16>
    %221 = vector.extract_strided_slice %175 {offsets = [0, 16], sizes = [8, 8], strides = [1, 1]} : vector<8x32xbf16> to vector<8x8xbf16>
    %cst_101 = arith.constant dense<0.000000e+00> : vector<8x8xf32>
    %222 = tpu.matmul %220, %221, %cst_101 {dimension_numbers = #tpu.dot_dimension_numbers<[1], [1], [0], [0], [0, 0, 1, 0], [], []>} : vector<8x8xbf16>, vector<8x8xbf16>, vector<8x8xf32> -> vector<8x8xf32>
    %cst_102 = arith.constant -1.000000e+30 : f32
    %223 = vector.broadcast %cst_102 : f32 to vector<8x8xf32>
    %224 = arith.select %158, %223, %222 : vector<8x8xi1>, vector<8x8xf32>
    %cst_103 = arith.constant dense<0xFF800000> : vector<8xf32>
    %225 = vector.multi_reduction <maximumf>, %224, %cst_103 [1] : vector<8x8xf32> to vector<8xf32>
    %226 = vector.shape_cast %225 : vector<8xf32> to vector<8x1xf32>
    %227 = vector.broadcast %226 : vector<8x1xf32> to vector<8x8xf32>
    %228 = arith.subf %224, %227 : vector<8x8xf32>
    %229 = math.exp %228 : vector<8x8xf32>
    %cst_104 = arith.constant dense<0.000000e+00> : vector<8xf32>
    %230 = vector.multi_reduction <add>, %229, %cst_104 [1] : vector<8x8xf32> to vector<8xf32>
    %231 = vector.shape_cast %230 : vector<8xf32> to vector<8x1xf32>
    %232 = tpu.reciprocal %231 {approx = true} : vector<8x1xf32> -> vector<8x1xf32>
    %233 = vector.broadcast %232 : vector<8x1xf32> to vector<8x8xf32>
    %234 = arith.mulf %229, %233 : vector<8x8xf32>
    %235 = arith.truncf %234 : vector<8x8xf32> to vector<8x8xbf16>
    %236 = vector.extract_strided_slice %183 {offsets = [0, 16], sizes = [8, 8], strides = [1, 1]} : vector<8x32xbf16> to vector<8x8xbf16>
    %cst_105 = arith.constant dense<0.000000e+00> : vector<8x8xf32>
    %237 = tpu.matmul %235, %236, %cst_105 {dimension_numbers = #tpu.dot_dimension_numbers<[1], [0], [0], [1], [0, 0, 1, 1], [], []>} : vector<8x8xbf16>, vector<8x8xbf16>, vector<8x8xf32> -> vector<8x8xf32>
    %238 = vector.extract_strided_slice %167 {offsets = [0, 24], sizes = [8, 8], strides = [1, 1]} : vector<8x32xbf16> to vector<8x8xbf16>
    %239 = vector.extract_strided_slice %175 {offsets = [0, 24], sizes = [8, 8], strides = [1, 1]} : vector<8x32xbf16> to vector<8x8xbf16>
    %cst_106 = arith.constant dense<0.000000e+00> : vector<8x8xf32>
    %240 = tpu.matmul %238, %239, %cst_106 {dimension_numbers = #tpu.dot_dimension_numbers<[1], [1], [0], [0], [0, 0, 1, 0], [], []>} : vector<8x8xbf16>, vector<8x8xbf16>, vector<8x8xf32> -> vector<8x8xf32>
    %cst_107 = arith.constant -1.000000e+30 : f32
    %241 = vector.broadcast %cst_107 : f32 to vector<8x8xf32>
    %242 = arith.select %158, %241, %240 : vector<8x8xi1>, vector<8x8xf32>
    %cst_108 = arith.constant dense<0xFF800000> : vector<8xf32>
    %243 = vector.multi_reduction <maximumf>, %242, %cst_108 [1] : vector<8x8xf32> to vector<8xf32>
    %244 = vector.shape_cast %243 : vector<8xf32> to vector<8x1xf32>
    %245 = vector.broadcast %244 : vector<8x1xf32> to vector<8x8xf32>
    %246 = arith.subf %242, %245 : vector<8x8xf32>
    %247 = math.exp %246 : vector<8x8xf32>
    %cst_109 = arith.constant dense<0.000000e+00> : vector<8xf32>
    %248 = vector.multi_reduction <add>, %247, %cst_109 [1] : vector<8x8xf32> to vector<8xf32>
    %249 = vector.shape_cast %248 : vector<8xf32> to vector<8x1xf32>
    %250 = tpu.reciprocal %249 {approx = true} : vector<8x1xf32> -> vector<8x1xf32>
    %251 = vector.broadcast %250 : vector<8x1xf32> to vector<8x8xf32>
    %252 = arith.mulf %247, %251 : vector<8x8xf32>
    %253 = arith.truncf %252 : vector<8x8xf32> to vector<8x8xbf16>
    %254 = vector.extract_strided_slice %183 {offsets = [0, 24], sizes = [8, 8], strides = [1, 1]} : vector<8x32xbf16> to vector<8x8xbf16>
    %cst_110 = arith.constant dense<0.000000e+00> : vector<8x8xf32>
    %255 = tpu.matmul %253, %254, %cst_110 {dimension_numbers = #tpu.dot_dimension_numbers<[1], [0], [0], [1], [0, 0, 1, 1], [], []>} : vector<8x8xbf16>, vector<8x8xbf16>, vector<8x8xf32> -> vector<8x8xf32>
    %256 = tpu.concatenate %201, %219, %237, %255 in 1 : vector<8x8xf32>, vector<8x8xf32>, vector<8x8xf32>, vector<8x8xf32> -> vector<8x32xf32>
    %257 = arith.truncf %256 : vector<8x32xf32> to vector<8x32xbf16>
    %c0_111 = arith.constant 0 : index
    %c0_112 = arith.constant 0 : index
    %258 = vector.load %arg16[%c0_111, %c0_112] : memref<32x32xbf16, #tpu.memory_space<vmem>>, vector<32x32xbf16>
    %cst_113 = arith.constant dense<0.000000e+00> : vector<8x32xf32>
    %259 = tpu.matmul %257, %258, %cst_113 {dimension_numbers = #tpu.dot_dimension_numbers<[1], [0], [0], [1], [0, 0, 1, 1], [], []>} : vector<8x32xbf16>, vector<32x32xbf16>, vector<8x32xf32> -> vector<8x32xf32>
    %c0_114 = arith.constant 0 : index
    %c0_115 = arith.constant 0 : index
    %260 = vector.load %arg17[%c0_114, %c0_115] : memref<1x32xf32, #tpu.memory_space<vmem>>, vector<1x32xf32>
    %261 = vector.broadcast %260 : vector<1x32xf32> to vector<8x32xf32>
    %262 = arith.addf %259, %261 : vector<8x32xf32>
    %263 = arith.addf %152, %262 : vector<8x32xf32>
    %c0_116 = arith.constant 0 : index
    %c0_117 = arith.constant 0 : index
    %264 = vector.load %arg18[%c0_116, %c0_117] : memref<1x32xf32, #tpu.memory_space<vmem>>, vector<1x32xf32>
    %c0_118 = arith.constant 0 : index
    %c0_119 = arith.constant 0 : index
    %265 = vector.load %arg19[%c0_118, %c0_119] : memref<1x32xf32, #tpu.memory_space<vmem>>, vector<1x32xf32>
    %cst_120 = arith.constant dense<0.000000e+00> : vector<8xf32>
    %266 = vector.multi_reduction <add>, %263, %cst_120 [1] : vector<8x32xf32> to vector<8xf32>
    %267 = vector.shape_cast %266 : vector<8xf32> to vector<8x1xf32>
    %cst_121 = arith.constant 3.200000e+01 : f32
    %268 = vector.broadcast %cst_121 : f32 to vector<8x1xf32>
    %269 = arith.divf %267, %268 : vector<8x1xf32>
    %270 = arith.mulf %263, %263 : vector<8x32xf32>
    %cst_122 = arith.constant dense<0.000000e+00> : vector<8xf32>
    %271 = vector.multi_reduction <add>, %270, %cst_122 [1] : vector<8x32xf32> to vector<8xf32>
    %272 = vector.shape_cast %271 : vector<8xf32> to vector<8x1xf32>
    %cst_123 = arith.constant 3.200000e+01 : f32
    %273 = vector.broadcast %cst_123 : f32 to vector<8x1xf32>
    %274 = arith.divf %272, %273 : vector<8x1xf32>
    %275 = arith.mulf %269, %269 : vector<8x1xf32>
    %276 = arith.subf %274, %275 : vector<8x1xf32>
    %277 = vector.broadcast %269 : vector<8x1xf32> to vector<8x32xf32>
    %278 = arith.subf %263, %277 : vector<8x32xf32>
    %cst_124 = arith.constant 9.99999974E-6 : f32
    %279 = vector.broadcast %cst_124 : f32 to vector<8x1xf32>
    %280 = arith.addf %276, %279 : vector<8x1xf32>
    %281 = math.rsqrt %280 : vector<8x1xf32>
    %282 = vector.broadcast %281 : vector<8x1xf32> to vector<8x32xf32>
    %283 = arith.mulf %278, %282 : vector<8x32xf32>
    %284 = vector.broadcast %264 : vector<1x32xf32> to vector<8x32xf32>
    %285 = arith.mulf %283, %284 : vector<8x32xf32>
    %286 = vector.broadcast %265 : vector<1x32xf32> to vector<8x32xf32>
    %287 = arith.addf %285, %286 : vector<8x32xf32>
    %288 = vector.broadcast %9 : vector<8x1xf32> to vector<8x32xf32>
    %289 = arith.mulf %287, %288 : vector<8x32xf32>
    %290 = arith.truncf %289 : vector<8x32xf32> to vector<8x32xbf16>
    %c0_125 = arith.constant 0 : index
    %c0_126 = arith.constant 0 : index
    %291 = vector.load %arg20[%c0_125, %c0_126] : memref<32x64xbf16, #tpu.memory_space<vmem>>, vector<32x64xbf16>
    %cst_127 = arith.constant dense<0.000000e+00> : vector<8x64xf32>
    %292 = tpu.matmul %290, %291, %cst_127 {dimension_numbers = #tpu.dot_dimension_numbers<[1], [0], [0], [1], [0, 0, 1, 1], [], []>} : vector<8x32xbf16>, vector<32x64xbf16>, vector<8x64xf32> -> vector<8x64xf32>
    %c0_128 = arith.constant 0 : index
    %c0_129 = arith.constant 0 : index
    %293 = vector.load %arg21[%c0_128, %c0_129] : memref<1x64xf32, #tpu.memory_space<vmem>>, vector<1x64xf32>
    %294 = vector.broadcast %293 : vector<1x64xf32> to vector<8x64xf32>
    %295 = arith.addf %292, %294 : vector<8x64xf32>
    %cst_130 = arith.constant 0.000000e+00 : f32
    %296 = vector.broadcast %cst_130 : f32 to vector<8x64xf32>
    %297 = arith.maximumf %295, %296 : vector<8x64xf32>
    %298 = arith.truncf %297 : vector<8x64xf32> to vector<8x64xbf16>
    %c0_131 = arith.constant 0 : index
    %c0_132 = arith.constant 0 : index
    %299 = vector.load %arg22[%c0_131, %c0_132] : memref<64x32xbf16, #tpu.memory_space<vmem>>, vector<64x32xbf16>
    %cst_133 = arith.constant dense<0.000000e+00> : vector<8x32xf32>
    %300 = tpu.matmul %298, %299, %cst_133 {dimension_numbers = #tpu.dot_dimension_numbers<[1], [0], [0], [1], [0, 0, 1, 1], [], []>} : vector<8x64xbf16>, vector<64x32xbf16>, vector<8x32xf32> -> vector<8x32xf32>
    %c0_134 = arith.constant 0 : index
    %c0_135 = arith.constant 0 : index
    %301 = vector.load %arg23[%c0_134, %c0_135] : memref<1x32xf32, #tpu.memory_space<vmem>>, vector<1x32xf32>
    %302 = vector.broadcast %301 : vector<1x32xf32> to vector<8x32xf32>
    %303 = arith.addf %300, %302 : vector<8x32xf32>
    %304 = arith.addf %289, %303 : vector<8x32xf32>
    %c0_136 = arith.constant 0 : index
    %c0_137 = arith.constant 0 : index
    %305 = vector.load %arg24[%c0_136, %c0_137] : memref<1x32xf32, #tpu.memory_space<vmem>>, vector<1x32xf32>
    %c0_138 = arith.constant 0 : index
    %c0_139 = arith.constant 0 : index
    %306 = vector.load %arg25[%c0_138, %c0_139] : memref<1x32xf32, #tpu.memory_space<vmem>>, vector<1x32xf32>
    %cst_140 = arith.constant dense<0.000000e+00> : vector<8xf32>
    %307 = vector.multi_reduction <add>, %304, %cst_140 [1] : vector<8x32xf32> to vector<8xf32>
    %308 = vector.shape_cast %307 : vector<8xf32> to vector<8x1xf32>
    %cst_141 = arith.constant 3.200000e+01 : f32
    %309 = vector.broadcast %cst_141 : f32 to vector<8x1xf32>
    %310 = arith.divf %308, %309 : vector<8x1xf32>
    %311 = arith.mulf %304, %304 : vector<8x32xf32>
    %cst_142 = arith.constant dense<0.000000e+00> : vector<8xf32>
    %312 = vector.multi_reduction <add>, %311, %cst_142 [1] : vector<8x32xf32> to vector<8xf32>
    %313 = vector.shape_cast %312 : vector<8xf32> to vector<8x1xf32>
    %cst_143 = arith.constant 3.200000e+01 : f32
    %314 = vector.broadcast %cst_143 : f32 to vector<8x1xf32>
    %315 = arith.divf %313, %314 : vector<8x1xf32>
    %316 = arith.mulf %310, %310 : vector<8x1xf32>
    %317 = arith.subf %315, %316 : vector<8x1xf32>
    %318 = vector.broadcast %310 : vector<8x1xf32> to vector<8x32xf32>
    %319 = arith.subf %304, %318 : vector<8x32xf32>
    %cst_144 = arith.constant 9.99999974E-6 : f32
    %320 = vector.broadcast %cst_144 : f32 to vector<8x1xf32>
    %321 = arith.addf %317, %320 : vector<8x1xf32>
    %322 = math.rsqrt %321 : vector<8x1xf32>
    %323 = vector.broadcast %322 : vector<8x1xf32> to vector<8x32xf32>
    %324 = arith.mulf %319, %323 : vector<8x32xf32>
    %325 = vector.broadcast %305 : vector<1x32xf32> to vector<8x32xf32>
    %326 = arith.mulf %324, %325 : vector<8x32xf32>
    %327 = vector.broadcast %306 : vector<1x32xf32> to vector<8x32xf32>
    %328 = arith.addf %326, %327 : vector<8x32xf32>
    %329 = vector.broadcast %9 : vector<8x1xf32> to vector<8x32xf32>
    %330 = arith.mulf %328, %329 : vector<8x32xf32>
    %331 = arith.truncf %330 : vector<8x32xf32> to vector<8x32xbf16>
    %c0_145 = arith.constant 0 : index
    %c0_146 = arith.constant 0 : index
    %c0_147 = arith.constant 0 : index
    %332 = vector.load %arg26[%c0_145, %c0_146, %c0_147] : memref<1x8x32xbf16, #tpu.memory_space<vmem>>, vector<1x8x32xbf16>
    %333 = vector.shape_cast %332 : vector<1x8x32xbf16> to vector<8x32xbf16>
    %334 = vector.shape_cast %331 : vector<8x32xbf16> to vector<1x8x32xbf16>
    tpu.vector_store %arg26[%c0_145, %c0_146, %c0_147], %334 {strides = array<i32>} : memref<1x8x32xbf16, #tpu.memory_space<vmem>>, vector<1x8x32xbf16>,
    return
  }
  func.func @transform_0(%arg0: i32, %arg1: i32) -> (i32, i32, i32) {
    %c0_i32 = arith.constant 0 : i32
    %c0_i32_0 = arith.constant 0 : i32
    return %arg0, %arg1, %c0_i32 : i32, i32, i32
  }
  func.func @transform_1(%arg0: i32, %arg1: i32) -> (i32, i32, i32) {
    %c0_i32 = arith.constant 0 : i32
    %c0_i32_0 = arith.constant 0 : i32
    %c0_i32_1 = arith.constant 0 : i32
    return %arg0, %c0_i32, %c0_i32_0 : i32, i32, i32
  }
  func.func @transform_2(%arg0: i32, %arg1: i32) -> (i32, i32, i32) {
    %c0_i32 = arith.constant 0 : i32
    %c0_i32_0 = arith.constant 0 : i32
    %c0_i32_1 = arith.constant 0 : i32
    return %arg0, %c0_i32, %c0_i32_0 : i32, i32, i32
  }
  func.func @transform_3(%arg0: i32, %arg1: i32) -> (i32, i32, i32) {
    %c0_i32 = arith.constant 0 : i32
    %c0_i32_0 = arith.constant 0 : i32
    %c0_i32_1 = arith.constant 0 : i32
    return %arg0, %c0_i32, %c0_i32_0 : i32, i32, i32
  }
  func.func @transform_4(%arg0: i32, %arg1: i32) -> (i32, i32, i32) {
    %c0_i32 = arith.constant 0 : i32
    %c0_i32_0 = arith.constant 0 : i32
    %c0_i32_1 = arith.constant 0 : i32
    return %arg0, %c0_i32, %c0_i32_0 : i32, i32, i32
  }
  func.func @transform_5(%arg0: i32, %arg1: i32) -> (i32, i32, i32) {
    %c0_i32 = arith.constant 0 : i32
    %c0_i32_0 = arith.constant 0 : i32
    return %arg0, %arg1, %c0_i32 : i32, i32, i32
  }
  func.func @transform_6(%arg0: i32, %arg1: i32) -> (i32, i32, i32) {
    %c0_i32 = arith.constant 0 : i32
    %c0_i32_0 = arith.constant 0 : i32
    %c0_i32_1 = arith.constant 0 : i32
    %c0_i32_2 = arith.constant 0 : i32
    return %c0_i32, %c0_i32_0, %c0_i32_1 : i32, i32, i32
  }
  func.func @transform_7(%arg0: i32, %arg1: i32) -> (i32, i32, i32) {
    %c0_i32 = arith.constant 0 : i32
    %c0_i32_0 = arith.constant 0 : i32
    %c0_i32_1 = arith.constant 0 : i32
    %c0_i32_2 = arith.constant 0 : i32
    return %c0_i32, %c0_i32_0, %c0_i32_1 : i32, i32, i32
  }
  func.func @transform_8(%arg0: i32, %arg1: i32) -> (i32, i32) {
    %c0_i32 = arith.constant 0 : i32
    %c0_i32_0 = arith.constant 0 : i32
    %c0_i32_1 = arith.constant 0 : i32
    return %c0_i32, %c0_i32_0 : i32, i32
  }
  func.func @transform_9(%arg0: i32, %arg1: i32) -> (i32, i32) {
    %c0_i32 = arith.constant 0 : i32
    %c0_i32_0 = arith.constant 0 : i32
    %c0_i32_1 = arith.constant 0 : i32
    return %c0_i32, %c0_i32_0 : i32, i32
  }
  func.func @transform_10(%arg0: i32, %arg1: i32) -> (i32, i32) {
    %c0_i32 = arith.constant 0 : i32
    %c0_i32_0 = arith.constant 0 : i32
    %c0_i32_1 = arith.constant 0 : i32
    return %c0_i32, %c0_i32_0 : i32, i32
  }
  func.func @transform_11(%arg0: i32, %arg1: i32) -> (i32, i32) {
    %c0_i32 = arith.constant 0 : i32
    %c0_i32_0 = arith.constant 0 : i32
    %c0_i32_1 = arith.constant 0 : i32
    return %c0_i32, %c0_i32_0 : i32, i32
  }
  func.func @transform_12(%arg0: i32, %arg1: i32) -> (i32, i32, i32) {
    %c0_i32 = arith.constant 0 : i32
    %c0_i32_0 = arith.constant 0 : i32
    %c0_i32_1 = arith.constant 0 : i32
    %c0_i32_2 = arith.constant 0 : i32
    return %c0_i32, %c0_i32_0, %c0_i32_1 : i32, i32, i32
  }
  func.func @transform_13(%arg0: i32, %arg1: i32) -> (i32, i32, i32) {
    %c0_i32 = arith.constant 0 : i32
    %c0_i32_0 = arith.constant 0 : i32
    %c0_i32_1 = arith.constant 0 : i32
    %c0_i32_2 = arith.constant 0 : i32
    return %c0_i32, %c0_i32_0, %c0_i32_1 : i32, i32, i32
  }
  func.func @transform_14(%arg0: i32, %arg1: i32) -> (i32, i32) {
    %c0_i32 = arith.constant 0 : i32
    %c0_i32_0 = arith.constant 0 : i32
    %c0_i32_1 = arith.constant 0 : i32
    return %c0_i32, %c0_i32_0 : i32, i32
  }
  func.func @transform_15(%arg0: i32, %arg1: i32) -> (i32, i32) {
    %c0_i32 = arith.constant 0 : i32
    %c0_i32_0 = arith.constant 0 : i32
    %c0_i32_1 = arith.constant 0 : i32
    return %c0_i32, %c0_i32_0 : i32, i32
  }
  func.func @transform_16(%arg0: i32, %arg1: i32) -> (i32, i32) {
    %c0_i32 = arith.constant 0 : i32
    %c0_i32_0 = arith.constant 0 : i32
    %c0_i32_1 = arith.constant 0 : i32
    return %c0_i32, %c0_i32_0 : i32, i32
  }
  func.func @transform_17(%arg0: i32, %arg1: i32) -> (i32, i32) {
    %c0_i32 = arith.constant 0 : i32
    %c0_i32_0 = arith.constant 0 : i32
    %c0_i32_1 = arith.constant 0 : i32
    return %c0_i32, %c0_i32_0 : i32, i32
  }
  func.func @transform_18(%arg0: i32, %arg1: i32) -> (i32, i32) {
    %c0_i32 = arith.constant 0 : i32
    %c0_i32_0 = arith.constant 0 : i32
    %c0_i32_1 = arith.constant 0 : i32
    return %c0_i32, %c0_i32_0 : i32, i32
  }
  func.func @transform_19(%arg0: i32, %arg1: i32) -> (i32, i32) {
    %c0_i32 = arith.constant 0 : i32
    %c0_i32_0 = arith.constant 0 : i32
    %c0_i32_1 = arith.constant 0 : i32
    return %c0_i32, %c0_i32_0 : i32, i32
  }
  func.func @transform_20(%arg0: i32, %arg1: i32) -> (i32, i32) {
    %c0_i32 = arith.constant 0 : i32
    %c0_i32_0 = arith.constant 0 : i32
    %c0_i32_1 = arith.constant 0 : i32
    return %c0_i32, %c0_i32_0 : i32, i32
  }
  func.func @transform_21(%arg0: i32, %arg1: i32) -> (i32, i32) {
    %c0_i32 = arith.constant 0 : i32
    %c0_i32_0 = arith.constant 0 : i32
    %c0_i32_1 = arith.constant 0 : i32
    return %c0_i32, %c0_i32_0 : i32, i32
  }
  func.func @transform_22(%arg0: i32, %arg1: i32) -> (i32, i32) {
    %c0_i32 = arith.constant 0 : i32
    %c0_i32_0 = arith.constant 0 : i32
    %c0_i32_1 = arith.constant 0 : i32
    return %c0_i32, %c0_i32_0 : i32, i32
  }
  func.func @transform_23(%arg0: i32, %arg1: i32) -> (i32, i32) {
    %c0_i32 = arith.constant 0 : i32
    %c0_i32_0 = arith.constant 0 : i32
    %c0_i32_1 = arith.constant 0 : i32
    return %c0_i32, %c0_i32_0 : i32, i32
  }
  func.func @transform_24(%arg0: i32, %arg1: i32) -> (i32, i32, i32) {
    %c0_i32 = arith.constant 0 : i32
    %c0_i32_0 = arith.constant 0 : i32
    return %arg0, %arg1, %c0_i32 : i32, i32, i32
  }
}

</mosaic_0001>

<bundles_post_ra>
// kernel: tpu_custom_call.1
= control target key start
LH: loop header
LB: loop body
LE: loop exit
PB: predicated region body
PF: predicated region fallthrough
CT: control target
= control target key end

     0   :  { %s6015_s0 = inlined_call_operand.hbm [shape: bf16[2,8,32], index: 0, kind: input, shape index: {}]   ;;  %s6016_s1 = inlined_call_operand.hbm [shape: bf16[2,8,32], index: 1, kind: input, shape index: {}]   ;;  %s6017_s2 = inlined_call_operand.hbm [shape: bf16[2,8,32], index: 2, kind: input, shape index: {}]   ;;  %s6018_s3 = inlined_call_operand.hbm [shape: s32[2,1,8], index: 3, kind: input, shape index: {}]   ;;  %s6019_s4 = inlined_call_operand.hbm [shape: s32[2,1,8], index: 4, kind: input, shape index: {}]   ;;  %s6020_s5 = inlined_call_operand.hbm [shape: f32[2,8,1], index: 5, kind: input, shape index: {}]   ;;  %s6021_s6 = inlined_call_operand.hbm [shape: bf16[3,32,32], index: 6, kind: input, shape index: {}]   ;;  %s6022_s7 = inlined_call_operand.hbm [shape: f32[3,1,32], index: 7, kind: input, shape index: {}]   ;;  %s6023_s8 = inlined_call_operand.hbm [shape: bf16[32,32], index: 8, kind: input, shape index: {}]   ;;  %s6024_s9 = inlined_call_operand.hbm [shape: f32[1,32], index: 9, kind: input, shape index: {}]   ;;  %s6025_s10 = inlined_call_operand.hbm [shape: f32[1,32], index: 10, kind: input, shape index: {}]   ;;  %s6026_s11 = inlined_call_operand.hbm [shape: f32[1,32], index: 11, kind: input, shape index: {}]   ;;  %s6027_s12 = inlined_call_operand.hbm [shape: bf16[3,32,32], index: 12, kind: input, shape index: {}]   ;;  %s6028_s13 = inlined_call_operand.hbm [shape: f32[3,1,32], index: 13, kind: input, shape index: {}]   ;;  %s6029_s14 = inlined_call_operand.hbm [shape: bf16[32,32], index: 14, kind: input, shape index: {}]   ;;  %s6030_s15 = inlined_call_operand.hbm [shape: f32[1,32], index: 15, kind: input, shape index: {}]   ;;  %s6031_s16 = inlined_call_operand.hbm [shape: f32[1,32], index: 16, kind: input, shape index: {}]   ;;  %s6032_s17 = inlined_call_operand.hbm [shape: f32[1,32], index: 17, kind: input, shape index: {}]   ;;  %s6033_s18 = inlined_call_operand.hbm [shape: bf16[32,64], index: 18, kind: input, shape index: {}]   ;;  %s6034_s19 = inlined_call_operand.hbm [shape: f32[1,64], index: 19, kind: input, shape index: {}]   ;;  %s6035_s20 = inlined_call_operand.hbm [shape: bf16[64,32], index: 20, kind: input, shape index: {}]   ;;  %s6036_s21 = inlined_call_operand.hbm [shape: f32[1,32], index: 21, kind: input, shape index: {}]   ;;  %s6037_s22 = inlined_call_operand.hbm [shape: f32[1,32], index: 22, kind: input, shape index: {}]   ;;  %s6038_s23 = inlined_call_operand.hbm [shape: f32[1,32], index: 23, kind: input, shape index: {}]   ;;  %s6039_s24 = inlined_call_operand.hbm [shape: bf16[2,8,32], index: 24, kind: output, shape index: {}]  }
   0x1   :  { %6093 = sst [smem:[#allocation66_spill]] %s6015_s0 }
   0x2   :  { %6094 = sst [smem:[#allocation67_spill]] %s6016_s1 }
   0x3   :  { %6095 = sst [smem:[#allocation68_spill]] %s6017_s2 }
   0x4   :  { %6096 = sst [smem:[#allocation69_spill]] %s6018_s3 }
   0x5   :  { %6097 = sst [smem:[#allocation70_spill]] %s6019_s4 }
   0x6   :  { %6098 = sst [smem:[#allocation71_spill]] %s6020_s5 }
   0x7   :  { %6099 = sst [smem:[#allocation72_spill]] %s6021_s6 }
   0x8   :  { %6100 = sst [smem:[#allocation73_spill]] %s6022_s7 }
   0x9   :  { %6101 = sst [smem:[#allocation74_spill]] %s6023_s8 }
   0xa   :  { %6102 = sst [smem:[#allocation75_spill]] %s6024_s9 }
   0xb   :  { %6103 = sst [smem:[#allocation76_spill]] %s6025_s10 }
   0xc   :  { %6104 = sst [smem:[#allocation77_spill]] %s6026_s11 }
   0xd   :  { %6105 = sst [smem:[#allocation78_spill]] %s6027_s12 }
   0xe   :  { %6106 = sst [smem:[#allocation79_spill]] %s6028_s13 }
   0xf   :  { %6107 = sst [smem:[#allocation80_spill]] %s6029_s14 }
  0x10   :  { %6108 = sst [smem:[#allocation81_spill]] %s6030_s15 }
  0x11   :  { %6109 = sst [smem:[#allocation82_spill]] %s6031_s16 }
  0x12   :  { %6110 = sst [smem:[#allocation83_spill]] %s6032_s17 }
  0x13   :  { %6111 = sst [smem:[#allocation84_spill]] %s6033_s18 }
  0x14   :  { %6112 = sst [smem:[#allocation85_spill]] %s6034_s19 }
  0x15   :  { %6113 = sst [smem:[#allocation86_spill]] %s6035_s20 }
  0x16   :  { %6114 = sst [smem:[#allocation87_spill]] %s6036_s21 }
  0x17   :  { %6115 = sst [smem:[#allocation88_spill]] %s6037_s22 }
  0x18   :  { %6116 = sst [smem:[#allocation89_spill]] %s6038_s23 }
  0x19   :  { %6117 = sst [smem:[#allocation90_spill]] %s6039_s24 }
  0x1a   :  { %29 = vsyncpa [#allocation3], 0 }
  0x1b   :  { %31 = vsyncpa [#allocation3 + $0x1], 0 }
  0x1c   :  { %32 = vsyncpa [#allocation6], 0 }
  0x1d   :  { %34 = vsyncpa [#allocation6 + $0x1], 0 }
  0x1e   :  { %35 = vsyncpa [#allocation9], 0 }
  0x1f   :  { %37 = vsyncpa [#allocation9 + $0x1], 0 }
  0x20   :  { %38 = vsyncpa [#allocation12], 0 }
  0x21   :  { %40 = vsyncpa [#allocation12 + $0x1], 0 }
  0x22   :  { %41 = vsyncpa [#allocation15], 0 }
  0x23   :  { %42 = vsyncpa [#allocation18], 0 }
  0x24   :  { %43 = vsyncpa [#allocation21], 0 }
  0x25   :  { %44 = vsyncpa [#allocation24], 0 }
  0x26   :  { %45 = vsyncpa [#allocation27], 0 }
  0x27   :  { %46 = vsyncpa [#allocation30], 0 }
  0x28   :  { %47 = vsyncpa [#allocation33], 0 }
  0x29   :  { %48 = vsyncpa [#allocation36], 0 }
  0x2a   :  { %49 = vsyncpa [#allocation39], 0 }
  0x2b   :  { %50 = vsyncpa [#allocation4], 0 }
  0x2c   :  { %52 = vsyncpa [#allocation4 + $0x1], 0  ;;  %s4995_s5 = smov 0   ;;  %s4997_s26 = smov 0  }
  0x2d   :  { %s4999_s27 = smov 0   ;;  %s5001_s28 = smov 0  }
  0x2e   :  { %s5003_s6 = smov 0   ;;  %s5005_s2 = smov 0  }
  0x2f LB: > { %6118 = sst [smem:[#allocation56_spill]] %s4810_s5  ;;  %s5026_s29 = sadd.s32 4294967295, %s4830_s2   ;;  %s4830_s2 = sphi %s5005_s2, %s58_s2   ;;  %s4826_s6 = sphi %s5003_s6, %s6219_s6   ;;  %s4822_s28 = sphi %s5001_s28, %s6218_s28   ;;  %s4818_s27 = sphi %s4999_s27, %s6214_s27   ;;  %s4814_s26 = sphi %s4997_s26, %s6217_s26   ;;  %s4810_s5 = sphi %s4995_s5, %s6216_s5  }
  0x30   : > { %6119 = sst [smem:[#allocation57_spill]] %s4818_s27  ;;  %p3302_p0 = scmp.ge.s32.totalorder %s4830_s2, 1 }
  0x31   : > { %6120 = sst [smem:[#allocation58_spill]] %s4822_s28  ;;  %p6063_p1 = scmp.eq.s32.totalorder %s5026_s29, 0 }
  0x32   : > { %6121 = sst [smem:[#allocation59_spill]] %s4830_s2  ;;  %p641_p2 = scmp.lt.s32.totalorder %s4830_s2, 3 }
  0x33   : > { %6122 = sst [smem:[#allocation60_spill]] %s5026_s29  ;;  %s4832_s7 = smov [#allocation13]  }
  0x34   : > { %p5031_p3 = pnand %p3302_p0, %p641_p2  ;;  %s653_s30 = sshll.u32 %s4832_s7, 4  ;;  %s5035_s30 = int_to_ptr.vmem [resolvable:$true] %s653_s30 }
  0x35   : > { %s4833_s25 = smov [#allocation14]   ;;  %s6126_s24 = sld [smem:[#allocation72_spill]] }
  0x36   : > { %s6123_s0 = scalar_select %p5031_p3, 1, 0 }
  0x37   : > { %p3756_p4 = pneg %p5031_p3  ;;  %s666_s8 = sshll.u32 %s4833_s25, 4  ;;  %s5046_s8 = int_to_ptr.vmem [resolvable:$true] %s666_s8 }
  0x38   : > { %6124 = sst [smem:[#allocation61_spill]] %s6123_s0 }
  0x39   : > { %p5042_p6 = pnand %p3756_p4, %p6063_p1 }
  0x3b   : > { %s6125_s3 = scalar_select %p5042_p6, 1, 0 }
  0x3c   : > { %s4012_s28 = scalar_lea.hbm %s6126_s24, 768  ;;  %p5056_p8 = pneg %p5042_p6 }
  0x3d   : > { %p4013_p7 = scmp.ne.s32.totalorder %s6126_s24, %s4012_s28  ;;  %p4019_p11 = scmp.lt.u32.totalorder %s4012_s28, %s6126_s24 }
  0x3e   : > { %s6127_s0 = scalar_select %p5056_p8, 1, 0 }
  0x3f   : > { %p4015_p9 = pnand %p5056_p8, %p4013_p7 }
  0x41   : > { %p4016_p10 = pneg %p4015_p9 }
  0x43   : > { %p4021_p12 = pnand %p4019_p11, %p4016_p10 }
  0x45   : > { %4024 = shalt.err (!%p4021_p12)
}
  0x46   : > { %s4025_s23 = scalar_lea.vmem %s5035_s30, 768  ;;  %p4033_p4 = scmp.lt.s32.totalorder %s5035_s30, %s5035_s30 }
  0x47   : > { %p4026_p13 = scmp.ne.s32.totalorder %s5035_s30, %s4025_s23  ;;  %p4034_p5 = scmp.lt.s32.totalorder %s4025_s23, %s4025_s23 }
  0x49   : > { %p4028_p0 = pnand %p4026_p13, %p5056_p8  ;;  %p4035_p7 = por %p4034_p5, %p4033_p4 }
  0x4b   : > { %p4029_p2 = pneg %p4028_p0 }
  0x4d   : > { %p4036_p9 = pnand %p4035_p7, %p4029_p2 }
  0x4f   : > { %4039 = shalt.err (!%p4036_p9)
}
  0x50   : > { %s6058_s4 = smov 64   ;;  %s6060_s22 = smov 4  }
  0x51   : > { %3759 = dma.hbm_to_vmem [thread:$0]  (!%p5042_p6), %s6126_s24, 768, %s5035_s30, [#allocation12], %s6058_s4, %s6058_s4, %s6060_s22  }
  0x52   : > { %s6128_s20 = sld [smem:[#allocation73_spill]] }
  0x58   : > { %s4040_s23 = scalar_lea.hbm %s6128_s20, 48 }
  0x59   : > { %p4041_p5 = scmp.ne.s32.totalorder %s6128_s20, %s4040_s23  ;;  %p4047_p12 = scmp.lt.u32.totalorder %s4040_s23, %s6128_s20 }
  0x5b   : > { %p4043_p10 = pnand %p4041_p5, %p5056_p8 }
  0x5d   : > { %p4044_p11 = pneg %p4043_p10 }
  0x5f   : > { %p4049_p13 = pnand %p4047_p12, %p4044_p11 }
  0x61   : > { %4052 = shalt.err (!%p4049_p13)
}
  0x62   : > { %s4053_s30 = scalar_lea.vmem %s5046_s8, 48  ;;  %s4060_s16 = scalar_lea.vmem %s5046_s8, 64 }
  0x63   : > { %p4054_p0 = scmp.ne.s32.totalorder %s5046_s8, %s4053_s30  ;;  %p4061_p7 = scmp.lt.s32.totalorder %s5046_s8, %s5046_s8 }
  0x64   : > { %p4062_p9 = scmp.lt.s32.totalorder %s4060_s16, %s4053_s30 }
  0x65   : > { %p4056_p2 = pnand %p4054_p0, %p5056_p8 }
  0x66   : > { %p4063_p5 = por %p4062_p9, %p4061_p7 }
  0x67   : > { %p4057_p4 = pneg %p4056_p2 }
  0x69   : > { %p4064_p10 = pnand %p4063_p5, %p4057_p4 }
  0x6b   : > { %4067 = shalt.err (!%p4064_p10)
}
  0x6c   : > { %s4836_s12 = smov 16   ;;  %s4837_s14 = smov 1  }
  0x6d   : > { %3762 = dma.hbm_to_vmem [thread:$0]  (!%p5042_p6), %s6128_s20, 48, %s5046_s8, [#allocation15], %s4836_s12, %s4836_s12, %s4837_s14  }
  0x6e   : > { %s4838_s1 = smov [#allocation17]   ;;  %s4839_s25 = smov [#allocation20]  }
  0x6f   : > { %s693_s7 = sshll.u32 %s4838_s1, 4  ;;  %s715_s23 = sshll.u32 %s4839_s25, 4  ;;  %s694_s7 = int_to_ptr.vmem [resolvable:$true] %s693_s7  ;;  %s5107_s23 = int_to_ptr.vmem [resolvable:$true] %s715_s23 }
  0x70   : > { %s6129_s9 = sld [smem:[#allocation75_spill]] }
  0x76   : > { %s4068_s4 = scalar_lea.hbm %s6129_s9, 16 }
  0x77   : > { %p4069_p11 = scmp.ne.s32.totalorder %s6129_s9, %s4068_s4  ;;  %p4075_p0 = scmp.lt.u32.totalorder %s4068_s4, %s6129_s9 }
  0x79   : > { %p4071_p12 = pnand %p4069_p11, %p5056_p8 }
  0x7b   : > { %p4072_p13 = pneg %p4071_p12 }
  0x7d   : > { %p4077_p2 = pnand %p4075_p0, %p4072_p13 }
  0x7f   : > { %4080 = shalt.err (!%p4077_p2)
}
  0x80   : > { %s4081_s28 = scalar_lea.vmem %s694_s7, 16  ;;  %s4088_s1 = scalar_lea.vmem %s694_s7, 32 }
  0x81   : > { %p4082_p4 = scmp.ne.s32.totalorder %s694_s7, %s4081_s28  ;;  %p4089_p5 = scmp.lt.s32.totalorder %s694_s7, %s694_s7 }
  0x82   : > { %p4090_p10 = scmp.lt.s32.totalorder %s4088_s1, %s4081_s28 }
  0x83   : > { %p4084_p7 = pnand %p4082_p4, %p5056_p8 }
  0x84   : > { %p4091_p1 = por %p4090_p10, %p4089_p5 }
  0x85   : > { %p4085_p9 = pneg %p4084_p7 }
  0x87   : > { %p4092_p3 = pnand %p4091_p1, %p4085_p9 }
  0x89   : > { %4095 = shalt.err (!%p4092_p3)
}
  0x8a   : > { %3768 = dma.hbm_to_vmem [thread:$0]  (!%p5042_p6), %s6129_s9, 16, %s694_s7, [#allocation18]  }
  0x8b   : > { %s6130_s11 = sld [smem:[#allocation77_spill]] }
  0x91   : > { %s4096_s30 = scalar_lea.hbm %s6130_s11, 16 }
  0x92   : > { %p4097_p11 = scmp.ne.s32.totalorder %s6130_s11, %s4096_s30  ;;  %p4103_p1 = scmp.lt.u32.totalorder %s4096_s30, %s6130_s11 }
  0x94   : > { %p4099_p12 = pnand %p4097_p11, %p5056_p8 }
  0x96   : > { %p4100_p13 = pneg %p4099_p12 }
  0x98   : > { %p4105_p3 = pnand %p4103_p1, %p4100_p13 }
  0x9a   : > { %4108 = shalt.err (!%p4105_p3)
}
  0x9b   : > { %s4109_s7 = scalar_lea.vmem %s5107_s23, 16  ;;  %s4116_s1 = scalar_lea.vmem %s5107_s23, 32 }
  0x9c   : > { %p4110_p0 = scmp.ne.s32.totalorder %s5107_s23, %s4109_s7  ;;  %p4117_p7 = scmp.lt.s32.totalorder %s5107_s23, %s5107_s23 }
  0x9d   : > { %p4118_p9 = scmp.lt.s32.totalorder %s4116_s1, %s4109_s7 }
  0x9e   : > { %p4112_p2 = pnand %p4110_p0, %p5056_p8 }
  0x9f   : > { %p4119_p5 = por %p4118_p9, %p4117_p7 }
  0xa0   : > { %p4113_p4 = pneg %p4112_p2 }
  0xa2   : > { %p4120_p10 = pnand %p4119_p5, %p4113_p4 }
  0xa4   : > { %4123 = shalt.err (!%p4120_p10)
}
  0xa5   : > { %3774 = dma.hbm_to_vmem [thread:$0]  (!%p5042_p6), %s6130_s11, 16, %s5107_s23, [#allocation21]  }
  0xa6   : > { %s4840_s4 = smov [#allocation23]   ;;  %s4841_s30 = smov [#allocation26]  }
  0xa7   : > { %s738_s25 = sshll.u32 %s4840_s4, 4  ;;  %s765_s16 = sshll.u32 %s4841_s30, 4  ;;  %s739_s25 = int_to_ptr.vmem [resolvable:$true] %s738_s25  ;;  %s5151_s16 = int_to_ptr.vmem [resolvable:$true] %s765_s16 }
  0xa8   : > { %s6131_s13 = sld [smem:[#allocation79_spill]] }
  0xae   : > { %s4124_s28 = scalar_lea.hbm %s6131_s13, 48 }
  0xaf   : > { %p4125_p11 = scmp.ne.s32.totalorder %s6131_s13, %s4124_s28  ;;  %p4131_p1 = scmp.lt.u32.totalorder %s4124_s28, %s6131_s13 }
  0xb1   : > { %p4127_p12 = pnand %p4125_p11, %p5056_p8 }
  0xb3   : > { %p4128_p13 = pneg %p4127_p12 }
  0xb5   : > { %p4133_p3 = pnand %p4131_p1, %p4128_p13 }
  0xb7   : > { %4136 = shalt.err (!%p4133_p3)
}
  0xb8   : > { %s4137_s22 = scalar_lea.vmem %s739_s25, 48  ;;  %s4144_s4 = scalar_lea.vmem %s739_s25, 64 }
  0xb9   : > { %p4138_p0 = scmp.ne.s32.totalorder %s739_s25, %s4137_s22  ;;  %p4145_p7 = scmp.lt.s32.totalorder %s739_s25, %s739_s25 }
  0xba   : > { %p4146_p9 = scmp.lt.s32.totalorder %s4144_s4, %s4137_s22 }
  0xbb   : > { %p4140_p2 = pnand %p4138_p0, %p5056_p8 }
  0xbc   : > { %p4147_p5 = por %p4146_p9, %p4145_p7 }
  0xbd   : > { %p4141_p4 = pneg %p4140_p2 }
  0xbf   : > { %p4148_p10 = pnand %p4147_p5, %p4141_p4 }
  0xc1   : > { %4151 = shalt.err (!%p4148_p10)
}
  0xc2   : > { %3780 = dma.hbm_to_vmem [thread:$0]  (!%p5042_p6), %s6131_s13, 48, %s739_s25, [#allocation24], %s4836_s12, %s4836_s12, %s4837_s14  }
  0xc3   : > { %s6132_s15 = sld [smem:[#allocation81_spill]] }
  0xc9   : > { %s4152_s7 = scalar_lea.hbm %s6132_s15, 16 }
  0xca   : > { %p4153_p11 = scmp.ne.s32.totalorder %s6132_s15, %s4152_s7  ;;  %p4159_p1 = scmp.lt.u32.totalorder %s4152_s7, %s6132_s15 }
  0xcc   : > { %p4155_p12 = pnand %p4153_p11, %p5056_p8 }
  0xce   : > { %p4156_p13 = pneg %p4155_p12 }
  0xd0   : > { %p4161_p3 = pnand %p4159_p1, %p4156_p13 }
  0xd2   : > { %4164 = shalt.err (!%p4161_p3)
}
  0xd3   : > { %s4165_s12 = scalar_lea.vmem %s5151_s16, 16  ;;  %s4172_s14 = scalar_lea.vmem %s5151_s16, 32 }
  0xd4   : > { %p4166_p0 = scmp.ne.s32.totalorder %s5151_s16, %s4165_s12  ;;  %p4173_p7 = scmp.lt.s32.totalorder %s5151_s16, %s5151_s16 }
  0xd5   : > { %p4174_p9 = scmp.lt.s32.totalorder %s4172_s14, %s4165_s12 }
  0xd6   : > { %p4168_p2 = pnand %p4166_p0, %p5056_p8 }
  0xd7   : > { %p4175_p5 = por %p4174_p9, %p4173_p7 }
  0xd8   : > { %p4169_p4 = pneg %p4168_p2 }
  0xda   : > { %p4176_p10 = pnand %p4175_p5, %p4169_p4 }
  0xdc   : > { %4179 = shalt.err (!%p4176_p10)
}
  0xdd   : > { %3786 = dma.hbm_to_vmem [thread:$0]  (!%p5042_p6), %s6132_s15, 16, %s5151_s16, [#allocation27]  }
  0xde   : > { %s4842_s30 = smov [#allocation29]   ;;  %s4843_s8 = smov [#allocation32]  }
  0xdf   : > { %s787_s18 = sshll.u32 %s4842_s30, 4  ;;  %s811_s28 = sshll.u32 %s4843_s8, 4  ;;  %s788_s18 = int_to_ptr.vmem [resolvable:$true] %s787_s18  ;;  %s5198_s28 = int_to_ptr.vmem [resolvable:$true] %s811_s28 }
  0xe0   : > { %s6133_s17 = sld [smem:[#allocation83_spill]] }
  0xe6   : > { %s4180_s24 = scalar_lea.hbm %s6133_s17, 16 }
  0xe7   : > { %p4181_p11 = scmp.ne.s32.totalorder %s6133_s17, %s4180_s24  ;;  %p4187_p1 = scmp.lt.u32.totalorder %s4180_s24, %s6133_s17 }
  0xe9   : > { %p4183_p12 = pnand %p4181_p11, %p5056_p8 }
  0xeb   : > { %p4184_p13 = pneg %p4183_p12 }
  0xed   : > { %p4189_p3 = pnand %p4187_p1, %p4184_p13 }
  0xef   : > { %4192 = shalt.err (!%p4189_p3)
}
  0xf0   : > { %s4193_s14 = scalar_lea.vmem %s788_s18, 16  ;;  %s4200_s25 = scalar_lea.vmem %s788_s18, 32 }
  0xf1   : > { %p4194_p0 = scmp.ne.s32.totalorder %s788_s18, %s4193_s14  ;;  %p4201_p7 = scmp.lt.s32.totalorder %s788_s18, %s788_s18 }
  0xf2   : > { %p4202_p9 = scmp.lt.s32.totalorder %s4200_s25, %s4193_s14 }
  0xf3   : > { %p4196_p2 = pnand %p4194_p0, %p5056_p8 }
  0xf4   : > { %p4203_p5 = por %p4202_p9, %p4201_p7 }
  0xf5   : > { %p4197_p4 = pneg %p4196_p2 }
  0xf7   : > { %p4204_p10 = pnand %p4203_p5, %p4197_p4 }
  0xf9   : > { %4207 = shalt.err (!%p4204_p10)
}
  0xfa   : > { %3792 = dma.hbm_to_vmem [thread:$0]  (!%p5042_p6), %s6133_s17, 16, %s788_s18, [#allocation30]  }
  0xfb   : > { %s6134_s19 = sld [smem:[#allocation85_spill]] }
 0x101   : > { %s4208_s1 = scalar_lea.hbm %s6134_s19, 16 }
 0x102   : > { %p4209_p11 = scmp.ne.s32.totalorder %s6134_s19, %s4208_s1  ;;  %p4215_p1 = scmp.lt.u32.totalorder %s4208_s1, %s6134_s19 }
 0x104   : > { %p4211_p12 = pnand %p4209_p11, %p5056_p8 }
 0x106   : > { %p4212_p13 = pneg %p4211_p12 }
 0x108   : > { %p4217_p3 = pnand %p4215_p1, %p4212_p13 }
 0x10a   : > { %4220 = shalt.err (!%p4217_p3)
}
 0x10b   : > { %s4221_s18 = scalar_lea.vmem %s5198_s28, 16  ;;  %s4228_s16 = scalar_lea.vmem %s5198_s28, 32 }
 0x10c   : > { %p4222_p0 = scmp.ne.s32.totalorder %s5198_s28, %s4221_s18  ;;  %p4229_p7 = scmp.lt.s32.totalorder %s5198_s28, %s5198_s28 }
 0x10d   : > { %p4230_p9 = scmp.lt.s32.totalorder %s4228_s16, %s4221_s18 }
 0x10e   : > { %p4224_p2 = pnand %p4222_p0, %p5056_p8 }
 0x10f   : > { %p4231_p5 = por %p4230_p9, %p4229_p7 }
 0x110   : > { %p4225_p4 = pneg %p4224_p2 }
 0x112   : > { %p4232_p10 = pnand %p4231_p5, %p4225_p4 }
 0x114   : > { %4235 = shalt.err (!%p4232_p10)
}
 0x115   : > { %3798 = dma.hbm_to_vmem [thread:$0]  (!%p5042_p6), %s6134_s19, 16, %s5198_s28, [#allocation33]  }
 0x116   : > { %s4844_s4 = smov [#allocation35]   ;;  %s6135_s21 = sld [smem:[#allocation87_spill]] }
 0x117   : > { %s835_s30 = sshll.u32 %s4844_s4, 4  ;;  %s836_s30 = int_to_ptr.vmem [resolvable:$true] %s835_s30 }
 0x11c   : > { %s4236_s1 = scalar_lea.hbm %s6135_s21, 16 }
 0x11d   : > { %p4237_p11 = scmp.ne.s32.totalorder %s6135_s21, %s4236_s1  ;;  %p4243_p1 = scmp.lt.u32.totalorder %s4236_s1, %s6135_s21 }
 0x11f   : > { %p4239_p12 = pnand %p4237_p11, %p5056_p8 }
 0x121   : > { %p4240_p13 = pneg %p4239_p12 }
 0x123   : > { %p4245_p3 = pnand %p4243_p1, %p4240_p13 }
 0x125   : > { %4248 = shalt.err (!%p4245_p3)
}
 0x126   : > { %s4249_s28 = scalar_lea.vmem %s836_s30, 16  ;;  %s4256_s18 = scalar_lea.vmem %s836_s30, 32 }
 0x127   : > { %p4250_p0 = scmp.ne.s32.totalorder %s836_s30, %s4249_s28  ;;  %p4257_p7 = scmp.lt.s32.totalorder %s836_s30, %s836_s30 }
 0x128   : > { %p4258_p9 = scmp.lt.s32.totalorder %s4256_s18, %s4249_s28 }
 0x129   : > { %p4252_p2 = pnand %p4250_p0, %p5056_p8 }
 0x12a   : > { %p4259_p5 = por %p4258_p9, %p4257_p7 }
 0x12b   : > { %p4253_p4 = pneg %p4252_p2 }
 0x12d   : > { %p4260_p10 = pnand %p4259_p5, %p4253_p4 }
 0x12f   : > { %4263 = shalt.err (!%p4260_p10)
}
 0x130   : > { %3804 = dma.hbm_to_vmem [thread:$0]  (!%p5042_p6), %s6135_s21, 16, %s836_s30, [#allocation36]  }
 0x131   : > { %s3301_s25 = sadd.s32 4294967294, %s4830_s2   ;;  %s70_s4 = sadd.s32 1, %s4826_s6 }
 0x132   : > { %s79_s8 = sadd.s32 1, %s4818_s27  ;;  %p72_p11 = scmp.ge.s32.totalorder %s70_s4, 2 }
 0x133   : > { %p86_p12 = scmp.ne.s32.totalorder %s4818_s27, %s4814_s26  ;;  %p87_p13 = scmp.eq.s32.totalorder %s4830_s2, 0 }
 0x134   : > { %p92_p1 = scmp.ne.s32.totalorder %s4814_s26, %s4810_s5  ;;  %s6221_s4 = smov (%p72_p11, %s70_s4), 0 }
 0x135   : > { %6136 = sst [smem:[#allocation62_spill]] %s6221_s4  ;;  %p5270_p3 = por %p87_p13, %p86_p12 }
 0x136   : > { %p6138_p0 = scmp.eq.s32.totalorder %s5026_s29, 0  ;;  %s74_s1 = ssub.s32 %s4826_s6, %s6221_s4 }
 0x137   : > { %p628_p4 = scmp.eq.s32.totalorder %s5026_s29, 1  ;;  %p77_p7 = scmp.eq.s32.totalorder %s74_s1, 0 }
 0x138   : > { %p5276_p2 = por %p6138_p0, %p92_p1  ;;  %p634_p9 = scmp.eq.s32.totalorder %s3301_s25, 1 }
 0x139   : > { %p5283_p5 = por %p628_p4, %p86_p12  ;;  %p3852_p10 = scmp.lt.s32.totalorder %s4830_s2, 2 }
 0x13a   : > { %s6139_s30 = scalar_select %p5276_p2, 1, 0 }
 0x13b   : > { %s6140_s24 = scalar_select %p5283_p5, 1, 0 }
 0x13c   : > { %s5289_s23 = scalar_select %p77_p7, %s4818_s27, %s79_s8  }
 0x13d   : > { %6141 = sst [smem:[#allocation63_spill]] %s6140_s24  ;;  %p5291_p11 = por %p634_p9, %p92_p1 }
 0x13e   : > { %6142 = sst [smem:[#allocation64_spill]] %s5289_s23  ;;  %s5296_s12 = sand.u32 1, %s4818_s27  }
 0x13f   : > { %s6143_s22 = scalar_select %p5291_p11, 1, 0 }
 0x140   : > { %s5299_s28 = sshll.u32 %s5296_s12, 2  ;;  %s5302_s18 = sshll.u32 %s4826_s6, 6 }
 0x141   : > { %6144 = sst [smem:[#allocation65_spill]] %s6143_s22  ;;  %p5306_p12 = pnand %p3852_p10, %p5270_p3 }
 0x142   : > { %s5311_s14 = sand.u32 1, %s4830_s2   ;;  %s6146_s1 = sld [smem:[#allocation67_spill]] }
 0x143   : > { %s6145_s16 = scalar_select %p5306_p12, 1, 0 }
 0x144   : > { %s891_s11 = scalar_lea.vmem [#allocation5], %s5299_s28  ;;  %p5327_p1 = pneg %p5306_p12 }
 0x145   : > { %s898_s7 = sshll.u32 %s891_s11, 4  ;;  %s5320_s7 = int_to_ptr.vmem [resolvable:$true] %s898_s7 }
 0x146   : > { %s6147_s17 = scalar_select %p5327_p1, 1, 0 }
 0x148   : > { %s5317_s9 = scalar_lea.hbm %s6146_s1, %s5302_s18  ;;  %s4269_s19 = scalar_lea.hbm %s6146_s1, 128 }
 0x149   : > { %s4264_s15 = scalar_lea.hbm %s5317_s9, 64  ;;  %p4270_p4 = scmp.lt.u32.totalorder %s5317_s9, %s6146_s1 }
 0x14a   : > { %p4265_p13 = scmp.ne.s32.totalorder %s5317_s9, %s4264_s15  ;;  %p4271_p7 = scmp.lt.u32.totalorder %s4269_s19, %s4264_s15 }
 0x14b   : > { %p4273_p10 = scmp.lt.u32.totalorder %s4264_s15, %s5317_s9 }
 0x14c   : > { %p4267_p3 = pnand %p5327_p1, %p4265_p13  ;;  %p4272_p9 = por %p4271_p7, %p4270_p4 }
 0x14e   : > { %p4268_p0 = pneg %p4267_p3  ;;  %p4274_p11 = por %p4273_p10, %p4272_p9 }
 0x150   : > { %p4275_p5 = pnand %p4274_p11, %p4268_p0 }
 0x152   : > { %4278 = shalt.err (!%p4275_p5)
}
 0x153   : > { %s4279_s13 = scalar_lea.vmem %s5320_s7, 64  ;;  %s4845_s25 = smov [#allocation5]  }
 0x154   : > { %p4280_p13 = scmp.ne.s32.totalorder %s5320_s7, %s4279_s13  ;;  %s4284_s8 = sshll.u32 %s4845_s25, 4  ;;  %s4285_s8 = int_to_ptr.vmem [resolvable:$false] %s4284_s8 }
 0x155   : > { %s4286_s20 = scalar_lea.vmem %s4285_s8, 128  ;;  %p4287_p6 = scmp.lt.s32.totalorder %s5320_s7, %s4285_s8 }
 0x156   : > { %p4282_p3 = pnand %p4280_p13, %p5327_p1  ;;  %p4288_p8 = scmp.lt.s32.totalorder %s4286_s20, %s4279_s13 }
 0x158   : > { %p4283_p2 = pneg %p4282_p3  ;;  %p4289_p4 = por %p4288_p8, %p4287_p6 }
 0x15a   : > { %p4290_p7 = pnand %p4289_p4, %p4283_p2 }
 0x15c   : > { %4293 = shalt.err (!%p4290_p7)
}
 0x15d   : > { %s6148_s15 = scalar_lea.sflag [#allocation6], %s5311_s14  ;;  %s6074_s19 = sshll.u32 %s4826_s6, 4 }
 0x15e   : > { %3817 = dma.hbm_to_vmem [thread:$0]  (!%p5306_p12), %s5317_s9, 64, %s5320_s7, %s6148_s15  }
 0x15f   : > { %s926_s11 = scalar_lea.vmem [#allocation8], %s5296_s12  ;;  %s6149_s20 = sld [smem:[#allocation69_spill]] }
 0x160   : > { %s933_s25 = sshll.u32 %s926_s11, 4  ;;  %s6089_s21 = scalar_lea.sflag [#allocation9], %s5311_s14  ;;  %s934_s25 = int_to_ptr.vmem [resolvable:$true] %s933_s25 }
 0x165   : > { %s5359_s1 = scalar_lea.hbm %s6149_s20, %s6074_s19  ;;  %s4299_s15 = scalar_lea.hbm %s6149_s20, 32 }
 0x166   : > { %s4294_s4 = scalar_lea.hbm %s5359_s1, 16  ;;  %p4300_p5 = scmp.lt.u32.totalorder %s5359_s1, %s6149_s20 }
 0x167   : > { %p4295_p6 = scmp.ne.s32.totalorder %s5359_s1, %s4294_s4  ;;  %p4301_p11 = scmp.lt.u32.totalorder %s4299_s15, %s4294_s4 }
 0x168   : > { %p4303_p9 = scmp.lt.u32.totalorder %s4294_s4, %s5359_s1 }
 0x169   : > { %p4297_p8 = pnand %p4295_p6, %p5327_p1  ;;  %p4302_p0 = por %p4301_p11, %p4300_p5 }
 0x16b   : > { %p4298_p2 = pneg %p4297_p8  ;;  %p4304_p10 = por %p4303_p9, %p4302_p0 }
 0x16d   : > { %p4305_p13 = pnand %p4304_p10, %p4298_p2 }
 0x16f   : > { %4308 = shalt.err (!%p4305_p13)
}
 0x170   : > { %s4309_s13 = scalar_lea.vmem %s934_s25, 16  ;;  %s4846_s8 = smov [#allocation8]  }
 0x171   : > { %p4310_p3 = scmp.ne.s32.totalorder %s934_s25, %s4309_s13  ;;  %s4314_s19 = sshll.u32 %s4846_s8, 4  ;;  %s4315_s19 = int_to_ptr.vmem [resolvable:$false] %s4314_s19 }
 0x172   : > { %s4316_s9 = scalar_lea.vmem %s4315_s19, 32  ;;  %p4317_p6 = scmp.lt.s32.totalorder %s934_s25, %s4315_s19 }
 0x173   : > { %p4312_p4 = pnand %p4310_p3, %p5327_p1  ;;  %p4318_p8 = scmp.lt.s32.totalorder %s4316_s9, %s4309_s13 }
 0x175   : > { %p4313_p7 = pneg %p4312_p4  ;;  %p4319_p12 = por %p4318_p8, %p4317_p6 }
 0x177   : > { %p4320_p5 = pnand %p4319_p12, %p4313_p7 }
 0x179   : > { %4323 = shalt.err (!%p4320_p5)
}
 0x17a   : > { %p6150_p11 = scmp.ne.s32.totalorder %s6145_s16, 0  ;;  %s6151_s4 = sshll.u32 %s4826_s6, 4 }
 0x17b   : > { %s6152_s15 = sld [smem:[#allocation70_spill]]  ;;  %s4847_s8 = smov [#allocation16]  }
 0x17c   : > { %3823 = dma.hbm_to_vmem [thread:$0]  (!%p6150_p11), %s5359_s1, 16, %s934_s25, %s6089_s21  }
 0x17d   : > { %s679_s19 = sshll.u32 %s4847_s8, 4  ;;  %s4848_s13 = smov [#allocation19]   ;;  %s680_s19 = int_to_ptr.vmem [resolvable:$true] %s679_s19 }
 0x17e   : > { %s704_s9 = sshll.u32 %s4848_s13, 4  ;;  %s6153_s2 = sld [smem:[#allocation74_spill]]  ;;  %s705_s9 = int_to_ptr.vmem [resolvable:$true] %s704_s9 }
 0x17f   : > { %p6155_p2 = scmp.ne.s32.totalorder %s6127_s0, 0 }
 0x181   : > { %s5386_s11 = scalar_lea.hbm %s6152_s15, %s6151_s4 }
 0x184   : > { %s6154_s22 = smov %s6153_s2  ;;  %s4324_s5 = scalar_lea.hbm %s6153_s2, 256 }
 0x185   : > { %p4325_p12 = scmp.ne.s32.totalorder %s6154_s22, %s4324_s5  ;;  %p4331_p10 = scmp.lt.u32.totalorder %s4324_s5, %s6154_s22 }
 0x187   : > { %p4327_p0 = pnand %p4325_p12, %p6155_p2 }
 0x189   : > { %p4328_p9 = pneg %p4327_p0 }
 0x18b   : > { %p4333_p13 = pnand %p4331_p10, %p4328_p9 }
 0x18d   : > { %4336 = shalt.err (!%p4333_p13)
}
 0x18e   : > { %s4337_s4 = scalar_lea.vmem %s680_s19, 256  ;;  %p4345_p6 = scmp.lt.s32.totalorder %s680_s19, %s680_s19 }
 0x18f   : > { %p4338_p3 = scmp.ne.s32.totalorder %s680_s19, %s4337_s4  ;;  %p4346_p8 = scmp.lt.s32.totalorder %s4337_s4, %s4337_s4 }
 0x191   : > { %p4340_p4 = pnand %p4338_p3, %p6155_p2  ;;  %p4347_p5 = por %p4346_p8, %p4345_p6 }
 0x193   : > { %p4341_p7 = pneg %p4340_p4 }
 0x195   : > { %p4348_p11 = pnand %p4347_p5, %p4341_p7 }
 0x197   : > { %4351 = shalt.err (!%p4348_p11)
}
 0x198   : > { %p6156_p12 = scmp.ne.s32.totalorder %s6125_s3, 0  ;;  %s6157_s27 = smov 4  }
 0x199   : > { %s6158_s2 = smov 64   ;;  %s6159_s10 = sld [smem:[#allocation76_spill]] }
 0x19a   : > { %3765 = dma.hbm_to_vmem [thread:$0]  (!%p6156_p12), %s6154_s22, 256, %s680_s19, [#allocation15], %s6158_s2, %s6158_s2, %s6157_s27  }
 0x19f   : > { %s4352_s23 = scalar_lea.hbm %s6159_s10, 16 }
 0x1a0   : > { %p4353_p0 = scmp.ne.s32.totalorder %s6159_s10, %s4352_s23  ;;  %p4359_p10 = scmp.lt.u32.totalorder %s4352_s23, %s6159_s10 }
 0x1a2   : > { %p4355_p11 = pnand %p4353_p0, %p6155_p2 }
 0x1a4   : > { %p4356_p9 = pneg %p4355_p11 }
 0x1a6   : > { %p4361_p13 = pnand %p4359_p10, %p4356_p9 }
 0x1a8   : > { %4364 = shalt.err (!%p4361_p13)
}
 0x1a9   : > { %s4365_s25 = scalar_lea.vmem %s705_s9, 16  ;;  %s4372_s19 = scalar_lea.vmem %s705_s9, 32 }
 0x1aa   : > { %p4366_p3 = scmp.ne.s32.totalorder %s705_s9, %s4365_s25  ;;  %p4373_p6 = scmp.lt.s32.totalorder %s705_s9, %s705_s9 }
 0x1ab   : > { %p4374_p8 = scmp.lt.s32.totalorder %s4372_s19, %s4365_s25 }
 0x1ac   : > { %p4368_p4 = pnand %p4366_p3, %p6155_p2 }
 0x1ad   : > { %p4375_p5 = por %p4374_p8, %p4373_p6 }
 0x1ae   : > { %p4369_p7 = pneg %p4368_p4 }
 0x1b0   : > { %p4376_p1 = pnand %p4375_p5, %p4369_p7 }
 0x1b2   : > { %4379 = shalt.err (!%p4376_p1)
}
 0x1b3   : > { %3771 = dma.hbm_to_vmem [thread:$0]  (!%p6156_p12), %s6159_s10, 16, %s705_s9, [#allocation18]  }
 0x1b4   : > { %s4849_s5 = smov [#allocation22]   ;;  %s4850_s20 = smov [#allocation25]  }
 0x1b5   : > { %s725_s24 = sshll.u32 %s4849_s5, 4  ;;  %s751_s23 = sshll.u32 %s4850_s20, 4  ;;  %s726_s24 = int_to_ptr.vmem [resolvable:$true] %s725_s24  ;;  %s752_s23 = int_to_ptr.vmem [resolvable:$true] %s751_s23 }
 0x1b6   : > { %s6160_s13 = sld [smem:[#allocation78_spill]] }
 0x1bc   : > { %s4380_s1 = scalar_lea.hbm %s6160_s13, 768 }
 0x1bd   : > { %p4381_p1 = scmp.ne.s32.totalorder %s6160_s13, %s4380_s1  ;;  %p4387_p9 = scmp.lt.u32.totalorder %s4380_s1, %s6160_s13 }
 0x1bf   : > { %p4383_p0 = pnand %p4381_p1, %p6155_p2 }
 0x1c1   : > { %p4384_p11 = pneg %p4383_p0 }
 0x1c3   : > { %p4389_p10 = pnand %p4387_p9, %p4384_p11 }
 0x1c5   : > { %4392 = shalt.err (!%p4389_p10)
}
 0x1c6   : > { %s4393_s9 = scalar_lea.vmem %s726_s24, 768  ;;  %p4401_p7 = scmp.lt.s32.totalorder %s726_s24, %s726_s24 }
 0x1c7   : > { %p4394_p13 = scmp.ne.s32.totalorder %s726_s24, %s4393_s9  ;;  %p4402_p6 = scmp.lt.s32.totalorder %s4393_s9, %s4393_s9 }
 0x1c9   : > { %p4396_p3 = pnand %p4394_p13, %p6155_p2  ;;  %p4403_p8 = por %p4402_p6, %p4401_p7 }
 0x1cb   : > { %p4397_p4 = pneg %p4396_p3 }
 0x1cd   : > { %p4404_p5 = pnand %p4403_p8, %p4397_p4 }
 0x1cf   : > { %4407 = shalt.err (!%p4404_p5)
}
 0x1d0   : > { %3777 = dma.hbm_to_vmem [thread:$0]  (!%p6156_p12), %s6160_s13, 768, %s726_s24, [#allocation21], %s6158_s2, %s6158_s2, %s6157_s27  }
 0x1d1   : > { %s6161_s7 = sld [smem:[#allocation80_spill]] }
 0x1d7   : > { %s4408_s8 = scalar_lea.hbm %s6161_s7, 256 }
 0x1d8   : > { %p4409_p1 = scmp.ne.s32.totalorder %s6161_s7, %s4408_s8  ;;  %p4415_p9 = scmp.lt.u32.totalorder %s4408_s8, %s6161_s7 }
 0x1da   : > { %p4411_p0 = pnand %p4409_p1, %p6155_p2 }
 0x1dc   : > { %p4412_p11 = pneg %p4411_p0 }
 0x1de   : > { %p4417_p10 = pnand %p4415_p9, %p4412_p11 }
 0x1e0   : > { %4420 = shalt.err (!%p4417_p10)
}
 0x1e1   : > { %s4421_s9 = scalar_lea.vmem %s752_s23, 256  ;;  %p4429_p7 = scmp.lt.s32.totalorder %s752_s23, %s752_s23 }
 0x1e2   : > { %p4422_p13 = scmp.ne.s32.totalorder %s752_s23, %s4421_s9  ;;  %p4430_p6 = scmp.lt.s32.totalorder %s4421_s9, %s4421_s9 }
 0x1e4   : > { %p4424_p3 = pnand %p4422_p13, %p6155_p2  ;;  %p4431_p8 = por %p4430_p6, %p4429_p7 }
 0x1e6   : > { %p4425_p4 = pneg %p4424_p3 }
 0x1e8   : > { %p4432_p5 = pnand %p4431_p8, %p4425_p4 }
 0x1ea   : > { %4435 = shalt.err (!%p4432_p5)
}
 0x1eb   : > { %3783 = dma.hbm_to_vmem [thread:$0]  (!%p6156_p12), %s6161_s7, 256, %s752_s23, [#allocation24], %s6158_s2, %s6158_s2, %s6157_s27  }
 0x1ec   : > { %s4851_s29 = smov [#allocation28]   ;;  %s4852_s20 = smov [#allocation31]  }
 0x1ed   : > { %s776_s5 = sshll.u32 %s4851_s29, 4  ;;  %s797_s8 = sshll.u32 %s4852_s20, 4  ;;  %s777_s5 = int_to_ptr.vmem [resolvable:$true] %s776_s5  ;;  %s798_s8 = int_to_ptr.vmem [resolvable:$true] %s797_s8 }
 0x1ee   : > { %s6162_s19 = sld [smem:[#allocation82_spill]] }
 0x1f4   : > { %s4436_s4 = scalar_lea.hbm %s6162_s19, 16 }
 0x1f5   : > { %p4437_p1 = scmp.ne.s32.totalorder %s6162_s19, %s4436_s4  ;;  %p4443_p9 = scmp.lt.u32.totalorder %s4436_s4, %s6162_s19 }
 0x1f7   : > { %p4439_p0 = pnand %p4437_p1, %p6155_p2 }
 0x1f9   : > { %p4440_p11 = pneg %p4439_p0 }
 0x1fb   : > { %p4445_p10 = pnand %p4443_p9, %p4440_p11 }
 0x1fd   : > { %4448 = shalt.err (!%p4445_p10)
}
 0x1fe   : > { %s4449_s23 = scalar_lea.vmem %s777_s5, 16  ;;  %s4456_s21 = scalar_lea.vmem %s777_s5, 32 }
 0x1ff   : > { %p4450_p13 = scmp.ne.s32.totalorder %s777_s5, %s4449_s23  ;;  %p4457_p7 = scmp.lt.s32.totalorder %s777_s5, %s777_s5 }
 0x200   : > { %p4458_p6 = scmp.lt.s32.totalorder %s4456_s21, %s4449_s23 }
 0x201   : > { %p4452_p3 = pnand %p4450_p13, %p6155_p2 }
 0x202   : > { %p4459_p8 = por %p4458_p6, %p4457_p7 }
 0x203   : > { %p4453_p4 = pneg %p4452_p3 }
 0x205   : > { %p4460_p5 = pnand %p4459_p8, %p4453_p4 }
 0x207   : > { %4463 = shalt.err (!%p4460_p5)
}
 0x208   : > { %3789 = dma.hbm_to_vmem [thread:$0]  (!%p6156_p12), %s6162_s19, 16, %s777_s5, [#allocation27]  }
 0x209   : > { %s6163_s1 = sld [smem:[#allocation84_spill]] }
 0x20f   : > { %s4464_s25 = scalar_lea.hbm %s6163_s1, 256 }
 0x210   : > { %p4465_p1 = scmp.ne.s32.totalorder %s6163_s1, %s4464_s25  ;;  %p4471_p9 = scmp.lt.u32.totalorder %s4464_s25, %s6163_s1 }
 0x212   : > { %p4467_p0 = pnand %p4465_p1, %p6155_p2 }
 0x214   : > { %p4468_p11 = pneg %p4467_p0 }
 0x216   : > { %p4473_p10 = pnand %p4471_p9, %p4468_p11 }
 0x218   : > { %4476 = shalt.err (!%p4473_p10)
}
 0x219   : > { %s4477_s21 = scalar_lea.vmem %s798_s8, 256  ;;  %p4485_p7 = scmp.lt.s32.totalorder %s798_s8, %s798_s8 }
 0x21a   : > { %p4478_p13 = scmp.ne.s32.totalorder %s798_s8, %s4477_s21  ;;  %p4486_p6 = scmp.lt.s32.totalorder %s4477_s21, %s4477_s21 }
 0x21c   : > { %p4480_p3 = pnand %p4478_p13, %p6155_p2  ;;  %p4487_p8 = por %p4486_p6, %p4485_p7 }
 0x21e   : > { %p4481_p4 = pneg %p4480_p3 }
 0x220   : > { %p4488_p5 = pnand %p4487_p8, %p4481_p4 }
 0x222   : > { %4491 = shalt.err (!%p4488_p5)
}
 0x223   : > { %3795 = dma.hbm_to_vmem [thread:$0]  (!%p6156_p12), %s6163_s1, 256, %s798_s8, [#allocation30], %s6158_s2, %s6158_s2, %s6157_s27  }
 0x224   : > { %s4853_s29 = smov [#allocation34]   ;;  %s4854_s20 = smov [#allocation37]  }
 0x225   : > { %s821_s13 = sshll.u32 %s4853_s29, 4  ;;  %s846_s25 = sshll.u32 %s4854_s20, 4  ;;  %s822_s13 = int_to_ptr.vmem [resolvable:$true] %s821_s13  ;;  %s847_s25 = int_to_ptr.vmem [resolvable:$true] %s846_s25 }
 0x226   : > { %s6164_s24 = sld [smem:[#allocation86_spill]] }
 0x22c   : > { %s4492_s23 = scalar_lea.hbm %s6164_s24, 512 }
 0x22d   : > { %p4493_p1 = scmp.ne.s32.totalorder %s6164_s24, %s4492_s23  ;;  %p4499_p9 = scmp.lt.u32.totalorder %s4492_s23, %s6164_s24 }
 0x22f   : > { %p4495_p0 = pnand %p4493_p1, %p6155_p2 }
 0x231   : > { %p4496_p11 = pneg %p4495_p0 }
 0x233   : > { %p4501_p10 = pnand %p4499_p9, %p4496_p11 }
 0x235   : > { %4504 = shalt.err (!%p4501_p10)
}
 0x236   : > { %s4505_s8 = scalar_lea.vmem %s822_s13, 512  ;;  %p4513_p7 = scmp.lt.s32.totalorder %s822_s13, %s822_s13 }
 0x237   : > { %p4506_p13 = scmp.ne.s32.totalorder %s822_s13, %s4505_s8  ;;  %p4514_p6 = scmp.lt.s32.totalorder %s4505_s8, %s4505_s8 }
 0x239   : > { %p4508_p3 = pnand %p4506_p13, %p6155_p2  ;;  %p4515_p8 = por %p4514_p6, %p4513_p7 }
 0x23b   : > { %p4509_p4 = pneg %p4508_p3 }
 0x23d   : > { %p4516_p5 = pnand %p4515_p8, %p4509_p4 }
 0x23f   : > { %4519 = shalt.err (!%p4516_p5)
}
 0x240   : > { %3801 = dma.hbm_to_vmem [thread:$0]  (!%p6156_p12), %s6164_s24, 512, %s822_s13, [#allocation33], %s6158_s2, %s6158_s2, %s6157_s27  }
 0x241   : > { %s6165_s20 = sld [smem:[#allocation88_spill]] }
 0x247   : > { %s4520_s4 = scalar_lea.hbm %s6165_s20, 16 }
 0x248   : > { %p4521_p1 = scmp.ne.s32.totalorder %s6165_s20, %s4520_s4  ;;  %p4527_p9 = scmp.lt.u32.totalorder %s4520_s4, %s6165_s20 }
 0x24a   : > { %p4523_p0 = pnand %p4521_p1, %p6155_p2 }
 0x24c   : > { %p4524_p11 = pneg %p4523_p0 }
 0x24e   : > { %p4529_p10 = pnand %p4527_p9, %p4524_p11 }
 0x250   : > { %4532 = shalt.err (!%p4529_p10)
}
 0x251   : > { %s4533_s8 = scalar_lea.vmem %s847_s25, 16  ;;  %s4540_s27 = scalar_lea.vmem %s847_s25, 32 }
 0x252   : > { %p4534_p13 = scmp.ne.s32.totalorder %s847_s25, %s4533_s8  ;;  %p4541_p7 = scmp.lt.s32.totalorder %s847_s25, %s847_s25 }
 0x253   : > { %p4542_p6 = scmp.lt.s32.totalorder %s4540_s27, %s4533_s8 }
 0x254   : > { %p4536_p3 = pnand %p4534_p13, %p6155_p2 }
 0x255   : > { %p4543_p8 = por %p4542_p6, %p4541_p7 }
 0x256   : > { %p4537_p4 = pneg %p4536_p3 }
 0x258   : > { %p4544_p5 = pnand %p4543_p8, %p4537_p4 }
 0x25a   : > { %4547 = shalt.err (!%p4544_p5)
}
 0x25b   : > { %3807 = dma.hbm_to_vmem [thread:$0]  (!%p6156_p12), %s6165_s20, 16, %s847_s25, [#allocation36]  }
 0x25c   : > { %s4855_s7 = smov [#allocation38]   ;;  %s6166_s4 = sld [smem:[#allocation89_spill]] }
 0x25d   : > { %s857_s19 = sshll.u32 %s4855_s7, 4  ;;  %s858_s19 = int_to_ptr.vmem [resolvable:$true] %s857_s19 }
 0x262   : > { %s4548_s9 = scalar_lea.hbm %s6166_s4, 16 }
 0x263   : > { %p4549_p1 = scmp.ne.s32.totalorder %s6166_s4, %s4548_s9  ;;  %p4555_p9 = scmp.lt.u32.totalorder %s4548_s9, %s6166_s4 }
 0x265   : > { %p4551_p0 = pnand %p4549_p1, %p6155_p2 }
 0x267   : > { %p4552_p11 = pneg %p4551_p0 }
 0x269   : > { %p4557_p10 = pnand %p4555_p9, %p4552_p11 }
 0x26b   : > { %4560 = shalt.err (!%p4557_p10)
}
 0x26c   : > { %s4561_s25 = scalar_lea.vmem %s858_s19, 16  ;;  %s4568_s27 = scalar_lea.vmem %s858_s19, 32 }
 0x26d   : > { %p4562_p13 = scmp.ne.s32.totalorder %s858_s19, %s4561_s25  ;;  %p4569_p7 = scmp.lt.s32.totalorder %s858_s19, %s858_s19 }
 0x26e   : > { %p4570_p6 = scmp.lt.s32.totalorder %s4568_s27, %s4561_s25 }
 0x26f   : > { %p4564_p3 = pnand %p4562_p13, %p6155_p2 }
 0x270   : > { %p4571_p8 = por %p4570_p6, %p4569_p7 }
 0x271   : > { %p4565_p4 = pneg %p4564_p3 }
 0x273   : > { %p4572_p5 = pnand %p4571_p8, %p4565_p4 }
 0x275   : > { %4575 = shalt.err (!%p4572_p5)
}
 0x276   : > { %3810 = dma.hbm_to_vmem [thread:$0]  (!%p6156_p12), %s6166_s4, 16, %s858_s19, [#allocation39]  }
 0x277   : > { %s6167_s10 = sld [smem:[#allocation66_spill]]  ;;  %s872_s9 = scalar_lea.vmem [#allocation2], %s5299_s28 }
 0x278   : > { %s880_s23 = sshll.u32 %s872_s9, 4  ;;  %s869_s3 = scalar_lea.sflag [#allocation3], %s5296_s12  ;;  %s881_s23 = int_to_ptr.vmem [resolvable:$true] %s880_s23 }
 0x279   : > { %p6168_p1 = scmp.ne.s32.totalorder %s6147_s17, 0 }
 0x27d   : > { %s5569_s29 = scalar_lea.hbm %s6167_s10, %s5302_s18  ;;  %s4581_s8 = scalar_lea.hbm %s6167_s10, 128 }
 0x27e   : > { %s4576_s21 = scalar_lea.hbm %s5569_s29, 64  ;;  %p4582_p12 = scmp.lt.u32.totalorder %s5569_s29, %s6167_s10 }
 0x27f   : > { %p4577_p2 = scmp.ne.s32.totalorder %s5569_s29, %s4576_s21  ;;  %p4583_p9 = scmp.lt.u32.totalorder %s4581_s8, %s4576_s21 }
 0x280   : > { %p4585_p13 = scmp.lt.u32.totalorder %s4576_s21, %s5569_s29 }
 0x281   : > { %p4579_p0 = pnand %p4577_p2, %p6168_p1  ;;  %p4584_p10 = por %p4583_p9, %p4582_p12 }
 0x283   : > { %p4580_p11 = pneg %p4579_p0  ;;  %p4586_p3 = por %p4585_p13, %p4584_p10 }
 0x285   : > { %p4587_p4 = pnand %p4586_p3, %p4580_p11 }
 0x287   : > { %4590 = shalt.err (!%p4587_p4)
}
 0x288   : > { %s4591_s2 = scalar_lea.vmem %s881_s23, 64  ;;  %s4856_s13 = smov [#allocation2]  }
 0x289   : > { %p4592_p7 = scmp.ne.s32.totalorder %s881_s23, %s4591_s2  ;;  %s4596_s7 = sshll.u32 %s4856_s13, 4  ;;  %s4597_s7 = int_to_ptr.vmem [resolvable:$false] %s4596_s7 }
 0x28a   : > { %s4598_s0 = scalar_lea.vmem %s4597_s7, 128  ;;  %p4599_p5 = scmp.lt.s32.totalorder %s881_s23, %s4597_s7 }
 0x28b   : > { %p4594_p6 = pnand %p4592_p7, %p6168_p1  ;;  %p4600_p2 = scmp.lt.s32.totalorder %s4598_s0, %s4591_s2 }
 0x28d   : > { %p4595_p8 = pneg %p4594_p6  ;;  %p4601_p0 = por %p4600_p2, %p4599_p5 }
 0x28f   : > { %p4602_p9 = pnand %p4601_p0, %p4595_p8 }
 0x291   : > { %4605 = shalt.err (!%p4602_p9)
}
 0x292   : > { %p6169_p12 = scmp.ne.s32.totalorder %s6145_s16, 0  ;;  %s6170_s5 = sld [smem:[#allocation68_spill]] }
 0x293   : > { %s909_s25 = scalar_lea.vmem [#allocation7], %s5299_s28 }
 0x294   : > { %3814 = dma.hbm_to_vmem [thread:$0]  (!%p6169_p12), %s5569_s29, 64, %s881_s23, %s869_s3  }
 0x295   : > { %s916_s27 = sshll.u32 %s909_s25, 4  ;;  %s917_s27 = int_to_ptr.vmem [resolvable:$true] %s916_s27 }
 0x298   : > { %s6171_s19 = smov %s6170_s5  ;;  %s5594_s8 = scalar_lea.hbm %s6170_s5, %s5302_s18 }
 0x299   : > { %s4606_s2 = scalar_lea.hbm %s5594_s8, 64  ;;  %s4611_s29 = scalar_lea.hbm %s6171_s19, 128 }
 0x29a   : > { %p4607_p11 = scmp.ne.s32.totalorder %s5594_s8, %s4606_s2  ;;  %p4612_p3 = scmp.lt.u32.totalorder %s5594_s8, %s6171_s19 }
 0x29b   : > { %p4613_p4 = scmp.lt.u32.totalorder %s4611_s29, %s4606_s2  ;;  %p4615_p6 = scmp.lt.u32.totalorder %s4606_s2, %s5594_s8 }
 0x29c   : > { %p4609_p10 = pnand %p4607_p11, %p6168_p1 }
 0x29d   : > { %p4614_p7 = por %p4613_p4, %p4612_p3 }
 0x29e   : > { %p4610_p13 = pneg %p4609_p10 }
 0x29f   : > { %p4616_p8 = por %p4615_p6, %p4614_p7 }
 0x2a1   : > { %p4617_p5 = pnand %p4616_p8, %p4610_p13 }
 0x2a3   : > { %4620 = shalt.err (!%p4617_p5)
}
 0x2a4   : > { %s4621_s28 = scalar_lea.vmem %s917_s27, 64  ;;  %s4857_s18 = smov [#allocation7]  }
 0x2a5   : > { %p4622_p2 = scmp.ne.s32.totalorder %s917_s27, %s4621_s28  ;;  %s4626_s0 = sshll.u32 %s4857_s18, 4  ;;  %s4627_s0 = int_to_ptr.vmem [resolvable:$false] %s4626_s0 }
 0x2a6   : > { %s4628_s9 = scalar_lea.vmem %s4627_s0, 128  ;;  %p4629_p11 = scmp.lt.s32.totalorder %s917_s27, %s4627_s0 }
 0x2a7   : > { %p4624_p0 = pnand %p4622_p2, %p6168_p1  ;;  %p4630_p10 = scmp.lt.s32.totalorder %s4628_s9, %s4621_s28 }
 0x2a9   : > { %p4625_p9 = pneg %p4624_p0  ;;  %p4631_p12 = por %p4630_p10, %p4629_p11 }
 0x2ab   : > { %p4632_p3 = pnand %p4631_p12, %p4625_p9 }
 0x2ad   : > { %4635 = shalt.err (!%p4632_p3)
}
 0x2ae   : > { %p6172_p4 = scmp.ne.s32.totalorder %s6145_s16, 0  ;;  %s6173_s21 = scalar_lea.sflag [#allocation6], %s5311_s14 }
 0x2af   : > { %s943_s5 = scalar_lea.vmem [#allocation10], %s5296_s12  ;;  %s3330_s2 = sshll.u32 %s5296_s12, 3 }
 0x2b0   : > { %3820 = dma.hbm_to_vmem [thread:$0]  (!%p6172_p4), %s5594_s8, 64, %s917_s27, %s6173_s21  }
 0x2b1   : > { %s950_s25 = sshll.u32 %s943_s5, 4  ;;  %s4636_s13 = scalar_lea.hbm %s5386_s11, 16  ;;  %s951_s25 = int_to_ptr.vmem [resolvable:$true] %s950_s25 }
 0x2b2   : > { %p4637_p12 = scmp.ne.s32.totalorder %s5386_s11, %s4636_s13  ;;  %s4641_s23 = scalar_lea.hbm %s6152_s15, 32 }
 0x2b3   : > { %p4642_p6 = scmp.lt.u32.totalorder %s5386_s11, %s6152_s15  ;;  %p4643_p8 = scmp.lt.u32.totalorder %s4641_s23, %s4636_s13 }
 0x2b4   : > { %p4639_p13 = pnand %p4637_p12, %p6168_p1  ;;  %p4645_p2 = scmp.lt.u32.totalorder %s4636_s13, %s5386_s11 }
 0x2b5   : > { %p4644_p5 = por %p4643_p8, %p4642_p6 }
 0x2b6   : > { %p4640_p7 = pneg %p4639_p13 }
 0x2b7   : > { %p4646_p0 = por %p4645_p2, %p4644_p5 }
 0x2b9   : > { %p4647_p9 = pnand %p4646_p0, %p4640_p7 }
 0x2bb   : > { %4650 = shalt.err (!%p4647_p9)
}
 0x2bc   : > { %s4651_s8 = scalar_lea.vmem %s951_s25, 16  ;;  %s4858_s27 = smov [#allocation10]  }
 0x2bd   : > { %p4652_p11 = scmp.ne.s32.totalorder %s951_s25, %s4651_s8  ;;  %s4656_s18 = sshll.u32 %s4858_s27, 4  ;;  %s4657_s18 = int_to_ptr.vmem [resolvable:$false] %s4656_s18 }
 0x2be   : > { %s4658_s0 = scalar_lea.vmem %s4657_s18, 32  ;;  %p4659_p12 = scmp.lt.s32.totalorder %s951_s25, %s4657_s18 }
 0x2bf   : > { %p4654_p10 = pnand %p4652_p11, %p6168_p1  ;;  %p4660_p13 = scmp.lt.s32.totalorder %s4658_s0, %s4651_s8 }
 0x2c1   : > { %p4655_p3 = pneg %p4654_p10  ;;  %p4661_p4 = por %p4660_p13, %p4659_p12 }
 0x2c3   : > { %p4662_p6 = pnand %p4661_p4, %p4655_p3 }
 0x2c5   : > { %4665 = shalt.err (!%p4662_p6)
}
 0x2c6   : > { %p6174_p8 = scmp.ne.s32.totalorder %s6145_s16, 0  ;;  %s6175_s9 = scalar_lea.sflag [#allocation9], %s5311_s14 }
 0x2c7   : > { %s3331_s21 = sshll.u32 %s4826_s6, 7  ;;  %s6176_s7 = sld [smem:[#allocation71_spill]] }
 0x2c8   : > { %3826 = dma.hbm_to_vmem [thread:$0]  (!%p6174_p8), %s5386_s11, 16, %s951_s25, %s6175_s9  }
 0x2c9   : > { %s961_s23 = scalar_lea.vmem [#allocation11], %s3330_s2  ;;  %s958_s28 = scalar_lea.sflag [#allocation12], %s5311_s14 }
 0x2ca   : > { %s969_s3 = sshll.u32 %s961_s23, 4  ;;  %s970_s3 = int_to_ptr.vmem [resolvable:$true] %s969_s3 }
 0x2cd   : > { %s5641_s29 = scalar_lea.hbm %s6176_s7, %s3331_s21  ;;  %s4671_s27 = scalar_lea.hbm %s6176_s7, 256 }
 0x2ce   : > { %s4666_s8 = scalar_lea.hbm %s5641_s29, 128  ;;  %p4672_p2 = scmp.lt.u32.totalorder %s5641_s29, %s6176_s7 }
 0x2cf   : > { %p4667_p4 = scmp.ne.s32.totalorder %s5641_s29, %s4666_s8  ;;  %p4673_p0 = scmp.lt.u32.totalorder %s4671_s27, %s4666_s8 }
 0x2d0   : > { %p4675_p11 = scmp.lt.u32.totalorder %s4666_s8, %s5641_s29 }
 0x2d1   : > { %p4669_p7 = pnand %p4667_p4, %p6168_p1  ;;  %p4674_p9 = por %p4673_p0, %p4672_p2 }
 0x2d3   : > { %p4670_p5 = pneg %p4669_p7  ;;  %p4676_p10 = por %p4675_p11, %p4674_p9 }
 0x2d5   : > { %p4677_p3 = pnand %p4676_p10, %p4670_p5 }
 0x2d7   : > { %4680 = shalt.err (!%p4677_p3)
}
 0x2d8   : > { %s4681_s12 = scalar_lea.vmem %s970_s3, 128  ;;  %s4859_s14 = smov [#allocation11]  }
 0x2d9   : > { %p4682_p12 = scmp.ne.s32.totalorder %s970_s3, %s4681_s12  ;;  %s4686_s2 = sshll.u32 %s4859_s14, 4  ;;  %s4687_s2 = int_to_ptr.vmem [resolvable:$false] %s4686_s2 }
 0x2da   : > { %s4688_s9 = scalar_lea.vmem %s4687_s2, 256  ;;  %p4689_p4 = scmp.lt.s32.totalorder %s970_s3, %s4687_s2 }
 0x2db   : > { %p4684_p13 = pnand %p4682_p12, %p6168_p1  ;;  %p4690_p7 = scmp.lt.s32.totalorder %s4688_s9, %s4681_s12 }
 0x2dd   : > { %p4685_p6 = pneg %p4684_p13  ;;  %p4691_p8 = por %p4690_p7, %p4689_p4 }
 0x2df   : > { %p4692_p0 = pnand %p4691_p8, %p4685_p6 }
 0x2e1   : > { %4695 = shalt.err (!%p4692_p0)
}
 0x2e2   : > { %p6177_p2 = scmp.ne.s32.totalorder %s6145_s16, 0  ;;  %s6178_s21 = sld [smem:[#allocation61_spill]] }
 0x2e4   : > { %3829 = dma.hbm_to_vmem [thread:$0]  (!%p6177_p2), %s5641_s29, 128, %s970_s3, %s958_s28  }
 0x2e8   : > { %p6179_p5 = scmp.ne.s32.totalorder %s6178_s21, 0 }
 0x2e9   : > { %s5666_s17 = sand.u32 (!%p6179_p5), 1, %s4814_s26   ;;  %p6180_p1 = scmp.ne.s32.totalorder (!%p6179_p5), %s6139_s30, 0 }
 0x2ea   : > { %978 = sbr.rel (%p6179_p5) target bundleno = 4663 (0x1237), region = 116  ;;  %s5669_s5 = sshll.u32 (!%p6179_p5), %s5666_s17, 2 }
 0x2eb   : > { %s981_s13 = scalar_lea.sflag (!%p6179_p5), [#allocation3], %s5666_s17  ;;  %s984_s23 = scalar_lea.vmem (!%p6179_p5), [#allocation2], %s5669_s5 }
 0x2f1   : > { %4749 = dma.done.wait (%p6180_p1), %s981_s13, 64  }
 0x2f2   : > { %4751 = vsyncadd (%p6180_p1), %s981_s13, 4294967232  ;;  %s6181_s16 = sld [smem:[#allocation60_spill]]  ;;  %s993_s28 = scalar_lea.vmem [#allocation5], %s5669_s5 }
 0x2f8   : > { %s989_s29 = sand.u32 1, %s6181_s16  }
 0x2f9   : > { %s990_s3 = scalar_lea.sflag [#allocation6], %s989_s29 }
 0x2fa   : > { %4753 = dma.done.wait (%p6180_p1), %s990_s3, 128  }
 0x2fb   : > { %4755 = vsyncadd (%p6180_p1), %s990_s3, 4294967168  ;;  %s1002_s8 = scalar_lea.vmem [#allocation7], %s5669_s5  ;;  %s1008_s11 = scalar_lea.sflag [#allocation9], %s989_s29 }
 0x2fc   : > { %s1010_s25 = scalar_lea.vmem [#allocation8], %s5666_s17 }
 0x2fd   : > { %4757 = dma.done.wait (%p6180_p1), %s1008_s11, 32  }
 0x2fe   : > { %4759 = vsyncadd (%p6180_p1), %s1008_s11, 4294967264  ;;  %s3336_s27 = sshll.u32 %s5666_s17, 3  ;;  %s1018_s18 = scalar_lea.vmem [#allocation10], %s5666_s17 }
 0x2ff   : > { %s1024_s0 = scalar_lea.sflag [#allocation12], %s989_s29  ;;  %s5691_s12 = scalar_lea.vmem [#allocation11], %s3336_s27 }
 0x300   : > { %4761 = dma.done.wait (%p6180_p1), %s1024_s0, 128  }
 0x301   : > { %4763 = vsyncadd (%p6180_p1), %s1024_s0, 4294967168  ;;  %p6182_p8 = scmp.eq.s32.totalorder %s6181_s16, 0 }
 0x303   : > { %4765 = dma.done.wait (%p6182_p8), [#allocation12], 768   ;;  %p6183_p9 = pmov %p6182_p8 }
 0x304   : > { %p6184_p11 = pmov %p6182_p8 }
 0x305   : > { %4767 = vsyncadd (%p6183_p9), [#allocation12], 4294966528 }
 0x306   : > { %4769 = dma.done.wait (%p6184_p11), [#allocation15], 304   ;;  %p6185_p10 = pmov %p6182_p8 }
 0x307   : > { %p6186_p3 = pmov %p6182_p8 }
 0x308   : > { %4771 = vsyncadd (%p6185_p10), [#allocation15], 4294966992 }
 0x309   : > { %4773 = dma.done.wait (%p6186_p3), [#allocation18], 32   ;;  %p6187_p12 = pmov %p6186_p3 }
 0x30a   : > { %p6188_p13 = pmov %p6186_p3 }
 0x30b   : > { %4775 = vsyncadd (%p6187_p12), [#allocation18], 4294967264 }
 0x30c   : > { %4777 = dma.done.wait (%p6188_p13), [#allocation21], 784   ;;  %p6189_p6 = pmov %p6186_p3 }
 0x30d   : > { %p6190_p4 = pmov %p6186_p3 }
 0x30e   : > { %4779 = vsyncadd (%p6189_p6), [#allocation21], 4294966512 }
 0x30f   : > { %4781 = dma.done.wait (%p6190_p4), [#allocation24], 304   ;;  %p6191_p7 = pmov %p6186_p3 }
 0x310   : > { %p6192_p0 = pmov %p6186_p3 }
 0x311   : > { %4783 = vsyncadd (%p6191_p7), [#allocation24], 4294966992 }
 0x312   : > { %4785 = dma.done.wait (%p6192_p0), [#allocation27], 32   ;;  %p6193_p2 = pmov %p6192_p0 }
 0x313   : > { %p6194_p5 = pmov %p6192_p0 }
 0x314   : > { %4787 = vsyncadd (%p6193_p2), [#allocation27], 4294967264 }
 0x315   : > { %4789 = dma.done.wait (%p6194_p5), [#allocation30], 272   ;;  %p6195_p1 = pmov %p6192_p0 }
 0x316   : > { %p6196_p8 = pmov %p6192_p0 }
 0x317   : > { %4791 = vsyncadd (%p6195_p1), [#allocation30], 4294967024 }
 0x318   : > { %4793 = dma.done.wait (%p6196_p8), [#allocation33], 528   ;;  %p6197_p9 = pmov %p6192_p0 }
 0x319   : > { %p6198_p11 = pmov %p6192_p0 }
 0x31a   : > { %4795 = vsyncadd (%p6197_p9), [#allocation33], 4294966768 }
 0x31b   : > { %4797 = dma.done.wait (%p6198_p11), [#allocation36], 32   ;;  %p6199_p10 = pmov %p6192_p0 }
 0x31c   : > { %p6200_p3 = pmov %p6192_p0 }
 0x31d   : > { %4799 = vsyncadd (%p6199_p10), [#allocation36], 4294967264 }
 0x31e   : > { %4801 = dma.done.wait (%p6200_p3), [#allocation39], 16   ;;  %p6201_p12 = pmov %p6192_p0 }
 0x31f   : > { %v4860_v0 = vmov 0.0   ;;  %vm4861_vm0 = vmmov 0   ;;  %v3952_v1 = vld [vmem:[#allocation13 + $0x10] sm:$0xff]   ;;  %v3953_v2 = vld [vmem:[#allocation13] sm:$0xff]   ;;  %v3954_v3 = vld [vmem:[#allocation13 + $0x18] sm:$0xff]   ;;  %vm1231_vm1 = vcmask 261120   ;;  %v1194_v33 = vlaneseq }
 0x320   : > { %4803 = vsyncadd (%p6201_p12), [#allocation39], 4294967280  ;;  %3498 = vmatprep.subr.bf16.mxu1 %v4860_v0  ;;  %3490 = vmatprep.subr.bf16.mxu0 %v4860_v0  ;;  %v1191_v4 = vld [vmem:[%s993_s28] sm:$0xf]  ;;  %v3955_v5 = vld [vmem:[#allocation13 + $0x8] sm:$0xff]   ;;  %vm1411_vm2 = vcmask 64512  }
 0x321   : > { %3502 = vmatprep.mubr.msk.bf16.mxu1 %vm4861_vm0, %v4860_v0  ;;  %3494 = vmatprep.mubr.msk.bf16.mxu0 %vm4861_vm0, %v4860_v0  ;;  %v5749_v6 = vld [vmem:[%s984_s23] sm:$0xf]  ;;  %v3361_v7 = vld [vmem:[#allocation14 + $0x1] ss:$0 sm:$0xff]  ;;  %v3357_v8 = vld [vmem:[#allocation14] ss:$0 sm:$0xff] }
 0x322   : > { %3499 = vmatpush3.bf16.msra.mxu1 %v3952_v1  ;;  %3491 = vmatpush3.bf16.msra.mxu0 %v3953_v2  ;;  %s4862_s30 = smov 112   ;;  %s4863_s14 = smov 120   ;;  %v3956_v22 = vld [vmem:[#allocation13 + $0x20] sm:$0xff]   ;;  %v3957_v23 = vld [vmem:[#allocation13 + $0x28] sm:$0xff]   ;;  %v1195_v34 = vshrl.u32 %v1194_v33, 7  ;;  %v1199_v35 = vand.u32 127, %v1194_v33 }
 0x323   : > { %3500 = vmatprep.subr.bf16.mxu1 %v4860_v0  ;;  %3492 = vmatprep.subr.bf16.mxu0 %v4860_v0  ;;  %s4864_s2 = smov 104   ;;  %v3356_v36 = vld [vmem:[%s1010_s25] ss:$0 sm:$0xff]  ;;  %v3365_v44 = vld [vmem:[#allocation14 + $0x2] ss:$0 sm:$0xff]  ;;  %vm1474_vm6 = vcmask 1043456  }
 0x324   : > { %vm1205_vm3 = vcmp.eq.s32.totalorder %v3356_v36, 0  ;;  %vm1206_vm4 = vcmp.gt.s32.totalorder %v1199_v35, %v1195_v34  ;;  %s4865_s9 = smov 8   ;;  %s4866_s21 = smov 16   ;;  %vm1867_vm7 = vcmask 130048   ;;  %vm1869_vm8 = vcmask 195584  }
 0x325   : > { %vm5793_vm5 = vmor %vm1205_vm3, %vm1206_vm4  ;;  %s4867_s13 = smov 24   ;;  %vm2850_vm10 = vcmask 523264   ;;  %s6204_s23 = sld [smem:[#allocation58_spill]]  ;;  %vm2928_vm11 = vcmask 257024  }
 0x326   : > { %3501 = vmatpush3.bf16.msra.mxu1 %v3954_v3  ;;  %3493 = vmatpush3.bf16.msra.mxu0 %v3955_v5  ;;  %s6205_s16 = sld [smem:[#allocation63_spill]]  ;;  %s1186_s3 = scalar_lea.vmem [#allocation40], %s5669_s5 }
 0x327   : > { %3514 = vmatprep.subr.bf16.mxu1 %v4860_v0  ;;  %3506 = vmatprep.subr.bf16.mxu0 %v4860_v0  ;;  %s2945_s28 = sshll.u32 %s1186_s3, 4  ;;  %s6206_s25 = sld [smem:[#allocation90_spill]]  ;;  %s5968_s28 = int_to_ptr.vmem [resolvable:$true] %s2945_s28 }
 0x328   : > { %s4696_s0 = scalar_lea.vmem %s5968_s28, 64  ;;  %s4869_s5 = smov [#allocation40]  }
 0x329   : > { %3503 = vmatmul.mubr.msk.bf16.vlgmr.msra.gmra.mrb[0].mxu1 %vm1231_vm1, %v1191_v4  ;;  %3495 = vmatmul.mubr.msk.bf16.vlgmr.msra.gmra.mrb[0].mxu0 %vm1231_vm1, %v5749_v6  ;;  %p4697_p13 = scmp.ne.s32.totalorder %s5968_s28, %s4696_s0 }
 0x32a   : > { %3516 = vmatprep.mubr.msk.bf16.mxu1 %vm4861_vm0, %v4860_v0  ;;  %3510 = vmatprep.mubr.msk.bf16.mxu0 %vm4861_vm0, %v4860_v0 }
 0x32b   : > { %3507 = vmatpush3.bf16.msra.mxu0 %v3956_v22  ;;  %s3423_s29 = sshll.u32 %s6204_s23, 6 }
 0x32c   : > { %3508 = vmatprep.subr.bf16.mxu0 %v4860_v0  ;;  %p6207_p6 = scmp.ne.s32.totalorder %s6205_s16, 0 }
 0x32d   : > { %s5966_s27 = scalar_lea.hbm %s6206_s25, %s3423_s29 }
 0x32e   : > { %p4698_p4 = pnand %p4697_p13, %p6207_p6 }
 0x32f   : > { %3509 = vmatpush3.bf16.msra.mxu0 %v3957_v23 }
 0x330   : > { %3520 = vmatprep.subr.bf16.mxu0 %v4860_v0  ;;  %p4699_p7 = pneg %p4698_p4 }
 0x332   : > { %3511 = vmatmul.mubr.msk.bf16.vlgmr.msra.gmra.mrb[4].mxu0 %vm1231_vm1, %v1191_v4 }
 0x333   : > { %3522 = vmatprep.mubr.msk.bf16.mxu0 %vm4861_vm0, %v4860_v0 }
 0x3fc   : > { %v1338_v9 = vpop.f32.mrb[0].mxu1  ;;  %v1269_v12 = vpop.f32.mrb[0].mxu0 }
 0x3fd   : > { %v1339_v10 = vadd.f32 %v3361_v7, %v1338_v9  ;;  %v3504_v11 = vpop.f32.mrb[1].mxu1  ;;  %v1270_v14 = vadd.f32 %v3357_v8, %v1269_v12  ;;  %v3496_v15 = vpop.f32.mrb[1].mxu0 }
 0x3fe   : > { %v1341_v13 = vpop.f32.mrb[2].mxu1  ;;  %v1272_v18 = vpop.f32.mrb[2].mxu0 }
 0x3ff   : > { %v1344_v16 = vpack.c.bf16 %v1339_v10, %v1339_v10  ;;  %v3505_v17 = vpop.f32.mrb[3].mxu1  ;;  %v3497_v19 = vpop.f32.mrb[3].mxu0  ;;  %v1275_v20 = vpack.c.bf16 %v1270_v14, %v1270_v14 }
 0x401   : > { %1634 = vrot.lane.b32.xlu1 %v1344_v16, %s4862_s30  ;;  %1522 = vrot.lane.b32.xlu0 %v1344_v16, %s4863_s14  ;;  %v1416_v21 = vsel %vm1411_vm2, %v1344_v16, 0 }
 0x402   : > { %3515 = vmatpush3.bf16.xpose.msra.mxu1 %v1416_v21 }
 0x403   : > { %3526 = vmatprep.subr.bf16.mxu1 %v4860_v0 }
 0x405   : > { %1632 = vrot.lane.b32.xlu1 %v1275_v20, %s4862_s30  ;;  %1519 = vrot.lane.b32.xlu0 %v1275_v20, %s4863_s14  ;;  %v1404_v45 = vpop.f32.mrb[4].mxu0 }
 0x406   : > { %v1405_v46 = vadd.f32 %v3365_v44, %v1404_v45  ;;  %v3512_v47 = vpop.f32.mrb[5].mxu0 }
 0x407   : > { %v1407_v48 = vpop.f32.mrb[6].mxu0 }
 0x408   : > { %v1410_v49 = vpack.c.bf16 %v1405_v46, %v1405_v46  ;;  %v3513_v50 = vpop.f32.mrb[7].mxu0 }
 0x409   : > { %1743 = vrot.lane.b32.xlu1 %v1275_v20, %s4864_s2  ;;  %1745 = vrot.lane.b32.xlu0 %v1344_v16, %s4864_s2 }
 0x40a   : > { %3517 = vmatmul.mubr.msk.bf16.vlgmr.msra.gmra.mrb[4].mxu1 %vm1411_vm2, %v1275_v20  ;;  %v1476_v51 = vsel %vm1474_vm6, %v1410_v49, 0 }
 0x40b   : > { %3528 = vmatprep.mubr.msk.bf16.mxu1 %vm4861_vm0, %v4860_v0  ;;  %3521 = vmatpush3.bf16.msra.mxu0 %v1476_v51 }
 0x40c   : > { %3532 = vmatprep.subr.bf16.mxu0 %v4860_v0 }
 0x473   : > { %v1523_v24 = vpop.permute.xlu0 %1522  ;;  %v1635_v26 = vpop.permute.xlu1 %1634 }
 0x474   : > { %v1528_v25 = vsel %vm1411_vm2, %v1523_v24, 0  ;;  %v1640_v28 = vsel %vm1411_vm2, %v1635_v26, 0 }
 0x475   : > { %3527 = vmatpush3.bf16.xpose.msra.mxu1 %v1528_v25 }
 0x476   : > { %3538 = vmatprep.subr.bf16.mxu1 %v4860_v0 }
 0x477   : > { %v1520_v27 = vpop.permute.xlu0 %1519  ;;  %v1633_v30 = vpop.permute.xlu1 %1632 }
 0x47b   : > { %v1746_v29 = vpop.permute.xlu0 %1745  ;;  %v1744_v32 = vpop.permute.xlu1 %1743 }
 0x47c   : > { %3529 = vmatmul.mubr.msk.bf16.vlgmr.msra.gmra.mrb[8].mxu1 %vm1411_vm2, %v1520_v27  ;;  %v1751_v31 = vsel %vm1411_vm2, %v1746_v29, 0 }
 0x47d   : > { %3539 = vmatpush3.bf16.xpose.msra.mxu1 %v1640_v28  ;;  %3540 = vmatprep.mubr.msk.bf16.mxu1 %vm4861_vm0, %v4860_v0 }
 0x47e   : > { %3550 = vmatprep.subr.bf16.mxu1 %v4860_v0 }
 0x484   : > { %3541 = vmatmul.mubr.msk.bf16.vlgmr.msra.gmra.mrb[12].mxu1 %vm1411_vm2, %v1633_v30 }
 0x485   : > { %3551 = vmatpush3.bf16.xpose.msra.mxu1 %v1751_v31  ;;  %3552 = vmatprep.mubr.msk.bf16.mxu1 %vm4861_vm0, %v4860_v0 }
 0x486   : > { %3562 = vmatprep.subr.bf16.mxu1 %v4860_v0 }
 0x48c   : > { %3553 = vmatmul.mubr.msk.bf16.vlgmr.msra.gmra.mrb[16].mxu1 %vm1411_vm2, %v1744_v32 }
 0x48d   : > { %3566 = vmatprep.mubr.msk.bf16.mxu1 %vm4861_vm0, %v4860_v0 }
 0x4dd   : > { %v1452_v38 = vpop.f32.mrb[4].mxu1 }
 0x4de   : > { %v1458_v39 = vsel %vm5793_vm5, -1e+30, %v1452_v38  ;;  %v3518_v40 = vpop.f32.mrb[5].mxu1 }
 0x4df   : > { %v1455_v41 = vpop.f32.mrb[6].mxu1  ;;  %v1459_v42 = vsel %vm1411_vm2, %v1458_v39, -inf }
 0x4e0   : > { %1460 = vmax.xlane.f32.xlu0 %v1459_v42  ;;  %v3519_v43 = vpop.f32.mrb[7].mxu1 }
 0x54f   : > { %v1564_v52 = vpop.f32.mrb[8].mxu1 }
 0x550   : > { %v1570_v53 = vsel %vm5793_vm5, -1e+30, %v1564_v52  ;;  %v3530_v54 = vpop.f32.mrb[9].mxu1 }
 0x551   : > { %v1567_v55 = vpop.f32.mrb[10].mxu1  ;;  %v1571_v56 = vsel %vm1411_vm2, %v1570_v53, -inf  ;;  %v3958_v54 = vld [vmem:[#allocation16] sm:$0xff]  }
 0x552   : > { %1572 = vmax.xlane.f32.xlu1 %v1571_v56  ;;  %v3531_v57 = vpop.f32.mrb[11].mxu1  ;;  %3563 = vmatpush3.bf16.msra.mxu1 %v3958_v54 }
 0x553   : > { %3564 = vmatprep.subr.bf16.mxu1 %v4860_v0 }
 0x557   : > { %v1676_v58 = vpop.f32.mrb[12].mxu1 }
 0x558   : > { %v1682_v59 = vsel %vm5793_vm5, -1e+30, %v1676_v58  ;;  %v3542_v60 = vpop.f32.mrb[13].mxu1 }
 0x559   : > { %v1679_v61 = vpop.f32.mrb[14].mxu1  ;;  %v1683_v62 = vsel %vm1411_vm2, %v1682_v59, -inf }
 0x55a   : > { %1684 = vmax.xlane.f32.xlu0 %v1683_v62  ;;  %v3543_v63 = vpop.f32.mrb[15].mxu1 }
 0x55f   : > { %v1787_v1 = vpop.f32.mrb[16].mxu1 }
 0x560   : > { %v1793_v2 = vsel %vm5793_vm5, -1e+30, %v1787_v1  ;;  %v3554_v3 = vpop.f32.mrb[17].mxu1 }
 0x561   : > { %v1790_v4 = vpop.f32.mrb[18].mxu1  ;;  %v1794_v5 = vsel %vm1411_vm2, %v1793_v2, -inf }
 0x562   : > { %1795 = vmax.xlane.f32.xlu0 %v1794_v5  ;;  %v3555_v7 = vpop.f32.mrb[19].mxu1 }
 0x56d   : > { %v1461_v8 = vpop.xlane.xlu0 %1460 }
 0x56e   : > { %v1462_v9 = vsub.f32 %v1458_v39, %v1461_v8 }
 0x570   : > { %v1463_v10 = vmul.f32 1.442695, %v1462_v9 }
 0x572   : > { %3974 = vpow2.f32 %v1463_v10 }
 0x57c   : > { %v3975_v11 = vpop.eup %3974 }
 0x57d   : > { %v1465_v12 = vsel %vm1411_vm2, %v3975_v11, 0.0 }
 0x57e   : > { %1466 = vadd.xlane.f32.xlu1 %v1465_v12 }
 0x58f   : > { %1584 = vrot.lane.b32.xlu1 %v1410_v49, %s4863_s14 }
 0x5df   : > { %v1573_v13 = vpop.xlane.xlu1 %1572 }
 0x5e0   : > { %v1574_v14 = vsub.f32 %v1570_v53, %v1573_v13  ;;  %v4868_v13 = vmov 0  }
 0x5e1   : > { %3951 = vset.pattern.permute.xlu0 %v4868_v13 }
 0x5e2   : > { %v1575_v15 = vmul.f32 1.442695, %v1574_v14  ;;  %v3377_v14 = vld [vmem:[#allocation17] ss:$0 sm:$0xff] }
 0x5e4   : > { %3976 = vpow2.f32 %v1575_v15  ;;  %v1190_v15 = vunpack.c.l.bf16 %v5749_v6  ;;  %v3961_v6 = vld [vmem:[#allocation22 + $0x18] sm:$0xff]  }
 0x5e7   : > { %v1685_v16 = vpop.xlane.xlu0 %1684 }
 0x5e8   : > { %v1686_v17 = vsub.f32 %v1682_v59, %v1685_v16  ;;  %v3959_v59 = vld [vmem:[#allocation16 + $0x8] sm:$0xff]  }
 0x5e9   : > { %3565 = vmatpush3.bf16.msra.mxu1 %v3959_v59 }
 0x5ea   : > { %v1687_v18 = vmul.f32 1.442695, %v1686_v17  ;;  %3578 = vmatprep.subr.bf16.mxu1 %v4860_v0 }
 0x5ec   : > { %3978 = vpow2.f32 %v1687_v18 }
 0x5ee   : > { %v3977_v19 = vpop.eup %3976 }
 0x5ef   : > { %v1796_v20 = vpop.xlane.xlu0 %1795  ;;  %v1577_v21 = vsel %vm1411_vm2, %v3977_v19, 0.0 }
 0x5f0   : > { %v1797_v22 = vsub.f32 %v1793_v2, %v1796_v20  ;;  %1578 = vadd.xlane.f32.xlu0 %v1577_v21 }
 0x5f2   : > { %v1798_v23 = vmul.f32 1.442695, %v1797_v22 }
 0x5f4   : > { %3980 = vpow2.f32 %v1798_v23 }
 0x5f6   : > { %v3979_v24 = vpop.eup %3978 }
 0x5f7   : > { %v1689_v25 = vsel %vm1411_vm2, %v3979_v24, 0.0 }
 0x5f8   : > { %1690 = vadd.xlane.f32.xlu1 %v1689_v25  ;;  %v1193_v25 = vld [vmem:[%s5691_s12] sm:$0xff]  ;;  %s4700_s12 = sshll.u32 %s4869_s5, 4  ;;  %s4701_s12 = int_to_ptr.vmem [resolvable:$false] %s4700_s12 }
 0x5f9   : > { %p4703_p0 = scmp.lt.s32.totalorder %s5968_s28, %s4701_s12 }
 0x5fe   : > { %v3981_v26 = vpop.eup %3980 }
 0x5ff   : > { %v1800_v27 = vsel %vm1411_vm2, %v3981_v26, 0.0 }
 0x600   : > { %1801 = vadd.xlane.f32.xlu0 %v1800_v27  ;;  %v3962_v27 = vld [vmem:[#allocation22] sm:$0xff]  }
 0x609   : > { %1806 = vrot.lane.b32.xlu1 %v1410_v49, %s4864_s2 }
 0x60b   : > { %v1467_v28 = vpop.xlane.xlu1 %1466 }
 0x60c   : > { %3982 = vrcp.f32 %v1467_v28  ;;  %v1192_v28 = vld [vmem:[%s1002_s8] sm:$0xf] }
 0x60f   : > { %v1585_v30 = vpop.permute.xlu1 %1584 }
 0x610   : > { %v1590_v33 = vsel %vm1474_vm6, %v1585_v30, 0 }
 0x616   : > { %v3983_v29 = vpop.eup %3982  ;;  %1695 = vrot.lane.b32.xlu0 %v1410_v49, %s4862_s30 }
 0x617   : > { %v1469_v31 = vmul.f32 %v3983_v29, %v3975_v11  ;;  %v3963_v29 = vld [vmem:[#allocation22 + $0x8] sm:$0xff]  }
 0x619   : > { %v1470_v32 = vpack.c.bf16 %v1469_v31, %v1469_v31 }
 0x61b   : > { %3523 = vmatmul.mubr.msk.bf16.vlgmr.msra.gmra.mrb[8].mxu0 %vm1411_vm2, %v1470_v32 }
 0x61c   : > { %3533 = vmatpush3.bf16.msra.mxu0 %v1590_v33  ;;  %3534 = vmatprep.mubr.msk.bf16.mxu0 %vm4861_vm0, %v4860_v0 }
 0x61d   : > { %3544 = vmatprep.subr.bf16.mxu0 %v4860_v0 }
 0x67d   : > { %v1579_v34 = vpop.xlane.xlu0 %1578 }
 0x67e   : > { %3984 = vrcp.f32 %v1579_v34 }
 0x685   : > { %v1691_v35 = vpop.xlane.xlu1 %1690 }
 0x686   : > { %3986 = vrcp.f32 %v1691_v35 }
 0x688   : > { %v3985_v36 = vpop.eup %3984 }
 0x689   : > { %v1581_v37 = vmul.f32 %v3985_v36, %v3977_v19  ;;  %v1807_v44 = vpop.permute.xlu1 %1806 }
 0x68a   : > { %v1812_v46 = vsel %vm1474_vm6, %v1807_v44, 0 }
 0x68b   : > { %v1582_v38 = vpack.c.bf16 %v1581_v37, %v1581_v37 }
 0x68d   : > { %v1802_v39 = vpop.xlane.xlu0 %1801  ;;  %3535 = vmatmul.mubr.msk.bf16.vlgmr.msra.gmra.mrb[12].mxu0 %vm1411_vm2, %v1582_v38 }
 0x68e   : > { %3988 = vrcp.f32 %v1802_v39  ;;  %3546 = vmatprep.mubr.msk.bf16.mxu0 %vm4861_vm0, %v4860_v0  ;;  %v3381_v39 = vld [vmem:[#allocation19] ss:$0 sm:$0xff] }
 0x690   : > { %v3987_v40 = vpop.eup %3986 }
 0x691   : > { %v1693_v41 = vmul.f32 %v3987_v40, %v3979_v24  ;;  %v1696_v42 = vpop.permute.xlu0 %1695 }
 0x692   : > { %v1701_v43 = vsel %vm1474_vm6, %v1696_v42, 0 }
 0x693   : > { %3545 = vmatpush3.bf16.msra.mxu0 %v1701_v43  ;;  %v1694_v45 = vpack.c.bf16 %v1693_v41, %v1693_v41  ;;  %v3382_v41 = vld [vmem:[#allocation20] ss:$0 sm:$0xff] }
 0x694   : > { %3556 = vmatprep.subr.bf16.mxu0 %v4860_v0 }
 0x696   : > { %3547 = vmatmul.mubr.msk.bf16.vlgmr.msra.gmra.mrb[16].mxu0 %vm1411_vm2, %v1694_v45 }
 0x697   : > { %3557 = vmatpush3.bf16.msra.mxu0 %v1812_v46  ;;  %3558 = vmatprep.mubr.msk.bf16.mxu0 %vm4861_vm0, %v4860_v0 }
 0x698   : > { %v3989_v47 = vpop.eup %3988  ;;  %3570 = vmatprep.subr.bf16.mxu0 %v4860_v0 }
 0x699   : > { %v1804_v48 = vmul.f32 %v3989_v47, %v3981_v26  ;;  %v3960_v26 = vld [vmem:[#allocation22 + $0x10] sm:$0xff]  }
 0x69a   : > { %v3388_v47 = vld [vmem:[#allocation23 + $0x1] ss:$0 sm:$0xff] }
 0x69b   : > { %v1805_v49 = vpack.c.bf16 %v1804_v48, %v1804_v48 }
 0x69e   : > { %3559 = vmatmul.mubr.msk.bf16.vlgmr.msra.gmra.mrb[20].mxu0 %vm1411_vm2, %v1805_v49 }
 0x69f   : > { %3574 = vmatprep.mubr.msk.bf16.mxu0 %vm4861_vm0, %v4860_v0  ;;  %3571 = vmatpush3.bf16.msra.mxu0 %v3962_v27 }
 0x6a0   : > { %3572 = vmatprep.subr.bf16.mxu0 %v4860_v0 }
 0x6a3   : > { %3573 = vmatpush3.bf16.msra.mxu0 %v3963_v29 }
 0x6a4   : > { %3586 = vmatprep.subr.bf16.mxu0 %v4860_v0 }
 0x6ee   : > { %v1512_v50 = vpop.f32.mrb[8].mxu0 }
 0x6ef   : > { %v3524_v51 = vpop.f32.mrb[9].mxu0 }
 0x6f0   : > { %v1515_v52 = vpop.f32.mrb[10].mxu0 }
 0x6f1   : > { %v3525_v53 = vpop.f32.mrb[11].mxu0 }
 0x760   : > { %v1626_v55 = vpop.f32.mrb[12].mxu0 }
 0x761   : > { %1855 = vrot.lane.b32.xlu1 %v1626_v55, %s4865_s9  ;;  %v3536_v56 = vpop.f32.mrb[13].mxu0  ;;  %v3384_v55 = vld [vmem:[#allocation23] ss:$0 sm:$0xff] }
 0x762   : > { %v1629_v57 = vpop.f32.mrb[14].mxu0 }
 0x763   : > { %v3537_v58 = vpop.f32.mrb[15].mxu0 }
 0x769   : > { %v1737_v60 = vpop.f32.mrb[16].mxu0 }
 0x76a   : > { %1859 = vrot.lane.b32.xlu0 %v1737_v60, %s4866_s21  ;;  %v3548_v61 = vpop.f32.mrb[17].mxu0 }
 0x76b   : > { %v1740_v62 = vpop.f32.mrb[18].mxu0 }
 0x76c   : > { %v3549_v63 = vpop.f32.mrb[19].mxu0 }
 0x771   : > { %v1848_v1 = vpop.f32.mrb[20].mxu0 }
 0x772   : > { %1863 = vrot.lane.b32.xlu1 %v1848_v1, %s4867_s13  ;;  %v3560_v2 = vpop.f32.mrb[21].mxu0  ;;  %v3964_v1 = vld [vmem:[#allocation22 + $0x20] sm:$0xff]  }
 0x773   : > { %v1851_v3 = vpop.f32.mrb[22].mxu0  ;;  %v3965_v2 = vld [vmem:[#allocation22 + $0x28] sm:$0xff]  }
 0x774   : > { %v3561_v4 = vpop.f32.mrb[23].mxu0 }
 0x7d3   : > { %v1856_v5 = vpop.permute.xlu1 %1855 }
 0x7d4   : > { %v1866_v8 = vsel %vm1411_vm2, %v1512_v50, %v1856_v5 }
 0x7dc   : > { %v1860_v7 = vpop.permute.xlu0 %1859 }
 0x7dd   : > { %v1868_v9 = vsel %vm1867_vm7, %v1866_v8, %v1860_v7 }
 0x7e4   : > { %v1864_v10 = vpop.permute.xlu1 %1863 }
 0x7e5   : > { %v1870_v11 = vsel %vm1869_vm8, %v1868_v9, %v1864_v10 }
 0x7e6   : > { %v1871_v12 = vpack.c.bf16 %v1870_v11, %v1870_v11  ;;  %v3383_v11 = vld [vmem:[%s1018_s18] ss:$0 sm:$0xff]  ;;  %s2931_s18 = scalar_lea.sflag [#allocation4], %s5666_s17 }
 0x7e7   : > { %vm1982_vm9 = vcmp.eq.s32.totalorder %v3383_v11, 0 }
 0x7e8   : > { %3567 = vmatmul.mubr.msk.bf16.vlgmr.msra.gmra.mrb[20].mxu1 %vm1231_vm1, %v1871_v12 }
 0x7e9   : > { %3582 = vmatprep.mubr.msk.bf16.mxu1 %vm4861_vm0, %v4860_v0  ;;  %3579 = vmatpush3.bf16.msra.mxu1 %v3960_v26 }
 0x7ea   : > { %3580 = vmatprep.subr.bf16.mxu1 %v4860_v0 }
 0x7ed   : > { %3581 = vmatpush3.bf16.msra.mxu1 %v3961_v6 }
 0x7ee   : > { %3594 = vmatprep.subr.bf16.mxu1 %v4860_v0 }
 0x7f0   : > { %3583 = vmatmul.mubr.msk.bf16.vlgmr.msra.gmra.mrb[24].mxu1 %vm1231_vm1, %v1192_v28 }
 0x7f1   : > { %3596 = vmatprep.mubr.msk.bf16.mxu1 %vm4861_vm0, %v4860_v0 }
 0x8bb   : > { %v1932_v16 = vpop.f32.mrb[20].mxu1 }
 0x8bc   : > { %v1933_v17 = vadd.f32 %v3377_v14, %v1932_v16  ;;  %v3568_v18 = vpop.f32.mrb[21].mxu1 }
 0x8bd   : > { %v1935_v19 = vpop.f32.mrb[22].mxu1 }
 0x8be   : > { %v1938_v20 = vadd.f32 %v1933_v17, %v1190_v15  ;;  %v3569_v21 = vpop.f32.mrb[23].mxu1 }
 0x8c0   : > { %v1941_v22 = vsel %vm1231_vm1, %v1938_v20, 0.0  ;;  %v1946_v23 = vmul.f32 %v1938_v20, %v1938_v20 }
 0x8c1   : > { %1942 = vadd.xlane.f32.xlu0 %v1941_v22 }
 0x8c2   : > { %v1947_v24 = vsel %vm1231_vm1, %v1946_v23, 0.0 }
 0x8c3   : > { %1948 = vadd.xlane.f32.xlu1 %v1947_v24  ;;  %v2113_v48 = vpop.f32.mrb[24].mxu1 }
 0x8c4   : > { %v2114_v49 = vadd.f32 %v3388_v47, %v2113_v48  ;;  %v3584_v50 = vpop.f32.mrb[25].mxu1 }
 0x8c5   : > { %v2116_v51 = vpop.f32.mrb[26].mxu1 }
 0x8c6   : > { %v2119_v52 = vpack.c.bf16 %v2114_v49, %v2114_v49  ;;  %v3585_v53 = vpop.f32.mrb[27].mxu1 }
 0x8c8   : > { %v2190_v54 = vsel %vm1411_vm2, %v2119_v52, 0 }
 0x8c9   : > { %3595 = vmatpush3.bf16.xpose.msra.mxu1 %v2190_v54 }
 0x8ca   : > { %3606 = vmatprep.subr.bf16.mxu1 %v4860_v0 }
 0x8d4   : > { %2295 = vrot.lane.b32.xlu1 %v2119_v52, %s4863_s14 }
 0x8d7   : > { %1973 = vperm.xlu0 %3951, %v1193_v25  }
 0x8d8   : > { %2407 = vrot.lane.b32.xlu1 %v2119_v52, %s4862_s30 }
 0x94e   : > { %v1943_v30 = vpop.xlane.xlu0 %1942 }
 0x94f   : > { %v1945_v31 = vmul.f32 0.03125, %v1943_v30 }
 0x950   : > { %v1949_v32 = vpop.xlane.xlu1 %1948 }
 0x951   : > { %v1951_v33 = vmul.f32 %v1945_v31, %v1945_v31  ;;  %v1950_v34 = vmul.f32 0.03125, %v1949_v32  ;;  %v1953_v37 = vsub.f32 %v1938_v20, %v1945_v31 }
 0x953   : > { %v1952_v35 = vsub.f32 %v1950_v34, %v1951_v33 }
 0x954   : > { %v2296_v60 = vpop.permute.xlu1 %2295 }
 0x955   : > { %v1954_v36 = vadd.f32 1e-05, %v1952_v35  ;;  %v2301_v63 = vsel %vm1411_vm2, %v2296_v60, 0 }
 0x956   : > { %v5860_v43 = vpop.permute.xlu0 %1973 }
 0x957   : > { %3990 = vrsqrt.f32 %v1954_v36 }
 0x958   : > { %v2408_v3 = vpop.permute.xlu1 %2407 }
 0x959   : > { %v2413_v5 = vsel %vm1411_vm2, %v2408_v3, 0 }
 0x961   : > { %v3991_v38 = vpop.eup %3990 }
 0x962   : > { %v1956_v40 = vmul.f32 %v3991_v38, %v1953_v37  ;;  %v3392_v38 = vld [vmem:[#allocation23 + $0x2] ss:$0 sm:$0xff] }
 0x964   : > { %v1963_v42 = vmul.f32 %v3381_v39, %v1956_v40 }
 0x966   : > { %v1970_v44 = vadd.f32 %v3382_v41, %v1963_v42 }
 0x968   : > { %v5863_v45 = vmul.f32 %v5860_v43, %v1970_v44 }
 0x96a   : > { %v1983_v46 = vpack.c.bf16 %v5863_v45, %v5863_v45 }
 0x96c   : > { %3575 = vmatmul.mubr.msk.bf16.vlgmr.msra.gmra.mrb[24].mxu0 %vm1231_vm1, %v1983_v46 }
 0x96d   : > { %3590 = vmatprep.mubr.msk.bf16.mxu0 %vm4861_vm0, %v4860_v0  ;;  %3587 = vmatpush3.bf16.msra.mxu0 %v3964_v1 }
 0x96e   : > { %3588 = vmatprep.subr.bf16.mxu0 %v4860_v0 }
 0x971   : > { %3589 = vmatpush3.bf16.msra.mxu0 %v3965_v2 }
 0x972   : > { %3600 = vmatprep.subr.bf16.mxu0 %v4860_v0 }
 0x974   : > { %3591 = vmatmul.mubr.msk.bf16.vlgmr.msra.gmra.mrb[28].mxu0 %vm1231_vm1, %v1192_v28 }
 0x975   : > { %3602 = vmatprep.mubr.msk.bf16.mxu0 %vm4861_vm0, %v4860_v0 }
 0xa3f   : > { %v2044_v56 = vpop.f32.mrb[24].mxu0 }
 0xa40   : > { %v2045_v57 = vadd.f32 %v3384_v55, %v2044_v56  ;;  %v3576_v58 = vpop.f32.mrb[25].mxu0 }
 0xa41   : > { %v2047_v59 = vpop.f32.mrb[26].mxu0 }
 0xa42   : > { %v2050_v61 = vpack.c.bf16 %v2045_v57, %v2045_v57  ;;  %v3577_v62 = vpop.f32.mrb[27].mxu0 }
 0xa44   : > { %2292 = vrot.lane.b32.xlu1 %v2050_v61, %s4863_s14  ;;  %3597 = vmatmul.mubr.msk.bf16.vlgmr.msra.gmra.mrb[28].mxu1 %vm1411_vm2, %v2050_v61 }
 0xa45   : > { %3607 = vmatpush3.bf16.xpose.msra.mxu1 %v2301_v63  ;;  %3608 = vmatprep.mubr.msk.bf16.mxu1 %vm4861_vm0, %v4860_v0 }
 0xa46   : > { %3618 = vmatprep.subr.bf16.mxu1 %v4860_v0 }
 0xa47   : > { %v2179_v39 = vpop.f32.mrb[28].mxu0 }
 0xa48   : > { %2405 = vrot.lane.b32.xlu1 %v2050_v61, %s4862_s30  ;;  %v2180_v40 = vadd.f32 %v3392_v38, %v2179_v39  ;;  %v3592_v41 = vpop.f32.mrb[29].mxu0 }
 0xa49   : > { %v2182_v42 = vpop.f32.mrb[30].mxu0 }
 0xa4a   : > { %v3593_v46 = vpop.f32.mrb[31].mxu0  ;;  %v2185_v48 = vpack.c.bf16 %v2180_v40, %v2180_v40 }
 0xa4c   : > { %2518 = vrot.lane.b32.xlu1 %v2119_v52, %s4864_s2  ;;  %v2249_v49 = vsel %vm1474_vm6, %v2185_v48, 0 }
 0xa4d   : > { %3601 = vmatpush3.bf16.msra.mxu0 %v2249_v49 }
 0xa4e   : > { %3612 = vmatprep.subr.bf16.mxu0 %v4860_v0 }
 0xa50   : > { %2516 = vrot.lane.b32.xlu1 %v2050_v61, %s4864_s2 }
 0xab6   : > { %v2293_v4 = vpop.permute.xlu1 %2292 }
 0xab7   : > { %3609 = vmatmul.mubr.msk.bf16.vlgmr.msra.gmra.mrb[32].mxu1 %vm1411_vm2, %v2293_v4 }
 0xab8   : > { %3619 = vmatpush3.bf16.xpose.msra.mxu1 %v2413_v5  ;;  %3620 = vmatprep.mubr.msk.bf16.mxu1 %vm4861_vm0, %v4860_v0 }
 0xab9   : > { %3630 = vmatprep.subr.bf16.mxu1 %v4860_v0 }
 0xaba   : > { %v2406_v7 = vpop.permute.xlu1 %2405 }
 0xabe   : > { %v2519_v8 = vpop.permute.xlu1 %2518 }
 0xabf   : > { %v2524_v9 = vsel %vm1411_vm2, %v2519_v8, 0  ;;  %3621 = vmatmul.mubr.msk.bf16.vlgmr.msra.gmra.mrb[36].mxu1 %vm1411_vm2, %v2406_v7 }
 0xac0   : > { %3631 = vmatpush3.bf16.xpose.msra.mxu1 %v2524_v9  ;;  %3632 = vmatprep.mubr.msk.bf16.mxu1 %vm4861_vm0, %v4860_v0 }
 0xac1   : > { %3642 = vmatprep.subr.bf16.mxu1 %v4860_v0 }
 0xac2   : > { %v2517_v10 = vpop.permute.xlu1 %2516 }
 0xac7   : > { %3633 = vmatmul.mubr.msk.bf16.vlgmr.msra.gmra.mrb[40].mxu1 %vm1411_vm2, %v2517_v10 }
 0xac8   : > { %3646 = vmatprep.mubr.msk.bf16.mxu1 %vm4861_vm0, %v4860_v0 }
 0xb17   : > { %v2226_v12 = vpop.f32.mrb[28].mxu1 }
 0xb18   : > { %v2232_v13 = vsel %vm1982_vm9, -1e+30, %v2226_v12  ;;  %v3598_v14 = vpop.f32.mrb[29].mxu1 }
 0xb19   : > { %v2229_v15 = vpop.f32.mrb[30].mxu1  ;;  %v2233_v16 = vsel %vm1411_vm2, %v2232_v13, -inf }
 0xb1a   : > { %2234 = vmax.xlane.f32.xlu1 %v2233_v16  ;;  %v3599_v17 = vpop.f32.mrb[31].mxu1 }
 0xb8a   : > { %v2337_v18 = vpop.f32.mrb[32].mxu1 }
 0xb8b   : > { %v2343_v19 = vsel %vm1982_vm9, -1e+30, %v2337_v18  ;;  %v3610_v20 = vpop.f32.mrb[33].mxu1 }
 0xb8c   : > { %v2340_v21 = vpop.f32.mrb[34].mxu1  ;;  %v2344_v22 = vsel %vm1411_vm2, %v2343_v19, -inf }
 0xb8d   : > { %2345 = vmax.xlane.f32.xlu0 %v2344_v22  ;;  %v3611_v23 = vpop.f32.mrb[35].mxu1 }
 0xb92   : > { %v2449_v24 = vpop.f32.mrb[36].mxu1 }
 0xb93   : > { %v2455_v25 = vsel %vm1982_vm9, -1e+30, %v2449_v24  ;;  %v3622_v26 = vpop.f32.mrb[37].mxu1 }
 0xb94   : > { %v2452_v27 = vpop.f32.mrb[38].mxu1  ;;  %v2456_v6 = vsel %vm1411_vm2, %v2455_v25, -inf }
 0xb95   : > { %2457 = vmax.xlane.f32.xlu0 %v2456_v6  ;;  %v3623_v28 = vpop.f32.mrb[39].mxu1 }
 0xb96   : > { %v3966_v28 = vld [vmem:[#allocation25] sm:$0xff]  }
 0xb97   : > { %3643 = vmatpush3.bf16.msra.mxu1 %v3966_v28 }
 0xb98   : > { %3644 = vmatprep.subr.bf16.mxu1 %v4860_v0 }
 0xb9a   : > { %v2560_v29 = vpop.f32.mrb[40].mxu1 }
 0xb9b   : > { %v2566_v30 = vsel %vm1982_vm9, -1e+30, %v2560_v29  ;;  %v3634_v31 = vpop.f32.mrb[41].mxu1 }
 0xb9c   : > { %v2563_v32 = vpop.f32.mrb[42].mxu1  ;;  %v2567_v33 = vsel %vm1411_vm2, %v2566_v30, -inf }
 0xb9d   : > { %2568 = vmax.xlane.f32.xlu1 %v2567_v33  ;;  %v3635_v34 = vpop.f32.mrb[43].mxu1 }
 0xba7   : > { %v2235_v35 = vpop.xlane.xlu1 %2234 }
 0xba8   : > { %v2236_v36 = vsub.f32 %v2232_v13, %v2235_v35 }
 0xbaa   : > { %v2237_v37 = vmul.f32 1.442695, %v2236_v36 }
 0xbac   : > { %3992 = vpow2.f32 %v2237_v37  ;;  %v3967_v37 = vld [vmem:[#allocation25 + $0x8] sm:$0xff]  }
 0xbad   : > { %3645 = vmatpush3.bf16.msra.mxu1 %v3967_v37 }
 0xbae   : > { %3658 = vmatprep.subr.bf16.mxu1 %v4860_v0 }
 0xbb6   : > { %v3993_v44 = vpop.eup %3992 }
 0xbb7   : > { %v2239_v47 = vsel %vm1411_vm2, %v3993_v44, 0.0 }
 0xbb8   : > { %2240 = vadd.xlane.f32.xlu0 %v2239_v47 }
 0xc1a   : > { %v2346_v50 = vpop.xlane.xlu0 %2345 }
 0xc1b   : > { %v2347_v51 = vsub.f32 %v2343_v19, %v2346_v50 }
 0xc1d   : > { %v2348_v52 = vmul.f32 1.442695, %v2347_v51  ;;  %v3404_v51 = vld [vmem:[#allocation26] ss:$0 sm:$0xff] }
 0xc1f   : > { %3994 = vpow2.f32 %v2348_v52 }
 0xc22   : > { %v2458_v53 = vpop.xlane.xlu0 %2457 }
 0xc23   : > { %v2459_v54 = vsub.f32 %v2455_v25, %v2458_v53 }
 0xc25   : > { %v2460_v55 = vmul.f32 1.442695, %v2459_v54 }
 0xc27   : > { %3996 = vpow2.f32 %v2460_v55 }
 0xc29   : > { %v3995_v56 = vpop.eup %3994 }
 0xc2a   : > { %v2350_v57 = vsel %vm1411_vm2, %v3995_v56, 0.0  ;;  %v2569_v61 = vpop.xlane.xlu1 %2568 }
 0xc2b   : > { %2351 = vadd.xlane.f32.xlu1 %v2350_v57  ;;  %v2570_v62 = vsub.f32 %v2566_v30, %v2569_v61  ;;  %v3968_v61 = vld [vmem:[#allocation31] sm:$0xff]  }
 0xc2d   : > { %v2571_v63 = vmul.f32 1.442695, %v2570_v62  ;;  %v3969_v62 = vld [vmem:[#allocation31 + $0x8] sm:$0xff]  }
 0xc31   : > { %v3997_v58 = vpop.eup %3996 }
 0xc32   : > { %v2462_v59 = vsel %vm1411_vm2, %v3997_v58, 0.0 }
 0xc33   : > { %2463 = vadd.xlane.f32.xlu0 %v2462_v59 }
 0xc3c   : > { %2468 = vrot.lane.b32.xlu1 %v2185_v48, %s4862_s30  ;;  %s4702_s30 = scalar_lea.vmem %s4701_s12, 128 }
 0xc3d   : > { %p4704_p2 = scmp.lt.s32.totalorder %s4702_s30, %s4696_s0 }
 0xc3f   : > { %p4705_p5 = por %p4704_p2, %p4703_p0 }
 0xc41   : > { %p4706_p1 = pnand %p4705_p5, %p4699_p7 }
 0xc45   : > { %v2241_v60 = vpop.xlane.xlu0 %2240 }
 0xc46   : > { %3998 = vrcp.f32 %v2241_v60 }
 0xc47   : > { %4000 = vpow2.f32 %v2571_v63  ;;  %v3970_v63 = vld [vmem:[#allocation34] sm:$0xff]  }
 0xc49   : > { %2357 = vrot.lane.b32.xlu0 %v2185_v48, %s4863_s14 }
 0xc50   : > { %v3999_v1 = vpop.eup %3998 }
 0xc51   : > { %v2243_v2 = vmul.f32 %v3999_v1, %v3993_v44  ;;  %v4001_v4 = vpop.eup %4000  ;;  %v3971_v1 = vld [vmem:[#allocation34 + $0x8] sm:$0xff]  }
 0xc52   : > { %v2573_v5 = vsel %vm1411_vm2, %v4001_v4, 0.0 }
 0xc53   : > { %v2244_v3 = vpack.c.bf16 %v2243_v2, %v2243_v2 }
 0xc55   : > { %3603 = vmatmul.mubr.msk.bf16.vlgmr.msra.gmra.mrb[32].mxu0 %vm1411_vm2, %v2244_v3 }
 0xc56   : > { %3614 = vmatprep.mubr.msk.bf16.mxu0 %vm4861_vm0, %v4860_v0 }
 0xc60   : > { %2574 = vadd.xlane.f32.xlu1 %v2573_v5 }
 0xc71   : > { %2579 = vrot.lane.b32.xlu1 %v2185_v48, %s4864_s2 }
 0xcb8   : > { %v2352_v7 = vpop.xlane.xlu1 %2351 }
 0xcb9   : > { %4002 = vrcp.f32 %v2352_v7 }
 0xcbc   : > { %v2469_v13 = vpop.permute.xlu1 %2468 }
 0xcbd   : > { %v2474_v15 = vsel %vm1474_vm6, %v2469_v13, 0  ;;  %v3409_v13 = vld [vmem:[#allocation29] ss:$0 sm:$0xff] }
 0xcc0   : > { %v2464_v8 = vpop.xlane.xlu0 %2463 }
 0xcc1   : > { %4004 = vrcp.f32 %v2464_v8 }
 0xcc3   : > { %v4003_v9 = vpop.eup %4002 }
 0xcc4   : > { %v2354_v10 = vmul.f32 %v4003_v9, %v3995_v56  ;;  %v2358_v11 = vpop.permute.xlu0 %2357 }
 0xcc5   : > { %v2363_v12 = vsel %vm1474_vm6, %v2358_v11, 0  ;;  %v3408_v11 = vld [vmem:[#allocation28] ss:$0 sm:$0xff] }
 0xcc6   : > { %3613 = vmatpush3.bf16.msra.mxu0 %v2363_v12  ;;  %v2355_v14 = vpack.c.bf16 %v2354_v10, %v2354_v10 }
 0xcc7   : > { %3624 = vmatprep.subr.bf16.mxu0 %v4860_v0 }
 0xcc9   : > { %3615 = vmatmul.mubr.msk.bf16.vlgmr.msra.gmra.mrb[36].mxu0 %vm1411_vm2, %v2355_v14 }
 0xcca   : > { %3625 = vmatpush3.bf16.msra.mxu0 %v2474_v15  ;;  %3626 = vmatprep.mubr.msk.bf16.mxu0 %vm4861_vm0, %v4860_v0 }
 0xccb   : > { %v4005_v16 = vpop.eup %4004  ;;  %3636 = vmatprep.subr.bf16.mxu0 %v4860_v0 }
 0xccc   : > { %v2466_v17 = vmul.f32 %v4005_v16, %v3997_v58 }
 0xcce   : > { %v2467_v18 = vpack.c.bf16 %v2466_v17, %v2466_v17 }
 0xcd1   : > { %3627 = vmatmul.mubr.msk.bf16.vlgmr.msra.gmra.mrb[40].mxu0 %vm1411_vm2, %v2467_v18  ;;  %v3972_v18 = vld [vmem:[#allocation34 + $0x10] sm:$0xff]  }
 0xcd2   : > { %3638 = vmatprep.mubr.msk.bf16.mxu0 %vm4861_vm0, %v4860_v0 }
 0xced   : > { %v2575_v19 = vpop.xlane.xlu1 %2574 }
 0xcee   : > { %4006 = vrcp.f32 %v2575_v19  ;;  %v3973_v19 = vld [vmem:[#allocation34 + $0x18] sm:$0xff]  }
 0xcf1   : > { %v2580_v20 = vpop.permute.xlu1 %2579 }
 0xcf2   : > { %v2585_v21 = vsel %vm1474_vm6, %v2580_v20, 0  ;;  %v3410_v20 = vld [vmem:[#allocation32] ss:$0 sm:$0xff] }
 0xcf3   : > { %3637 = vmatpush3.bf16.msra.mxu0 %v2585_v21 }
 0xcf4   : > { %3650 = vmatprep.subr.bf16.mxu0 %v4860_v0 }
 0xcf8   : > { %v4007_v22 = vpop.eup %4006 }
 0xcf9   : > { %v2577_v23 = vmul.f32 %v4007_v22, %v4001_v4 }
 0xcfb   : > { %v2578_v24 = vpack.c.bf16 %v2577_v23, %v2577_v23 }
 0xcfd   : > { %3639 = vmatmul.mubr.msk.bf16.vlgmr.msra.gmra.mrb[44].mxu0 %vm1411_vm2, %v2578_v24 }
 0xcfe   : > { %3654 = vmatprep.mubr.msk.bf16.mxu0 %vm4861_vm0, %v4860_v0  ;;  %3651 = vmatpush3.bf16.msra.mxu0 %v3968_v61 }
 0xcff   : > { %3652 = vmatprep.subr.bf16.mxu0 %v4860_v0 }
 0xd02   : > { %3653 = vmatpush3.bf16.msra.mxu0 %v3969_v62 }
 0xd28   : > { %v2285_v25 = vpop.f32.mrb[32].mxu0 }
 0xd29   : > { %v3604_v26 = vpop.f32.mrb[33].mxu0 }
 0xd2a   : > { %v2288_v27 = vpop.f32.mrb[34].mxu0 }
 0xd2b   : > { %v3605_v6 = vpop.f32.mrb[35].mxu0 }
 0xd2c   : > { %v3414_v6 = vld [vmem:[#allocation35] ss:$0 sm:$0xff] }
 0xd9c   : > { %v2399_v29 = vpop.f32.mrb[36].mxu0 }
 0xd9d   : > { %2628 = vrot.lane.b32.xlu0 %v2399_v29, %s4865_s9  ;;  %v3616_v30 = vpop.f32.mrb[37].mxu0 }
 0xd9e   : > { %v2402_v31 = vpop.f32.mrb[38].mxu0 }
 0xd9f   : > { %v3617_v32 = vpop.f32.mrb[39].mxu0 }
 0xda4   : > { %v2510_v33 = vpop.f32.mrb[40].mxu0 }
 0xda5   : > { %2632 = vrot.lane.b32.xlu1 %v2510_v33, %s4866_s21  ;;  %v3628_v34 = vpop.f32.mrb[41].mxu0 }
 0xda6   : > { %v2513_v35 = vpop.f32.mrb[42].mxu0 }
 0xda7   : > { %v3629_v36 = vpop.f32.mrb[43].mxu0 }
 0xdd0   : > { %v2621_v38 = vpop.f32.mrb[44].mxu0 }
 0xdd1   : > { %2636 = vrot.lane.b32.xlu0 %v2621_v38, %s4867_s13  ;;  %v3640_v39 = vpop.f32.mrb[45].mxu0 }
 0xdd2   : > { %v2624_v40 = vpop.f32.mrb[46].mxu0 }
 0xdd3   : > { %v3641_v41 = vpop.f32.mrb[47].mxu0 }
 0xe0f   : > { %v2629_v42 = vpop.permute.xlu0 %2628 }
 0xe10   : > { %v2639_v46 = vsel %vm1411_vm2, %v2285_v25, %v2629_v42 }
 0xe17   : > { %v2633_v44 = vpop.permute.xlu1 %2632 }
 0xe18   : > { %v2640_v47 = vsel %vm1867_vm7, %v2639_v46, %v2633_v44 }
 0xe43   : > { %v2637_v48 = vpop.permute.xlu0 %2636 }
 0xe44   : > { %v2641_v49 = vsel %vm1869_vm8, %v2640_v47, %v2637_v48  ;;  %v3420_v47 = vld [vmem:[#allocation37] ss:$0 sm:$0xff] }
 0xe45   : > { %v2642_v50 = vpack.c.bf16 %v2641_v49, %v2641_v49  ;;  %v3421_v49 = vld [vmem:[#allocation38] ss:$0 sm:$0xff] }
 0xe47   : > { %3647 = vmatmul.mubr.msk.bf16.vlgmr.msra.gmra.mrb[44].mxu1 %vm1231_vm1, %v2642_v50 }
 0xe48   : > { %3666 = vmatprep.mubr.msk.bf16.mxu1 %vm4861_vm0, %v4860_v0  ;;  %3659 = vmatpush3.bf16.msra.mxu1 %v3970_v63 }
 0xe49   : > { %3660 = vmatprep.subr.bf16.mxu1 %v4860_v0 }
 0xe4c   : > { %3661 = vmatpush3.bf16.msra.mxu1 %v3971_v1 }
 0xe4d   : > { %3662 = vmatprep.subr.bf16.mxu1 %v4860_v0 }
 0xe50   : > { %3663 = vmatpush3.bf16.msra.mxu1 %v3972_v18 }
 0xe51   : > { %3664 = vmatprep.subr.bf16.mxu1 %v4860_v0 }
 0xe54   : > { %3665 = vmatpush3.bf16.msra.mxu1 %v3973_v19 }
 0xf1a   : > { %v2703_v52 = vpop.f32.mrb[44].mxu1 }
 0xf1b   : > { %v2704_v53 = vadd.f32 %v3404_v51, %v2703_v52  ;;  %v3648_v54 = vpop.f32.mrb[45].mxu1 }
 0xf1c   : > { %v2706_v55 = vpop.f32.mrb[46].mxu1 }
 0xf1d   : > { %v2709_v56 = vadd.f32 %v2704_v53, %v5863_v45  ;;  %v3649_v57 = vpop.f32.mrb[47].mxu1 }
 0xf1f   : > { %v2712_v58 = vsel %vm1231_vm1, %v2709_v56, 0.0  ;;  %v2716_v59 = vmul.f32 %v2709_v56, %v2709_v56 }
 0xf20   : > { %2713 = vadd.xlane.f32.xlu1 %v2712_v58 }
 0xf21   : > { %v2717_v60 = vsel %vm1231_vm1, %v2716_v59, 0.0 }
 0xf22   : > { %2718 = vadd.xlane.f32.xlu0 %v2717_v60 }
 0xfad   : > { %v2714_v45 = vpop.xlane.xlu1 %2713 }
 0xfae   : > { %v2715_v2 = vmul.f32 0.03125, %v2714_v45 }
 0xfaf   : > { %v2719_v3 = vpop.xlane.xlu0 %2718 }
 0xfb0   : > { %v2721_v4 = vmul.f32 %v2715_v2, %v2715_v2  ;;  %v2720_v5 = vmul.f32 0.03125, %v2719_v3  ;;  %v2723_v9 = vsub.f32 %v2709_v56, %v2715_v2 }
 0xfb2   : > { %v2722_v7 = vsub.f32 %v2720_v5, %v2721_v4 }
 0xfb4   : > { %v2724_v8 = vadd.f32 1e-05, %v2722_v7 }
 0xfb6   : > { %4008 = vrsqrt.f32 %v2724_v8 }
 0xfc0   : > { %v4009_v10 = vpop.eup %4008 }
 0xfc1   : > { %v2726_v12 = vmul.f32 %v4009_v10, %v2723_v9 }
 0xfc3   : > { %v2733_v14 = vmul.f32 %v3408_v11, %v2726_v12 }
 0xfc5   : > { %v2740_v15 = vadd.f32 %v3409_v13, %v2733_v14 }
 0xfc7   : > { %v2741_v16 = vmul.f32 %v2740_v15, %v5860_v43 }
 0xfc9   : > { %v2742_v17 = vpack.c.bf16 %v2741_v16, %v2741_v16 }
 0xfcb   : > { %3655 = vmatmul.mubr.msk.bf16.vlgmr.msra.gmra.mrb[48].mxu0 %vm1231_vm1, %v2742_v17 }
0x109e   : > { %v2803_v21 = vpop.f32.mrb[48].mxu0 }
0x109f   : > { %v2804_v22 = vadd.f32 %v3410_v20, %v2803_v21  ;;  %v3656_v23 = vpop.f32.mrb[49].mxu0 }
0x10a0   : > { %v2806_v24 = vpop.f32.mrb[50].mxu0 }
0x10a1   : > { %v2809_v25 = vmax.f32 %v2804_v22, 0.0  ;;  %v3657_v26 = vpop.f32.mrb[51].mxu0 }
0x10a3   : > { %v2810_v27 = vpack.c.bf16 %v2809_v25, %v2809_v25 }
0x10a5   : > { %3667 = vmatmul.mubr.msk.bf16.vlgmr.msra.gmra.mrb[48].mxu1 %vm2850_vm10, %v2810_v27 }
0x1178   : > { %v2888_v28 = vpop.f32.mrb[48].mxu1 }
0x1179   : > { %v2889_v29 = vadd.f32 %v3414_v6, %v2888_v28  ;;  %v3668_v30 = vpop.f32.mrb[49].mxu1 }
0x117a   : > { %v2891_v31 = vpop.f32.mrb[50].mxu1 }
0x117b   : > { %v2894_v32 = vadd.f32 %v2889_v29, %v2741_v16  ;;  %v3669_v33 = vpop.f32.mrb[51].mxu1 }
0x117d   : > { %v2897_v0 = vsel %vm1231_vm1, %v2894_v32, 0.0  ;;  %v2901_v34 = vmul.f32 %v2894_v32, %v2894_v32 }
0x117e   : > { %2898 = vadd.xlane.f32.xlu0 %v2897_v0 }
0x117f   : > { %v2902_v35 = vsel %vm1231_vm1, %v2901_v34, 0.0 }
0x1180   : > { %2903 = vadd.xlane.f32.xlu1 %v2902_v35 }
0x120b   : > { %v2899_v36 = vpop.xlane.xlu0 %2898 }
0x120c   : > { %v2900_v37 = vmul.f32 0.03125, %v2899_v36 }
0x120d   : > { %v2904_v38 = vpop.xlane.xlu1 %2903 }
0x120e   : > { %v2906_v39 = vmul.f32 %v2900_v37, %v2900_v37  ;;  %v2905_v40 = vmul.f32 0.03125, %v2904_v38  ;;  %v2908_v44 = vsub.f32 %v2894_v32, %v2900_v37 }
0x1210   : > { %v2907_v41 = vsub.f32 %v2905_v40, %v2906_v39 }
0x1212   : > { %v2909_v42 = vadd.f32 1e-05, %v2907_v41 }
0x1214   : > { %4010 = vrsqrt.f32 %v2909_v42 }
0x121e   : > { %v4011_v46 = vpop.eup %4010 }
0x121f   : > { %v2911_v48 = vmul.f32 %v4011_v46, %v2908_v44 }
0x1221   : > { %v2918_v50 = vmul.f32 %v3420_v47, %v2911_v48 }
0x1223   : > { %v2925_v51 = vadd.f32 %v3421_v49, %v2918_v50 }
0x1225   : > { %v2926_v52 = vmul.f32 %v2925_v51, %v5860_v43 }
0x1227   : > { %v2927_v53 = vpack.c.bf16 %v2926_v52, %v2926_v52 }
0x1229   : > { %2929 = vst.msk [vmem:[%s1186_s3] sm:$0xf] %vm2928_vm11, %v2927_v53 }
0x122a   : > { %4709 = shalt.err (!%p4706_p1)
}
0x122b   : > { %s4710_s17 = scalar_lea.hbm %s5966_s27, 64  ;;  %s4714_s9 = scalar_lea.hbm %s6206_s25, 128 }
0x122c   : > { %p4711_p8 = scmp.ne.s32.totalorder %s5966_s27, %s4710_s17  ;;  %p4715_p10 = scmp.lt.u32.totalorder %s5966_s27, %s6206_s25 }
0x122d   : > { %p4716_p3 = scmp.lt.u32.totalorder %s4714_s9, %s4710_s17  ;;  %p4718_p13 = scmp.lt.u32.totalorder %s4710_s17, %s5966_s27 }
0x122e   : > { %p4712_p9 = pnand %p4711_p8, %p6207_p6 }
0x122f   : > { %p4717_p12 = por %p4716_p3, %p4715_p10 }
0x1230   : > { %p4713_p11 = pneg %p4712_p9 }
0x1231   : > { %p4719_p4 = por %p4718_p13, %p4717_p12 }
0x1233   : > { %p4720_p7 = pnand %p4719_p4, %p4713_p11 }
0x1235   : > { %4723 = shalt.err (!%p4720_p7)
}
0x1236   : > { %3754 = dma.vmem_to_hbm [thread:$0]  (%p6207_p6), %s5968_s28, 64, %s5966_s27, %s2931_s18  }
0x1237 PF: > { %s6208_s23 = sld [smem:[#allocation56_spill]]  ;;  %s6209_s29 = sld [smem:[#allocation65_spill]] }
0x1238   : > { %s6210_s3 = sld [smem:[#allocation59_spill]] }
0x123d   : > { %s2957_s8 = sand.u32 1, %s6208_s23   ;;  %p6211_p0 = scmp.ne.s32.totalorder %s6209_s29, 0 }
0x123e   : > { %p6212_p2 = scmp.ge.s32.totalorder %s6210_s3, 2  ;;  %s2958_s11 = scalar_lea.sflag [#allocation4], %s2957_s8 }
0x1240   : > { %p3831_p5 = pnand %p6212_p2, %p6211_p0 }
0x1242   : > { %4805 = dma.done.wait (!%p3831_p5), %s2958_s11, 64  }
0x1243   : > { %4807 = vsyncadd (!%p3831_p5), %s2958_s11, 4294967232  ;;  %s58_s2 = sadd.s32 1, %s6210_s3   ;;  %s6213_s0 = sld [smem:[#allocation57_spill]] }
0x1244   : > { %p55_p1 = scmp.ge.s32.totalorder %s58_s2, 4   ;;  %s6214_s27 = sld [smem:[#allocation64_spill]] }
0x1245   : > { %s6215_s16 = sld [smem:[#allocation62_spill]]  ;;  %s6216_s5 = smov %s4814_s26 }
0x1246   : > { %s6218_s28 = smov %s4826_s6  ;;  %57 = sbr.rel (!%p55_p1) target bundleno = 47 (0x2f), region = 302 }
0x1249   : > { %s6217_s26 = smov %s6213_s0 }
0x124b   : > { %s6219_s6 = smov %s6215_s16 }
0x124d   :  { %2963 = vsyncpa [#allocation3], 1 }
0x124e   :  { %2965 = vsyncpa [#allocation3 + $0x1], 1 }
0x124f   :  { %2966 = vsyncpa [#allocation6], 1 }
0x1250   :  { %2968 = vsyncpa [#allocation6 + $0x1], 1 }
0x1251   :  { %2969 = vsyncpa [#allocation9], 1 }
0x1252   :  { %2971 = vsyncpa [#allocation9 + $0x1], 1 }
0x1253   :  { %2972 = vsyncpa [#allocation12], 1 }
0x1254   :  { %2974 = vsyncpa [#allocation12 + $0x1], 1 }
0x1255   :  { %2975 = vsyncpa [#allocation15], 1 }
0x1256   :  { %2976 = vsyncpa [#allocation18], 1 }
0x1257   :  { %2977 = vsyncpa [#allocation21], 1 }
0x1258   :  { %2978 = vsyncpa [#allocation24], 1 }
0x1259   :  { %2979 = vsyncpa [#allocation27], 1 }
0x125a   :  { %2980 = vsyncpa [#allocation30], 1 }
0x125b   :  { %2981 = vsyncpa [#allocation33], 1 }
0x125c   :  { %2982 = vsyncpa [#allocation36], 1 }
0x125d   :  { %2983 = vsyncpa [#allocation39], 1 }
0x125e   :  { %2984 = vsyncpa [#allocation4], 1 }
0x125f   :  { %2986 = vsyncpa [#allocation4 + $0x1], 1 }

// kernel: tpu_custom_call.1
= control target key start
LH: loop header
LB: loop body
LE: loop exit
PB: predicated region body
PF: predicated region fallthrough
CT: control target
= control target key end

     0   :  { %s6015_s0 = inlined_call_operand.hbm [shape: bf16[2,8,32], index: 0, kind: input, shape index: {}]   ;;  %s6016_s1 = inlined_call_operand.hbm [shape: bf16[2,8,32], index: 1, kind: input, shape index: {}]   ;;  %s6017_s2 = inlined_call_operand.hbm [shape: bf16[2,8,32], index: 2, kind: input, shape index: {}]   ;;  %s6018_s3 = inlined_call_operand.hbm [shape: s32[2,1,8], index: 3, kind: input, shape index: {}]   ;;  %s6019_s4 = inlined_call_operand.hbm [shape: s32[2,1,8], index: 4, kind: input, shape index: {}]   ;;  %s6020_s5 = inlined_call_operand.hbm [shape: f32[2,8,1], index: 5, kind: input, shape index: {}]   ;;  %s6021_s6 = inlined_call_operand.hbm [shape: bf16[3,32,32], index: 6, kind: input, shape index: {}]   ;;  %s6022_s7 = inlined_call_operand.hbm [shape: f32[3,1,32], index: 7, kind: input, shape index: {}]   ;;  %s6023_s8 = inlined_call_operand.hbm [shape: bf16[32,32], index: 8, kind: input, shape index: {}]   ;;  %s6024_s9 = inlined_call_operand.hbm [shape: f32[1,32], index: 9, kind: input, shape index: {}]   ;;  %s6025_s10 = inlined_call_operand.hbm [shape: f32[1,32], index: 10, kind: input, shape index: {}]   ;;  %s6026_s11 = inlined_call_operand.hbm [shape: f32[1,32], index: 11, kind: input, shape index: {}]   ;;  %s6027_s12 = inlined_call_operand.hbm [shape: bf16[3,32,32], index: 12, kind: input, shape index: {}]   ;;  %s6028_s13 = inlined_call_operand.hbm [shape: f32[3,1,32], index: 13, kind: input, shape index: {}]   ;;  %s6029_s14 = inlined_call_operand.hbm [shape: bf16[32,32], index: 14, kind: input, shape index: {}]   ;;  %s6030_s15 = inlined_call_operand.hbm [shape: f32[1,32], index: 15, kind: input, shape index: {}]   ;;  %s6031_s16 = inlined_call_operand.hbm [shape: f32[1,32], index: 16, kind: input, shape index: {}]   ;;  %s6032_s17 = inlined_call_operand.hbm [shape: f32[1,32], index: 17, kind: input, shape index: {}]   ;;  %s6033_s18 = inlined_call_operand.hbm [shape: bf16[32,64], index: 18, kind: input, shape index: {}]   ;;  %s6034_s19 = inlined_call_operand.hbm [shape: f32[1,64], index: 19, kind: input, shape index: {}]   ;;  %s6035_s20 = inlined_call_operand.hbm [shape: bf16[64,32], index: 20, kind: input, shape index: {}]   ;;  %s6036_s21 = inlined_call_operand.hbm [shape: f32[1,32], index: 21, kind: input, shape index: {}]   ;;  %s6037_s22 = inlined_call_operand.hbm [shape: f32[1,32], index: 22, kind: input, shape index: {}]   ;;  %s6038_s23 = inlined_call_operand.hbm [shape: f32[1,32], index: 23, kind: input, shape index: {}]   ;;  %s6039_s24 = inlined_call_operand.hbm [shape: bf16[2,8,32], index: 24, kind: output, shape index: {}]  }
   0x1   :  { %6093 = sst [smem:[#allocation66_spill]] %s6015_s0 }
   0x2   :  { %6094 = sst [smem:[#allocation67_spill]] %s6016_s1 }
   0x3   :  { %6095 = sst [smem:[#allocation68_spill]] %s6017_s2 }
   0x4   :  { %6096 = sst [smem:[#allocation69_spill]] %s6018_s3 }
   0x5   :  { %6097 = sst [smem:[#allocation70_spill]] %s6019_s4 }
   0x6   :  { %6098 = sst [smem:[#allocation71_spill]] %s6020_s5 }
   0x7   :  { %6099 = sst [smem:[#allocation72_spill]] %s6021_s6 }
   0x8   :  { %6100 = sst [smem:[#allocation73_spill]] %s6022_s7 }
   0x9   :  { %6101 = sst [smem:[#allocation74_spill]] %s6023_s8 }
   0xa   :  { %6102 = sst [smem:[#allocation75_spill]] %s6024_s9 }
   0xb   :  { %6103 = sst [smem:[#allocation76_spill]] %s6025_s10 }
   0xc   :  { %6104 = sst [smem:[#allocation77_spill]] %s6026_s11 }
   0xd   :  { %6105 = sst [smem:[#allocation78_spill]] %s6027_s12 }
   0xe   :  { %6106 = sst [smem:[#allocation79_spill]] %s6028_s13 }
   0xf   :  { %6107 = sst [smem:[#allocation80_spill]] %s6029_s14 }
  0x10   :  { %6108 = sst [smem:[#allocation81_spill]] %s6030_s15 }
  0x11   :  { %6109 = sst [smem:[#allocation82_spill]] %s6031_s16 }
  0x12   :  { %6110 = sst [smem:[#allocation83_spill]] %s6032_s17 }
  0x13   :  { %6111 = sst [smem:[#allocation84_spill]] %s6033_s18 }
  0x14   :  { %6112 = sst [smem:[#allocation85_spill]] %s6034_s19 }
  0x15   :  { %6113 = sst [smem:[#allocation86_spill]] %s6035_s20 }
  0x16   :  { %6114 = sst [smem:[#allocation87_spill]] %s6036_s21 }
  0x17   :  { %6115 = sst [smem:[#allocation88_spill]] %s6037_s22 }
  0x18   :  { %6116 = sst [smem:[#allocation89_spill]] %s6038_s23 }
  0x19   :  { %6117 = sst [smem:[#allocation90_spill]] %s6039_s24 }
  0x1a   :  { %29 = vsyncpa [#allocation3], 0 }
  0x1b   :  { %31 = vsyncpa [#allocation3 + $0x1], 0 }
  0x1c   :  { %32 = vsyncpa [#allocation6], 0 }
  0x1d   :  { %34 = vsyncpa [#allocation6 + $0x1], 0 }
  0x1e   :  { %35 = vsyncpa [#allocation9], 0 }
  0x1f   :  { %37 = vsyncpa [#allocation9 + $0x1], 0 }
  0x20   :  { %38 = vsyncpa [#allocation12], 0 }
  0x21   :  { %40 = vsyncpa [#allocation12 + $0x1], 0 }
  0x22   :  { %41 = vsyncpa [#allocation15], 0 }
  0x23   :  { %42 = vsyncpa [#allocation18], 0 }
  0x24   :  { %43 = vsyncpa [#allocation21], 0 }
  0x25   :  { %44 = vsyncpa [#allocation24], 0 }
  0x26   :  { %45 = vsyncpa [#allocation27], 0 }
  0x27   :  { %46 = vsyncpa [#allocation30], 0 }
  0x28   :  { %47 = vsyncpa [#allocation33], 0 }
  0x29   :  { %48 = vsyncpa [#allocation36], 0 }
  0x2a   :  { %49 = vsyncpa [#allocation39], 0 }
  0x2b   :  { %50 = vsyncpa [#allocation4], 0 }
  0x2c   :  { %52 = vsyncpa [#allocation4 + $0x1], 0  ;;  %s4995_s5 = smov 0   ;;  %s4997_s26 = smov 0  }
  0x2d   :  { %s4999_s27 = smov 0   ;;  %s5001_s28 = smov 0  }
  0x2e   :  { %s5003_s6 = smov 0   ;;  %s5005_s2 = smov 0  }
  0x2f LB: > { %6118 = sst [smem:[#allocation56_spill]] %s4810_s5  ;;  %s5026_s29 = sadd.s32 4294967295, %s4830_s2   ;;  %s4830_s2 = sphi %s5005_s2, %s58_s2   ;;  %s4826_s6 = sphi %s5003_s6, %s6219_s6   ;;  %s4822_s28 = sphi %s5001_s28, %s6218_s28   ;;  %s4818_s27 = sphi %s4999_s27, %s6214_s27   ;;  %s4814_s26 = sphi %s4997_s26, %s6217_s26   ;;  %s4810_s5 = sphi %s4995_s5, %s6216_s5  }
  0x30   : > { %6119 = sst [smem:[#allocation57_spill]] %s4818_s27  ;;  %p3302_p0 = scmp.ge.s32.totalorder %s4830_s2, 1 }
  0x31   : > { %6120 = sst [smem:[#allocation58_spill]] %s4822_s28  ;;  %p6063_p1 = scmp.eq.s32.totalorder %s5026_s29, 0 }
  0x32   : > { %6121 = sst [smem:[#allocation59_spill]] %s4830_s2  ;;  %p641_p2 = scmp.lt.s32.totalorder %s4830_s2, 3 }
  0x33   : > { %6122 = sst [smem:[#allocation60_spill]] %s5026_s29  ;;  %s4832_s7 = smov [#allocation13]  }
  0x34   : > { %p5031_p3 = pnand %p3302_p0, %p641_p2  ;;  %s653_s30 = sshll.u32 %s4832_s7, 4  ;;  %s5035_s30 = int_to_ptr.vmem [resolvable:$true] %s653_s30 }
  0x35   : > { %s4833_s25 = smov [#allocation14]   ;;  %s6126_s24 = sld [smem:[#allocation72_spill]] }
  0x36   : > { %s6123_s0 = scalar_select %p5031_p3, 1, 0 }
  0x37   : > { %p3756_p4 = pneg %p5031_p3  ;;  %s666_s8 = sshll.u32 %s4833_s25, 4  ;;  %s5046_s8 = int_to_ptr.vmem [resolvable:$true] %s666_s8 }
  0x38   : > { %6124 = sst [smem:[#allocation61_spill]] %s6123_s0 }
  0x39   : > { %p5042_p6 = pnand %p3756_p4, %p6063_p1 }
  0x3b   : > { %s6125_s3 = scalar_select %p5042_p6, 1, 0 }
  0x3c   : > { %s4012_s28 = scalar_lea.hbm %s6126_s24, 768  ;;  %p5056_p8 = pneg %p5042_p6 }
  0x3d   : > { %p4013_p7 = scmp.ne.s32.totalorder %s6126_s24, %s4012_s28  ;;  %p4019_p11 = scmp.lt.u32.totalorder %s4012_s28, %s6126_s24 }
  0x3e   : > { %s6127_s0 = scalar_select %p5056_p8, 1, 0 }
  0x3f   : > { %p4015_p9 = pnand %p5056_p8, %p4013_p7 }
  0x41   : > { %p4016_p10 = pneg %p4015_p9 }
  0x43   : > { %p4021_p12 = pnand %p4019_p11, %p4016_p10 }
  0x45   : > { %4024 = shalt.err (!%p4021_p12)
}
  0x46   : > { %s4025_s23 = scalar_lea.vmem %s5035_s30, 768  ;;  %p4033_p4 = scmp.lt.s32.totalorder %s5035_s30, %s5035_s30 }
  0x47   : > { %p4026_p13 = scmp.ne.s32.totalorder %s5035_s30, %s4025_s23  ;;  %p4034_p5 = scmp.lt.s32.totalorder %s4025_s23, %s4025_s23 }
  0x49   : > { %p4028_p0 = pnand %p4026_p13, %p5056_p8  ;;  %p4035_p7 = por %p4034_p5, %p4033_p4 }
  0x4b   : > { %p4029_p2 = pneg %p4028_p0 }
  0x4d   : > { %p4036_p9 = pnand %p4035_p7, %p4029_p2 }
  0x4f   : > { %4039 = shalt.err (!%p4036_p9)
}
  0x50   : > { %s6058_s4 = smov 64   ;;  %s6060_s22 = smov 4  }
  0x51   : > { %3759 = dma.hbm_to_vmem [thread:$0]  (!%p5042_p6), %s6126_s24, 768, %s5035_s30, [#allocation12], %s6058_s4, %s6058_s4, %s6060_s22  }
  0x52   : > { %s6128_s20 = sld [smem:[#allocation73_spill]] }
  0x58   : > { %s4040_s23 = scalar_lea.hbm %s6128_s20, 48 }
  0x59   : > { %p4041_p5 = scmp.ne.s32.totalorder %s6128_s20, %s4040_s23  ;;  %p4047_p12 = scmp.lt.u32.totalorder %s4040_s23, %s6128_s20 }
  0x5b   : > { %p4043_p10 = pnand %p4041_p5, %p5056_p8 }
  0x5d   : > { %p4044_p11 = pneg %p4043_p10 }
  0x5f   : > { %p4049_p13 = pnand %p4047_p12, %p4044_p11 }
  0x61   : > { %4052 = shalt.err (!%p4049_p13)
}
  0x62   : > { %s4053_s30 = scalar_lea.vmem %s5046_s8, 48  ;;  %s4060_s16 = scalar_lea.vmem %s5046_s8, 64 }
  0x63   : > { %p4054_p0 = scmp.ne.s32.totalorder %s5046_s8, %s4053_s30  ;;  %p4061_p7 = scmp.lt.s32.totalorder %s5046_s8, %s5046_s8 }
  0x64   : > { %p4062_p9 = scmp.lt.s32.totalorder %s4060_s16, %s4053_s30 }
  0x65   : > { %p4056_p2 = pnand %p4054_p0, %p5056_p8 }
  0x66   : > { %p4063_p5 = por %p4062_p9, %p4061_p7 }
  0x67   : > { %p4057_p4 = pneg %p4056_p2 }
  0x69   : > { %p4064_p10 = pnand %p4063_p5, %p4057_p4 }
  0x6b   : > { %4067 = shalt.err (!%p4064_p10)
}
  0x6c   : > { %s4836_s12 = smov 16   ;;  %s4837_s14 = smov 1  }
  0x6d   : > { %3762 = dma.hbm_to_vmem [thread:$0]  (!%p5042_p6), %s6128_s20, 48, %s5046_s8, [#allocation15], %s4836_s12, %s4836_s12, %s4837_s14  }
  0x6e   : > { %s4838_s1 = smov [#allocation17]   ;;  %s4839_s25 = smov [#allocation20]  }
  0x6f   : > { %s693_s7 = sshll.u32 %s4838_s1, 4  ;;  %s715_s23 = sshll.u32 %s4839_s25, 4  ;;  %s694_s7 = int_to_ptr.vmem [resolvable:$true] %s693_s7  ;;  %s5107_s23 = int_to_ptr.vmem [resolvable:$true] %s715_s23 }
  0x70   : > { %s6129_s9 = sld [smem:[#allocation75_spill]] }
  0x76   : > { %s4068_s4 = scalar_lea.hbm %s6129_s9, 16 }
  0x77   : > { %p4069_p11 = scmp.ne.s32.totalorder %s6129_s9, %s4068_s4  ;;  %p4075_p0 = scmp.lt.u32.totalorder %s4068_s4, %s6129_s9 }
  0x79   : > { %p4071_p12 = pnand %p4069_p11, %p5056_p8 }
  0x7b   : > { %p4072_p13 = pneg %p4071_p12 }
  0x7d   : > { %p4077_p2 = pnand %p4075_p0, %p4072_p13 }
  0x7f   : > { %4080 = shalt.err (!%p4077_p2)
}
  0x80   : > { %s4081_s28 = scalar_lea.vmem %s694_s7, 16  ;;  %s4088_s1 = scalar_lea.vmem %s694_s7, 32 }
  0x81   : > { %p4082_p4 = scmp.ne.s32.totalorder %s694_s7, %s4081_s28  ;;  %p4089_p5 = scmp.lt.s32.totalorder %s694_s7, %s694_s7 }
  0x82   : > { %p4090_p10 = scmp.lt.s32.totalorder %s4088_s1, %s4081_s28 }
  0x83   : > { %p4084_p7 = pnand %p4082_p4, %p5056_p8 }
  0x84   : > { %p4091_p1 = por %p4090_p10, %p4089_p5 }
  0x85   : > { %p4085_p9 = pneg %p4084_p7 }
  0x87   : > { %p4092_p3 = pnand %p4091_p1, %p4085_p9 }
  0x89   : > { %4095 = shalt.err (!%p4092_p3)
}
  0x8a   : > { %3768 = dma.hbm_to_vmem [thread:$0]  (!%p5042_p6), %s6129_s9, 16, %s694_s7, [#allocation18]  }
  0x8b   : > { %s6130_s11 = sld [smem:[#allocation77_spill]] }
  0x91   : > { %s4096_s30 = scalar_lea.hbm %s6130_s11, 16 }
  0x92   : > { %p4097_p11 = scmp.ne.s32.totalorder %s6130_s11, %s4096_s30  ;;  %p4103_p1 = scmp.lt.u32.totalorder %s4096_s30, %s6130_s11 }
  0x94   : > { %p4099_p12 = pnand %p4097_p11, %p5056_p8 }
  0x96   : > { %p4100_p13 = pneg %p4099_p12 }
  0x98   : > { %p4105_p3 = pnand %p4103_p1, %p4100_p13 }
  0x9a   : > { %4108 = shalt.err (!%p4105_p3)
}
  0x9b   : > { %s4109_s7 = scalar_lea.vmem %s5107_s23, 16  ;;  %s4116_s1 = scalar_lea.vmem %s5107_s23, 32 }
  0x9c   : > { %p4110_p0 = scmp.ne.s32.totalorder %s5107_s23, %s4109_s7  ;;  %p4117_p7 = scmp.lt.s32.totalorder %s5107_s23, %s5107_s23 }
  0x9d   : > { %p4118_p9 = scmp.lt.s32.totalorder %s4116_s1, %s4109_s7 }
  0x9e   : > { %p4112_p2 = pnand %p4110_p0, %p5056_p8 }
  0x9f   : > { %p4119_p5 = por %p4118_p9, %p4117_p7 }
  0xa0   : > { %p4113_p4 = pneg %p4112_p2 }
  0xa2   : > { %p4120_p10 = pnand %p4119_p5, %p4113_p4 }
  0xa4   : > { %4123 = shalt.err (!%p4120_p10)
}
  0xa5   : > { %3774 = dma.hbm_to_vmem [thread:$0]  (!%p5042_p6), %s6130_s11, 16, %s5107_s23, [#allocation21]  }
  0xa6   : > { %s4840_s4 = smov [#allocation23]   ;;  %s4841_s30 = smov [#allocation26]  }
  0xa7   : > { %s738_s25 = sshll.u32 %s4840_s4, 4  ;;  %s765_s16 = sshll.u32 %s4841_s30, 4  ;;  %s739_s25 = int_to_ptr.vmem [resolvable:$true] %s738_s25  ;;  %s5151_s16 = int_to_ptr.vmem [resolvable:$true] %s765_s16 }
  0xa8   : > { %s6131_s13 = sld [smem:[#allocation79_spill]] }
  0xae   : > { %s4124_s28 = scalar_lea.hbm %s6131_s13, 48 }
  0xaf   : > { %p4125_p11 = scmp.ne.s32.totalorder %s6131_s13, %s4124_s28  ;;  %p4131_p1 = scmp.lt.u32.totalorder %s4124_s28, %s6131_s13 }
  0xb1   : > { %p4127_p12 = pnand %p4125_p11, %p5056_p8 }
  0xb3   : > { %p4128_p13 = pneg %p4127_p12 }
  0xb5   : > { %p4133_p3 = pnand %p4131_p1, %p4128_p13 }
  0xb7   : > { %4136 = shalt.err (!%p4133_p3)
}
  0xb8   : > { %s4137_s22 = scalar_lea.vmem %s739_s25, 48  ;;  %s4144_s4 = scalar_lea.vmem %s739_s25, 64 }
  0xb9   : > { %p4138_p0 = scmp.ne.s32.totalorder %s739_s25, %s4137_s22  ;;  %p4145_p7 = scmp.lt.s32.totalorder %s739_s25, %s739_s25 }
  0xba   : > { %p4146_p9 = scmp.lt.s32.totalorder %s4144_s4, %s4137_s22 }
  0xbb   : > { %p4140_p2 = pnand %p4138_p0, %p5056_p8 }
  0xbc   : > { %p4147_p5 = por %p4146_p9, %p4145_p7 }
  0xbd   : > { %p4141_p4 = pneg %p4140_p2 }
  0xbf   : > { %p4148_p10 = pnand %p4147_p5, %p4141_p4 }
  0xc1   : > { %4151 = shalt.err (!%p4148_p10)
}
  0xc2   : > { %3780 = dma.hbm_to_vmem [thread:$0]  (!%p5042_p6), %s6131_s13, 48, %s739_s25, [#allocation24], %s4836_s12, %s4836_s12, %s4837_s14  }
  0xc3   : > { %s6132_s15 = sld [smem:[#allocation81_spill]] }
  0xc9   : > { %s4152_s7 = scalar_lea.hbm %s6132_s15, 16 }
  0xca   : > { %p4153_p11 = scmp.ne.s32.totalorder %s6132_s15, %s4152_s7  ;;  %p4159_p1 = scmp.lt.u32.totalorder %s4152_s7, %s6132_s15 }
  0xcc   : > { %p4155_p12 = pnand %p4153_p11, %p5056_p8 }
  0xce   : > { %p4156_p13 = pneg %p4155_p12 }
  0xd0   : > { %p4161_p3 = pnand %p4159_p1, %p4156_p13 }
  0xd2   : > { %4164 = shalt.err (!%p4161_p3)
}
  0xd3   : > { %s4165_s12 = scalar_lea.vmem %s5151_s16, 16  ;;  %s4172_s14 = scalar_lea.vmem %s5151_s16, 32 }
  0xd4   : > { %p4166_p0 = scmp.ne.s32.totalorder %s5151_s16, %s4165_s12  ;;  %p4173_p7 = scmp.lt.s32.totalorder %s5151_s16, %s5151_s16 }
  0xd5   : > { %p4174_p9 = scmp.lt.s32.totalorder %s4172_s14, %s4165_s12 }
  0xd6   : > { %p4168_p2 = pnand %p4166_p0, %p5056_p8 }
  0xd7   : > { %p4175_p5 = por %p4174_p9, %p4173_p7 }
  0xd8   : > { %p4169_p4 = pneg %p4168_p2 }
  0xda   : > { %p4176_p10 = pnand %p4175_p5, %p4169_p4 }
  0xdc   : > { %4179 = shalt.err (!%p4176_p10)
}
  0xdd   : > { %3786 = dma.hbm_to_vmem [thread:$0]  (!%p5042_p6), %s6132_s15, 16, %s5151_s16, [#allocation27]  }
  0xde   : > { %s4842_s30 = smov [#allocation29]   ;;  %s4843_s8 = smov [#allocation32]  }
  0xdf   : > { %s787_s18 = sshll.u32 %s4842_s30, 4  ;;  %s811_s28 = sshll.u32 %s4843_s8, 4  ;;  %s788_s18 = int_to_ptr.vmem [resolvable:$true] %s787_s18  ;;  %s5198_s28 = int_to_ptr.vmem [resolvable:$true] %s811_s28 }
  0xe0   : > { %s6133_s17 = sld [smem:[#allocation83_spill]] }
  0xe6   : > { %s4180_s24 = scalar_lea.hbm %s6133_s17, 16 }
  0xe7   : > { %p4181_p11 = scmp.ne.s32.totalorder %s6133_s17, %s4180_s24  ;;  %p4187_p1 = scmp.lt.u32.totalorder %s4180_s24, %s6133_s17 }
  0xe9   : > { %p4183_p12 = pnand %p4181_p11, %p5056_p8 }
  0xeb   : > { %p4184_p13 = pneg %p4183_p12 }
  0xed   : > { %p4189_p3 = pnand %p4187_p1, %p4184_p13 }
  0xef   : > { %4192 = shalt.err (!%p4189_p3)
}
  0xf0   : > { %s4193_s14 = scalar_lea.vmem %s788_s18, 16  ;;  %s4200_s25 = scalar_lea.vmem %s788_s18, 32 }
  0xf1   : > { %p4194_p0 = scmp.ne.s32.totalorder %s788_s18, %s4193_s14  ;;  %p4201_p7 = scmp.lt.s32.totalorder %s788_s18, %s788_s18 }
  0xf2   : > { %p4202_p9 = scmp.lt.s32.totalorder %s4200_s25, %s4193_s14 }
  0xf3   : > { %p4196_p2 = pnand %p4194_p0, %p5056_p8 }
  0xf4   : > { %p4203_p5 = por %p4202_p9, %p4201_p7 }
  0xf5   : > { %p4197_p4 = pneg %p4196_p2 }
  0xf7   : > { %p4204_p10 = pnand %p4203_p5, %p4197_p4 }
  0xf9   : > { %4207 = shalt.err (!%p4204_p10)
}
  0xfa   : > { %3792 = dma.hbm_to_vmem [thread:$0]  (!%p5042_p6), %s6133_s17, 16, %s788_s18, [#allocation30]  }
  0xfb   : > { %s6134_s19 = sld [smem:[#allocation85_spill]] }
 0x101   : > { %s4208_s1 = scalar_lea.hbm %s6134_s19, 16 }
 0x102   : > { %p4209_p11 = scmp.ne.s32.totalorder %s6134_s19, %s4208_s1  ;;  %p4215_p1 = scmp.lt.u32.totalorder %s4208_s1, %s6134_s19 }
 0x104   : > { %p4211_p12 = pnand %p4209_p11, %p5056_p8 }
 0x106   : > { %p4212_p13 = pneg %p4211_p12 }
 0x108   : > { %p4217_p3 = pnand %p4215_p1, %p4212_p13 }
 0x10a   : > { %4220 = shalt.err (!%p4217_p3)
}
 0x10b   : > { %s4221_s18 = scalar_lea.vmem %s5198_s28, 16  ;;  %s4228_s16 = scalar_lea.vmem %s5198_s28, 32 }
 0x10c   : > { %p4222_p0 = scmp.ne.s32.totalorder %s5198_s28, %s4221_s18  ;;  %p4229_p7 = scmp.lt.s32.totalorder %s5198_s28, %s5198_s28 }
 0x10d   : > { %p4230_p9 = scmp.lt.s32.totalorder %s4228_s16, %s4221_s18 }
 0x10e   : > { %p4224_p2 = pnand %p4222_p0, %p5056_p8 }
 0x10f   : > { %p4231_p5 = por %p4230_p9, %p4229_p7 }
 0x110   : > { %p4225_p4 = pneg %p4224_p2 }
 0x112   : > { %p4232_p10 = pnand %p4231_p5, %p4225_p4 }
 0x114   : > { %4235 = shalt.err (!%p4232_p10)
}
 0x115   : > { %3798 = dma.hbm_to_vmem [thread:$0]  (!%p5042_p6), %s6134_s19, 16, %s5198_s28, [#allocation33]  }
 0x116   : > { %s4844_s4 = smov [#allocation35]   ;;  %s6135_s21 = sld [smem:[#allocation87_spill]] }
 0x117   : > { %s835_s30 = sshll.u32 %s4844_s4, 4  ;;  %s836_s30 = int_to_ptr.vmem [resolvable:$true] %s835_s30 }
 0x11c   : > { %s4236_s1 = scalar_lea.hbm %s6135_s21, 16 }
 0x11d   : > { %p4237_p11 = scmp.ne.s32.totalorder %s6135_s21, %s4236_s1  ;;  %p4243_p1 = scmp.lt.u32.totalorder %s4236_s1, %s6135_s21 }
 0x11f   : > { %p4239_p12 = pnand %p4237_p11, %p5056_p8 }
 0x121   : > { %p4240_p13 = pneg %p4239_p12 }
 0x123   : > { %p4245_p3 = pnand %p4243_p1, %p4240_p13 }
 0x125   : > { %4248 = shalt.err (!%p4245_p3)
}
 0x126   : > { %s4249_s28 = scalar_lea.vmem %s836_s30, 16  ;;  %s4256_s18 = scalar_lea.vmem %s836_s30, 32 }
 0x127   : > { %p4250_p0 = scmp.ne.s32.totalorder %s836_s30, %s4249_s28  ;;  %p4257_p7 = scmp.lt.s32.totalorder %s836_s30, %s836_s30 }
 0x128   : > { %p4258_p9 = scmp.lt.s32.totalorder %s4256_s18, %s4249_s28 }
 0x129   : > { %p4252_p2 = pnand %p4250_p0, %p5056_p8 }
 0x12a   : > { %p4259_p5 = por %p4258_p9, %p4257_p7 }
 0x12b   : > { %p4253_p4 = pneg %p4252_p2 }
 0x12d   : > { %p4260_p10 = pnand %p4259_p5, %p4253_p4 }
 0x12f   : > { %4263 = shalt.err (!%p4260_p10)
}
 0x130   : > { %3804 = dma.hbm_to_vmem [thread:$0]  (!%p5042_p6), %s6135_s21, 16, %s836_s30, [#allocation36]  }
 0x131   : > { %s3301_s25 = sadd.s32 4294967294, %s4830_s2   ;;  %s70_s4 = sadd.s32 1, %s4826_s6 }
 0x132   : > { %s79_s8 = sadd.s32 1, %s4818_s27  ;;  %p72_p11 = scmp.ge.s32.totalorder %s70_s4, 2 }
 0x133   : > { %p86_p12 = scmp.ne.s32.totalorder %s4818_s27, %s4814_s26  ;;  %p87_p13 = scmp.eq.s32.totalorder %s4830_s2, 0 }
 0x134   : > { %p92_p1 = scmp.ne.s32.totalorder %s4814_s26, %s4810_s5  ;;  %s6221_s4 = smov (%p72_p11, %s70_s4), 0 }
 0x135   : > { %6136 = sst [smem:[#allocation62_spill]] %s6221_s4  ;;  %p5270_p3 = por %p87_p13, %p86_p12 }
 0x136   : > { %p6138_p0 = scmp.eq.s32.totalorder %s5026_s29, 0  ;;  %s74_s1 = ssub.s32 %s4826_s6, %s6221_s4 }
 0x137   : > { %p628_p4 = scmp.eq.s32.totalorder %s5026_s29, 1  ;;  %p77_p7 = scmp.eq.s32.totalorder %s74_s1, 0 }
 0x138   : > { %p5276_p2 = por %p6138_p0, %p92_p1  ;;  %p634_p9 = scmp.eq.s32.totalorder %s3301_s25, 1 }
 0x139   : > { %p5283_p5 = por %p628_p4, %p86_p12  ;;  %p3852_p10 = scmp.lt.s32.totalorder %s4830_s2, 2 }
 0x13a   : > { %s6139_s30 = scalar_select %p5276_p2, 1, 0 }
 0x13b   : > { %s6140_s24 = scalar_select %p5283_p5, 1, 0 }
 0x13c   : > { %s5289_s23 = scalar_select %p77_p7, %s4818_s27, %s79_s8  }
 0x13d   : > { %6141 = sst [smem:[#allocation63_spill]] %s6140_s24  ;;  %p5291_p11 = por %p634_p9, %p92_p1 }
 0x13e   : > { %6142 = sst [smem:[#allocation64_spill]] %s5289_s23  ;;  %s5296_s12 = sand.u32 1, %s4818_s27  }
 0x13f   : > { %s6143_s22 = scalar_select %p5291_p11, 1, 0 }
 0x140   : > { %s5299_s28 = sshll.u32 %s5296_s12, 2  ;;  %s5302_s18 = sshll.u32 %s4826_s6, 6 }
 0x141   : > { %6144 = sst [smem:[#allocation65_spill]] %s6143_s22  ;;  %p5306_p12 = pnand %p3852_p10, %p5270_p3 }
 0x142   : > { %s5311_s14 = sand.u32 1, %s4830_s2   ;;  %s6146_s1 = sld [smem:[#allocation67_spill]] }
 0x143   : > { %s6145_s16 = scalar_select %p5306_p12, 1, 0 }
 0x144   : > { %s891_s11 = scalar_lea.vmem [#allocation5], %s5299_s28  ;;  %p5327_p1 = pneg %p5306_p12 }
 0x145   : > { %s898_s7 = sshll.u32 %s891_s11, 4  ;;  %s5320_s7 = int_to_ptr.vmem [resolvable:$true] %s898_s7 }
 0x146   : > { %s6147_s17 = scalar_select %p5327_p1, 1, 0 }
 0x148   : > { %s5317_s9 = scalar_lea.hbm %s6146_s1, %s5302_s18  ;;  %s4269_s19 = scalar_lea.hbm %s6146_s1, 128 }
 0x149   : > { %s4264_s15 = scalar_lea.hbm %s5317_s9, 64  ;;  %p4270_p4 = scmp.lt.u32.totalorder %s5317_s9, %s6146_s1 }
 0x14a   : > { %p4265_p13 = scmp.ne.s32.totalorder %s5317_s9, %s4264_s15  ;;  %p4271_p7 = scmp.lt.u32.totalorder %s4269_s19, %s4264_s15 }
 0x14b   : > { %p4273_p10 = scmp.lt.u32.totalorder %s4264_s15, %s5317_s9 }
 0x14c   : > { %p4267_p3 = pnand %p5327_p1, %p4265_p13  ;;  %p4272_p9 = por %p4271_p7, %p4270_p4 }
 0x14e   : > { %p4268_p0 = pneg %p4267_p3  ;;  %p4274_p11 = por %p4273_p10, %p4272_p9 }
 0x150   : > { %p4275_p5 = pnand %p4274_p11, %p4268_p0 }
 0x152   : > { %4278 = shalt.err (!%p4275_p5)
}
 0x153   : > { %s4279_s13 = scalar_lea.vmem %s5320_s7, 64  ;;  %s4845_s25 = smov [#allocation5]  }
 0x154   : > { %p4280_p13 = scmp.ne.s32.totalorder %s5320_s7, %s4279_s13  ;;  %s4284_s8 = sshll.u32 %s4845_s25, 4  ;;  %s4285_s8 = int_to_ptr.vmem [resolvable:$false] %s4284_s8 }
 0x155   : > { %s4286_s20 = scalar_lea.vmem %s4285_s8, 128  ;;  %p4287_p6 = scmp.lt.s32.totalorder %s5320_s7, %s4285_s8 }
 0x156   : > { %p4282_p3 = pnand %p4280_p13, %p5327_p1  ;;  %p4288_p8 = scmp.lt.s32.totalorder %s4286_s20, %s4279_s13 }
 0x158   : > { %p4283_p2 = pneg %p4282_p3  ;;  %p4289_p4 = por %p4288_p8, %p4287_p6 }
 0x15a   : > { %p4290_p7 = pnand %p4289_p4, %p4283_p2 }
 0x15c   : > { %4293 = shalt.err (!%p4290_p7)
}
 0x15d   : > { %s6148_s15 = scalar_lea.sflag [#allocation6], %s5311_s14  ;;  %s6074_s19 = sshll.u32 %s4826_s6, 4 }
 0x15e   : > { %3817 = dma.hbm_to_vmem [thread:$0]  (!%p5306_p12), %s5317_s9, 64, %s5320_s7, %s6148_s15  }
 0x15f   : > { %s926_s11 = scalar_lea.vmem [#allocation8], %s5296_s12  ;;  %s6149_s20 = sld [smem:[#allocation69_spill]] }
 0x160   : > { %s933_s25 = sshll.u32 %s926_s11, 4  ;;  %s6089_s21 = scalar_lea.sflag [#allocation9], %s5311_s14  ;;  %s934_s25 = int_to_ptr.vmem [resolvable:$true] %s933_s25 }
 0x165   : > { %s5359_s1 = scalar_lea.hbm %s6149_s20, %s6074_s19  ;;  %s4299_s15 = scalar_lea.hbm %s6149_s20, 32 }
 0x166   : > { %s4294_s4 = scalar_lea.hbm %s5359_s1, 16  ;;  %p4300_p5 = scmp.lt.u32.totalorder %s5359_s1, %s6149_s20 }
 0x167   : > { %p4295_p6 = scmp.ne.s32.totalorder %s5359_s1, %s4294_s4  ;;  %p4301_p11 = scmp.lt.u32.totalorder %s4299_s15, %s4294_s4 }
 0x168   : > { %p4303_p9 = scmp.lt.u32.totalorder %s4294_s4, %s5359_s1 }
 0x169   : > { %p4297_p8 = pnand %p4295_p6, %p5327_p1  ;;  %p4302_p0 = por %p4301_p11, %p4300_p5 }
 0x16b   : > { %p4298_p2 = pneg %p4297_p8  ;;  %p4304_p10 = por %p4303_p9, %p4302_p0 }
 0x16d   : > { %p4305_p13 = pnand %p4304_p10, %p4298_p2 }
 0x16f   : > { %4308 = shalt.err (!%p4305_p13)
}
 0x170   : > { %s4309_s13 = scalar_lea.vmem %s934_s25, 16  ;;  %s4846_s8 = smov [#allocation8]  }
 0x171   : > { %p4310_p3 = scmp.ne.s32.totalorder %s934_s25, %s4309_s13  ;;  %s4314_s19 = sshll.u32 %s4846_s8, 4  ;;  %s4315_s19 = int_to_ptr.vmem [resolvable:$false] %s4314_s19 }
 0x172   : > { %s4316_s9 = scalar_lea.vmem %s4315_s19, 32  ;;  %p4317_p6 = scmp.lt.s32.totalorder %s934_s25, %s4315_s19 }
 0x173   : > { %p4312_p4 = pnand %p4310_p3, %p5327_p1  ;;  %p4318_p8 = scmp.lt.s32.totalorder %s4316_s9, %s4309_s13 }
 0x175   : > { %p4313_p7 = pneg %p4312_p4  ;;  %p4319_p12 = por %p4318_p8, %p4317_p6 }
 0x177   : > { %p4320_p5 = pnand %p4319_p12, %p4313_p7 }
 0x179   : > { %4323 = shalt.err (!%p4320_p5)
}
 0x17a   : > { %p6150_p11 = scmp.ne.s32.totalorder %s6145_s16, 0  ;;  %s6151_s4 = sshll.u32 %s4826_s6, 4 }
 0x17b   : > { %s6152_s15 = sld [smem:[#allocation70_spill]]  ;;  %s4847_s8 = smov [#allocation16]  }
 0x17c   : > { %3823 = dma.hbm_to_vmem [thread:$0]  (!%p6150_p11), %s5359_s1, 16, %s934_s25, %s6089_s21  }
 0x17d   : > { %s679_s19 = sshll.u32 %s4847_s8, 4  ;;  %s4848_s13 = smov [#allocation19]   ;;  %s680_s19 = int_to_ptr.vmem [resolvable:$true] %s679_s19 }
 0x17e   : > { %s704_s9 = sshll.u32 %s4848_s13, 4  ;;  %s6153_s2 = sld [smem:[#allocation74_spill]]  ;;  %s705_s9 = int_to_ptr.vmem [resolvable:$true] %s704_s9 }
 0x17f   : > { %p6155_p2 = scmp.ne.s32.totalorder %s6127_s0, 0 }
 0x181   : > { %s5386_s11 = scalar_lea.hbm %s6152_s15, %s6151_s4 }
 0x184   : > { %s6154_s22 = smov %s6153_s2  ;;  %s4324_s5 = scalar_lea.hbm %s6153_s2, 256 }
 0x185   : > { %p4325_p12 = scmp.ne.s32.totalorder %s6154_s22, %s4324_s5  ;;  %p4331_p10 = scmp.lt.u32.totalorder %s4324_s5, %s6154_s22 }
 0x187   : > { %p4327_p0 = pnand %p4325_p12, %p6155_p2 }
 0x189   : > { %p4328_p9 = pneg %p4327_p0 }
 0x18b   : > { %p4333_p13 = pnand %p4331_p10, %p4328_p9 }
 0x18d   : > { %4336 = shalt.err (!%p4333_p13)
}
 0x18e   : > { %s4337_s4 = scalar_lea.vmem %s680_s19, 256  ;;  %p4345_p6 = scmp.lt.s32.totalorder %s680_s19, %s680_s19 }
 0x18f   : > { %p4338_p3 = scmp.ne.s32.totalorder %s680_s19, %s4337_s4  ;;  %p4346_p8 = scmp.lt.s32.totalorder %s4337_s4, %s4337_s4 }
 0x191   : > { %p4340_p4 = pnand %p4338_p3, %p6155_p2  ;;  %p4347_p5 = por %p4346_p8, %p4345_p6 }
 0x193   : > { %p4341_p7 = pneg %p4340_p4 }
 0x195   : > { %p4348_p11 = pnand %p4347_p5, %p4341_p7 }
 0x197   : > { %4351 = shalt.err (!%p4348_p11)
}
 0x198   : > { %p6156_p12 = scmp.ne.s32.totalorder %s6125_s3, 0  ;;  %s6157_s27 = smov 4  }
 0x199   : > { %s6158_s2 = smov 64   ;;  %s6159_s10 = sld [smem:[#allocation76_spill]] }
 0x19a   : > { %3765 = dma.hbm_to_vmem [thread:$0]  (!%p6156_p12), %s6154_s22, 256, %s680_s19, [#allocation15], %s6158_s2, %s6158_s2, %s6157_s27  }
 0x19f   : > { %s4352_s23 = scalar_lea.hbm %s6159_s10, 16 }
 0x1a0   : > { %p4353_p0 = scmp.ne.s32.totalorder %s6159_s10, %s4352_s23  ;;  %p4359_p10 = scmp.lt.u32.totalorder %s4352_s23, %s6159_s10 }
 0x1a2   : > { %p4355_p11 = pnand %p4353_p0, %p6155_p2 }
 0x1a4   : > { %p4356_p9 = pneg %p4355_p11 }
 0x1a6   : > { %p4361_p13 = pnand %p4359_p10, %p4356_p9 }
 0x1a8   : > { %4364 = shalt.err (!%p4361_p13)
}
 0x1a9   : > { %s4365_s25 = scalar_lea.vmem %s705_s9, 16  ;;  %s4372_s19 = scalar_lea.vmem %s705_s9, 32 }
 0x1aa   : > { %p4366_p3 = scmp.ne.s32.totalorder %s705_s9, %s4365_s25  ;;  %p4373_p6 = scmp.lt.s32.totalorder %s705_s9, %s705_s9 }
 0x1ab   : > { %p4374_p8 = scmp.lt.s32.totalorder %s4372_s19, %s4365_s25 }
 0x1ac   : > { %p4368_p4 = pnand %p4366_p3, %p6155_p2 }
 0x1ad   : > { %p4375_p5 = por %p4374_p8, %p4373_p6 }
 0x1ae   : > { %p4369_p7 = pneg %p4368_p4 }
 0x1b0   : > { %p4376_p1 = pnand %p4375_p5, %p4369_p7 }
 0x1b2   : > { %4379 = shalt.err (!%p4376_p1)
}
 0x1b3   : > { %3771 = dma.hbm_to_vmem [thread:$0]  (!%p6156_p12), %s6159_s10, 16, %s705_s9, [#allocation18]  }
 0x1b4   : > { %s4849_s5 = smov [#allocation22]   ;;  %s4850_s20 = smov [#allocation25]  }
 0x1b5   : > { %s725_s24 = sshll.u32 %s4849_s5, 4  ;;  %s751_s23 = sshll.u32 %s4850_s20, 4  ;;  %s726_s24 = int_to_ptr.vmem [resolvable:$true] %s725_s24  ;;  %s752_s23 = int_to_ptr.vmem [resolvable:$true] %s751_s23 }
 0x1b6   : > { %s6160_s13 = sld [smem:[#allocation78_spill]] }
 0x1bc   : > { %s4380_s1 = scalar_lea.hbm %s6160_s13, 768 }
 0x1bd   : > { %p4381_p1 = scmp.ne.s32.totalorder %s6160_s13, %s4380_s1  ;;  %p4387_p9 = scmp.lt.u32.totalorder %s4380_s1, %s6160_s13 }
 0x1bf   : > { %p4383_p0 = pnand %p4381_p1, %p6155_p2 }
 0x1c1   : > { %p4384_p11 = pneg %p4383_p0 }
 0x1c3   : > { %p4389_p10 = pnand %p4387_p9, %p4384_p11 }
 0x1c5   : > { %4392 = shalt.err (!%p4389_p10)
}
 0x1c6   : > { %s4393_s9 = scalar_lea.vmem %s726_s24, 768  ;;  %p4401_p7 = scmp.lt.s32.totalorder %s726_s24, %s726_s24 }
 0x1c7   : > { %p4394_p13 = scmp.ne.s32.totalorder %s726_s24, %s4393_s9  ;;  %p4402_p6 = scmp.lt.s32.totalorder %s4393_s9, %s4393_s9 }
 0x1c9   : > { %p4396_p3 = pnand %p4394_p13, %p6155_p2  ;;  %p4403_p8 = por %p4402_p6, %p4401_p7 }
 0x1cb   : > { %p4397_p4 = pneg %p4396_p3 }
 0x1cd   : > { %p4404_p5 = pnand %p4403_p8, %p4397_p4 }
 0x1cf   : > { %4407 = shalt.err (!%p4404_p5)
}
 0x1d0   : > { %3777 = dma.hbm_to_vmem [thread:$0]  (!%p6156_p12), %s6160_s13, 768, %s726_s24, [#allocation21], %s6158_s2, %s6158_s2, %s6157_s27  }
 0x1d1   : > { %s6161_s7 = sld [smem:[#allocation80_spill]] }
 0x1d7   : > { %s4408_s8 = scalar_lea.hbm %s6161_s7, 256 }
 0x1d8   : > { %p4409_p1 = scmp.ne.s32.totalorder %s6161_s7, %s4408_s8  ;;  %p4415_p9 = scmp.lt.u32.totalorder %s4408_s8, %s6161_s7 }
 0x1da   : > { %p4411_p0 = pnand %p4409_p1, %p6155_p2 }
 0x1dc   : > { %p4412_p11 = pneg %p4411_p0 }
 0x1de   : > { %p4417_p10 = pnand %p4415_p9, %p4412_p11 }
 0x1e0   : > { %4420 = shalt.err (!%p4417_p10)
}
 0x1e1   : > { %s4421_s9 = scalar_lea.vmem %s752_s23, 256  ;;  %p4429_p7 = scmp.lt.s32.totalorder %s752_s23, %s752_s23 }
 0x1e2   : > { %p4422_p13 = scmp.ne.s32.totalorder %s752_s23, %s4421_s9  ;;  %p4430_p6 = scmp.lt.s32.totalorder %s4421_s9, %s4421_s9 }
 0x1e4   : > { %p4424_p3 = pnand %p4422_p13, %p6155_p2  ;;  %p4431_p8 = por %p4430_p6, %p4429_p7 }
 0x1e6   : > { %p4425_p4 = pneg %p4424_p3 }
 0x1e8   : > { %p4432_p5 = pnand %p4431_p8, %p4425_p4 }
 0x1ea   : > { %4435 = shalt.err (!%p4432_p5)
}
 0x1eb   : > { %3783 = dma.hbm_to_vmem [thread:$0]  (!%p6156_p12), %s6161_s7, 256, %s752_s23, [#allocation24], %s6158_s2, %s6158_s2, %s6157_s27  }
 0x1ec   : > { %s4851_s29 = smov [#allocation28]   ;;  %s4852_s20 = smov [#allocation31]  }
 0x1ed   : > { %s776_s5 = sshll.u32 %s4851_s29, 4  ;;  %s797_s8 = sshll.u32 %s4852_s20, 4  ;;  %s777_s5 = int_to_ptr.vmem [resolvable:$true] %s776_s5  ;;  %s798_s8 = int_to_ptr.vmem [resolvable:$true] %s797_s8 }
 0x1ee   : > { %s6162_s19 = sld [smem:[#allocation82_spill]] }
 0x1f4   : > { %s4436_s4 = scalar_lea.hbm %s6162_s19, 16 }
 0x1f5   : > { %p4437_p1 = scmp.ne.s32.totalorder %s6162_s19, %s4436_s4  ;;  %p4443_p9 = scmp.lt.u32.totalorder %s4436_s4, %s6162_s19 }
 0x1f7   : > { %p4439_p0 = pnand %p4437_p1, %p6155_p2 }
 0x1f9   : > { %p4440_p11 = pneg %p4439_p0 }
 0x1fb   : > { %p4445_p10 = pnand %p4443_p9, %p4440_p11 }
 0x1fd   : > { %4448 = shalt.err (!%p4445_p10)
}
 0x1fe   : > { %s4449_s23 = scalar_lea.vmem %s777_s5, 16  ;;  %s4456_s21 = scalar_lea.vmem %s777_s5, 32 }
 0x1ff   : > { %p4450_p13 = scmp.ne.s32.totalorder %s777_s5, %s4449_s23  ;;  %p4457_p7 = scmp.lt.s32.totalorder %s777_s5, %s777_s5 }
 0x200   : > { %p4458_p6 = scmp.lt.s32.totalorder %s4456_s21, %s4449_s23 }
 0x201   : > { %p4452_p3 = pnand %p4450_p13, %p6155_p2 }
 0x202   : > { %p4459_p8 = por %p4458_p6, %p4457_p7 }
 0x203   : > { %p4453_p4 = pneg %p4452_p3 }
 0x205   : > { %p4460_p5 = pnand %p4459_p8, %p4453_p4 }
 0x207   : > { %4463 = shalt.err (!%p4460_p5)
}
 0x208   : > { %3789 = dma.hbm_to_vmem [thread:$0]  (!%p6156_p12), %s6162_s19, 16, %s777_s5, [#allocation27]  }
 0x209   : > { %s6163_s1 = sld [smem:[#allocation84_spill]] }
 0x20f   : > { %s4464_s25 = scalar_lea.hbm %s6163_s1, 256 }
 0x210   : > { %p4465_p1 = scmp.ne.s32.totalorder %s6163_s1, %s4464_s25  ;;  %p4471_p9 = scmp.lt.u32.totalorder %s4464_s25, %s6163_s1 }
 0x212   : > { %p4467_p0 = pnand %p4465_p1, %p6155_p2 }
 0x214   : > { %p4468_p11 = pneg %p4467_p0 }
 0x216   : > { %p4473_p10 = pnand %p4471_p9, %p4468_p11 }
 0x218   : > { %4476 = shalt.err (!%p4473_p10)
}
 0x219   : > { %s4477_s21 = scalar_lea.vmem %s798_s8, 256  ;;  %p4485_p7 = scmp.lt.s32.totalorder %s798_s8, %s798_s8 }
 0x21a   : > { %p4478_p13 = scmp.ne.s32.totalorder %s798_s8, %s4477_s21  ;;  %p4486_p6 = scmp.lt.s32.totalorder %s4477_s21, %s4477_s21 }
 0x21c   : > { %p4480_p3 = pnand %p4478_p13, %p6155_p2  ;;  %p4487_p8 = por %p4486_p6, %p4485_p7 }
 0x21e   : > { %p4481_p4 = pneg %p4480_p3 }
 0x220   : > { %p4488_p5 = pnand %p4487_p8, %p4481_p4 }
 0x222   : > { %4491 = shalt.err (!%p4488_p5)
}
 0x223   : > { %3795 = dma.hbm_to_vmem [thread:$0]  (!%p6156_p12), %s6163_s1, 256, %s798_s8, [#allocation30], %s6158_s2, %s6158_s2, %s6157_s27  }
 0x224   : > { %s4853_s29 = smov [#allocation34]   ;;  %s4854_s20 = smov [#allocation37]  }
 0x225   : > { %s821_s13 = sshll.u32 %s4853_s29, 4  ;;  %s846_s25 = sshll.u32 %s4854_s20, 4  ;;  %s822_s13 = int_to_ptr.vmem [resolvable:$true] %s821_s13  ;;  %s847_s25 = int_to_ptr.vmem [resolvable:$true] %s846_s25 }
 0x226   : > { %s6164_s24 = sld [smem:[#allocation86_spill]] }
 0x22c   : > { %s4492_s23 = scalar_lea.hbm %s6164_s24, 512 }
 0x22d   : > { %p4493_p1 = scmp.ne.s32.totalorder %s6164_s24, %s4492_s23  ;;  %p4499_p9 = scmp.lt.u32.totalorder %s4492_s23, %s6164_s24 }
 0x22f   : > { %p4495_p0 = pnand %p4493_p1, %p6155_p2 }
 0x231   : > { %p4496_p11 = pneg %p4495_p0 }
 0x233   : > { %p4501_p10 = pnand %p4499_p9, %p4496_p11 }
 0x235   : > { %4504 = shalt.err (!%p4501_p10)
}
 0x236   : > { %s4505_s8 = scalar_lea.vmem %s822_s13, 512  ;;  %p4513_p7 = scmp.lt.s32.totalorder %s822_s13, %s822_s13 }
 0x237   : > { %p4506_p13 = scmp.ne.s32.totalorder %s822_s13, %s4505_s8  ;;  %p4514_p6 = scmp.lt.s32.totalorder %s4505_s8, %s4505_s8 }
 0x239   : > { %p4508_p3 = pnand %p4506_p13, %p6155_p2  ;;  %p4515_p8 = por %p4514_p6, %p4513_p7 }
 0x23b   : > { %p4509_p4 = pneg %p4508_p3 }
 0x23d   : > { %p4516_p5 = pnand %p4515_p8, %p4509_p4 }
 0x23f   : > { %4519 = shalt.err (!%p4516_p5)
}
 0x240   : > { %3801 = dma.hbm_to_vmem [thread:$0]  (!%p6156_p12), %s6164_s24, 512, %s822_s13, [#allocation33], %s6158_s2, %s6158_s2, %s6157_s27  }
 0x241   : > { %s6165_s20 = sld [smem:[#allocation88_spill]] }
 0x247   : > { %s4520_s4 = scalar_lea.hbm %s6165_s20, 16 }
 0x248   : > { %p4521_p1 = scmp.ne.s32.totalorder %s6165_s20, %s4520_s4  ;;  %p4527_p9 = scmp.lt.u32.totalorder %s4520_s4, %s6165_s20 }
 0x24a   : > { %p4523_p0 = pnand %p4521_p1, %p6155_p2 }
 0x24c   : > { %p4524_p11 = pneg %p4523_p0 }
 0x24e   : > { %p4529_p10 = pnand %p4527_p9, %p4524_p11 }
 0x250   : > { %4532 = shalt.err (!%p4529_p10)
}
 0x251   : > { %s4533_s8 = scalar_lea.vmem %s847_s25, 16  ;;  %s4540_s27 = scalar_lea.vmem %s847_s25, 32 }
 0x252   : > { %p4534_p13 = scmp.ne.s32.totalorder %s847_s25, %s4533_s8  ;;  %p4541_p7 = scmp.lt.s32.totalorder %s847_s25, %s847_s25 }
 0x253   : > { %p4542_p6 = scmp.lt.s32.totalorder %s4540_s27, %s4533_s8 }
 0x254   : > { %p4536_p3 = pnand %p4534_p13, %p6155_p2 }
 0x255   : > { %p4543_p8 = por %p4542_p6, %p4541_p7 }
 0x256   : > { %p4537_p4 = pneg %p4536_p3 }
 0x258   : > { %p4544_p5 = pnand %p4543_p8, %p4537_p4 }
 0x25a   : > { %4547 = shalt.err (!%p4544_p5)
}
 0x25b   : > { %3807 = dma.hbm_to_vmem [thread:$0]  (!%p6156_p12), %s6165_s20, 16, %s847_s25, [#allocation36]  }
 0x25c   : > { %s4855_s7 = smov [#allocation38]   ;;  %s6166_s4 = sld [smem:[#allocation89_spill]] }
 0x25d   : > { %s857_s19 = sshll.u32 %s4855_s7, 4  ;;  %s858_s19 = int_to_ptr.vmem [resolvable:$true] %s857_s19 }
 0x262   : > { %s4548_s9 = scalar_lea.hbm %s6166_s4, 16 }
 0x263   : > { %p4549_p1 = scmp.ne.s32.totalorder %s6166_s4, %s4548_s9  ;;  %p4555_p9 = scmp.lt.u32.totalorder %s4548_s9, %s6166_s4 }
 0x265   : > { %p4551_p0 = pnand %p4549_p1, %p6155_p2 }
 0x267   : > { %p4552_p11 = pneg %p4551_p0 }
 0x269   : > { %p4557_p10 = pnand %p4555_p9, %p4552_p11 }
 0x26b   : > { %4560 = shalt.err (!%p4557_p10)
}
 0x26c   : > { %s4561_s25 = scalar_lea.vmem %s858_s19, 16  ;;  %s4568_s27 = scalar_lea.vmem %s858_s19, 32 }
 0x26d   : > { %p4562_p13 = scmp.ne.s32.totalorder %s858_s19, %s4561_s25  ;;  %p4569_p7 = scmp.lt.s32.totalorder %s858_s19, %s858_s19 }
 0x26e   : > { %p4570_p6 = scmp.lt.s32.totalorder %s4568_s27, %s4561_s25 }
 0x26f   : > { %p4564_p3 = pnand %p4562_p13, %p6155_p2 }
 0x270   : > { %p4571_p8 = por %p4570_p6, %p4569_p7 }
 0x271   : > { %p4565_p4 = pneg %p4564_p3 }
 0x273   : > { %p4572_p5 = pnand %p4571_p8, %p4565_p4 }
 0x275   : > { %4575 = shalt.err (!%p4572_p5)
}
 0x276   : > { %3810 = dma.hbm_to_vmem [thread:$0]  (!%p6156_p12), %s6166_s4, 16, %s858_s19, [#allocation39]  }
 0x277   : > { %s6167_s10 = sld [smem:[#allocation66_spill]]  ;;  %s872_s9 = scalar_lea.vmem [#allocation2], %s5299_s28 }
 0x278   : > { %s880_s23 = sshll.u32 %s872_s9, 4  ;;  %s869_s3 = scalar_lea.sflag [#allocation3], %s5296_s12  ;;  %s881_s23 = int_to_ptr.vmem [resolvable:$true] %s880_s23 }
 0x279   : > { %p6168_p1 = scmp.ne.s32.totalorder %s6147_s17, 0 }
 0x27d   : > { %s5569_s29 = scalar_lea.hbm %s6167_s10, %s5302_s18  ;;  %s4581_s8 = scalar_lea.hbm %s6167_s10, 128 }
 0x27e   : > { %s4576_s21 = scalar_lea.hbm %s5569_s29, 64  ;;  %p4582_p12 = scmp.lt.u32.totalorder %s5569_s29, %s6167_s10 }
 0x27f   : > { %p4577_p2 = scmp.ne.s32.totalorder %s5569_s29, %s4576_s21  ;;  %p4583_p9 = scmp.lt.u32.totalorder %s4581_s8, %s4576_s21 }
 0x280   : > { %p4585_p13 = scmp.lt.u32.totalorder %s4576_s21, %s5569_s29 }
 0x281   : > { %p4579_p0 = pnand %p4577_p2, %p6168_p1  ;;  %p4584_p10 = por %p4583_p9, %p4582_p12 }
 0x283   : > { %p4580_p11 = pneg %p4579_p0  ;;  %p4586_p3 = por %p4585_p13, %p4584_p10 }
 0x285   : > { %p4587_p4 = pnand %p4586_p3, %p4580_p11 }
 0x287   : > { %4590 = shalt.err (!%p4587_p4)
}
 0x288   : > { %s4591_s2 = scalar_lea.vmem %s881_s23, 64  ;;  %s4856_s13 = smov [#allocation2]  }
 0x289   : > { %p4592_p7 = scmp.ne.s32.totalorder %s881_s23, %s4591_s2  ;;  %s4596_s7 = sshll.u32 %s4856_s13, 4  ;;  %s4597_s7 = int_to_ptr.vmem [resolvable:$false] %s4596_s7 }
 0x28a   : > { %s4598_s0 = scalar_lea.vmem %s4597_s7, 128  ;;  %p4599_p5 = scmp.lt.s32.totalorder %s881_s23, %s4597_s7 }
 0x28b   : > { %p4594_p6 = pnand %p4592_p7, %p6168_p1  ;;  %p4600_p2 = scmp.lt.s32.totalorder %s4598_s0, %s4591_s2 }
 0x28d   : > { %p4595_p8 = pneg %p4594_p6  ;;  %p4601_p0 = por %p4600_p2, %p4599_p5 }
 0x28f   : > { %p4602_p9 = pnand %p4601_p0, %p4595_p8 }
 0x291   : > { %4605 = shalt.err (!%p4602_p9)
}
 0x292   : > { %p6169_p12 = scmp.ne.s32.totalorder %s6145_s16, 0  ;;  %s6170_s5 = sld [smem:[#allocation68_spill]] }
 0x293   : > { %s909_s25 = scalar_lea.vmem [#allocation7], %s5299_s28 }
 0x294   : > { %3814 = dma.hbm_to_vmem [thread:$0]  (!%p6169_p12), %s5569_s29, 64, %s881_s23, %s869_s3  }
 0x295   : > { %s916_s27 = sshll.u32 %s909_s25, 4  ;;  %s917_s27 = int_to_ptr.vmem [resolvable:$true] %s916_s27 }
 0x298   : > { %s6171_s19 = smov %s6170_s5  ;;  %s5594_s8 = scalar_lea.hbm %s6170_s5, %s5302_s18 }
 0x299   : > { %s4606_s2 = scalar_lea.hbm %s5594_s8, 64  ;;  %s4611_s29 = scalar_lea.hbm %s6171_s19, 128 }
 0x29a   : > { %p4607_p11 = scmp.ne.s32.totalorder %s5594_s8, %s4606_s2  ;;  %p4612_p3 = scmp.lt.u32.totalorder %s5594_s8, %s6171_s19 }
 0x29b   : > { %p4613_p4 = scmp.lt.u32.totalorder %s4611_s29, %s4606_s2  ;;  %p4615_p6 = scmp.lt.u32.totalorder %s4606_s2, %s5594_s8 }
 0x29c   : > { %p4609_p10 = pnand %p4607_p11, %p6168_p1 }
 0x29d   : > { %p4614_p7 = por %p4613_p4, %p4612_p3 }
 0x29e   : > { %p4610_p13 = pneg %p4609_p10 }
 0x29f   : > { %p4616_p8 = por %p4615_p6, %p4614_p7 }
 0x2a1   : > { %p4617_p5 = pnand %p4616_p8, %p4610_p13 }
 0x2a3   : > { %4620 = shalt.err (!%p4617_p5)
}
 0x2a4   : > { %s4621_s28 = scalar_lea.vmem %s917_s27, 64  ;;  %s4857_s18 = smov [#allocation7]  }
 0x2a5   : > { %p4622_p2 = scmp.ne.s32.totalorder %s917_s27, %s4621_s28  ;;  %s4626_s0 = sshll.u32 %s4857_s18, 4  ;;  %s4627_s0 = int_to_ptr.vmem [resolvable:$false] %s4626_s0 }
 0x2a6   : > { %s4628_s9 = scalar_lea.vmem %s4627_s0, 128  ;;  %p4629_p11 = scmp.lt.s32.totalorder %s917_s27, %s4627_s0 }
 0x2a7   : > { %p4624_p0 = pnand %p4622_p2, %p6168_p1  ;;  %p4630_p10 = scmp.lt.s32.totalorder %s4628_s9, %s4621_s28 }
 0x2a9   : > { %p4625_p9 = pneg %p4624_p0  ;;  %p4631_p12 = por %p4630_p10, %p4629_p11 }
 0x2ab   : > { %p4632_p3 = pnand %p4631_p12, %p4625_p9 }
 0x2ad   : > { %4635 = shalt.err (!%p4632_p3)
}
 0x2ae   : > { %p6172_p4 = scmp.ne.s32.totalorder %s6145_s16, 0  ;;  %s6173_s21 = scalar_lea.sflag [#allocation6], %s5311_s14 }
 0x2af   : > { %s943_s5 = scalar_lea.vmem [#allocation10], %s5296_s12  ;;  %s3330_s2 = sshll.u32 %s5296_s12, 3 }
 0x2b0   : > { %3820 = dma.hbm_to_vmem [thread:$0]  (!%p6172_p4), %s5594_s8, 64, %s917_s27, %s6173_s21  }
 0x2b1   : > { %s950_s25 = sshll.u32 %s943_s5, 4  ;;  %s4636_s13 = scalar_lea.hbm %s5386_s11, 16  ;;  %s951_s25 = int_to_ptr.vmem [resolvable:$true] %s950_s25 }
 0x2b2   : > { %p4637_p12 = scmp.ne.s32.totalorder %s5386_s11, %s4636_s13  ;;  %s4641_s23 = scalar_lea.hbm %s6152_s15, 32 }
 0x2b3   : > { %p4642_p6 = scmp.lt.u32.totalorder %s5386_s11, %s6152_s15  ;;  %p4643_p8 = scmp.lt.u32.totalorder %s4641_s23, %s4636_s13 }
 0x2b4   : > { %p4639_p13 = pnand %p4637_p12, %p6168_p1  ;;  %p4645_p2 = scmp.lt.u32.totalorder %s4636_s13, %s5386_s11 }
 0x2b5   : > { %p4644_p5 = por %p4643_p8, %p4642_p6 }
 0x2b6   : > { %p4640_p7 = pneg %p4639_p13 }
 0x2b7   : > { %p4646_p0 = por %p4645_p2, %p4644_p5 }
 0x2b9   : > { %p4647_p9 = pnand %p4646_p0, %p4640_p7 }
 0x2bb   : > { %4650 = shalt.err (!%p4647_p9)
}
 0x2bc   : > { %s4651_s8 = scalar_lea.vmem %s951_s25, 16  ;;  %s4858_s27 = smov [#allocation10]  }
 0x2bd   : > { %p4652_p11 = scmp.ne.s32.totalorder %s951_s25, %s4651_s8  ;;  %s4656_s18 = sshll.u32 %s4858_s27, 4  ;;  %s4657_s18 = int_to_ptr.vmem [resolvable:$false] %s4656_s18 }
 0x2be   : > { %s4658_s0 = scalar_lea.vmem %s4657_s18, 32  ;;  %p4659_p12 = scmp.lt.s32.totalorder %s951_s25, %s4657_s18 }
 0x2bf   : > { %p4654_p10 = pnand %p4652_p11, %p6168_p1  ;;  %p4660_p13 = scmp.lt.s32.totalorder %s4658_s0, %s4651_s8 }
 0x2c1   : > { %p4655_p3 = pneg %p4654_p10  ;;  %p4661_p4 = por %p4660_p13, %p4659_p12 }
 0x2c3   : > { %p4662_p6 = pnand %p4661_p4, %p4655_p3 }
 0x2c5   : > { %4665 = shalt.err (!%p4662_p6)
}
 0x2c6   : > { %p6174_p8 = scmp.ne.s32.totalorder %s6145_s16, 0  ;;  %s6175_s9 = scalar_lea.sflag [#allocation9], %s5311_s14 }
 0x2c7   : > { %s3331_s21 = sshll.u32 %s4826_s6, 7  ;;  %s6176_s7 = sld [smem:[#allocation71_spill]] }
 0x2c8   : > { %3826 = dma.hbm_to_vmem [thread:$0]  (!%p6174_p8), %s5386_s11, 16, %s951_s25, %s6175_s9  }
 0x2c9   : > { %s961_s23 = scalar_lea.vmem [#allocation11], %s3330_s2  ;;  %s958_s28 = scalar_lea.sflag [#allocation12], %s5311_s14 }
 0x2ca   : > { %s969_s3 = sshll.u32 %s961_s23, 4  ;;  %s970_s3 = int_to_ptr.vmem [resolvable:$true] %s969_s3 }
 0x2cd   : > { %s5641_s29 = scalar_lea.hbm %s6176_s7, %s3331_s21  ;;  %s4671_s27 = scalar_lea.hbm %s6176_s7, 256 }
 0x2ce   : > { %s4666_s8 = scalar_lea.hbm %s5641_s29, 128  ;;  %p4672_p2 = scmp.lt.u32.totalorder %s5641_s29, %s6176_s7 }
 0x2cf   : > { %p4667_p4 = scmp.ne.s32.totalorder %s5641_s29, %s4666_s8  ;;  %p4673_p0 = scmp.lt.u32.totalorder %s4671_s27, %s4666_s8 }
 0x2d0   : > { %p4675_p11 = scmp.lt.u32.totalorder %s4666_s8, %s5641_s29 }
 0x2d1   : > { %p4669_p7 = pnand %p4667_p4, %p6168_p1  ;;  %p4674_p9 = por %p4673_p0, %p4672_p2 }
 0x2d3   : > { %p4670_p5 = pneg %p4669_p7  ;;  %p4676_p10 = por %p4675_p11, %p4674_p9 }
 0x2d5   : > { %p4677_p3 = pnand %p4676_p10, %p4670_p5 }
 0x2d7   : > { %4680 = shalt.err (!%p4677_p3)
}
 0x2d8   : > { %s4681_s12 = scalar_lea.vmem %s970_s3, 128  ;;  %s4859_s14 = smov [#allocation11]  }
 0x2d9   : > { %p4682_p12 = scmp.ne.s32.totalorder %s970_s3, %s4681_s12  ;;  %s4686_s2 = sshll.u32 %s4859_s14, 4  ;;  %s4687_s2 = int_to_ptr.vmem [resolvable:$false] %s4686_s2 }
 0x2da   : > { %s4688_s9 = scalar_lea.vmem %s4687_s2, 256  ;;  %p4689_p4 = scmp.lt.s32.totalorder %s970_s3, %s4687_s2 }
 0x2db   : > { %p4684_p13 = pnand %p4682_p12, %p6168_p1  ;;  %p4690_p7 = scmp.lt.s32.totalorder %s4688_s9, %s4681_s12 }
 0x2dd   : > { %p4685_p6 = pneg %p4684_p13  ;;  %p4691_p8 = por %p4690_p7, %p4689_p4 }
 0x2df   : > { %p4692_p0 = pnand %p4691_p8, %p4685_p6 }
 0x2e1   : > { %4695 = shalt.err (!%p4692_p0)
}
 0x2e2   : > { %p6177_p2 = scmp.ne.s32.totalorder %s6145_s16, 0  ;;  %s6178_s21 = sld [smem:[#allocation61_spill]] }
 0x2e4   : > { %3829 = dma.hbm_to_vmem [thread:$0]  (!%p6177_p2), %s5641_s29, 128, %s970_s3, %s958_s28  }
 0x2e8   : > { %p6179_p5 = scmp.ne.s32.totalorder %s6178_s21, 0 }
 0x2e9   : > { %s5666_s17 = sand.u32 (!%p6179_p5), 1, %s4814_s26   ;;  %p6180_p1 = scmp.ne.s32.totalorder (!%p6179_p5), %s6139_s30, 0 }
 0x2ea   : > { %978 = sbr.rel (%p6179_p5) target bundleno = 4663 (0x1237), region = 116  ;;  %s5669_s5 = sshll.u32 (!%p6179_p5), %s5666_s17, 2 }
 0x2eb   : > { %s981_s13 = scalar_lea.sflag (!%p6179_p5), [#allocation3], %s5666_s17  ;;  %s984_s23 = scalar_lea.vmem (!%p6179_p5), [#allocation2], %s5669_s5 }
 0x2f1   : > { %4749 = dma.done.wait (%p6180_p1), %s981_s13, 64  }
 0x2f2   : > { %4751 = vsyncadd (%p6180_p1), %s981_s13, 4294967232  ;;  %s6181_s16 = sld [smem:[#allocation60_spill]]  ;;  %s993_s28 = scalar_lea.vmem [#allocation5], %s5669_s5 }
 0x2f8   : > { %s989_s29 = sand.u32 1, %s6181_s16  }
 0x2f9   : > { %s990_s3 = scalar_lea.sflag [#allocation6], %s989_s29 }
 0x2fa   : > { %4753 = dma.done.wait (%p6180_p1), %s990_s3, 128  }
 0x2fb   : > { %4755 = vsyncadd (%p6180_p1), %s990_s3, 4294967168  ;;  %s1002_s8 = scalar_lea.vmem [#allocation7], %s5669_s5  ;;  %s1008_s11 = scalar_lea.sflag [#allocation9], %s989_s29 }
 0x2fc   : > { %s1010_s25 = scalar_lea.vmem [#allocation8], %s5666_s17 }
 0x2fd   : > { %4757 = dma.done.wait (%p6180_p1), %s1008_s11, 32  }
 0x2fe   : > { %4759 = vsyncadd (%p6180_p1), %s1008_s11, 4294967264  ;;  %s3336_s27 = sshll.u32 %s5666_s17, 3  ;;  %s1018_s18 = scalar_lea.vmem [#allocation10], %s5666_s17 }
 0x2ff   : > { %s1024_s0 = scalar_lea.sflag [#allocation12], %s989_s29  ;;  %s5691_s12 = scalar_lea.vmem [#allocation11], %s3336_s27 }
 0x300   : > { %4761 = dma.done.wait (%p6180_p1), %s1024_s0, 128  }
 0x301   : > { %4763 = vsyncadd (%p6180_p1), %s1024_s0, 4294967168  ;;  %p6182_p8 = scmp.eq.s32.totalorder %s6181_s16, 0 }
 0x303   : > { %4765 = dma.done.wait (%p6182_p8), [#allocation12], 768   ;;  %p6183_p9 = pmov %p6182_p8 }
 0x304   : > { %p6184_p11 = pmov %p6182_p8 }
 0x305   : > { %4767 = vsyncadd (%p6183_p9), [#allocation12], 4294966528 }
 0x306   : > { %4769 = dma.done.wait (%p6184_p11), [#allocation15], 304   ;;  %p6185_p10 = pmov %p6182_p8 }
 0x307   : > { %p6186_p3 = pmov %p6182_p8 }
 0x308   : > { %4771 = vsyncadd (%p6185_p10), [#allocation15], 4294966992 }
 0x309   : > { %4773 = dma.done.wait (%p6186_p3), [#allocation18], 32   ;;  %p6187_p12 = pmov %p6186_p3 }
 0x30a   : > { %p6188_p13 = pmov %p6186_p3 }
 0x30b   : > { %4775 = vsyncadd (%p6187_p12), [#allocation18], 4294967264 }
 0x30c   : > { %4777 = dma.done.wait (%p6188_p13), [#allocation21], 784   ;;  %p6189_p6 = pmov %p6186_p3 }
 0x30d   : > { %p6190_p4 = pmov %p6186_p3 }
 0x30e   : > { %4779 = vsyncadd (%p6189_p6), [#allocation21], 4294966512 }
 0x30f   : > { %4781 = dma.done.wait (%p6190_p4), [#allocation24], 304   ;;  %p6191_p7 = pmov %p6186_p3 }
 0x310   : > { %p6192_p0 = pmov %p6186_p3 }
 0x311   : > { %4783 = vsyncadd (%p6191_p7), [#allocation24], 4294966992 }
 0x312   : > { %4785 = dma.done.wait (%p6192_p0), [#allocation27], 32   ;;  %p6193_p2 = pmov %p6192_p0 }
 0x313   : > { %p6194_p5 = pmov %p6192_p0 }
 0x314   : > { %4787 = vsyncadd (%p6193_p2), [#allocation27], 4294967264 }
 0x315   : > { %4789 = dma.done.wait (%p6194_p5), [#allocation30], 272   ;;  %p6195_p1 = pmov %p6192_p0 }
 0x316   : > { %p6196_p8 = pmov %p6192_p0 }
 0x317   : > { %4791 = vsyncadd (%p6195_p1), [#allocation30], 4294967024 }
 0x318   : > { %4793 = dma.done.wait (%p6196_p8), [#allocation33], 528   ;;  %p6197_p9 = pmov %p6192_p0 }
 0x319   : > { %p6198_p11 = pmov %p6192_p0 }
 0x31a   : > { %4795 = vsyncadd (%p6197_p9), [#allocation33], 4294966768 }
 0x31b   : > { %4797 = dma.done.wait (%p6198_p11), [#allocation36], 32   ;;  %p6199_p10 = pmov %p6192_p0 }
 0x31c   : > { %p6200_p3 = pmov %p6192_p0 }
 0x31d   : > { %4799 = vsyncadd (%p6199_p10), [#allocation36], 4294967264 }
 0x31e   : > { %4801 = dma.done.wait (%p6200_p3), [#allocation39], 16   ;;  %p6201_p12 = pmov %p6192_p0 }
 0x31f   : > { %v4860_v0 = vmov 0.0   ;;  %vm4861_vm0 = vmmov 0   ;;  %v3952_v1 = vld [vmem:[#allocation13 + $0x10] sm:$0xff]   ;;  %v3953_v2 = vld [vmem:[#allocation13] sm:$0xff]   ;;  %v3954_v3 = vld [vmem:[#allocation13 + $0x18] sm:$0xff]   ;;  %vm1231_vm1 = vcmask 261120   ;;  %v1194_v33 = vlaneseq }
 0x320   : > { %4803 = vsyncadd (%p6201_p12), [#allocation39], 4294967280  ;;  %3498 = vmatprep.subr.bf16.mxu1 %v4860_v0  ;;  %3490 = vmatprep.subr.bf16.mxu0 %v4860_v0  ;;  %v1191_v4 = vld [vmem:[%s993_s28] sm:$0xf]  ;;  %v3955_v5 = vld [vmem:[#allocation13 + $0x8] sm:$0xff]   ;;  %vm1411_vm2 = vcmask 64512  }
 0x321   : > { %3502 = vmatprep.mubr.msk.bf16.mxu1 %vm4861_vm0, %v4860_v0  ;;  %3494 = vmatprep.mubr.msk.bf16.mxu0 %vm4861_vm0, %v4860_v0  ;;  %v5749_v6 = vld [vmem:[%s984_s23] sm:$0xf]  ;;  %v3361_v7 = vld [vmem:[#allocation14 + $0x1] ss:$0 sm:$0xff]  ;;  %v3357_v8 = vld [vmem:[#allocation14] ss:$0 sm:$0xff] }
 0x322   : > { %3499 = vmatpush3.bf16.msra.mxu1 %v3952_v1  ;;  %3491 = vmatpush3.bf16.msra.mxu0 %v3953_v2  ;;  %s4862_s30 = smov 112   ;;  %s4863_s14 = smov 120   ;;  %v3956_v22 = vld [vmem:[#allocation13 + $0x20] sm:$0xff]   ;;  %v3957_v23 = vld [vmem:[#allocation13 + $0x28] sm:$0xff]   ;;  %v1195_v34 = vshrl.u32 %v1194_v33, 7  ;;  %v1199_v35 = vand.u32 127, %v1194_v33 }
 0x323   : > { %3500 = vmatprep.subr.bf16.mxu1 %v4860_v0  ;;  %3492 = vmatprep.subr.bf16.mxu0 %v4860_v0  ;;  %s4864_s2 = smov 104   ;;  %v3356_v36 = vld [vmem:[%s1010_s25] ss:$0 sm:$0xff]  ;;  %v3365_v44 = vld [vmem:[#allocation14 + $0x2] ss:$0 sm:$0xff]  ;;  %vm1474_vm6 = vcmask 1043456  }
 0x324   : > { %vm1205_vm3 = vcmp.eq.s32.totalorder %v3356_v36, 0  ;;  %vm1206_vm4 = vcmp.gt.s32.totalorder %v1199_v35, %v1195_v34  ;;  %s4865_s9 = smov 8   ;;  %s4866_s21 = smov 16   ;;  %vm1867_vm7 = vcmask 130048   ;;  %vm1869_vm8 = vcmask 195584  }
 0x325   : > { %vm5793_vm5 = vmor %vm1205_vm3, %vm1206_vm4  ;;  %s4867_s13 = smov 24   ;;  %vm2850_vm10 = vcmask 523264   ;;  %s6204_s23 = sld [smem:[#allocation58_spill]]  ;;  %vm2928_vm11 = vcmask 257024  }
 0x326   : > { %3501 = vmatpush3.bf16.msra.mxu1 %v3954_v3  ;;  %3493 = vmatpush3.bf16.msra.mxu0 %v3955_v5  ;;  %s6205_s16 = sld [smem:[#allocation63_spill]]  ;;  %s1186_s3 = scalar_lea.vmem [#allocation40], %s5669_s5 }
 0x327   : > { %3514 = vmatprep.subr.bf16.mxu1 %v4860_v0  ;;  %3506 = vmatprep.subr.bf16.mxu0 %v4860_v0  ;;  %s2945_s28 = sshll.u32 %s1186_s3, 4  ;;  %s6206_s25 = sld [smem:[#allocation90_spill]]  ;;  %s5968_s28 = int_to_ptr.vmem [resolvable:$true] %s2945_s28 }
 0x328   : > { %s4696_s0 = scalar_lea.vmem %s5968_s28, 64  ;;  %s4869_s5 = smov [#allocation40]  }
 0x329   : > { %3503 = vmatmul.mubr.msk.bf16.vlgmr.msra.gmra.mrb[0].mxu1 %vm1231_vm1, %v1191_v4  ;;  %3495 = vmatmul.mubr.msk.bf16.vlgmr.msra.gmra.mrb[0].mxu0 %vm1231_vm1, %v5749_v6  ;;  %p4697_p13 = scmp.ne.s32.totalorder %s5968_s28, %s4696_s0 }
 0x32a   : > { %3516 = vmatprep.mubr.msk.bf16.mxu1 %vm4861_vm0, %v4860_v0  ;;  %3510 = vmatprep.mubr.msk.bf16.mxu0 %vm4861_vm0, %v4860_v0 }
 0x32b   : > { %3507 = vmatpush3.bf16.msra.mxu0 %v3956_v22  ;;  %s3423_s29 = sshll.u32 %s6204_s23, 6 }
 0x32c   : > { %3508 = vmatprep.subr.bf16.mxu0 %v4860_v0  ;;  %p6207_p6 = scmp.ne.s32.totalorder %s6205_s16, 0 }
 0x32d   : > { %s5966_s27 = scalar_lea.hbm %s6206_s25, %s3423_s29 }
 0x32e   : > { %p4698_p4 = pnand %p4697_p13, %p6207_p6 }
 0x32f   : > { %3509 = vmatpush3.bf16.msra.mxu0 %v3957_v23 }
 0x330   : > { %3520 = vmatprep.subr.bf16.mxu0 %v4860_v0  ;;  %p4699_p7 = pneg %p4698_p4 }
 0x332   : > { %3511 = vmatmul.mubr.msk.bf16.vlgmr.msra.gmra.mrb[4].mxu0 %vm1231_vm1, %v1191_v4 }
 0x333   : > { %3522 = vmatprep.mubr.msk.bf16.mxu0 %vm4861_vm0, %v4860_v0 }
 0x3fc   : > { %v1338_v9 = vpop.f32.mrb[0].mxu1  ;;  %v1269_v12 = vpop.f32.mrb[0].mxu0 }
 0x3fd   : > { %v1339_v10 = vadd.f32 %v3361_v7, %v1338_v9  ;;  %v3504_v11 = vpop.f32.mrb[1].mxu1  ;;  %v1270_v14 = vadd.f32 %v3357_v8, %v1269_v12  ;;  %v3496_v15 = vpop.f32.mrb[1].mxu0 }
 0x3fe   : > { %v1341_v13 = vpop.f32.mrb[2].mxu1  ;;  %v1272_v18 = vpop.f32.mrb[2].mxu0 }
 0x3ff   : > { %v1344_v16 = vpack.c.bf16 %v1339_v10, %v1339_v10  ;;  %v3505_v17 = vpop.f32.mrb[3].mxu1  ;;  %v3497_v19 = vpop.f32.mrb[3].mxu0  ;;  %v1275_v20 = vpack.c.bf16 %v1270_v14, %v1270_v14 }
 0x401   : > { %1634 = vrot.lane.b32.xlu1 %v1344_v16, %s4862_s30  ;;  %1522 = vrot.lane.b32.xlu0 %v1344_v16, %s4863_s14  ;;  %v1416_v21 = vsel %vm1411_vm2, %v1344_v16, 0 }
 0x402   : > { %3515 = vmatpush3.bf16.xpose.msra.mxu1 %v1416_v21 }
 0x403   : > { %3526 = vmatprep.subr.bf16.mxu1 %v4860_v0 }
 0x405   : > { %1632 = vrot.lane.b32.xlu1 %v1275_v20, %s4862_s30  ;;  %1519 = vrot.lane.b32.xlu0 %v1275_v20, %s4863_s14  ;;  %v1404_v45 = vpop.f32.mrb[4].mxu0 }
 0x406   : > { %v1405_v46 = vadd.f32 %v3365_v44, %v1404_v45  ;;  %v3512_v47 = vpop.f32.mrb[5].mxu0 }
 0x407   : > { %v1407_v48 = vpop.f32.mrb[6].mxu0 }
 0x408   : > { %v1410_v49 = vpack.c.bf16 %v1405_v46, %v1405_v46  ;;  %v3513_v50 = vpop.f32.mrb[7].mxu0 }
 0x409   : > { %1743 = vrot.lane.b32.xlu1 %v1275_v20, %s4864_s2  ;;  %1745 = vrot.lane.b32.xlu0 %v1344_v16, %s4864_s2 }
 0x40a   : > { %3517 = vmatmul.mubr.msk.bf16.vlgmr.msra.gmra.mrb[4].mxu1 %vm1411_vm2, %v1275_v20  ;;  %v1476_v51 = vsel %vm1474_vm6, %v1410_v49, 0 }
 0x40b   : > { %3528 = vmatprep.mubr.msk.bf16.mxu1 %vm4861_vm0, %v4860_v0  ;;  %3521 = vmatpush3.bf16.msra.mxu0 %v1476_v51 }
 0x40c   : > { %3532 = vmatprep.subr.bf16.mxu0 %v4860_v0 }
 0x473   : > { %v1523_v24 = vpop.permute.xlu0 %1522  ;;  %v1635_v26 = vpop.permute.xlu1 %1634 }
 0x474   : > { %v1528_v25 = vsel %vm1411_vm2, %v1523_v24, 0  ;;  %v1640_v28 = vsel %vm1411_vm2, %v1635_v26, 0 }
 0x475   : > { %3527 = vmatpush3.bf16.xpose.msra.mxu1 %v1528_v25 }
 0x476   : > { %3538 = vmatprep.subr.bf16.mxu1 %v4860_v0 }
 0x477   : > { %v1520_v27 = vpop.permute.xlu0 %1519  ;;  %v1633_v30 = vpop.permute.xlu1 %1632 }
 0x47b   : > { %v1746_v29 = vpop.permute.xlu0 %1745  ;;  %v1744_v32 = vpop.permute.xlu1 %1743 }
 0x47c   : > { %3529 = vmatmul.mubr.msk.bf16.vlgmr.msra.gmra.mrb[8].mxu1 %vm1411_vm2, %v1520_v27  ;;  %v1751_v31 = vsel %vm1411_vm2, %v1746_v29, 0 }
 0x47d   : > { %3539 = vmatpush3.bf16.xpose.msra.mxu1 %v1640_v28  ;;  %3540 = vmatprep.mubr.msk.bf16.mxu1 %vm4861_vm0, %v4860_v0 }
 0x47e   : > { %3550 = vmatprep.subr.bf16.mxu1 %v4860_v0 }
 0x484   : > { %3541 = vmatmul.mubr.msk.bf16.vlgmr.msra.gmra.mrb[12].mxu1 %vm1411_vm2, %v1633_v30 }
 0x485   : > { %3551 = vmatpush3.bf16.xpose.msra.mxu1 %v1751_v31  ;;  %3552 = vmatprep.mubr.msk.bf16.mxu1 %vm4861_vm0, %v4860_v0 }
 0x486   : > { %3562 = vmatprep.subr.bf16.mxu1 %v4860_v0 }
 0x48c   : > { %3553 = vmatmul.mubr.msk.bf16.vlgmr.msra.gmra.mrb[16].mxu1 %vm1411_vm2, %v1744_v32 }
 0x48d   : > { %3566 = vmatprep.mubr.msk.bf16.mxu1 %vm4861_vm0, %v4860_v0 }
 0x4dd   : > { %v1452_v38 = vpop.f32.mrb[4].mxu1 }
 0x4de   : > { %v1458_v39 = vsel %vm5793_vm5, -1e+30, %v1452_v38  ;;  %v3518_v40 = vpop.f32.mrb[5].mxu1 }
 0x4df   : > { %v1455_v41 = vpop.f32.mrb[6].mxu1  ;;  %v1459_v42 = vsel %vm1411_vm2, %v1458_v39, -inf }
 0x4e0   : > { %1460 = vmax.xlane.f32.xlu0 %v1459_v42  ;;  %v3519_v43 = vpop.f32.mrb[7].mxu1 }
 0x54f   : > { %v1564_v52 = vpop.f32.mrb[8].mxu1 }
 0x550   : > { %v1570_v53 = vsel %vm5793_vm5, -1e+30, %v1564_v52  ;;  %v3530_v54 = vpop.f32.mrb[9].mxu1 }
 0x551   : > { %v1567_v55 = vpop.f32.mrb[10].mxu1  ;;  %v1571_v56 = vsel %vm1411_vm2, %v1570_v53, -inf  ;;  %v3958_v54 = vld [vmem:[#allocation16] sm:$0xff]  }
 0x552   : > { %1572 = vmax.xlane.f32.xlu1 %v1571_v56  ;;  %v3531_v57 = vpop.f32.mrb[11].mxu1  ;;  %3563 = vmatpush3.bf16.msra.mxu1 %v3958_v54 }
 0x553   : > { %3564 = vmatprep.subr.bf16.mxu1 %v4860_v0 }
 0x557   : > { %v1676_v58 = vpop.f32.mrb[12].mxu1 }
 0x558   : > { %v1682_v59 = vsel %vm5793_vm5, -1e+30, %v1676_v58  ;;  %v3542_v60 = vpop.f32.mrb[13].mxu1 }
 0x559   : > { %v1679_v61 = vpop.f32.mrb[14].mxu1  ;;  %v1683_v62 = vsel %vm1411_vm2, %v1682_v59, -inf }
 0x55a   : > { %1684 = vmax.xlane.f32.xlu0 %v1683_v62  ;;  %v3543_v63 = vpop.f32.mrb[15].mxu1 }
 0x55f   : > { %v1787_v1 = vpop.f32.mrb[16].mxu1 }
 0x560   : > { %v1793_v2 = vsel %vm5793_vm5, -1e+30, %v1787_v1  ;;  %v3554_v3 = vpop.f32.mrb[17].mxu1 }
 0x561   : > { %v1790_v4 = vpop.f32.mrb[18].mxu1  ;;  %v1794_v5 = vsel %vm1411_vm2, %v1793_v2, -inf }
 0x562   : > { %1795 = vmax.xlane.f32.xlu0 %v1794_v5  ;;  %v3555_v7 = vpop.f32.mrb[19].mxu1 }
 0x56d   : > { %v1461_v8 = vpop.xlane.xlu0 %1460 }
 0x56e   : > { %v1462_v9 = vsub.f32 %v1458_v39, %v1461_v8 }
 0x570   : > { %v1463_v10 = vmul.f32 1.442695, %v1462_v9 }
 0x572   : > { %3974 = vpow2.f32 %v1463_v10 }
 0x57c   : > { %v3975_v11 = vpop.eup %3974 }
 0x57d   : > { %v1465_v12 = vsel %vm1411_vm2, %v3975_v11, 0.0 }
 0x57e   : > { %1466 = vadd.xlane.f32.xlu1 %v1465_v12 }
 0x58f   : > { %1584 = vrot.lane.b32.xlu1 %v1410_v49, %s4863_s14 }
 0x5df   : > { %v1573_v13 = vpop.xlane.xlu1 %1572 }
 0x5e0   : > { %v1574_v14 = vsub.f32 %v1570_v53, %v1573_v13  ;;  %v4868_v13 = vmov 0  }
 0x5e1   : > { %3951 = vset.pattern.permute.xlu0 %v4868_v13 }
 0x5e2   : > { %v1575_v15 = vmul.f32 1.442695, %v1574_v14  ;;  %v3377_v14 = vld [vmem:[#allocation17] ss:$0 sm:$0xff] }
 0x5e4   : > { %3976 = vpow2.f32 %v1575_v15  ;;  %v1190_v15 = vunpack.c.l.bf16 %v5749_v6  ;;  %v3961_v6 = vld [vmem:[#allocation22 + $0x18] sm:$0xff]  }
 0x5e7   : > { %v1685_v16 = vpop.xlane.xlu0 %1684 }
 0x5e8   : > { %v1686_v17 = vsub.f32 %v1682_v59, %v1685_v16  ;;  %v3959_v59 = vld [vmem:[#allocation16 + $0x8] sm:$0xff]  }
 0x5e9   : > { %3565 = vmatpush3.bf16.msra.mxu1 %v3959_v59 }
 0x5ea   : > { %v1687_v18 = vmul.f32 1.442695, %v1686_v17  ;;  %3578 = vmatprep.subr.bf16.mxu1 %v4860_v0 }
 0x5ec   : > { %3978 = vpow2.f32 %v1687_v18 }
 0x5ee   : > { %v3977_v19 = vpop.eup %3976 }
 0x5ef   : > { %v1796_v20 = vpop.xlane.xlu0 %1795  ;;  %v1577_v21 = vsel %vm1411_vm2, %v3977_v19, 0.0 }
 0x5f0   : > { %v1797_v22 = vsub.f32 %v1793_v2, %v1796_v20  ;;  %1578 = vadd.xlane.f32.xlu0 %v1577_v21 }
 0x5f2   : > { %v1798_v23 = vmul.f32 1.442695, %v1797_v22 }
 0x5f4   : > { %3980 = vpow2.f32 %v1798_v23 }
 0x5f6   : > { %v3979_v24 = vpop.eup %3978 }
 0x5f7   : > { %v1689_v25 = vsel %vm1411_vm2, %v3979_v24, 0.0 }
 0x5f8   : > { %1690 = vadd.xlane.f32.xlu1 %v1689_v25  ;;  %v1193_v25 = vld [vmem:[%s5691_s12] sm:$0xff]  ;;  %s4700_s12 = sshll.u32 %s4869_s5, 4  ;;  %s4701_s12 = int_to_ptr.vmem [resolvable:$false] %s4700_s12 }
 0x5f9   : > { %p4703_p0 = scmp.lt.s32.totalorder %s5968_s28, %s4701_s12 }
 0x5fe   : > { %v3981_v26 = vpop.eup %3980 }
 0x5ff   : > { %v1800_v27 = vsel %vm1411_vm2, %v3981_v26, 0.0 }
 0x600   : > { %1801 = vadd.xlane.f32.xlu0 %v1800_v27  ;;  %v3962_v27 = vld [vmem:[#allocation22] sm:$0xff]  }
 0x609   : > { %1806 = vrot.lane.b32.xlu1 %v1410_v49, %s4864_s2 }
 0x60b   : > { %v1467_v28 = vpop.xlane.xlu1 %1466 }
 0x60c   : > { %3982 = vrcp.f32 %v1467_v28  ;;  %v1192_v28 = vld [vmem:[%s1002_s8] sm:$0xf] }
 0x60f   : > { %v1585_v30 = vpop.permute.xlu1 %1584 }
 0x610   : > { %v1590_v33 = vsel %vm1474_vm6, %v1585_v30, 0 }
 0x616   : > { %v3983_v29 = vpop.eup %3982  ;;  %1695 = vrot.lane.b32.xlu0 %v1410_v49, %s4862_s30 }
 0x617   : > { %v1469_v31 = vmul.f32 %v3983_v29, %v3975_v11  ;;  %v3963_v29 = vld [vmem:[#allocation22 + $0x8] sm:$0xff]  }
 0x619   : > { %v1470_v32 = vpack.c.bf16 %v1469_v31, %v1469_v31 }
 0x61b   : > { %3523 = vmatmul.mubr.msk.bf16.vlgmr.msra.gmra.mrb[8].mxu0 %vm1411_vm2, %v1470_v32 }
 0x61c   : > { %3533 = vmatpush3.bf16.msra.mxu0 %v1590_v33  ;;  %3534 = vmatprep.mubr.msk.bf16.mxu0 %vm4861_vm0, %v4860_v0 }
 0x61d   : > { %3544 = vmatprep.subr.bf16.mxu0 %v4860_v0 }
 0x67d   : > { %v1579_v34 = vpop.xlane.xlu0 %1578 }
 0x67e   : > { %3984 = vrcp.f32 %v1579_v34 }
 0x685   : > { %v1691_v35 = vpop.xlane.xlu1 %1690 }
 0x686   : > { %3986 = vrcp.f32 %v1691_v35 }
 0x688   : > { %v3985_v36 = vpop.eup %3984 }
 0x689   : > { %v1581_v37 = vmul.f32 %v3985_v36, %v3977_v19  ;;  %v1807_v44 = vpop.permute.xlu1 %1806 }
 0x68a   : > { %v1812_v46 = vsel %vm1474_vm6, %v1807_v44, 0 }
 0x68b   : > { %v1582_v38 = vpack.c.bf16 %v1581_v37, %v1581_v37 }
 0x68d   : > { %v1802_v39 = vpop.xlane.xlu0 %1801  ;;  %3535 = vmatmul.mubr.msk.bf16.vlgmr.msra.gmra.mrb[12].mxu0 %vm1411_vm2, %v1582_v38 }
 0x68e   : > { %3988 = vrcp.f32 %v1802_v39  ;;  %3546 = vmatprep.mubr.msk.bf16.mxu0 %vm4861_vm0, %v4860_v0  ;;  %v3381_v39 = vld [vmem:[#allocation19] ss:$0 sm:$0xff] }
 0x690   : > { %v3987_v40 = vpop.eup %3986 }
 0x691   : > { %v1693_v41 = vmul.f32 %v3987_v40, %v3979_v24  ;;  %v1696_v42 = vpop.permute.xlu0 %1695 }
 0x692   : > { %v1701_v43 = vsel %vm1474_vm6, %v1696_v42, 0 }
 0x693   : > { %3545 = vmatpush3.bf16.msra.mxu0 %v1701_v43  ;;  %v1694_v45 = vpack.c.bf16 %v1693_v41, %v1693_v41  ;;  %v3382_v41 = vld [vmem:[#allocation20] ss:$0 sm:$0xff] }
 0x694   : > { %3556 = vmatprep.subr.bf16.mxu0 %v4860_v0 }
 0x696   : > { %3547 = vmatmul.mubr.msk.bf16.vlgmr.msra.gmra.mrb[16].mxu0 %vm1411_vm2, %v1694_v45 }
 0x697   : > { %3557 = vmatpush3.bf16.msra.mxu0 %v1812_v46  ;;  %3558 = vmatprep.mubr.msk.bf16.mxu0 %vm4861_vm0, %v4860_v0 }
 0x698   : > { %v3989_v47 = vpop.eup %3988  ;;  %3570 = vmatprep.subr.bf16.mxu0 %v4860_v0 }
 0x699   : > { %v1804_v48 = vmul.f32 %v3989_v47, %v3981_v26  ;;  %v3960_v26 = vld [vmem:[#allocation22 + $0x10] sm:$0xff]  }
 0x69a   : > { %v3388_v47 = vld [vmem:[#allocation23 + $0x1] ss:$0 sm:$0xff] }
 0x69b   : > { %v1805_v49 = vpack.c.bf16 %v1804_v48, %v1804_v48 }
 0x69e   : > { %3559 = vmatmul.mubr.msk.bf16.vlgmr.msra.gmra.mrb[20].mxu0 %vm1411_vm2, %v1805_v49 }
 0x69f   : > { %3574 = vmatprep.mubr.msk.bf16.mxu0 %vm4861_vm0, %v4860_v0  ;;  %3571 = vmatpush3.bf16.msra.mxu0 %v3962_v27 }
 0x6a0   : > { %3572 = vmatprep.subr.bf16.mxu0 %v4860_v0 }
 0x6a3   : > { %3573 = vmatpush3.bf16.msra.mxu0 %v3963_v29 }
 0x6a4   : > { %3586 = vmatprep.subr.bf16.mxu0 %v4860_v0 }
 0x6ee   : > { %v1512_v50 = vpop.f32.mrb[8].mxu0 }
 0x6ef   : > { %v3524_v51 = vpop.f32.mrb[9].mxu0 }
 0x6f0   : > { %v1515_v52 = vpop.f32.mrb[10].mxu0 }
 0x6f1   : > { %v3525_v53 = vpop.f32.mrb[11].mxu0 }
 0x760   : > { %v1626_v55 = vpop.f32.mrb[12].mxu0 }
 0x761   : > { %1855 = vrot.lane.b32.xlu1 %v1626_v55, %s4865_s9  ;;  %v3536_v56 = vpop.f32.mrb[13].mxu0  ;;  %v3384_v55 = vld [vmem:[#allocation23] ss:$0 sm:$0xff] }
 0x762   : > { %v1629_v57 = vpop.f32.mrb[14].mxu0 }
 0x763   : > { %v3537_v58 = vpop.f32.mrb[15].mxu0 }
 0x769   : > { %v1737_v60 = vpop.f32.mrb[16].mxu0 }
 0x76a   : > { %1859 = vrot.lane.b32.xlu0 %v1737_v60, %s4866_s21  ;;  %v3548_v61 = vpop.f32.mrb[17].mxu0 }
 0x76b   : > { %v1740_v62 = vpop.f32.mrb[18].mxu0 }
 0x76c   : > { %v3549_v63 = vpop.f32.mrb[19].mxu0 }
 0x771   : > { %v1848_v1 = vpop.f32.mrb[20].mxu0 }
 0x772   : > { %1863 = vrot.lane.b32.xlu1 %v1848_v1, %s4867_s13  ;;  %v3560_v2 = vpop.f32.mrb[21].mxu0  ;;  %v3964_v1 = vld [vmem:[#allocation22 + $0x20] sm:$0xff]  }
 0x773   : > { %v1851_v3 = vpop.f32.mrb[22].mxu0  ;;  %v3965_v2 = vld [vmem:[#allocation22 + $0x28] sm:$0xff]  }
 0x774   : > { %v3561_v4 = vpop.f32.mrb[23].mxu0 }
 0x7d3   : > { %v1856_v5 = vpop.permute.xlu1 %1855 }
 0x7d4   : > { %v1866_v8 = vsel %vm1411_vm2, %v1512_v50, %v1856_v5 }
 0x7dc   : > { %v1860_v7 = vpop.permute.xlu0 %1859 }
 0x7dd   : > { %v1868_v9 = vsel %vm1867_vm7, %v1866_v8, %v1860_v7 }
 0x7e4   : > { %v1864_v10 = vpop.permute.xlu1 %1863 }
 0x7e5   : > { %v1870_v11 = vsel %vm1869_vm8, %v1868_v9, %v1864_v10 }
 0x7e6   : > { %v1871_v12 = vpack.c.bf16 %v1870_v11, %v1870_v11  ;;  %v3383_v11 = vld [vmem:[%s1018_s18] ss:$0 sm:$0xff]  ;;  %s2931_s18 = scalar_lea.sflag [#allocation4], %s5666_s17 }
 0x7e7   : > { %vm1982_vm9 = vcmp.eq.s32.totalorder %v3383_v11, 0 }
 0x7e8   : > { %3567 = vmatmul.mubr.msk.bf16.vlgmr.msra.gmra.mrb[20].mxu1 %vm1231_vm1, %v1871_v12 }
 0x7e9   : > { %3582 = vmatprep.mubr.msk.bf16.mxu1 %vm4861_vm0, %v4860_v0  ;;  %3579 = vmatpush3.bf16.msra.mxu1 %v3960_v26 }
 0x7ea   : > { %3580 = vmatprep.subr.bf16.mxu1 %v4860_v0 }
 0x7ed   : > { %3581 = vmatpush3.bf16.msra.mxu1 %v3961_v6 }
 0x7ee   : > { %3594 = vmatprep.subr.bf16.mxu1 %v4860_v0 }
 0x7f0   : > { %3583 = vmatmul.mubr.msk.bf16.vlgmr.msra.gmra.mrb[24].mxu1 %vm1231_vm1, %v1192_v28 }
 0x7f1   : > { %3596 = vmatprep.mubr.msk.bf16.mxu1 %vm4861_vm0, %v4860_v0 }
 0x8bb   : > { %v1932_v16 = vpop.f32.mrb[20].mxu1 }
 0x8bc   : > { %v1933_v17 = vadd.f32 %v3377_v14, %v1932_v16  ;;  %v3568_v18 = vpop.f32.mrb[21].mxu1 }
 0x8bd   : > { %v1935_v19 = vpop.f32.mrb[22].mxu1 }
 0x8be   : > { %v1938_v20 = vadd.f32 %v1933_v17, %v1190_v15  ;;  %v3569_v21 = vpop.f32.mrb[23].mxu1 }
 0x8c0   : > { %v1941_v22 = vsel %vm1231_vm1, %v1938_v20, 0.0  ;;  %v1946_v23 = vmul.f32 %v1938_v20, %v1938_v20 }
 0x8c1   : > { %1942 = vadd.xlane.f32.xlu0 %v1941_v22 }
 0x8c2   : > { %v1947_v24 = vsel %vm1231_vm1, %v1946_v23, 0.0 }
 0x8c3   : > { %1948 = vadd.xlane.f32.xlu1 %v1947_v24  ;;  %v2113_v48 = vpop.f32.mrb[24].mxu1 }
 0x8c4   : > { %v2114_v49 = vadd.f32 %v3388_v47, %v2113_v48  ;;  %v3584_v50 = vpop.f32.mrb[25].mxu1 }
 0x8c5   : > { %v2116_v51 = vpop.f32.mrb[26].mxu1 }
 0x8c6   : > { %v2119_v52 = vpack.c.bf16 %v2114_v49, %v2114_v49  ;;  %v3585_v53 = vpop.f32.mrb[27].mxu1 }
 0x8c8   : > { %v2190_v54 = vsel %vm1411_vm2, %v2119_v52, 0 }
 0x8c9   : > { %3595 = vmatpush3.bf16.xpose.msra.mxu1 %v2190_v54 }
 0x8ca   : > { %3606 = vmatprep.subr.bf16.mxu1 %v4860_v0 }
 0x8d4   : > { %2295 = vrot.lane.b32.xlu1 %v2119_v52, %s4863_s14 }
 0x8d7   : > { %1973 = vperm.xlu0 %3951, %v1193_v25  }
 0x8d8   : > { %2407 = vrot.lane.b32.xlu1 %v2119_v52, %s4862_s30 }
 0x94e   : > { %v1943_v30 = vpop.xlane.xlu0 %1942 }
 0x94f   : > { %v1945_v31 = vmul.f32 0.03125, %v1943_v30 }
 0x950   : > { %v1949_v32 = vpop.xlane.xlu1 %1948 }
 0x951   : > { %v1951_v33 = vmul.f32 %v1945_v31, %v1945_v31  ;;  %v1950_v34 = vmul.f32 0.03125, %v1949_v32  ;;  %v1953_v37 = vsub.f32 %v1938_v20, %v1945_v31 }
 0x953   : > { %v1952_v35 = vsub.f32 %v1950_v34, %v1951_v33 }
 0x954   : > { %v2296_v60 = vpop.permute.xlu1 %2295 }
 0x955   : > { %v1954_v36 = vadd.f32 1e-05, %v1952_v35  ;;  %v2301_v63 = vsel %vm1411_vm2, %v2296_v60, 0 }
 0x956   : > { %v5860_v43 = vpop.permute.xlu0 %1973 }
 0x957   : > { %3990 = vrsqrt.f32 %v1954_v36 }
 0x958   : > { %v2408_v3 = vpop.permute.xlu1 %2407 }
 0x959   : > { %v2413_v5 = vsel %vm1411_vm2, %v2408_v3, 0 }
 0x961   : > { %v3991_v38 = vpop.eup %3990 }
 0x962   : > { %v1956_v40 = vmul.f32 %v3991_v38, %v1953_v37  ;;  %v3392_v38 = vld [vmem:[#allocation23 + $0x2] ss:$0 sm:$0xff] }
 0x964   : > { %v1963_v42 = vmul.f32 %v3381_v39, %v1956_v40 }
 0x966   : > { %v1970_v44 = vadd.f32 %v3382_v41, %v1963_v42 }
 0x968   : > { %v5863_v45 = vmul.f32 %v5860_v43, %v1970_v44 }
 0x96a   : > { %v1983_v46 = vpack.c.bf16 %v5863_v45, %v5863_v45 }
 0x96c   : > { %3575 = vmatmul.mubr.msk.bf16.vlgmr.msra.gmra.mrb[24].mxu0 %vm1231_vm1, %v1983_v46 }
 0x96d   : > { %3590 = vmatprep.mubr.msk.bf16.mxu0 %vm4861_vm0, %v4860_v0  ;;  %3587 = vmatpush3.bf16.msra.mxu0 %v3964_v1 }
 0x96e   : > { %3588 = vmatprep.subr.bf16.mxu0 %v4860_v0 }
 0x971   : > { %3589 = vmatpush3.bf16.msra.mxu0 %v3965_v2 }
 0x972   : > { %3600 = vmatprep.subr.bf16.mxu0 %v4860_v0 }
 0x974   : > { %3591 = vmatmul.mubr.msk.bf16.vlgmr.msra.gmra.mrb[28].mxu0 %vm1231_vm1, %v1192_v28 }
 0x975   : > { %3602 = vmatprep.mubr.msk.bf16.mxu0 %vm4861_vm0, %v4860_v0 }
 0xa3f   : > { %v2044_v56 = vpop.f32.mrb[24].mxu0 }
 0xa40   : > { %v2045_v57 = vadd.f32 %v3384_v55, %v2044_v56  ;;  %v3576_v58 = vpop.f32.mrb[25].mxu0 }
 0xa41   : > { %v2047_v59 = vpop.f32.mrb[26].mxu0 }
 0xa42   : > { %v2050_v61 = vpack.c.bf16 %v2045_v57, %v2045_v57  ;;  %v3577_v62 = vpop.f32.mrb[27].mxu0 }
 0xa44   : > { %2292 = vrot.lane.b32.xlu1 %v2050_v61, %s4863_s14  ;;  %3597 = vmatmul.mubr.msk.bf16.vlgmr.msra.gmra.mrb[28].mxu1 %vm1411_vm2, %v2050_v61 }
 0xa45   : > { %3607 = vmatpush3.bf16.xpose.msra.mxu1 %v2301_v63  ;;  %3608 = vmatprep.mubr.msk.bf16.mxu1 %vm4861_vm0, %v4860_v0 }
 0xa46   : > { %3618 = vmatprep.subr.bf16.mxu1 %v4860_v0 }
 0xa47   : > { %v2179_v39 = vpop.f32.mrb[28].mxu0 }
 0xa48   : > { %2405 = vrot.lane.b32.xlu1 %v2050_v61, %s4862_s30  ;;  %v2180_v40 = vadd.f32 %v3392_v38, %v2179_v39  ;;  %v3592_v41 = vpop.f32.mrb[29].mxu0 }
 0xa49   : > { %v2182_v42 = vpop.f32.mrb[30].mxu0 }
 0xa4a   : > { %v3593_v46 = vpop.f32.mrb[31].mxu0  ;;  %v2185_v48 = vpack.c.bf16 %v2180_v40, %v2180_v40 }
 0xa4c   : > { %2518 = vrot.lane.b32.xlu1 %v2119_v52, %s4864_s2  ;;  %v2249_v49 = vsel %vm1474_vm6, %v2185_v48, 0 }
 0xa4d   : > { %3601 = vmatpush3.bf16.msra.mxu0 %v2249_v49 }
 0xa4e   : > { %3612 = vmatprep.subr.bf16.mxu0 %v4860_v0 }
 0xa50   : > { %2516 = vrot.lane.b32.xlu1 %v2050_v61, %s4864_s2 }
 0xab6   : > { %v2293_v4 = vpop.permute.xlu1 %2292 }
 0xab7   : > { %3609 = vmatmul.mubr.msk.bf16.vlgmr.msra.gmra.mrb[32].mxu1 %vm1411_vm2, %v2293_v4 }
 0xab8   : > { %3619 = vmatpush3.bf16.xpose.msra.mxu1 %v2413_v5  ;;  %3620 = vmatprep.mubr.msk.bf16.mxu1 %vm4861_vm0, %v4860_v0 }
 0xab9   : > { %3630 = vmatprep.subr.bf16.mxu1 %v4860_v0 }
 0xaba   : > { %v2406_v7 = vpop.permute.xlu1 %2405 }
 0xabe   : > { %v2519_v8 = vpop.permute.xlu1 %2518 }
 0xabf   : > { %v2524_v9 = vsel %vm1411_vm2, %v2519_v8, 0  ;;  %3621 = vmatmul.mubr.msk.bf16.vlgmr.msra.gmra.mrb[36].mxu1 %vm1411_vm2, %v2406_v7 }
 0xac0   : > { %3631 = vmatpush3.bf16.xpose.msra.mxu1 %v2524_v9  ;;  %3632 = vmatprep.mubr.msk.bf16.mxu1 %vm4861_vm0, %v4860_v0 }
 0xac1   : > { %3642 = vmatprep.subr.bf16.mxu1 %v4860_v0 }
 0xac2   : > { %v2517_v10 = vpop.permute.xlu1 %2516 }
 0xac7   : > { %3633 = vmatmul.mubr.msk.bf16.vlgmr.msra.gmra.mrb[40].mxu1 %vm1411_vm2, %v2517_v10 }
 0xac8   : > { %3646 = vmatprep.mubr.msk.bf16.mxu1 %vm4861_vm0, %v4860_v0 }
 0xb17   : > { %v2226_v12 = vpop.f32.mrb[28].mxu1 }
 0xb18   : > { %v2232_v13 = vsel %vm1982_vm9, -1e+30, %v2226_v12  ;;  %v3598_v14 = vpop.f32.mrb[29].mxu1 }
 0xb19   : > { %v2229_v15 = vpop.f32.mrb[30].mxu1  ;;  %v2233_v16 = vsel %vm1411_vm2, %v2232_v13, -inf }
 0xb1a   : > { %2234 = vmax.xlane.f32.xlu1 %v2233_v16  ;;  %v3599_v17 = vpop.f32.mrb[31].mxu1 }
 0xb8a   : > { %v2337_v18 = vpop.f32.mrb[32].mxu1 }
 0xb8b   : > { %v2343_v19 = vsel %vm1982_vm9, -1e+30, %v2337_v18  ;;  %v3610_v20 = vpop.f32.mrb[33].mxu1 }
 0xb8c   : > { %v2340_v21 = vpop.f32.mrb[34].mxu1  ;;  %v2344_v22 = vsel %vm1411_vm2, %v2343_v19, -inf }
 0xb8d   : > { %2345 = vmax.xlane.f32.xlu0 %v2344_v22  ;;  %v3611_v23 = vpop.f32.mrb[35].mxu1 }
 0xb92   : > { %v2449_v24 = vpop.f32.mrb[36].mxu1 }
 0xb93   : > { %v2455_v25 = vsel %vm1982_vm9, -1e+30, %v2449_v24  ;;  %v3622_v26 = vpop.f32.mrb[37].mxu1 }
 0xb94   : > { %v2452_v27 = vpop.f32.mrb[38].mxu1  ;;  %v2456_v6 = vsel %vm1411_vm2, %v2455_v25, -inf }
 0xb95   : > { %2457 = vmax.xlane.f32.xlu0 %v2456_v6  ;;  %v3623_v28 = vpop.f32.mrb[39].mxu1 }
 0xb96   : > { %v3966_v28 = vld [vmem:[#allocation25] sm:$0xff]  }
 0xb97   : > { %3643 = vmatpush3.bf16.msra.mxu1 %v3966_v28 }
 0xb98   : > { %3644 = vmatprep.subr.bf16.mxu1 %v4860_v0 }
 0xb9a   : > { %v2560_v29 = vpop.f32.mrb[40].mxu1 }
 0xb9b   : > { %v2566_v30 = vsel %vm1982_vm9, -1e+30, %v2560_v29  ;;  %v3634_v31 = vpop.f32.mrb[41].mxu1 }
 0xb9c   : > { %v2563_v32 = vpop.f32.mrb[42].mxu1  ;;  %v2567_v33 = vsel %vm1411_vm2, %v2566_v30, -inf }
 0xb9d   : > { %2568 = vmax.xlane.f32.xlu1 %v2567_v33  ;;  %v3635_v34 = vpop.f32.mrb[43].mxu1 }
 0xba7   : > { %v2235_v35 = vpop.xlane.xlu1 %2234 }
 0xba8   : > { %v2236_v36 = vsub.f32 %v2232_v13, %v2235_v35 }
 0xbaa   : > { %v2237_v37 = vmul.f32 1.442695, %v2236_v36 }
 0xbac   : > { %3992 = vpow2.f32 %v2237_v37  ;;  %v3967_v37 = vld [vmem:[#allocation25 + $0x8] sm:$0xff]  }
 0xbad   : > { %3645 = vmatpush3.bf16.msra.mxu1 %v3967_v37 }
 0xbae   : > { %3658 = vmatprep.subr.bf16.mxu1 %v4860_v0 }
 0xbb6   : > { %v3993_v44 = vpop.eup %3992 }
 0xbb7   : > { %v2239_v47 = vsel %vm1411_vm2, %v3993_v44, 0.0 }
 0xbb8   : > { %2240 = vadd.xlane.f32.xlu0 %v2239_v47 }
 0xc1a   : > { %v2346_v50 = vpop.xlane.xlu0 %2345 }
 0xc1b   : > { %v2347_v51 = vsub.f32 %v2343_v19, %v2346_v50 }
 0xc1d   : > { %v2348_v52 = vmul.f32 1.442695, %v2347_v51  ;;  %v3404_v51 = vld [vmem:[#allocation26] ss:$0 sm:$0xff] }
 0xc1f   : > { %3994 = vpow2.f32 %v2348_v52 }
 0xc22   : > { %v2458_v53 = vpop.xlane.xlu0 %2457 }
 0xc23   : > { %v2459_v54 = vsub.f32 %v2455_v25, %v2458_v53 }
 0xc25   : > { %v2460_v55 = vmul.f32 1.442695, %v2459_v54 }
 0xc27   : > { %3996 = vpow2.f32 %v2460_v55 }
 0xc29   : > { %v3995_v56 = vpop.eup %3994 }
 0xc2a   : > { %v2350_v57 = vsel %vm1411_vm2, %v3995_v56, 0.0  ;;  %v2569_v61 = vpop.xlane.xlu1 %2568 }
 0xc2b   : > { %2351 = vadd.xlane.f32.xlu1 %v2350_v57  ;;  %v2570_v62 = vsub.f32 %v2566_v30, %v2569_v61  ;;  %v3968_v61 = vld [vmem:[#allocation31] sm:$0xff]  }
 0xc2d   : > { %v2571_v63 = vmul.f32 1.442695, %v2570_v62  ;;  %v3969_v62 = vld [vmem:[#allocation31 + $0x8] sm:$0xff]  }
 0xc31   : > { %v3997_v58 = vpop.eup %3996 }
 0xc32   : > { %v2462_v59 = vsel %vm1411_vm2, %v3997_v58, 0.0 }
 0xc33   : > { %2463 = vadd.xlane.f32.xlu0 %v2462_v59 }
 0xc3c   : > { %2468 = vrot.lane.b32.xlu1 %v2185_v48, %s4862_s30  ;;  %s4702_s30 = scalar_lea.vmem %s4701_s12, 128 }
 0xc3d   : > { %p4704_p2 = scmp.lt.s32.totalorder %s4702_s30, %s4696_s0 }
 0xc3f   : > { %p4705_p5 = por %p4704_p2, %p4703_p0 }
 0xc41   : > { %p4706_p1 = pnand %p4705_p5, %p4699_p7 }
 0xc45   : > { %v2241_v60 = vpop.xlane.xlu0 %2240 }
 0xc46   : > { %3998 = vrcp.f32 %v2241_v60 }
 0xc47   : > { %4000 = vpow2.f32 %v2571_v63  ;;  %v3970_v63 = vld [vmem:[#allocation34] sm:$0xff]  }
 0xc49   : > { %2357 = vrot.lane.b32.xlu0 %v2185_v48, %s4863_s14 }
 0xc50   : > { %v3999_v1 = vpop.eup %3998 }
 0xc51   : > { %v2243_v2 = vmul.f32 %v3999_v1, %v3993_v44  ;;  %v4001_v4 = vpop.eup %4000  ;;  %v3971_v1 = vld [vmem:[#allocation34 + $0x8] sm:$0xff]  }
 0xc52   : > { %v2573_v5 = vsel %vm1411_vm2, %v4001_v4, 0.0 }
 0xc53   : > { %v2244_v3 = vpack.c.bf16 %v2243_v2, %v2243_v2 }
 0xc55   : > { %3603 = vmatmul.mubr.msk.bf16.vlgmr.msra.gmra.mrb[32].mxu0 %vm1411_vm2, %v2244_v3 }
 0xc56   : > { %3614 = vmatprep.mubr.msk.bf16.mxu0 %vm4861_vm0, %v4860_v0 }
 0xc60   : > { %2574 = vadd.xlane.f32.xlu1 %v2573_v5 }
 0xc71   : > { %2579 = vrot.lane.b32.xlu1 %v2185_v48, %s4864_s2 }
 0xcb8   : > { %v2352_v7 = vpop.xlane.xlu1 %2351 }
 0xcb9   : > { %4002 = vrcp.f32 %v2352_v7 }
 0xcbc   : > { %v2469_v13 = vpop.permute.xlu1 %2468 }
 0xcbd   : > { %v2474_v15 = vsel %vm1474_vm6, %v2469_v13, 0  ;;  %v3409_v13 = vld [vmem:[#allocation29] ss:$0 sm:$0xff] }
 0xcc0   : > { %v2464_v8 = vpop.xlane.xlu0 %2463 }
 0xcc1   : > { %4004 = vrcp.f32 %v2464_v8 }
 0xcc3   : > { %v4003_v9 = vpop.eup %4002 }
 0xcc4   : > { %v2354_v10 = vmul.f32 %v4003_v9, %v3995_v56  ;;  %v2358_v11 = vpop.permute.xlu0 %2357 }
 0xcc5   : > { %v2363_v12 = vsel %vm1474_vm6, %v2358_v11, 0  ;;  %v3408_v11 = vld [vmem:[#allocation28] ss:$0 sm:$0xff] }
 0xcc6   : > { %3613 = vmatpush3.bf16.msra.mxu0 %v2363_v12  ;;  %v2355_v14 = vpack.c.bf16 %v2354_v10, %v2354_v10 }
 0xcc7   : > { %3624 = vmatprep.subr.bf16.mxu0 %v4860_v0 }
 0xcc9   : > { %3615 = vmatmul.mubr.msk.bf16.vlgmr.msra.gmra.mrb[36].mxu0 %vm1411_vm2, %v2355_v14 }
 0xcca   : > { %3625 = vmatpush3.bf16.msra.mxu0 %v2474_v15  ;;  %3626 = vmatprep.mubr.msk.bf16.mxu0 %vm4861_vm0, %v4860_v0 }
 0xccb   : > { %v4005_v16 = vpop.eup %4004  ;;  %3636 = vmatprep.subr.bf16.mxu0 %v4860_v0 }
 0xccc   : > { %v2466_v17 = vmul.f32 %v4005_v16, %v3997_v58 }
 0xcce   : > { %v2467_v18 = vpack.c.bf16 %v2466_v17, %v2466_v17 }
 0xcd1   : > { %3627 = vmatmul.mubr.msk.bf16.vlgmr.msra.gmra.mrb[40].mxu0 %vm1411_vm2, %v2467_v18  ;;  %v3972_v18 = vld [vmem:[#allocation34 + $0x10] sm:$0xff]  }
 0xcd2   : > { %3638 = vmatprep.mubr.msk.bf16.mxu0 %vm4861_vm0, %v4860_v0 }
 0xced   : > { %v2575_v19 = vpop.xlane.xlu1 %2574 }
 0xcee   : > { %4006 = vrcp.f32 %v2575_v19  ;;  %v3973_v19 = vld [vmem:[#allocation34 + $0x18] sm:$0xff]  }
 0xcf1   : > { %v2580_v20 = vpop.permute.xlu1 %2579 }
 0xcf2   : > { %v2585_v21 = vsel %vm1474_vm6, %v2580_v20, 0  ;;  %v3410_v20 = vld [vmem:[#allocation32] ss:$0 sm:$0xff] }
 0xcf3   : > { %3637 = vmatpush3.bf16.msra.mxu0 %v2585_v21 }
 0xcf4   : > { %3650 = vmatprep.subr.bf16.mxu0 %v4860_v0 }
 0xcf8   : > { %v4007_v22 = vpop.eup %4006 }
 0xcf9   : > { %v2577_v23 = vmul.f32 %v4007_v22, %v4001_v4 }
 0xcfb   : > { %v2578_v24 = vpack.c.bf16 %v2577_v23, %v2577_v23 }
 0xcfd   : > { %3639 = vmatmul.mubr.msk.bf16.vlgmr.msra.gmra.mrb[44].mxu0 %vm1411_vm2, %v2578_v24 }
 0xcfe   : > { %3654 = vmatprep.mubr.msk.bf16.mxu0 %vm4861_vm0, %v4860_v0  ;;  %3651 = vmatpush3.bf16.msra.mxu0 %v3968_v61 }
 0xcff   : > { %3652 = vmatprep.subr.bf16.mxu0 %v4860_v0 }
 0xd02   : > { %3653 = vmatpush3.bf16.msra.mxu0 %v3969_v62 }
 0xd28   : > { %v2285_v25 = vpop.f32.mrb[32].mxu0 }
 0xd29   : > { %v3604_v26 = vpop.f32.mrb[33].mxu0 }
 0xd2a   : > { %v2288_v27 = vpop.f32.mrb[34].mxu0 }
 0xd2b   : > { %v3605_v6 = vpop.f32.mrb[35].mxu0 }
 0xd2c   : > { %v3414_v6 = vld [vmem:[#allocation35] ss:$0 sm:$0xff] }
 0xd9c   : > { %v2399_v29 = vpop.f32.mrb[36].mxu0 }
 0xd9d   : > { %2628 = vrot.lane.b32.xlu0 %v2399_v29, %s4865_s9  ;;  %v3616_v30 = vpop.f32.mrb[37].mxu0 }
 0xd9e   : > { %v2402_v31 = vpop.f32.mrb[38].mxu0 }
 0xd9f   : > { %v3617_v32 = vpop.f32.mrb[39].mxu0 }
 0xda4   : > { %v2510_v33 = vpop.f32.mrb[40].mxu0 }
 0xda5   : > { %2632 = vrot.lane.b32.xlu1 %v2510_v33, %s4866_s21  ;;  %v3628_v34 = vpop.f32.mrb[41].mxu0 }
 0xda6   : > { %v2513_v35 = vpop.f32.mrb[42].mxu0 }
 0xda7   : > { %v3629_v36 = vpop.f32.mrb[43].mxu0 }
 0xdd0   : > { %v2621_v38 = vpop.f32.mrb[44].mxu0 }
 0xdd1   : > { %2636 = vrot.lane.b32.xlu0 %v2621_v38, %s4867_s13  ;;  %v3640_v39 = vpop.f32.mrb[45].mxu0 }
 0xdd2   : > { %v2624_v40 = vpop.f32.mrb[46].mxu0 }
 0xdd3   : > { %v3641_v41 = vpop.f32.mrb[47].mxu0 }
 0xe0f   : > { %v2629_v42 = vpop.permute.xlu0 %2628 }
 0xe10   : > { %v2639_v46 = vsel %vm1411_vm2, %v2285_v25, %v2629_v42 }
 0xe17   : > { %v2633_v44 = vpop.permute.xlu1 %2632 }
 0xe18   : > { %v2640_v47 = vsel %vm1867_vm7, %v2639_v46, %v2633_v44 }
 0xe43   : > { %v2637_v48 = vpop.permute.xlu0 %2636 }
 0xe44   : > { %v2641_v49 = vsel %vm1869_vm8, %v2640_v47, %v2637_v48  ;;  %v3420_v47 = vld [vmem:[#allocation37] ss:$0 sm:$0xff] }
 0xe45   : > { %v2642_v50 = vpack.c.bf16 %v2641_v49, %v2641_v49  ;;  %v3421_v49 = vld [vmem:[#allocation38] ss:$0 sm:$0xff] }
 0xe47   : > { %3647 = vmatmul.mubr.msk.bf16.vlgmr.msra.gmra.mrb[44].mxu1 %vm1231_vm1, %v2642_v50 }
 0xe48   : > { %3666 = vmatprep.mubr.msk.bf16.mxu1 %vm4861_vm0, %v4860_v0  ;;  %3659 = vmatpush3.bf16.msra.mxu1 %v3970_v63 }
 0xe49   : > { %3660 = vmatprep.subr.bf16.mxu1 %v4860_v0 }
 0xe4c   : > { %3661 = vmatpush3.bf16.msra.mxu1 %v3971_v1 }
 0xe4d   : > { %3662 = vmatprep.subr.bf16.mxu1 %v4860_v0 }
 0xe50   : > { %3663 = vmatpush3.bf16.msra.mxu1 %v3972_v18 }
 0xe51   : > { %3664 = vmatprep.subr.bf16.mxu1 %v4860_v0 }
 0xe54   : > { %3665 = vmatpush3.bf16.msra.mxu1 %v3973_v19 }
 0xf1a   : > { %v2703_v52 = vpop.f32.mrb[44].mxu1 }
 0xf1b   : > { %v2704_v53 = vadd.f32 %v3404_v51, %v2703_v52  ;;  %v3648_v54 = vpop.f32.mrb[45].mxu1 }
 0xf1c   : > { %v2706_v55 = vpop.f32.mrb[46].mxu1 }
 0xf1d   : > { %v2709_v56 = vadd.f32 %v2704_v53, %v5863_v45  ;;  %v3649_v57 = vpop.f32.mrb[47].mxu1 }
 0xf1f   : > { %v2712_v58 = vsel %vm1231_vm1, %v2709_v56, 0.0  ;;  %v2716_v59 = vmul.f32 %v2709_v56, %v2709_v56 }
 0xf20   : > { %2713 = vadd.xlane.f32.xlu1 %v2712_v58 }
 0xf21   : > { %v2717_v60 = vsel %vm1231_vm1, %v2716_v59, 0.0 }
 0xf22   : > { %2718 = vadd.xlane.f32.xlu0 %v2717_v60 }
 0xfad   : > { %v2714_v45 = vpop.xlane.xlu1 %2713 }
 0xfae   : > { %v2715_v2 = vmul.f32 0.03125, %v2714_v45 }
 0xfaf   : > { %v2719_v3 = vpop.xlane.xlu0 %2718 }
 0xfb0   : > { %v2721_v4 = vmul.f32 %v2715_v2, %v2715_v2  ;;  %v2720_v5 = vmul.f32 0.03125, %v2719_v3  ;;  %v2723_v9 = vsub.f32 %v2709_v56, %v2715_v2 }
 0xfb2   : > { %v2722_v7 = vsub.f32 %v2720_v5, %v2721_v4 }
 0xfb4   : > { %v2724_v8 = vadd.f32 1e-05, %v2722_v7 }
 0xfb6   : > { %4008 = vrsqrt.f32 %v2724_v8 }
 0xfc0   : > { %v4009_v10 = vpop.eup %4008 }
 0xfc1   : > { %v2726_v12 = vmul.f32 %v4009_v10, %v2723_v9 }
 0xfc3   : > { %v2733_v14 = vmul.f32 %v3408_v11, %v2726_v12 }
 0xfc5   : > { %v2740_v15 = vadd.f32 %v3409_v13, %v2733_v14 }
 0xfc7   : > { %v2741_v16 = vmul.f32 %v2740_v15, %v5860_v43 }
 0xfc9   : > { %v2742_v17 = vpack.c.bf16 %v2741_v16, %v2741_v16 }
 0xfcb   : > { %3655 = vmatmul.mubr.msk.bf16.vlgmr.msra.gmra.mrb[48].mxu0 %vm1231_vm1, %v2742_v17 }
0x109e   : > { %v2803_v21 = vpop.f32.mrb[48].mxu0 }
0x109f   : > { %v2804_v22 = vadd.f32 %v3410_v20, %v2803_v21  ;;  %v3656_v23 = vpop.f32.mrb[49].mxu0 }
0x10a0   : > { %v2806_v24 = vpop.f32.mrb[50].mxu0 }
0x10a1   : > { %v2809_v25 = vmax.f32 %v2804_v22, 0.0  ;;  %v3657_v26 = vpop.f32.mrb[51].mxu0 }
0x10a3   : > { %v2810_v27 = vpack.c.bf16 %v2809_v25, %v2809_v25 }
0x10a5   : > { %3667 = vmatmul.mubr.msk.bf16.vlgmr.msra.gmra.mrb[48].mxu1 %vm2850_vm10, %v2810_v27 }
0x1178   : > { %v2888_v28 = vpop.f32.mrb[48].mxu1 }
0x1179   : > { %v2889_v29 = vadd.f32 %v3414_v6, %v2888_v28  ;;  %v3668_v30 = vpop.f32.mrb[49].mxu1 }
0x117a   : > { %v2891_v31 = vpop.f32.mrb[50].mxu1 }
0x117b   : > { %v2894_v32 = vadd.f32 %v2889_v29, %v2741_v16  ;;  %v3669_v33 = vpop.f32.mrb[51].mxu1 }
0x117d   : > { %v2897_v0 = vsel %vm1231_vm1, %v2894_v32, 0.0  ;;  %v2901_v34 = vmul.f32 %v2894_v32, %v2894_v32 }
0x117e   : > { %2898 = vadd.xlane.f32.xlu0 %v2897_v0 }
0x117f   : > { %v2902_v35 = vsel %vm1231_vm1, %v2901_v34, 0.0 }
0x1180   : > { %2903 = vadd.xlane.f32.xlu1 %v2902_v35 }
0x120b   : > { %v2899_v36 = vpop.xlane.xlu0 %2898 }
0x120c   : > { %v2900_v37 = vmul.f32 0.03125, %v2899_v36 }
0x120d   : > { %v2904_v38 = vpop.xlane.xlu1 %2903 }
0x120e   : > { %v2906_v39 = vmul.f32 %v2900_v37, %v2900_v37  ;;  %v2905_v40 = vmul.f32 0.03125, %v2904_v38  ;;  %v2908_v44 = vsub.f32 %v2894_v32, %v2900_v37 }
0x1210   : > { %v2907_v41 = vsub.f32 %v2905_v40, %v2906_v39 }
0x1212   : > { %v2909_v42 = vadd.f32 1e-05, %v2907_v41 }
0x1214   : > { %4010 = vrsqrt.f32 %v2909_v42 }
0x121e   : > { %v4011_v46 = vpop.eup %4010 }
0x121f   : > { %v2911_v48 = vmul.f32 %v4011_v46, %v2908_v44 }
0x1221   : > { %v2918_v50 = vmul.f32 %v3420_v47, %v2911_v48 }
0x1223   : > { %v2925_v51 = vadd.f32 %v3421_v49, %v2918_v50 }
0x1225   : > { %v2926_v52 = vmul.f32 %v2925_v51, %v5860_v43 }
0x1227   : > { %v2927_v53 = vpack.c.bf16 %v2926_v52, %v2926_v52 }
0x1229   : > { %2929 = vst.msk [vmem:[%s1186_s3] sm:$0xf] %vm2928_vm11, %v2927_v53 }
0x122a   : > { %4709 = shalt.err (!%p4706_p1)
}
0x122b   : > { %s4710_s17 = scalar_lea.hbm %s5966_s27, 64  ;;  %s4714_s9 = scalar_lea.hbm %s6206_s25, 128 }
0x122c   : > { %p4711_p8 = scmp.ne.s32.totalorder %s5966_s27, %s4710_s17  ;;  %p4715_p10 = scmp.lt.u32.totalorder %s5966_s27, %s6206_s25 }
0x122d   : > { %p4716_p3 = scmp.lt.u32.totalorder %s4714_s9, %s4710_s17  ;;  %p4718_p13 = scmp.lt.u32.totalorder %s4710_s17, %s5966_s27 }
0x122e   : > { %p4712_p9 = pnand %p4711_p8, %p6207_p6 }
0x122f   : > { %p4717_p12 = por %p4716_p3, %p4715_p10 }
0x1230   : > { %p4713_p11 = pneg %p4712_p9 }
0x1231   : > { %p4719_p4 = por %p4718_p13, %p4717_p12 }
0x1233   : > { %p4720_p7 = pnand %p4719_p4, %p4713_p11 }
0x1235   : > { %4723 = shalt.err (!%p4720_p7)
}
0x1236   : > { %3754 = dma.vmem_to_hbm [thread:$0]  (%p6207_p6), %s5968_s28, 64, %s5966_s27, %s2931_s18  }
0x1237 PF: > { %s6208_s23 = sld [smem:[#allocation56_spill]]  ;;  %s6209_s29 = sld [smem:[#allocation65_spill]] }
0x1238   : > { %s6210_s3 = sld [smem:[#allocation59_spill]] }
0x123d   : > { %s2957_s8 = sand.u32 1, %s6208_s23   ;;  %p6211_p0 = scmp.ne.s32.totalorder %s6209_s29, 0 }
0x123e   : > { %p6212_p2 = scmp.ge.s32.totalorder %s6210_s3, 2  ;;  %s2958_s11 = scalar_lea.sflag [#allocation4], %s2957_s8 }
0x1240   : > { %p3831_p5 = pnand %p6212_p2, %p6211_p0 }
0x1242   : > { %4805 = dma.done.wait (!%p3831_p5), %s2958_s11, 64  }
0x1243   : > { %4807 = vsyncadd (!%p3831_p5), %s2958_s11, 4294967232  ;;  %s58_s2 = sadd.s32 1, %s6210_s3   ;;  %s6213_s0 = sld [smem:[#allocation57_spill]] }
0x1244   : > { %p55_p1 = scmp.ge.s32.totalorder %s58_s2, 4   ;;  %s6214_s27 = sld [smem:[#allocation64_spill]] }
0x1245   : > { %s6215_s16 = sld [smem:[#allocation62_spill]]  ;;  %s6216_s5 = smov %s4814_s26 }
0x1246   : > { %s6218_s28 = smov %s4826_s6  ;;  %57 = sbr.rel (!%p55_p1) target bundleno = 47 (0x2f), region = 302 }
0x1249   : > { %s6217_s26 = smov %s6213_s0 }
0x124b   : > { %s6219_s6 = smov %s6215_s16 }
0x124d   :  { %2963 = vsyncpa [#allocation3], 1 }
0x124e   :  { %2965 = vsyncpa [#allocation3 + $0x1], 1 }
0x124f   :  { %2966 = vsyncpa [#allocation6], 1 }
0x1250   :  { %2968 = vsyncpa [#allocation6 + $0x1], 1 }
0x1251   :  { %2969 = vsyncpa [#allocation9], 1 }
0x1252   :  { %2971 = vsyncpa [#allocation9 + $0x1], 1 }
0x1253   :  { %2972 = vsyncpa [#allocation12], 1 }
0x1254   :  { %2974 = vsyncpa [#allocation12 + $0x1], 1 }
0x1255   :  { %2975 = vsyncpa [#allocation15], 1 }
0x1256   :  { %2976 = vsyncpa [#allocation18], 1 }
0x1257   :  { %2977 = vsyncpa [#allocation21], 1 }
0x1258   :  { %2978 = vsyncpa [#allocation24], 1 }
0x1259   :  { %2979 = vsyncpa [#allocation27], 1 }
0x125a   :  { %2980 = vsyncpa [#allocation30], 1 }
0x125b   :  { %2981 = vsyncpa [#allocation33], 1 }
0x125c   :  { %2982 = vsyncpa [#allocation36], 1 }
0x125d   :  { %2983 = vsyncpa [#allocation39], 1 }
0x125e   :  { %2984 = vsyncpa [#allocation4], 1 }
0x125f   :  { %2986 = vsyncpa [#allocation4 + $0x1], 1 }

</bundles_post_ra>
